<compile_context>
chip_gen: v7x
topology: tpu7x:2x2x1
jax: 0.10.0
libtpu: 0.0.40
codegen_flags: <defaults>
</compile_context>

<pallas_src>
import jax
import jax.numpy as jnp
from jax.experimental import pallas as pl
from jax.experimental.pallas import tpu as pltpu

# ---------------------------------------------------------------------------
# Model dimensions (fixed by the module).
# ---------------------------------------------------------------------------
EMB1, EMB2, Z_DIM = 256, 512, 1024   # Meta_Embadding widths
H_DYN = 256                          # dynamic (generated) hidden layer width
LANES = 128
SM_COLS = 2 * H_DYN + LANES          # concatenated small heads: [ b1 | W2 | b2 | 0 ]


def _round_up(x, m):
    return (x + m - 1) // m * m


def _vmem_capacity_bytes():
    try:
        return int(pltpu.get_tpu_info().vmem_capacity_bytes)
    except Exception:                                   # pragma: no cover
        return 64 * 1024 * 1024                         # conservative (v7x per-TC)


# ---------------------------------------------------------------------------
# Pallas kernel.
# Grid = (critic c, head-1 column tile j).  Per-critic weights are stacked on
# a leading axis of size 2 and selected by c; the big head-1 weight generator
# (Z_DIM x S_pad*H) is streamed tile-by-tile over j and its contribution to
# the dynamic hidden layer is accumulated into VMEM scratch.
# ---------------------------------------------------------------------------
def _hyper_q_kernel(
    meta_ref,            # (Bp, A)            f32   — shared by both critics
    base_ref,            # (nj, Bp, t_s)      f32   — resident, indexed by j
    e1w_ref, e1b_ref,    # (1, A, 256)/(1, 1, 256)       bf16
    e2w_ref, e2b_ref,    # (1, 256, 512)/(1, 1, 512)     bf16
    e3w_ref, e3b_ref,    # (1, 512, 1024)/(1, 1, 1024)   bf16
    h1w_w_ref,           # (1, 1024, tn)      bf16  — permuted head-1 W tile j
    h1w_b_ref,           # (1, 1, tn)         bf16
    wsm_ref, bsm_ref,    # (1, 1024, SM_COLS)/(1, 1, SM_COLS) bf16
    out_ref,             # (1, Bp, 128)       f32
    z_sc,                # (Bp, 1024)         f32   VMEM scratch
    gs_sc,               # (Bp, SM_COLS)      f32   VMEM scratch
    acc_sc,              # (Bp, 256)          f32   VMEM scratch
):
    f32 = jnp.float32
    bf16 = jnp.bfloat16
    j = pl.program_id(1)
    Bp, H = acc_sc.shape

    # ---- once per critic: Meta_Embadding MLP -> z, small heads, zero acc ----
    @pl.when(j == 0)
    def _():
        m = meta_ref[...].astype(bf16)
        h = jnp.dot(m, e1w_ref[0], preferred_element_type=f32) + e1b_ref[0].astype(f32)
        h = jnp.maximum(h, 0.0).astype(bf16)
        h = jnp.dot(h, e2w_ref[0], preferred_element_type=f32) + e2b_ref[0].astype(f32)
        h = jnp.maximum(h, 0.0).astype(bf16)
        z = jnp.dot(h, e3w_ref[0], preferred_element_type=f32) + e3b_ref[0].astype(f32)
        z = jnp.maximum(z, 0.0)
        z_sc[...] = z                                         # keep z in f32
        # Small heads (b1 | W2 | b2) generated here so the 1024xSM_COLS matmul
        # hides under the pipelined h1w tile prefetches, not in the epilogue.
        gs_sc[...] = (jnp.dot(z.astype(bf16), wsm_ref[0], preferred_element_type=f32)
                      + bsm_ref[0].astype(f32))
        acc_sc[...] = jnp.zeros_like(acc_sc)

    # ---- per tile: generate tn columns of W1 and contract against base -----
    # Columns are host-permuted so permuted column s*H + h == W1[b, h, s]; this
    # tile covers state features s = j*t_s .. (j+1)*t_s - 1.
    zb = z_sc[...].astype(bf16)
    gw1 = jnp.dot(zb, h1w_w_ref[0], preferred_element_type=f32) + h1w_b_ref[0].astype(f32)
    bt = base_ref[j]                                          # (Bp, t_s) f32
    t_s = bt.shape[-1]
    parts = [gw1[:, s * H:(s + 1) * H] * bt[:, s:s + 1] for s in range(t_s)]
    while len(parts) > 1:                                     # balanced tree-add
        nxt = [parts[i] + parts[i + 1] for i in range(0, len(parts) - 1, 2)]
        if len(parts) % 2:
            nxt.append(parts[-1])
        parts = nxt
    acc_sc[...] = acc_sc[...] + parts[0]

    # ---- once per critic: cheap epilogue (relu + dot-reduce + store) --------
    @pl.when(j == pl.num_programs(1) - 1)
    def _():
        gs = gs_sc[...]
        gb1 = gs[:, 0:H]
        gw2 = gs[:, H:2 * H]
        gb2 = gs[:, 2 * H:2 * H + 1]
        out1 = jnp.maximum(acc_sc[...] + gb1, 0.0)            # (Bp, H)
        q = jnp.sum(gw2 * out1, axis=-1, keepdims=True) + gb2 # (Bp, 1)
        out_ref[...] = jnp.broadcast_to(q, (Bp, LANES))[None].astype(out_ref.dtype)


# ---------------------------------------------------------------------------
# Parameter init (deterministic, PyTorch nn.Linear layout: weight (out, in)).
# ---------------------------------------------------------------------------
def _linear_params(key, in_dim, out_dim, w_std=None):
    kw, kb = jax.random.split(key)
    if w_std is None:
        bound = 1.0 / jnp.sqrt(jnp.float32(in_dim))
        w = jax.random.uniform(kw, (out_dim, in_dim), jnp.float32, -bound, bound)
        b = jax.random.uniform(kb, (out_dim,), jnp.float32, -bound, bound)
    else:
        w = w_std * jax.random.normal(kw, (out_dim, in_dim), jnp.float32)
        b = w_std * jax.random.normal(kb, (out_dim,), jnp.float32)
    return w, b


def init_hyper_q(key, meta_dim, base_dim):
    ks = jax.random.split(key, 7)
    return {
        "e1": _linear_params(ks[0], meta_dim, EMB1),
        "e2": _linear_params(ks[1], EMB1, EMB2),
        "e3": _linear_params(ks[2], EMB2, Z_DIM),
        "h1w": _linear_params(ks[3], Z_DIM, H_DYN * base_dim, w_std=0.05),
        "h1b": _linear_params(ks[4], Z_DIM, H_DYN, w_std=0.05),
        "h2w": _linear_params(ks[5], Z_DIM, 1 * H_DYN, w_std=0.008),
        "h2b": _linear_params(ks[6], Z_DIM, 1, w_std=0.008),
    }


# ---------------------------------------------------------------------------
# One-time weight preparation (hoisted out of the forward path):
#   transpose to (in, out), permute head-1 columns (h*S+s -> s*H+h), pad,
#   concatenate small heads, cast everything streamed to bf16.
# ---------------------------------------------------------------------------
def _prep_one(p, base_dim, s_pad):
    bf16 = jnp.bfloat16

    def t(wb):
        w, b = wb
        return w.T.astype(bf16), b.reshape(1, -1).astype(bf16)

    e1w, e1b = t(p["e1"])
    e2w, e2b = t(p["e2"])
    e3w, e3b = t(p["e3"])

    # Head1 weight generator: flat output index h*S+s  ->  permuted column s*H+h
    w, b = p["h1w"]                                        # (H*S, Z), (H*S,)
    wt = (w.T.reshape(Z_DIM, H_DYN, base_dim)
              .transpose(0, 2, 1)
              .reshape(Z_DIM, base_dim * H_DYN))
    bt = b.reshape(H_DYN, base_dim).T.reshape(1, base_dim * H_DYN)
    pad_cols = (s_pad - base_dim) * H_DYN
    h1w_w = jnp.pad(wt, ((0, 0), (0, pad_cols))).astype(bf16)
    h1w_b = jnp.pad(bt, ((0, 0), (0, pad_cols))).astype(bf16)

    # Small heads concatenated: [ b1 generator | W2 generator | b2 generator | 0 ]
    h1b_w, h1b_b = t(p["h1b"])
    h2w_w, h2w_b = t(p["h2w"])
    h2b_w, h2b_b = t(p["h2b"])
    wsm = jnp.zeros((Z_DIM, SM_COLS), bf16)
    wsm = (wsm.at[:, 0:H_DYN].set(h1b_w)
              .at[:, H_DYN:2 * H_DYN].set(h2w_w)
              .at[:, 2 * H_DYN:2 * H_DYN + 1].set(h2b_w))
    bsm = jnp.zeros((1, SM_COLS), bf16)
    bsm = (bsm.at[:, 0:H_DYN].set(h1b_b)
              .at[:, H_DYN:2 * H_DYN].set(h2w_b)
              .at[:, 2 * H_DYN:2 * H_DYN + 1].set(h2b_b))

    return (e1w, e1b, e2w, e2b, e3w, e3b, h1w_w, h1w_b, wsm, bsm)


def prepare_critic_weights(params_q1, params_q2, base_dim, s_pad):
    a = _prep_one(params_q1, base_dim, s_pad)
    b = _prep_one(params_q2, base_dim, s_pad)
    return tuple(jnp.stack([x, y]) for x, y in zip(a, b))


# ---------------------------------------------------------------------------
# Forward builder: returns a jitted forward(weights, state, action) -> (q1, q2)
# ---------------------------------------------------------------------------
def build_hyper_critic_reverse(state_dim, action_dim, params_q1, params_q2,
                               t_s_max=None):
    vmem_cap = _vmem_capacity_bytes()
    if t_s_max is None:
        # 128 MiB parts (v5e/v6e) take ~16 MiB streaming tiles; 64 MiB (v7x) ~8 MiB.
        t_s_max = 32 if vmem_cap >= 100 * 1024 * 1024 else 16
    nj = -(-state_dim // t_s_max)               # number of column tiles
    t_s = -(-state_dim // nj)                   # minimal-slack tile width (ceil)
    s_pad = nj * t_s
    tn = t_s * H_DYN                            # tile width (multiple of 128)

    # Weight permutation / packing happens once, NOT per forward.
    weights = prepare_critic_weights(params_q1, params_q2, state_dim, s_pad)

    def forward(weights, state, action):
        B = state.shape[0]
        Bp = max(16, _round_up(B, 16))          # bf16 native sublane tile (16,128)
        state_p = jnp.zeros((Bp, s_pad), jnp.float32).at[:B, :state_dim].set(state)
        action_p = jnp.zeros((Bp, action_dim), jnp.float32).at[:B].set(action)
        # base3[j, b, s] = state[b, j*t_s + s]; resident for the whole critic,
        # indexed by j inside the kernel (no per-step base DMAs).
        base3 = state_p.reshape(Bp, nj, t_s).transpose(1, 0, 2)

        (e1w, e1b, e2w, e2b, e3w, e3b, h1w_w, h1w_b, wsm, bsm) = weights

        def c_spec(shape):  # per-critic block, constant across the tile axis
            return pl.BlockSpec((1,) + shape, lambda c, j: (c, 0, 0))

        in_specs = [
            pl.BlockSpec((Bp, action_dim), lambda c, j: (0, 0)),      # meta (shared)
            pl.BlockSpec((nj, Bp, t_s), lambda c, j: (0, 0, 0)),      # base (resident)
            c_spec((action_dim, EMB1)), c_spec((1, EMB1)),
            c_spec((EMB1, EMB2)),       c_spec((1, EMB2)),
            c_spec((EMB2, Z_DIM)),      c_spec((1, Z_DIM)),
            pl.BlockSpec((1, Z_DIM, tn), lambda c, j: (c, 0, j)),     # streamed h1w W
            pl.BlockSpec((1, 1, tn), lambda c, j: (c, 0, j)),         # streamed h1w b
            c_spec((Z_DIM, SM_COLS)),   c_spec((1, SM_COLS)),
        ]
        out_spec = pl.BlockSpec((1, Bp, LANES), lambda c, j: (c, 0, 0))

        # VMEM budget derived from actual block sizes (default pipeline
        # double-buffers every block) + scratch, capped per generation.
        const_bf16 = (action_dim * EMB1 + EMB1 + EMB1 * EMB2 + EMB2
                      + EMB2 * Z_DIM + Z_DIM + Z_DIM * SM_COLS + SM_COLS)
        stream_bf16 = Z_DIM * tn + tn
        io_f32 = Bp * action_dim + nj * Bp * t_s + Bp * LANES
        scratch_f32 = Bp * (Z_DIM + SM_COLS + H_DYN)
        need = (2 * 2 * (const_bf16 + stream_bf16)
                + 2 * 4 * io_f32 + 4 * scratch_f32)
        vmem_limit = int(max(16 * 1024 * 1024,
                             min(int(0.75 * vmem_cap), need + 8 * 1024 * 1024)))

        # Advisory cost: memory-dominated kernel (helps XLA schedule around it).
        macs = Bp * (action_dim * EMB1 + EMB1 * EMB2 + EMB2 * Z_DIM
                     + Z_DIM * s_pad * H_DYN + Z_DIM * SM_COLS)
        bytes_acc = (2 * 2 * (Z_DIM * s_pad * H_DYN + s_pad * H_DYN + const_bf16)
                     + 4 * (Bp * action_dim + nj * Bp * t_s) + 2 * 4 * Bp * LANES)
        cost = pl.CostEstimate(flops=int(2 * 2 * macs), transcendentals=0,
                               bytes_accessed=int(bytes_acc))

        out = pl.pallas_call(
            _hyper_q_kernel,
            out_shape=jax.ShapeDtypeStruct((2, Bp, LANES), jnp.float32),
            grid_spec=pltpu.PrefetchScalarGridSpec(
                num_scalar_prefetch=0,
                grid=(2, nj),
                in_specs=in_specs,
                out_specs=out_spec,
                scratch_shapes=[pltpu.VMEM((Bp, Z_DIM), jnp.float32),
                                pltpu.VMEM((Bp, SM_COLS), jnp.float32),
                                pltpu.VMEM((Bp, H_DYN), jnp.float32)],
            ),
            compiler_params=pltpu.CompilerParams(
                dimension_semantics=("parallel", "arbitrary"),
                vmem_limit_bytes=vmem_limit,
            ),
            cost_estimate=cost,
        )(action_p, base3, e1w, e1b, e2w, e2b, e3w, e3b, h1w_w, h1w_b, wsm, bsm)

        q1 = out[0, :B, 0:1]
        q2 = out[1, :B, 0:1]
        return q1, q2

    return jax.jit(forward), weights


# ---------------------------------------------------------------------------
# Pure-JAX reference (PyTorch forward semantics, with weights rounded to bf16
# to match what the kernel streams; activations stay f32).
# ---------------------------------------------------------------------------
def hyper_q_ref(p, meta_v, base_v):
    rb = lambda x: x.astype(jnp.bfloat16).astype(jnp.float32)
    relu = lambda x: jnp.maximum(x, 0.0)
    B, S = base_v.shape
    h = relu(meta_v @ rb(p["e1"][0]).T + rb(p["e1"][1]))
    h = relu(h @ rb(p["e2"][0]).T + rb(p["e2"][1]))
    z = relu(h @ rb(p["e3"][0]).T + rb(p["e3"][1]))
    w1 = (z @ rb(p["h1w"][0]).T + rb(p["h1w"][1])).reshape(B, H_DYN, S)
    b1 = (z @ rb(p["h1b"][0]).T + rb(p["h1b"][1])).reshape(B, H_DYN, 1)
    w2 = (z @ rb(p["h2w"][0]).T + rb(p["h2w"][1])).reshape(B, 1, H_DYN)
    b2 = (z @ rb(p["h2b"][0]).T + rb(p["h2b"][1])).reshape(B, 1, 1)
    out = relu(jnp.matmul(w1, base_v[:, :, None]) + b1)   # (B, H, 1)
    q = jnp.matmul(w2, out) + b2                          # (B, 1, 1)
    return q.reshape(B, 1)


def _run_config(state_dim, action_dim, batch, seed, t_s_max=None):
    key = jax.random.PRNGKey(seed)
    k_state, k_action, k_q1, k_q2 = jax.random.split(key, 4)
    state = jax.random.normal(k_state, (batch, state_dim), jnp.float32)
    action = jax.random.normal(k_action, (batch, action_dim), jnp.float32)

    params_q1 = init_hyper_q(k_q1, action_dim, state_dim)   # meta_v_dim = action_dim
    params_q2 = init_hyper_q(k_q2, action_dim, state_dim)   # base_v_dim = state_dim

    forward, weights = build_hyper_critic_reverse(
        state_dim, action_dim, params_q1, params_q2, t_s_max=t_s_max)

    # Hyper_Critic_Reverse.forward(state, action): q = Q(action, state)
    q1, q2 = forward(weights, state, action)
    q1 = jax.block_until_ready(q1)
    q2 = jax.block_until_ready(q2)

    q1_ref = hyper_q_ref(params_q1, action, state)
    q2_ref = hyper_q_ref(params_q2, action, state)
    assert q1.shape == (batch, 1) and q2.shape == (batch, 1)
    assert jnp.allclose(q1, q1_ref, atol=5e-2, rtol=5e-2), \
        f"q1 mismatch (S={state_dim}, A={action_dim}, B={batch})"
    assert jnp.allclose(q2, q2_ref, atol=5e-2, rtol=5e-2), \
        f"q2 mismatch (S={state_dim}, A={action_dim}, B={batch})"


# ---------------------------------------------------------------------------
# Demo / verification
# ---------------------------------------------------------------------------
if __name__ == "__main__":
    # Config 1: the original small case (single tile, padded batch).
    _run_config(state_dim=8, action_dim=4, batch=4, seed=0)
    # Config 2: exercises state_dim % t_s != 0 (padded head-1 columns),
    # multi-tile accumulation (nj=3), and batch not a multiple of 16.
    _run_config(state_dim=19, action_dim=6, batch=5, seed=0, t_s_max=8)
    print("KERNEL_OK")
</pallas_src>

<mosaic_0001>
module attributes {stable_mosaic.version = 11 : i64} {
  func.func @_hyper_q_kernel(%arg0: i32, %arg1: i32, %arg2: memref<16x4xf32, #tpu.memory_space<vmem>>, %arg3: memref<1x16x8xf32, #tpu.memory_space<vmem>>, %arg4: memref<1x4x256xbf16, #tpu.memory_space<vmem>>, %arg5: memref<1x1x256xbf16, #tpu.memory_space<vmem>>, %arg6: memref<1x256x512xbf16, #tpu.memory_space<vmem>>, %arg7: memref<1x1x512xbf16, #tpu.memory_space<vmem>>, %arg8: memref<1x512x1024xbf16, #tpu.memory_space<vmem>>, %arg9: memref<1x1x1024xbf16, #tpu.memory_space<vmem>>, %arg10: memref<1x1024x2048xbf16, #tpu.memory_space<vmem>>, %arg11: memref<1x1x2048xbf16, #tpu.memory_space<vmem>>, %arg12: memref<1x1024x640xbf16, #tpu.memory_space<vmem>>, %arg13: memref<1x1x640xbf16, #tpu.memory_space<vmem>>, %arg14: memref<1x16x128xf32, #tpu.memory_space<vmem>>, %arg15: memref<16x1024xf32, #tpu.memory_space<vmem>>, %arg16: memref<16x640xf32, #tpu.memory_space<vmem>>, %arg17: memref<16x256xf32, #tpu.memory_space<vmem>>) attributes {dimension_semantics = [#tpu.dimension_semantics<parallel>, #tpu.dimension_semantics<arbitrary>], iteration_bounds = array<i64: 2, 1>, scalar_prefetch = 0 : i64, scratch_operands = 3 : i64, tpu.core_type = #tpu.core_type<tc>, window_params = [{pipeline_mode = #tpu.pipeline_mode<synchronous>, transform_indices = @transform_0, window_bounds = array<i64: 16, 4>}, {pipeline_mode = #tpu.pipeline_mode<synchronous>, transform_indices = @transform_1, window_bounds = array<i64: 1, 16, 8>}, {transform_indices = @transform_2, window_bounds = array<i64: 1, 4, 256>}, {transform_indices = @transform_3, window_bounds = array<i64: 1, 1, 256>}, {transform_indices = @transform_4, window_bounds = array<i64: 1, 256, 512>}, {transform_indices = @transform_5, window_bounds = array<i64: 1, 1, 512>}, {transform_indices = @transform_6, window_bounds = array<i64: 1, 512, 1024>}, {transform_indices = @transform_7, window_bounds = array<i64: 1, 1, 1024>}, {transform_indices = @transform_8, window_bounds = array<i64: 1, 1024, 2048>}, {transform_indices = @transform_9, window_bounds = array<i64: 1, 1, 2048>}, {transform_indices = @transform_10, window_bounds = array<i64: 1, 1024, 640>}, {transform_indices = @transform_11, window_bounds = array<i64: 1, 1, 640>}, {transform_indices = @transform_12, window_bounds = array<i64: 1, 16, 128>}]} {
    %c0_i32 = arith.constant 0 : i32
    %0 = arith.cmpi eq, %arg1, %c0_i32 : i32
    %1 = arith.extui %0 : i1 to i32
    %c0_i32_0 = arith.constant 0 : i32
    %2 = arith.cmpi ne, %1, %c0_i32_0 : i32
    scf.if %2 {
      %c0_16 = arith.constant 0 : index
      %c0_17 = arith.constant 0 : index
      %61 = vector.load %arg2[%c0_16, %c0_17] : memref<16x4xf32, #tpu.memory_space<vmem>>, vector<16x4xf32>
      %62 = arith.truncf %61 : vector<16x4xf32> to vector<16x4xbf16>
      %c0_18 = arith.constant 0 : index
      %c0_19 = arith.constant 0 : index
      %c0_20 = arith.constant 0 : index
      %63 = vector.load %arg4[%c0_18, %c0_19, %c0_20] : memref<1x4x256xbf16, #tpu.memory_space<vmem>>, vector<1x4x256xbf16>
      %64 = vector.shape_cast %63 : vector<1x4x256xbf16> to vector<4x256xbf16>
      %cst_21 = arith.constant dense<0.000000e+00> : vector<16x256xf32>
      %65 = tpu.matmul %62, %64, %cst_21 {dimension_numbers = #tpu.dot_dimension_numbers<[1], [0], [0], [1], [0, 0, 1, 1], [], []>} : vector<16x4xbf16>, vector<4x256xbf16>, vector<16x256xf32> -> vector<16x256xf32>
      %c0_22 = arith.constant 0 : index
      %c0_23 = arith.constant 0 : index
      %c0_24 = arith.constant 0 : index
      %66 = vector.load %arg5[%c0_22, %c0_23, %c0_24] : memref<1x1x256xbf16, #tpu.memory_space<vmem>>, vector<1x1x256xbf16>
      %67 = vector.shape_cast %66 : vector<1x1x256xbf16> to vector<1x256xbf16>
      %68 = arith.extf %67 : vector<1x256xbf16> to vector<1x256xf32>
      %69 = vector.broadcast %68 : vector<1x256xf32> to vector<16x256xf32>
      %70 = arith.addf %65, %69 : vector<16x256xf32>
      %cst_25 = arith.constant 0.000000e+00 : f32
      %71 = vector.broadcast %cst_25 : f32 to vector<16x256xf32>
      %72 = arith.maximumf %70, %71 : vector<16x256xf32>
      %73 = arith.truncf %72 : vector<16x256xf32> to vector<16x256xbf16>
      %c0_26 = arith.constant 0 : index
      %c0_27 = arith.constant 0 : index
      %c0_28 = arith.constant 0 : index
      %74 = vector.load %arg6[%c0_26, %c0_27, %c0_28] : memref<1x256x512xbf16, #tpu.memory_space<vmem>>, vector<1x256x512xbf16>
      %75 = vector.shape_cast %74 : vector<1x256x512xbf16> to vector<256x512xbf16>
      %cst_29 = arith.constant dense<0.000000e+00> : vector<16x512xf32>
      %76 = tpu.matmul %73, %75, %cst_29 {dimension_numbers = #tpu.dot_dimension_numbers<[1], [0], [0], [1], [0, 0, 1, 1], [], []>} : vector<16x256xbf16>, vector<256x512xbf16>, vector<16x512xf32> -> vector<16x512xf32>
      %c0_30 = arith.constant 0 : index
      %c0_31 = arith.constant 0 : index
      %c0_32 = arith.constant 0 : index
      %77 = vector.load %arg7[%c0_30, %c0_31, %c0_32] : memref<1x1x512xbf16, #tpu.memory_space<vmem>>, vector<1x1x512xbf16>
      %78 = vector.shape_cast %77 : vector<1x1x512xbf16> to vector<1x512xbf16>
      %79 = arith.extf %78 : vector<1x512xbf16> to vector<1x512xf32>
      %80 = vector.broadcast %79 : vector<1x512xf32> to vector<16x512xf32>
      %81 = arith.addf %76, %80 : vector<16x512xf32>
      %cst_33 = arith.constant 0.000000e+00 : f32
      %82 = vector.broadcast %cst_33 : f32 to vector<16x512xf32>
      %83 = arith.maximumf %81, %82 : vector<16x512xf32>
      %84 = arith.truncf %83 : vector<16x512xf32> to vector<16x512xbf16>
      %c0_34 = arith.constant 0 : index
      %c0_35 = arith.constant 0 : index
      %c0_36 = arith.constant 0 : index
      %85 = vector.load %arg8[%c0_34, %c0_35, %c0_36] : memref<1x512x1024xbf16, #tpu.memory_space<vmem>>, vector<1x512x1024xbf16>
      %86 = vector.shape_cast %85 : vector<1x512x1024xbf16> to vector<512x1024xbf16>
      %cst_37 = arith.constant dense<0.000000e+00> : vector<16x1024xf32>
      %87 = tpu.matmul %84, %86, %cst_37 {dimension_numbers = #tpu.dot_dimension_numbers<[1], [0], [0], [1], [0, 0, 1, 1], [], []>} : vector<16x512xbf16>, vector<512x1024xbf16>, vector<16x1024xf32> -> vector<16x1024xf32>
      %c0_38 = arith.constant 0 : index
      %c0_39 = arith.constant 0 : index
      %c0_40 = arith.constant 0 : index
      %88 = vector.load %arg9[%c0_38, %c0_39, %c0_40] : memref<1x1x1024xbf16, #tpu.memory_space<vmem>>, vector<1x1x1024xbf16>
      %89 = vector.shape_cast %88 : vector<1x1x1024xbf16> to vector<1x1024xbf16>
      %90 = arith.extf %89 : vector<1x1024xbf16> to vector<1x1024xf32>
      %91 = vector.broadcast %90 : vector<1x1024xf32> to vector<16x1024xf32>
      %92 = arith.addf %87, %91 : vector<16x1024xf32>
      %cst_41 = arith.constant 0.000000e+00 : f32
      %93 = vector.broadcast %cst_41 : f32 to vector<16x1024xf32>
      %94 = arith.maximumf %92, %93 : vector<16x1024xf32>
      %c0_42 = arith.constant 0 : index
      %c0_43 = arith.constant 0 : index
      %95 = vector.load %arg15[%c0_42, %c0_43] : memref<16x1024xf32, #tpu.memory_space<vmem>>, vector<16x1024xf32>
      tpu.vector_store %arg15[%c0_42, %c0_43], %94 {strides = array<i32>} : memref<16x1024xf32, #tpu.memory_space<vmem>>, vector<16x1024xf32>,
      %96 = arith.truncf %94 : vector<16x1024xf32> to vector<16x1024xbf16>
      %c0_44 = arith.constant 0 : index
      %c0_45 = arith.constant 0 : index
      %c0_46 = arith.constant 0 : index
      %97 = vector.load %arg12[%c0_44, %c0_45, %c0_46] : memref<1x1024x640xbf16, #tpu.memory_space<vmem>>, vector<1x1024x640xbf16>
      %98 = vector.shape_cast %97 : vector<1x1024x640xbf16> to vector<1024x640xbf16>
      %cst_47 = arith.constant dense<0.000000e+00> : vector<16x640xf32>
      %99 = tpu.matmul %96, %98, %cst_47 {dimension_numbers = #tpu.dot_dimension_numbers<[1], [0], [0], [1], [0, 0, 1, 1], [], []>} : vector<16x1024xbf16>, vector<1024x640xbf16>, vector<16x640xf32> -> vector<16x640xf32>
      %c0_48 = arith.constant 0 : index
      %c0_49 = arith.constant 0 : index
      %c0_50 = arith.constant 0 : index
      %100 = vector.load %arg13[%c0_48, %c0_49, %c0_50] : memref<1x1x640xbf16, #tpu.memory_space<vmem>>, vector<1x1x640xbf16>
      %101 = vector.shape_cast %100 : vector<1x1x640xbf16> to vector<1x640xbf16>
      %102 = arith.extf %101 : vector<1x640xbf16> to vector<1x640xf32>
      %103 = vector.broadcast %102 : vector<1x640xf32> to vector<16x640xf32>
      %104 = arith.addf %99, %103 : vector<16x640xf32>
      %c0_51 = arith.constant 0 : index
      %c0_52 = arith.constant 0 : index
      %105 = vector.load %arg16[%c0_51, %c0_52] : memref<16x640xf32, #tpu.memory_space<vmem>>, vector<16x640xf32>
      tpu.vector_store %arg16[%c0_51, %c0_52], %104 {strides = array<i32>} : memref<16x640xf32, #tpu.memory_space<vmem>>, vector<16x640xf32>,
      %cst_53 = arith.constant 0.000000e+00 : f32
      %106 = vector.broadcast %cst_53 : f32 to vector<16x256xf32>
      %c0_54 = arith.constant 0 : index
      %c0_55 = arith.constant 0 : index
      %107 = vector.load %arg17[%c0_54, %c0_55] : memref<16x256xf32, #tpu.memory_space<vmem>>, vector<16x256xf32>
      tpu.vector_store %arg17[%c0_54, %c0_55], %106 {strides = array<i32>} : memref<16x256xf32, #tpu.memory_space<vmem>>, vector<16x256xf32>,
    } else {
    }
    %c0 = arith.constant 0 : index
    %c0_1 = arith.constant 0 : index
    %3 = vector.load %arg15[%c0, %c0_1] : memref<16x1024xf32, #tpu.memory_space<vmem>>, vector<16x1024xf32>
    %4 = arith.truncf %3 : vector<16x1024xf32> to vector<16x1024xbf16>
    %c0_2 = arith.constant 0 : index
    %c0_3 = arith.constant 0 : index
    %c0_4 = arith.constant 0 : index
    %5 = vector.load %arg10[%c0_2, %c0_3, %c0_4] : memref<1x1024x2048xbf16, #tpu.memory_space<vmem>>, vector<1x1024x2048xbf16>
    %6 = vector.shape_cast %5 : vector<1x1024x2048xbf16> to vector<1024x2048xbf16>
    %cst = arith.constant dense<0.000000e+00> : vector<16x2048xf32>
    %7 = tpu.matmul %4, %6, %cst {dimension_numbers = #tpu.dot_dimension_numbers<[1], [0], [0], [1], [0, 0, 1, 1], [], []>} : vector<16x1024xbf16>, vector<1024x2048xbf16>, vector<16x2048xf32> -> vector<16x2048xf32>
    %c0_5 = arith.constant 0 : index
    %c0_6 = arith.constant 0 : index
    %c0_7 = arith.constant 0 : index
    %8 = vector.load %arg11[%c0_5, %c0_6, %c0_7] : memref<1x1x2048xbf16, #tpu.memory_space<vmem>>, vector<1x1x2048xbf16>
    %9 = vector.shape_cast %8 : vector<1x1x2048xbf16> to vector<1x2048xbf16>
    %10 = arith.extf %9 : vector<1x2048xbf16> to vector<1x2048xf32>
    %11 = vector.broadcast %10 : vector<1x2048xf32> to vector<16x2048xf32>
    %12 = arith.addf %7, %11 : vector<16x2048xf32>
    %13 = arith.index_cast %arg1 : i32 to index
    %c0_8 = arith.constant 0 : index
    %c0_9 = arith.constant 0 : index
    %14 = vector.load %arg3[%13, %c0_8, %c0_9] : memref<1x16x8xf32, #tpu.memory_space<vmem>>, vector<1x16x8xf32>
    %15 = vector.shape_cast %14 : vector<1x16x8xf32> to vector<16x8xf32>
    %16 = vector.extract_strided_slice %12 {offsets = [0, 0], sizes = [16, 256], strides = [1, 1]} : vector<16x2048xf32> to vector<16x256xf32>
    %17 = vector.extract_strided_slice %15 {offsets = [0, 0], sizes = [16, 1], strides = [1, 1]} : vector<16x8xf32> to vector<16x1xf32>
    %18 = vector.broadcast %17 : vector<16x1xf32> to vector<16x256xf32>
    %19 = arith.mulf %16, %18 : vector<16x256xf32>
    %20 = vector.extract_strided_slice %12 {offsets = [0, 256], sizes = [16, 256], strides = [1, 1]} : vector<16x2048xf32> to vector<16x256xf32>
    %21 = vector.extract_strided_slice %15 {offsets = [0, 1], sizes = [16, 1], strides = [1, 1]} : vector<16x8xf32> to vector<16x1xf32>
    %22 = vector.broadcast %21 : vector<16x1xf32> to vector<16x256xf32>
    %23 = arith.mulf %20, %22 : vector<16x256xf32>
    %24 = vector.extract_strided_slice %12 {offsets = [0, 512], sizes = [16, 256], strides = [1, 1]} : vector<16x2048xf32> to vector<16x256xf32>
    %25 = vector.extract_strided_slice %15 {offsets = [0, 2], sizes = [16, 1], strides = [1, 1]} : vector<16x8xf32> to vector<16x1xf32>
    %26 = vector.broadcast %25 : vector<16x1xf32> to vector<16x256xf32>
    %27 = arith.mulf %24, %26 : vector<16x256xf32>
    %28 = vector.extract_strided_slice %12 {offsets = [0, 768], sizes = [16, 256], strides = [1, 1]} : vector<16x2048xf32> to vector<16x256xf32>
    %29 = vector.extract_strided_slice %15 {offsets = [0, 3], sizes = [16, 1], strides = [1, 1]} : vector<16x8xf32> to vector<16x1xf32>
    %30 = vector.broadcast %29 : vector<16x1xf32> to vector<16x256xf32>
    %31 = arith.mulf %28, %30 : vector<16x256xf32>
    %32 = vector.extract_strided_slice %12 {offsets = [0, 1024], sizes = [16, 256], strides = [1, 1]} : vector<16x2048xf32> to vector<16x256xf32>
    %33 = vector.extract_strided_slice %15 {offsets = [0, 4], sizes = [16, 1], strides = [1, 1]} : vector<16x8xf32> to vector<16x1xf32>
    %34 = vector.broadcast %33 : vector<16x1xf32> to vector<16x256xf32>
    %35 = arith.mulf %32, %34 : vector<16x256xf32>
    %36 = vector.extract_strided_slice %12 {offsets = [0, 1280], sizes = [16, 256], strides = [1, 1]} : vector<16x2048xf32> to vector<16x256xf32>
    %37 = vector.extract_strided_slice %15 {offsets = [0, 5], sizes = [16, 1], strides = [1, 1]} : vector<16x8xf32> to vector<16x1xf32>
    %38 = vector.broadcast %37 : vector<16x1xf32> to vector<16x256xf32>
    %39 = arith.mulf %36, %38 : vector<16x256xf32>
    %40 = vector.extract_strided_slice %12 {offsets = [0, 1536], sizes = [16, 256], strides = [1, 1]} : vector<16x2048xf32> to vector<16x256xf32>
    %41 = vector.extract_strided_slice %15 {offsets = [0, 6], sizes = [16, 1], strides = [1, 1]} : vector<16x8xf32> to vector<16x1xf32>
    %42 = vector.broadcast %41 : vector<16x1xf32> to vector<16x256xf32>
    %43 = arith.mulf %40, %42 : vector<16x256xf32>
    %44 = vector.extract_strided_slice %12 {offsets = [0, 1792], sizes = [16, 256], strides = [1, 1]} : vector<16x2048xf32> to vector<16x256xf32>
    %45 = vector.extract_strided_slice %15 {offsets = [0, 7], sizes = [16, 1], strides = [1, 1]} : vector<16x8xf32> to vector<16x1xf32>
    %46 = vector.broadcast %45 : vector<16x1xf32> to vector<16x256xf32>
    %47 = arith.mulf %44, %46 : vector<16x256xf32>
    %48 = arith.addf %19, %23 : vector<16x256xf32>
    %49 = arith.addf %27, %31 : vector<16x256xf32>
    %50 = arith.addf %35, %39 : vector<16x256xf32>
    %51 = arith.addf %43, %47 : vector<16x256xf32>
    %52 = arith.addf %48, %49 : vector<16x256xf32>
    %53 = arith.addf %50, %51 : vector<16x256xf32>
    %54 = arith.addf %52, %53 : vector<16x256xf32>
    %c0_10 = arith.constant 0 : index
    %c0_11 = arith.constant 0 : index
    %55 = vector.load %arg17[%c0_10, %c0_11] : memref<16x256xf32, #tpu.memory_space<vmem>>, vector<16x256xf32>
    %56 = arith.addf %55, %54 : vector<16x256xf32>
    %c0_12 = arith.constant 0 : index
    %c0_13 = arith.constant 0 : index
    %57 = vector.load %arg17[%c0_12, %c0_13] : memref<16x256xf32, #tpu.memory_space<vmem>>, vector<16x256xf32>
    tpu.vector_store %arg17[%c0_12, %c0_13], %56 {strides = array<i32>} : memref<16x256xf32, #tpu.memory_space<vmem>>, vector<16x256xf32>,
    %c0_i32_14 = arith.constant 0 : i32
    %58 = arith.cmpi eq, %arg1, %c0_i32_14 : i32
    %59 = arith.extui %58 : i1 to i32
    %c0_i32_15 = arith.constant 0 : i32
    %60 = arith.cmpi ne, %59, %c0_i32_15 : i32
    scf.if %60 {
      %c0_16 = arith.constant 0 : index
      %c0_17 = arith.constant 0 : index
      %61 = vector.load %arg16[%c0_16, %c0_17] : memref<16x640xf32, #tpu.memory_space<vmem>>, vector<16x640xf32>
      %62 = vector.extract_strided_slice %61 {offsets = [0, 0], sizes = [16, 256], strides = [1, 1]} : vector<16x640xf32> to vector<16x256xf32>
      %63 = vector.extract_strided_slice %61 {offsets = [0, 256], sizes = [16, 256], strides = [1, 1]} : vector<16x640xf32> to vector<16x256xf32>
      %64 = vector.extract_strided_slice %61 {offsets = [0, 512], sizes = [16, 1], strides = [1, 1]} : vector<16x640xf32> to vector<16x1xf32>
      %c0_18 = arith.constant 0 : index
      %c0_19 = arith.constant 0 : index
      %65 = vector.load %arg17[%c0_18, %c0_19] : memref<16x256xf32, #tpu.memory_space<vmem>>, vector<16x256xf32>
      %66 = arith.addf %65, %62 : vector<16x256xf32>
      %cst_20 = arith.constant 0.000000e+00 : f32
      %67 = vector.broadcast %cst_20 : f32 to vector<16x256xf32>
      %68 = arith.maximumf %66, %67 : vector<16x256xf32>
      %69 = arith.mulf %63, %68 : vector<16x256xf32>
      %cst_21 = arith.constant dense<0.000000e+00> : vector<16xf32>
      %70 = vector.multi_reduction <add>, %69, %cst_21 [1] : vector<16x256xf32> to vector<16xf32>
      %71 = vector.shape_cast %70 : vector<16xf32> to vector<16x1xf32>
      %72 = arith.addf %71, %64 : vector<16x1xf32>
      %73 = vector.shape_cast %72 : vector<16x1xf32> to vector<16x1xf32>
      %74 = vector.broadcast %73 : vector<16x1xf32> to vector<16x128xf32>
      %75 = vector.shape_cast %74 : vector<16x128xf32> to vector<1x16x128xf32>
      %c0_22 = arith.constant 0 : index
      %c0_23 = arith.constant 0 : index
      %c0_24 = arith.constant 0 : index
      %76 = vector.load %arg14[%c0_22, %c0_23, %c0_24] : memref<1x16x128xf32, #tpu.memory_space<vmem>>, vector<1x16x128xf32>
      tpu.vector_store %arg14[%c0_22, %c0_23, %c0_24], %75 {strides = array<i32>} : memref<1x16x128xf32, #tpu.memory_space<vmem>>, vector<1x16x128xf32>,
    } else {
    }
    return
  }
  func.func @transform_0(%arg0: i32, %arg1: i32) -> (i32, i32) {
    %c0_i32 = arith.constant 0 : i32
    %c0_i32_0 = arith.constant 0 : i32
    %c0_i32_1 = arith.constant 0 : i32
    return %c0_i32, %c0_i32_0 : i32, i32
  }
  func.func @transform_1(%arg0: i32, %arg1: i32) -> (i32, i32, i32) {
    %c0_i32 = arith.constant 0 : i32
    %c0_i32_0 = arith.constant 0 : i32
    %c0_i32_1 = arith.constant 0 : i32
    %c0_i32_2 = arith.constant 0 : i32
    return %c0_i32, %c0_i32_0, %c0_i32_1 : i32, i32, i32
  }
  func.func @transform_2(%arg0: i32, %arg1: i32) -> (i32, i32, i32) {
    %c0_i32 = arith.constant 0 : i32
    %c0_i32_0 = arith.constant 0 : i32
    %c0_i32_1 = arith.constant 0 : i32
    return %arg0, %c0_i32, %c0_i32_0 : i32, i32, i32
  }
  func.func @transform_3(%arg0: i32, %arg1: i32) -> (i32, i32, i32) {
    %c0_i32 = arith.constant 0 : i32
    %c0_i32_0 = arith.constant 0 : i32
    %c0_i32_1 = arith.constant 0 : i32
    return %arg0, %c0_i32, %c0_i32_0 : i32, i32, i32
  }
  func.func @transform_4(%arg0: i32, %arg1: i32) -> (i32, i32, i32) {
    %c0_i32 = arith.constant 0 : i32
    %c0_i32_0 = arith.constant 0 : i32
    %c0_i32_1 = arith.constant 0 : i32
    return %arg0, %c0_i32, %c0_i32_0 : i32, i32, i32
  }
  func.func @transform_5(%arg0: i32, %arg1: i32) -> (i32, i32, i32) {
    %c0_i32 = arith.constant 0 : i32
    %c0_i32_0 = arith.constant 0 : i32
    %c0_i32_1 = arith.constant 0 : i32
    return %arg0, %c0_i32, %c0_i32_0 : i32, i32, i32
  }
  func.func @transform_6(%arg0: i32, %arg1: i32) -> (i32, i32, i32) {
    %c0_i32 = arith.constant 0 : i32
    %c0_i32_0 = arith.constant 0 : i32
    %c0_i32_1 = arith.constant 0 : i32
    return %arg0, %c0_i32, %c0_i32_0 : i32, i32, i32
  }
  func.func @transform_7(%arg0: i32, %arg1: i32) -> (i32, i32, i32) {
    %c0_i32 = arith.constant 0 : i32
    %c0_i32_0 = arith.constant 0 : i32
    %c0_i32_1 = arith.constant 0 : i32
    return %arg0, %c0_i32, %c0_i32_0 : i32, i32, i32
  }
  func.func @transform_8(%arg0: i32, %arg1: i32) -> (i32, i32, i32) {
    %c0_i32 = arith.constant 0 : i32
    %c0_i32_0 = arith.constant 0 : i32
    return %arg0, %c0_i32, %arg1 : i32, i32, i32
  }
  func.func @transform_9(%arg0: i32, %arg1: i32) -> (i32, i32, i32) {
    %c0_i32 = arith.constant 0 : i32
    %c0_i32_0 = arith.constant 0 : i32
    return %arg0, %c0_i32, %arg1 : i32, i32, i32
  }
  func.func @transform_10(%arg0: i32, %arg1: i32) -> (i32, i32, i32) {
    %c0_i32 = arith.constant 0 : i32
    %c0_i32_0 = arith.constant 0 : i32
    %c0_i32_1 = arith.constant 0 : i32
    return %arg0, %c0_i32, %c0_i32_0 : i32, i32, i32
  }
  func.func @transform_11(%arg0: i32, %arg1: i32) -> (i32, i32, i32) {
    %c0_i32 = arith.constant 0 : i32
    %c0_i32_0 = arith.constant 0 : i32
    %c0_i32_1 = arith.constant 0 : i32
    return %arg0, %c0_i32, %c0_i32_0 : i32, i32, i32
  }
  func.func @transform_12(%arg0: i32, %arg1: i32) -> (i32, i32, i32) {
    %c0_i32 = arith.constant 0 : i32
    %c0_i32_0 = arith.constant 0 : i32
    %c0_i32_1 = arith.constant 0 : i32
    return %arg0, %c0_i32, %c0_i32_0 : i32, i32, i32
  }
}

</mosaic_0001>

<bundles_post_ra>
// kernel: forward.1
= control target key start
LH: loop header
LB: loop body
LE: loop exit
PB: predicated region body
PF: predicated region fallthrough
CT: control target
= control target key end

     0   :  { %s19429_s0 = inlined_call_operand.vmem [shape: f32[16,4], index: 0, kind: input, shape index: {}]   ;;  %s19430_s1 = inlined_call_operand.vmem [shape: f32[1,16,8], index: 1, kind: input, shape index: {}]   ;;  %s19431_s2 = inlined_call_operand.hbm [shape: bf16[2,4,256], index: 2, kind: input, shape index: {}]   ;;  %s19432_s3 = inlined_call_operand.vmem [shape: bf16[2,1,256], index: 3, kind: input, shape index: {}]   ;;  %s19433_s4 = inlined_call_operand.hbm [shape: bf16[2,256,512], index: 4, kind: input, shape index: {}]   ;;  %s19434_s5 = inlined_call_operand.vmem [shape: bf16[2,1,512], index: 5, kind: input, shape index: {}]   ;;  %s19435_s6 = inlined_call_operand.hbm [shape: bf16[2,512,1024], index: 6, kind: input, shape index: {}]   ;;  %s19436_s7 = inlined_call_operand.vmem [shape: bf16[2,1,1024], index: 7, kind: input, shape index: {}]   ;;  %s19437_s8 = inlined_call_operand.hbm [shape: bf16[2,1024,2048], index: 8, kind: input, shape index: {}]   ;;  %s19438_s9 = inlined_call_operand.vmem [shape: bf16[2,1,2048], index: 9, kind: input, shape index: {}]   ;;  %s19439_s10 = inlined_call_operand.hbm [shape: bf16[2,1024,640], index: 10, kind: input, shape index: {}]   ;;  %s19440_s11 = inlined_call_operand.vmem [shape: bf16[2,1,640], index: 11, kind: input, shape index: {}]   ;;  %s19441_s12 = inlined_call_operand.vmem [shape: f32[2,16,128], index: 12, kind: output, shape index: {}]  }
   0x1   :  { %19452 = sst [smem:[#allocation20_spill]] %s19430_s1 }
   0x2   :  { %19453 = sst [smem:[#allocation21_spill]] %s19433_s4 }
   0x3   :  { %19454 = sst [smem:[#allocation22_spill]] %s19436_s7 }
   0x4   :  { %19455 = sst [smem:[#allocation23_spill]] %s19437_s8 }
   0x5   :  { %19456 = sst [smem:[#allocation24_spill]] %s19438_s9 }
   0x6   :  { %19457 = sst [smem:[#allocation25_spill]] %s19440_s11 }
   0x7   :  { %19458 = sst [smem:[#allocation26_spill]] %s19441_s12 }
   0x8   :  { %17 = vsyncpa [#allocation6], 0 }
   0x9   :  { %19 = vsyncpa [#allocation6 + $0x1], 0 }
   0xa   :  { %20 = vsyncpa [#allocation8], 0 }
   0xb   :  { %22 = vsyncpa [#allocation8 + $0x1], 0 }
   0xc   :  { %23 = vsyncpa [#allocation11], 0 }
   0xd   :  { %25 = vsyncpa [#allocation11 + $0x1], 0  ;;  %s16998_s21 = smov 0   ;;  %s17000_s22 = smov 0  }
   0xe   :  { %s17002_s23 = smov 0   ;;  %s17004_s24 = smov 0  }
   0xf   :  { %s17006_s25 = smov 0   ;;  %s17008_s26 = smov 0  }
  0x10 LB: > { %19459 = sst [smem:[#allocation16_spill]] %s16898_s23  ;;  %s19442_s27 = sadd.s32 4294967295, %s16910_s26   ;;  %s16910_s26 = sphi %s17008_s26, %s31_s26   ;;  %s16906_s25 = sphi %s17006_s25, %s19488_s25   ;;  %s16902_s24 = sphi %s17004_s24, %s19487_s24   ;;  %s16898_s23 = sphi %s17002_s23, %s19483_s23   ;;  %s16894_s22 = sphi %s17000_s22, %s19486_s22   ;;  %s16890_s21 = sphi %s16998_s21, %s19485_s21  }
  0x11   : > { %s43_s28 = sadd.s32 1, %s16906_s25  ;;  %s92_s29 = sadd.s32 1, %s16898_s23 }
  0x12   : > { %p45_p0 = scmp.ge.s32.totalorder %s43_s28, 2  ;;  %p99_p1 = scmp.ne.s32.totalorder %s16898_s23, %s16894_s22 }
  0x13   : > { %p100_p2 = scmp.eq.s32.totalorder %s16910_s26, 0  ;;  %p105_p4 = scmp.ne.s32.totalorder %s16894_s22, %s16890_s21 }
  0x14   : > { %s19490_s28 = smov (%p45_p0, %s43_s28), 0  ;;  %p106_p5 = scmp.eq.s32.totalorder %s19442_s27, 0 }
  0x15   : > { %19460 = sst [smem:[#allocation17_spill]] %s19490_s28  ;;  %p101_p3 = por %p100_p2, %p99_p1 }
  0x16   : > { %s89_s30 = ssub.s32 %s16906_s25, %s19490_s28  ;;  %p17039_p7 = por %p106_p5, %p105_p4 }
  0x17   : > { %p90_p6 = scmp.eq.s32.totalorder %s89_s30, 0  ;;  %p16071_p8 = scmp.lt.s32.totalorder %s16910_s26, 2 }
  0x18   : > { %s19461_s13 = scalar_select %p17039_p7, 1, 0 }
  0x19   : > { %s17045_s14 = scalar_select %p90_p6, %s16898_s23, %s92_s29  }
  0x1a   : > { %s17048_s15 = sand.u32 1, %s16898_s23   ;;  %p17050_p9 = pnand %p16071_p8, %p101_p3 }
  0x1b   : > { %19462 = sst [smem:[#allocation18_spill]] %s17045_s14  ;;  %s19445_s17 = sand.u32 1, %s16910_s26  }
  0x1c   : > { %s19463_s16 = scalar_select %p17050_p9, 1, 0 }
  0x1d   : > { %s14066_s18 = sshll.u32 %s17048_s15, 9  ;;  %s15757_s19 = sshll.u32 %s16906_s25, 13 }
  0x1e   : > { %s19464_s4 = sld [smem:[#allocation21_spill]]  ;;  %s429_s29 = scalar_lea.vmem [#allocation7], %s14066_s18 }
  0x1f   : > { %s436_s27 = sshll.u32 %s429_s29, 4  ;;  %s17067_s28 = scalar_lea.sflag [#allocation8], %s19445_s17  ;;  %s17062_s27 = int_to_ptr.vmem [resolvable:$true] %s436_s27 }
  0x20   : > { %p17073_p12 = pneg %p17050_p9 }
  0x24   : > { %s17060_s30 = scalar_lea.hbm %s19464_s4, %s15757_s19  ;;  %s16707_s20 = scalar_lea.hbm %s19464_s4, 16384 }
  0x25   : > { %s16702_s14 = scalar_lea.hbm %s17060_s30, 8192  ;;  %p16708_p1 = scmp.lt.u32.totalorder %s17060_s30, %s19464_s4 }
  0x26   : > { %p16703_p11 = scmp.ne.s32.totalorder %s17060_s30, %s16702_s14  ;;  %p16709_p2 = scmp.lt.u32.totalorder %s16707_s20, %s16702_s14 }
  0x27   : > { %p16711_p4 = scmp.lt.u32.totalorder %s16702_s14, %s17060_s30 }
  0x28   : > { %p16705_p13 = pnand %p17073_p12, %p16703_p11  ;;  %p16710_p3 = por %p16709_p2, %p16708_p1 }
  0x2a   : > { %p16706_p0 = pneg %p16705_p13  ;;  %p16712_p5 = por %p16711_p4, %p16710_p3 }
  0x2c   : > { %p16713_p6 = pnand %p16712_p5, %p16706_p0 }
  0x2e   : > { %16716 = shalt.err (!%p16713_p6)
}
  0x2f   : > { %s16717_s17 = scalar_lea.vmem %s17062_s27, 8192  ;;  %s16912_s19 = smov [#allocation7]  }
  0x30   : > { %p16718_p8 = scmp.ne.s32.totalorder %s17062_s27, %s16717_s17  ;;  %s16722_s18 = sshll.u32 %s16912_s19, 4  ;;  %s16723_s18 = int_to_ptr.vmem [resolvable:$false] %s16722_s18 }
  0x31   : > { %s16724_s21 = scalar_lea.vmem %s16723_s18, 16384  ;;  %p16725_p10 = scmp.lt.s32.totalorder %s17062_s27, %s16723_s18 }
  0x32   : > { %p16720_p11 = pnand %p16718_p8, %p17073_p12  ;;  %p16726_p7 = scmp.lt.s32.totalorder %s16724_s21, %s16717_s17 }
  0x34   : > { %p16721_p13 = pneg %p16720_p11  ;;  %p16727_p1 = por %p16726_p7, %p16725_p10 }
  0x36   : > { %p16728_p2 = pnand %p16727_p1, %p16721_p13 }
  0x38   : > { %16731 = shalt.err (!%p16728_p2)
}
  0x39   : > { %s16913_s14 = smov 256   ;;  %s16914_s20 = smov 16  }
  0x3a   : > { %16061 = dma.hbm_to_vmem [thread:$0]  (!%p17050_p9), %s17060_s30, 8192, %s17062_s27, %s17067_s28, %s16913_s14, %s16913_s14, %s16914_s20  }
  0x3b   : > { %p542_p0 = scmp.lt.s32.totalorder %s16910_s26, 3  ;;  %s14072_s29 = sshll.u32 %s17048_s15, 13 }
  0x3c   : > { %s15759_s17 = sshll.u32 %s16906_s25, 17  ;;  %p19466_p7 = scmp.ge.s32.totalorder %s16910_s26, 1 }
  0x3d   : > { %s19468_s8 = sld [smem:[#allocation23_spill]]  ;;  %s485_s12 = scalar_lea.vmem [#allocation10], %s14072_s29 }
  0x3e   : > { %p17102_p10 = pnand %p19466_p7, %p542_p0  ;;  %s494_s9 = sshll.u32 %s485_s12, 4  ;;  %s17111_s9 = int_to_ptr.vmem [resolvable:$true] %s494_s9 }
  0x3f   : > { %s19469_s27 = sand.u32 1, %s16910_s26  }
  0x40   : > { %s19467_s19 = scalar_select %p17102_p10, 1, 0 }
  0x41   : > { %s17115_s30 = scalar_lea.sflag [#allocation11], %s19469_s27 }
  0x43   : > { %s17109_s4 = scalar_lea.hbm %s19468_s8, %s15759_s17  ;;  %s16737_s17 = scalar_lea.hbm %s19468_s8, 262144 }
  0x44   : > { %s16732_s14 = scalar_lea.hbm %s17109_s4, 131072  ;;  %p16738_p6 = scmp.lt.u32.totalorder %s17109_s4, %s19468_s8 }
  0x45   : > { %p16733_p3 = scmp.ne.s32.totalorder %s17109_s4, %s16732_s14  ;;  %p16739_p8 = scmp.lt.u32.totalorder %s16737_s17, %s16732_s14 }
  0x46   : > { %p16741_p13 = scmp.lt.u32.totalorder %s16732_s14, %s17109_s4 }
  0x47   : > { %p16735_p4 = pnand %p16733_p3, %p17073_p12  ;;  %p16740_p11 = por %p16739_p8, %p16738_p6 }
  0x49   : > { %p16736_p5 = pneg %p16735_p4  ;;  %p16742_p1 = por %p16741_p13, %p16740_p11 }
  0x4b   : > { %p16743_p2 = pnand %p16742_p1, %p16736_p5 }
  0x4d   : > { %16746 = shalt.err (!%p16743_p2)
}
  0x4e   : > { %s16747_s12 = scalar_lea.vmem %s17111_s9, 131072  ;;  %s16915_s29 = smov [#allocation10]  }
  0x4f   : > { %p16748_p0 = scmp.ne.s32.totalorder %s17111_s9, %s16747_s12  ;;  %s16752_s27 = sshll.u32 %s16915_s29, 4  ;;  %s16753_s27 = int_to_ptr.vmem [resolvable:$false] %s16752_s27 }
  0x50   : > { %s16754_s1 = scalar_lea.vmem %s16753_s27, 262144  ;;  %p16755_p4 = scmp.lt.s32.totalorder %s17111_s9, %s16753_s27 }
  0x51   : > { %p16750_p7 = pnand %p16748_p0, %p17073_p12  ;;  %p16756_p10 = scmp.lt.s32.totalorder %s16754_s1, %s16747_s12 }
  0x53   : > { %p16751_p3 = pneg %p16750_p7  ;;  %p16757_p6 = por %p16756_p10, %p16755_p4 }
  0x55   : > { %p16758_p8 = pnand %p16757_p6, %p16751_p3 }
  0x57   : > { %16761 = shalt.err (!%p16758_p8)
}
  0x58   : > { %s16916_s14 = smov 1024   ;;  %s16917_s20 = smov 64  }
  0x59   : > { %16067 = dma.hbm_to_vmem [thread:$0]  (!%p17050_p9), %s17109_s4, 131072, %s17111_s9, %s17115_s30, %s16916_s14, %s16916_s14, %s16917_s20  }
  0x5a   : > { %s14063_s18 = sshll.u32 %s17048_s15, 2  ;;  %s15756_s17 = sshll.u32 %s16906_s25, 6 }
  0x5b   : > { %s17144_s29 = scalar_lea.hbm %s19431_s2, %s15756_s17  ;;  %s403_s27 = scalar_lea.vmem [#allocation5], %s14063_s18 }
  0x5c   : > { %s411_s1 = sshll.u32 %s403_s27, 4  ;;  %s14069_s8 = sshll.u32 %s17048_s15, 11  ;;  %s412_s1 = int_to_ptr.vmem [resolvable:$true] %s411_s1 }
  0x5d   : > { %s400_s11 = scalar_lea.sflag [#allocation6], %s17048_s15  ;;  %s16762_s7 = scalar_lea.hbm %s17144_s29, 64 }
  0x5e   : > { %p16763_p10 = scmp.ne.s32.totalorder %s17144_s29, %s16762_s7  ;;  %s16767_s14 = scalar_lea.hbm %s19431_s2, 128 }
  0x5f   : > { %p16768_p13 = scmp.lt.u32.totalorder %s17144_s29, %s19431_s2  ;;  %p16769_p1 = scmp.lt.u32.totalorder %s16767_s14, %s16762_s7 }
  0x60   : > { %p16765_p5 = pnand %p16763_p10, %p17073_p12  ;;  %p16771_p0 = scmp.lt.u32.totalorder %s16762_s7, %s17144_s29 }
  0x61   : > { %p16770_p2 = por %p16769_p1, %p16768_p13 }
  0x62   : > { %p16766_p11 = pneg %p16765_p5 }
  0x63   : > { %p16772_p7 = por %p16771_p0, %p16770_p2 }
  0x65   : > { %p16773_p3 = pnand %p16772_p7, %p16766_p11 }
  0x67   : > { %16776 = shalt.err (!%p16773_p3)
}
  0x68   : > { %s16777_s18 = scalar_lea.vmem %s412_s1, 64  ;;  %s16918_s21 = smov [#allocation5]  }
  0x69   : > { %p16778_p4 = scmp.ne.s32.totalorder %s412_s1, %s16777_s18  ;;  %s16782_s12 = sshll.u32 %s16918_s21, 4  ;;  %s16783_s12 = int_to_ptr.vmem [resolvable:$false] %s16782_s12 }
  0x6a   : > { %s16784_s27 = scalar_lea.vmem %s16783_s12, 128  ;;  %p16785_p10 = scmp.lt.s32.totalorder %s412_s1, %s16783_s12 }
  0x6b   : > { %p16780_p6 = pnand %p16778_p4, %p17073_p12  ;;  %p16786_p5 = scmp.lt.s32.totalorder %s16784_s27, %s16777_s18 }
  0x6d   : > { %p16781_p8 = pneg %p16780_p6  ;;  %p16787_p9 = por %p16786_p5, %p16785_p10 }
  0x6f   : > { %p16788_p1 = pnand %p16787_p9, %p16781_p8 }
  0x71   : > { %16791 = shalt.err (!%p16788_p1)
}
  0x72   : > { %p19470_p13 = scmp.ne.s32.totalorder %s19463_s16, 0  ;;  %s15758_s7 = sshll.u32 %s16906_s25, 15 }
  0x73   : > { %s457_s4 = scalar_lea.vmem [#allocation9], %s14069_s8  ;;  %s17171_s17 = scalar_lea.hbm %s19435_s6, %s15758_s7 }
  0x74   : > { %16058 = dma.hbm_to_vmem [thread:$0]  (!%p19470_p13), %s17144_s29, 64, %s412_s1, %s400_s11  }
  0x75   : > { %s464_s9 = sshll.u32 %s457_s4, 4  ;;  %s16792_s18 = scalar_lea.hbm %s17171_s17, 32768  ;;  %s17173_s9 = int_to_ptr.vmem [resolvable:$true] %s464_s9 }
  0x76   : > { %p16793_p9 = scmp.ne.s32.totalorder %s17171_s17, %s16792_s18  ;;  %s16797_s8 = scalar_lea.hbm %s19435_s6, 65536 }
  0x77   : > { %p16798_p0 = scmp.lt.u32.totalorder %s17171_s17, %s19435_s6  ;;  %p16799_p7 = scmp.lt.u32.totalorder %s16797_s8, %s16792_s18 }
  0x78   : > { %p16795_p11 = pnand %p16793_p9, %p17073_p12  ;;  %p16801_p4 = scmp.lt.u32.totalorder %s16792_s18, %s17171_s17 }
  0x79   : > { %p16800_p3 = por %p16799_p7, %p16798_p0 }
  0x7a   : > { %p16796_p2 = pneg %p16795_p11 }
  0x7b   : > { %p16802_p6 = por %p16801_p4, %p16800_p3 }
  0x7d   : > { %p16803_p8 = pnand %p16802_p6, %p16796_p2 }
  0x7f   : > { %16806 = shalt.err (!%p16803_p8)
}
  0x80   : > { %s16807_s12 = scalar_lea.vmem %s17173_s9, 32768  ;;  %s16919_s27 = smov [#allocation9]  }
  0x81   : > { %p16808_p10 = scmp.ne.s32.totalorder %s17173_s9, %s16807_s12  ;;  %s16812_s7 = sshll.u32 %s16919_s27, 4  ;;  %s16813_s7 = int_to_ptr.vmem [resolvable:$false] %s16812_s7 }
  0x82   : > { %s16814_s4 = scalar_lea.vmem %s16813_s7, 65536  ;;  %p16815_p9 = scmp.lt.s32.totalorder %s17173_s9, %s16813_s7 }
  0x83   : > { %p16810_p5 = pnand %p16808_p10, %p17073_p12  ;;  %p16816_p11 = scmp.lt.s32.totalorder %s16814_s4, %s16807_s12 }
  0x85   : > { %p16811_p1 = pneg %p16810_p5  ;;  %p16817_p0 = por %p16816_p11, %p16815_p9 }
  0x87   : > { %p16818_p7 = pnand %p16817_p0, %p16811_p1 }
  0x89   : > { %16821 = shalt.err (!%p16818_p7)
}
  0x8a   : > { %s16920_s14 = smov 512   ;;  %s16921_s20 = smov 32  }
  0x8b   : > { %16064 = dma.hbm_to_vmem [thread:$0]  (!%p19470_p13), %s17171_s17, 32768, %s17173_s9, %s17067_s28, %s16920_s14, %s16920_s14, %s16921_s20  }
  0x8c   : > { %s16041_s18 = smul.u32 2560, %s17048_s15  ;;  %s16827_s9 = scalar_lea.hbm %s19439_s10, 81920 }
  0x8d   : > { %s16042_s11 = smul.u32 40960, %s16906_s25 }
  0x8e   : > { %s520_s21 = scalar_lea.vmem [#allocation12], %s16041_s18 }
  0x8f   : > { %s17202_s1 = scalar_lea.hbm %s19439_s10, %s16042_s11  ;;  %s527_s12 = sshll.u32 %s520_s21, 4  ;;  %s17204_s12 = int_to_ptr.vmem [resolvable:$true] %s527_s12 }
  0x90   : > { %s16822_s27 = scalar_lea.hbm %s17202_s1, 40960  ;;  %p16828_p6 = scmp.lt.u32.totalorder %s17202_s1, %s19439_s10 }
  0x91   : > { %p16823_p2 = scmp.ne.s32.totalorder %s17202_s1, %s16822_s27  ;;  %p16829_p8 = scmp.lt.u32.totalorder %s16827_s9, %s16822_s27 }
  0x92   : > { %p16831_p5 = scmp.lt.u32.totalorder %s16822_s27, %s17202_s1 }
  0x93   : > { %p16825_p3 = pnand %p16823_p2, %p17073_p12  ;;  %p16830_p10 = por %p16829_p8, %p16828_p6 }
  0x95   : > { %p16826_p4 = pneg %p16825_p3  ;;  %p16832_p1 = por %p16831_p5, %p16830_p10 }
  0x97   : > { %p16833_p9 = pnand %p16832_p1, %p16826_p4 }
  0x99   : > { %16836 = shalt.err (!%p16833_p9)
}
  0x9a   : > { %s16837_s4 = scalar_lea.vmem %s17204_s12, 40960  ;;  %s16922_s14 = smov [#allocation12]  }
  0x9b   : > { %p16838_p11 = scmp.ne.s32.totalorder %s17204_s12, %s16837_s4  ;;  %s16842_s20 = sshll.u32 %s16922_s14, 4  ;;  %s16843_s20 = int_to_ptr.vmem [resolvable:$false] %s16842_s20 }
  0x9c   : > { %s16844_s18 = scalar_lea.vmem %s16843_s20, 81920  ;;  %p16845_p2 = scmp.lt.s32.totalorder %s17204_s12, %s16843_s20 }
  0x9d   : > { %p16840_p0 = pnand %p16838_p11, %p17073_p12  ;;  %p16846_p3 = scmp.lt.s32.totalorder %s16844_s18, %s16837_s4 }
  0x9f   : > { %p16841_p7 = pneg %p16840_p0  ;;  %p16847_p6 = por %p16846_p3, %p16845_p2 }
  0xa1   : > { %p16848_p8 = pnand %p16847_p6, %p16841_p7 }
  0xa3   : > { %16851 = shalt.err (!%p16848_p8)
}
  0xa4   : > { %s16923_s11 = smov 320   ;;  %s16924_s29 = smov 20  }
  0xa5   : > { %16070 = dma.hbm_to_vmem [thread:$0]  (!%p19470_p13), %s17202_s1, 40960, %s17204_s12, %s17115_s30, %s16923_s11, %s16923_s11, %s16924_s29  }
  0xa6   : > { %p19471_p12 = scmp.ne.s32.totalorder %s19467_s19, 0 }
  0xa8   : > { %546 = sbr.rel (%p19471_p12) target bundleno = 2712 (0xa98), region = 68 }
  0xaf   : > { %s17231_s23 = sand.u32 1, %s16894_s22   ;;  %p19472_p4 = scmp.ne.s32.totalorder %s19461_s13, 0 }
  0xb0   : > { %s14077_s8 = sshll.u32 %s17231_s23, 2  ;;  %s549_s21 = scalar_lea.sflag [#allocation6], %s17231_s23 }
  0xb1   : > { %s552_s27 = scalar_lea.vmem [#allocation5], %s14077_s8 }
  0xb2   : > { %16877 = dma.done.wait (%p19472_p4), %s549_s21, 64  }
  0xb3   : > { %16879 = vsyncadd (%p19472_p4), %s549_s21, 4294967232  ;;  %s19473_s16 = sadd.s32 4294967295, %s16910_s26   ;;  %s14078_s30 = sshll.u32 %s17231_s23, 9 }
  0xb4   : > { %s557_s19 = sand.u32 1, %s19473_s16   ;;  %s17242_s12 = scalar_lea.vmem [#allocation7], %s14078_s30 }
  0xb5   : > { %s558_s1 = scalar_lea.sflag [#allocation8], %s557_s19 }
  0xb6   : > { %16881 = dma.done.wait (%p19472_p4), %s558_s1, 40960  }
  0xb7   : > { %16883 = vsyncadd (%p19472_p4), %s558_s1, 4294926336  ;;  %s14079_s28 = sshll.u32 %s17231_s23, 11  ;;  %s14080_s15 = sshll.u32 %s17231_s23, 13 }
  0xb8   : > { %s17250_s9 = scalar_lea.vmem [#allocation9], %s14079_s28  ;;  %s576_s17 = scalar_lea.sflag [#allocation11], %s557_s19 }
  0xb9   : > { %s17252_s7 = scalar_lea.vmem [#allocation10], %s14080_s15 }
  0xba   : > { %16885 = dma.done.wait (%p19472_p4), %s576_s17, 172032  }
  0xbb   : > { %16887 = vsyncadd (%p19472_p4), %s576_s17, 4294795264  ;;  %v19450_v0 = vmov 0   ;;  %vm747_vm0 = vcmask 1041408   ;;  %v709_v2 = vld [vmem:[%s19429_s0] sm:$0xff]  ;;  %v710_v3 = vld [vmem:[%s19429_s0 + $0x8] sm:$0xff]  ;;  %vm743_vm1 = vcmask 31744  }
  0xbc   : > { %786 = vmatprep.mubr.bf16.mxu0 %v19450_v0  ;;  %16136 = vset.pattern.permute.xlu0 %v19450_v0  ;;  %v14087_v1 = vld.sshfl [vmem:[%s552_s27] sm:$0x33 pattern:$0x76325410]  ;;  %v16150_v6 = vld [vmem:[%s17242_s12 + $0x4] ss:$16 sps:$4 sm:$0xff]   ;;  %v711_v8 = vpack.c.bf16 %v710_v3, %v709_v2 }
  0xbd   : > { %v742_v4 = vcombine.high %v14087_v1, %v14087_v1  ;;  %v749_v5 = vsel %vm747_vm0, %v14087_v1, 0  ;;  %v16152_v7 = vld [vmem:[%s17242_s12 + $0x8] ss:$16 sps:$4 sm:$0xff]   ;;  %1226 = vmatprep.subr.bf16.mxu1 %v16150_v6  ;;  %v16154_v9 = vld [vmem:[%s17242_s12 + $0xc] ss:$16 sps:$4 sm:$0xff]   ;;  %p673_p13 = scmp.lt.s32.totalorder %s16902_s24, 1 }
  0xbe   : > { %v16155_v10 = vld [vmem:[%s17242_s12] ss:$16 sps:$4 sm:$0xff]   ;;  %v16156_v11 = vld [vmem:[%s17242_s12 + $0x24] ss:$16 sps:$4 sm:$0xff]   ;;  %v16160_v12 = vld [vmem:[%s17242_s12 + $0x2c] ss:$16 sps:$4 sm:$0xff]  }
  0xbf   : > { %14088 = vmatprep.subr.msk.bf16.mxu0 %vm747_vm0, %v742_v4  ;;  %1227 = vmatpush1.bf16.msra.mxu1 %v16155_v10  ;;  %v16161_v13 = vld [vmem:[%s17242_s12 + $0x20] ss:$16 sps:$4 sm:$0xff]   ;;  %v16162_v14 = vld [vmem:[%s17242_s12 + $0x44] ss:$16 sps:$4 sm:$0xff]   ;;  %v16158_v15 = vld [vmem:[%s17242_s12 + $0x28] ss:$16 sps:$4 sm:$0xff]  }
  0xc0   : > { %755 = vmatpush1.bf16.msra.mxu0 %v749_v5  ;;  %1228 = vmatprep.subr.bf16.mxu1 %v16156_v11  ;;  %v16166_v16 = vld [vmem:[%s17242_s12 + $0x4c] ss:$16 sps:$4 sm:$0xff]   ;;  %v16167_v17 = vld [vmem:[%s17242_s12 + $0x40] ss:$16 sps:$4 sm:$0xff]   ;;  %v16168_v18 = vld [vmem:[%s17242_s12 + $0x64] ss:$16 sps:$4 sm:$0xff]  }
  0xc1   : > { %1269 = vmatprep.subr.bf16.mxu0 %v16154_v9  ;;  %v16164_v19 = vld [vmem:[%s17242_s12 + $0x48] ss:$16 sps:$4 sm:$0xff]   ;;  %v16172_v20 = vld [vmem:[%s17242_s12 + $0x6c] ss:$16 sps:$4 sm:$0xff]   ;;  %v16173_v21 = vld [vmem:[%s17242_s12 + $0x60] ss:$16 sps:$4 sm:$0xff]  }
  0xc2   : > { %v16174_v22 = vld [vmem:[%s17242_s12 + $0x84] ss:$16 sps:$4 sm:$0xff]   ;;  %v16170_v23 = vld [vmem:[%s17242_s12 + $0x68] ss:$16 sps:$4 sm:$0xff]   ;;  %v16178_v24 = vld [vmem:[%s17242_s12 + $0x8c] ss:$16 sps:$4 sm:$0xff]  }
  0xc3   : > { %14089 = vmatmul.mubr.msk.bf16.vlgmr.msra.gmra.mrb[0].mxu0 %vm743_vm1, %v711_v8  ;;  %1229 = vmatpush1.bf16.msra.mxu1 %v16161_v13  ;;  %v16179_v25 = vld [vmem:[%s17242_s12 + $0x80] ss:$16 sps:$4 sm:$0xff]   ;;  %v16180_v26 = vld [vmem:[%s17242_s12 + $0xa4] ss:$16 sps:$4 sm:$0xff]   ;;  %v16176_v27 = vld [vmem:[%s17242_s12 + $0x88] ss:$16 sps:$4 sm:$0xff]  }
  0xc4   : > { %1270 = vmatpush1.bf16.msra.mxu0 %v16152_v7  ;;  %1230 = vmatprep.subr.bf16.mxu1 %v16162_v14  ;;  %v16184_v28 = vld [vmem:[%s17242_s12 + $0xac] ss:$16 sps:$4 sm:$0xff]   ;;  %v16185_v29 = vld [vmem:[%s17242_s12 + $0xa0] ss:$16 sps:$4 sm:$0xff]   ;;  %v16186_v30 = vld [vmem:[%s17242_s12 + $0xc4] ss:$16 sps:$4 sm:$0xff]  }
  0xc5   : > { %1271 = vmatprep.subr.bf16.mxu0 %v16160_v12  ;;  %v16182_v31 = vld [vmem:[%s17242_s12 + $0xa8] ss:$16 sps:$4 sm:$0xff]   ;;  %v16190_v32 = vld [vmem:[%s17242_s12 + $0xcc] ss:$16 sps:$4 sm:$0xff]   ;;  %v16191_v33 = vld [vmem:[%s17242_s12 + $0xc0] ss:$16 sps:$4 sm:$0xff]  }
  0xc6   : > { %v16192_v34 = vld [vmem:[%s17242_s12 + $0xe4] ss:$16 sps:$4 sm:$0xff]   ;;  %v16188_v35 = vld [vmem:[%s17242_s12 + $0xc8] ss:$16 sps:$4 sm:$0xff]   ;;  %v16196_v36 = vld [vmem:[%s17242_s12 + $0xec] ss:$16 sps:$4 sm:$0xff]  }
  0xc7   : > { %1231 = vmatpush1.bf16.msra.mxu1 %v16167_v17  ;;  %v16197_v37 = vld [vmem:[%s17242_s12 + $0xe0] ss:$16 sps:$4 sm:$0xff]   ;;  %v16198_v38 = vld [vmem:[%s17242_s12 + $0x104] ss:$16 sps:$4 sm:$0xff]   ;;  %v16194_v39 = vld [vmem:[%s17242_s12 + $0xe8] ss:$16 sps:$4 sm:$0xff]  }
  0xc8   : > { %1272 = vmatpush1.bf16.msra.mxu0 %v16158_v15  ;;  %1232 = vmatprep.subr.bf16.mxu1 %v16168_v18  ;;  %v16202_v40 = vld [vmem:[%s17242_s12 + $0x10c] ss:$16 sps:$4 sm:$0xff]   ;;  %v16203_v41 = vld [vmem:[%s17242_s12 + $0x100] ss:$16 sps:$4 sm:$0xff]   ;;  %v16204_v42 = vld [vmem:[%s17242_s12 + $0x124] ss:$16 sps:$4 sm:$0xff]  }
  0xc9   : > { %1273 = vmatprep.subr.bf16.mxu0 %v16166_v16  ;;  %v16200_v43 = vld [vmem:[%s17242_s12 + $0x108] ss:$16 sps:$4 sm:$0xff]   ;;  %v16208_v44 = vld [vmem:[%s17242_s12 + $0x12c] ss:$16 sps:$4 sm:$0xff]   ;;  %v16209_v45 = vld [vmem:[%s17242_s12 + $0x120] ss:$16 sps:$4 sm:$0xff]   ;;  %v716_v16 = vlaneseq }
  0xca   : > { %v16206_v46 = vld [vmem:[%s17242_s12 + $0x128] ss:$16 sps:$4 sm:$0xff]   ;;  %v16210_v47 = vld [vmem:[%s17242_s12 + $0x144] ss:$16 sps:$4 sm:$0xff]   ;;  %v16214_v48 = vld [vmem:[%s17242_s12 + $0x14c] ss:$16 sps:$4 sm:$0xff]  }
  0xcb   : > { %1233 = vmatpush1.bf16.msra.mxu1 %v16173_v21  ;;  %v16215_v49 = vld [vmem:[%s17242_s12 + $0x140] ss:$16 sps:$4 sm:$0xff]   ;;  %v16216_v50 = vld [vmem:[%s17242_s12 + $0x164] ss:$16 sps:$4 sm:$0xff]   ;;  %v16212_v51 = vld [vmem:[%s17242_s12 + $0x148] ss:$16 sps:$4 sm:$0xff]  }
  0xcc   : > { %1274 = vmatpush1.bf16.msra.mxu0 %v16164_v19  ;;  %1234 = vmatprep.subr.bf16.mxu1 %v16174_v22  ;;  %v16220_v52 = vld [vmem:[%s17242_s12 + $0x16c] ss:$16 sps:$4 sm:$0xff]   ;;  %v16221_v53 = vld [vmem:[%s17242_s12 + $0x160] ss:$16 sps:$4 sm:$0xff]   ;;  %v16222_v54 = vld [vmem:[%s17242_s12 + $0x184] ss:$16 sps:$4 sm:$0xff]  }
  0xcd   : > { %1275 = vmatprep.subr.bf16.mxu0 %v16172_v20  ;;  %v16218_v55 = vld [vmem:[%s17242_s12 + $0x168] ss:$16 sps:$4 sm:$0xff]   ;;  %v16226_v56 = vld [vmem:[%s17242_s12 + $0x18c] ss:$16 sps:$4 sm:$0xff]   ;;  %v16227_v57 = vld [vmem:[%s17242_s12 + $0x180] ss:$16 sps:$4 sm:$0xff]  }
  0xce   : > { %v16228_v58 = vld [vmem:[%s17242_s12 + $0x1a4] ss:$16 sps:$4 sm:$0xff]   ;;  %v16224_v59 = vld [vmem:[%s17242_s12 + $0x188] ss:$16 sps:$4 sm:$0xff]   ;;  %v16232_v60 = vld [vmem:[%s17242_s12 + $0x1ac] ss:$16 sps:$4 sm:$0xff]  }
  0xcf   : > { %1235 = vmatpush1.bf16.msra.mxu1 %v16179_v25  ;;  %v16230_v61 = vld [vmem:[%s17242_s12 + $0x1a8] ss:$16 sps:$4 sm:$0xff]   ;;  %v16233_v62 = vld [vmem:[%s17242_s12 + $0x1a0] ss:$16 sps:$4 sm:$0xff]   ;;  %v16234_v63 = vld [vmem:[%s17242_s12 + $0x1c4] ss:$16 sps:$4 sm:$0xff]  }
  0xd0   : > { %1276 = vmatpush1.bf16.msra.mxu0 %v16170_v23  ;;  %1236 = vmatprep.subr.bf16.mxu1 %v16180_v26  ;;  %v16238_v1 = vld [vmem:[%s17242_s12 + $0x1cc] ss:$16 sps:$4 sm:$0xff]   ;;  %v16236_v2 = vld [vmem:[%s17242_s12 + $0x1c8] ss:$16 sps:$4 sm:$0xff]   ;;  %v16239_v3 = vld [vmem:[%s17242_s12 + $0x1c0] ss:$16 sps:$4 sm:$0xff]  }
  0xd1   : > { %1277 = vmatprep.subr.bf16.mxu0 %v16178_v24  ;;  %v16240_v4 = vld [vmem:[%s17242_s12 + $0x1e4] ss:$16 sps:$4 sm:$0xff]   ;;  %v16244_v5 = vld [vmem:[%s17242_s12 + $0x1ec] ss:$16 sps:$4 sm:$0xff]   ;;  %v16242_v6 = vld [vmem:[%s17242_s12 + $0x1e8] ss:$16 sps:$4 sm:$0xff]  }
  0xd2   : > { %v16245_v7 = vld [vmem:[%s17242_s12 + $0x1e0] ss:$16 sps:$4 sm:$0xff]   ;;  %v1325_v10 = vld [vmem:[%s17250_s9 + $0x8] sm:$0xff]  ;;  %s19492_s24 = smov (!%p673_p13, %s16902_s24), 1  ;;  %v17342_v17 = vshrl.u32 %v716_v16, 7  ;;  %s16043_s30 = smul.u32 2560, %s17231_s23 }
  0xd3   : > { %1237 = vmatpush1.bf16.msra.mxu1 %v16185_v29  ;;  %v1324_v8 = vld [vmem:[%s17250_s9] sm:$0xff]  ;;  %v1329_v13 = vld [vmem:[%s17250_s9 + $0x28] sm:$0xff]  ;;  %s14081_s13 = sshll.u32 %s19492_s24, 1  ;;  %s14082_s21 = sshll.u32 %s19492_s24, 2 }
  0xd4   : > { %1278 = vmatpush1.bf16.msra.mxu0 %v16176_v27  ;;  %1238 = vmatprep.subr.bf16.mxu1 %v16186_v30  ;;  %v1328_v9 = vld [vmem:[%s17250_s9 + $0x20] sm:$0xff]  ;;  %v14156_v14 = vcombine.low %v1325_v10, %v1329_v13  ;;  %v14157_v15 = vcombine.high %v1325_v10, %v1329_v13  ;;  %s676_s8 = scalar_lea.vmem %s19432_s3, %s14081_s13  ;;  %v17345_v20 = vsub.s32 0, %v17342_v17  ;;  %v17348_v21 = vsub.s32 2, %v17342_v17  ;;  %v1369_v10 = vld [vmem:[%s17250_s9 + $0x168] sm:$0xff]  ;;  %s680_s19 = scalar_lea.vmem %s19434_s5, %s14082_s21 }
  0xd5   : > { %1279 = vmatprep.subr.bf16.mxu0 %v16184_v28  ;;  %v14154_v11 = vcombine.low %v1324_v8, %v1328_v9  ;;  %v14155_v12 = vcombine.high %v1324_v8, %v1328_v9  ;;  %v713_v18 = vld [vmem:[%s676_s8] sm:$0x3]  ;;  %v1368_v8 = vld [vmem:[%s17250_s9 + $0x160] sm:$0xff]  ;;  %v1365_v9 = vld [vmem:[%s17250_s9 + $0x148] sm:$0xff]  ;;  %s17547_s1 = scalar_lea.vmem [#allocation12], %s16043_s30  ;;  %s14083_s23 = sshll.u32 %s19492_s24, 3 }
  0xd6   : > { %v714_v19 = vunpack.c.l.bf16 %v713_v18  ;;  %v1376_v16 = vld [vmem:[%s17250_s9 + $0x1a0] sm:$0xff]  ;;  %v1373_v18 = vld [vmem:[%s17250_s9 + $0x188] sm:$0xff]  ;;  %s19474_s15 = sld [smem:[#allocation22_spill]]  ;;  %s16044_s17 = smul.u32 5, %s19492_s24 }
  0xd7   : > { %1239 = vmatpush1.bf16.msra.mxu1 %v16191_v33  ;;  %s19475_s20 = sld [smem:[#allocation25_spill]]  ;;  %s19476_s29 = sld [smem:[#allocation20_spill]]  ;;  %v6873_v0 = vld [vmem:[%s17252_s7 + $0x1c60] sm:$0xff] }
  0xd8   : > { %1280 = vmatpush1.bf16.msra.mxu0 %v16182_v31  ;;  %1240 = vmatprep.subr.bf16.mxu1 %v16192_v34  ;;  %v719_v22 = vrot.slane %v714_v19, %v17345_v20  ;;  %v723_v23 = vrot.slane %v714_v19, %v17348_v21  ;;  %v1377_v19 = vld [vmem:[%s17250_s9 + $0x1a8] sm:$0xff]  ;;  %s14084_s27 = sshll.u32 %s19492_s24, 4  ;;  %s19478_s30 = sld [smem:[#allocation24_spill]] }
  0xd9   : > { %1281 = vmatprep.subr.bf16.mxu0 %v16190_v32  ;;  %s19481_s21 = sld [smem:[#allocation26_spill]] }
  0xda   : > { %v729_v24 = vrot.slane %v719_v22, %v17345_v20  ;;  %v733_v25 = vrot.slane %v723_v23, %v17345_v20  ;;  %v14196_v23 = vcombine.low %v1365_v9, %v1369_v10 }
  0xdb   : > { %1241 = vmatpush1.bf16.msra.mxu1 %v16197_v37 }
  0xdc   : > { %1282 = vmatpush1.bf16.msra.mxu0 %v16188_v35  ;;  %1242 = vmatprep.subr.bf16.mxu1 %v16198_v38 }
  0xdd   : > { %1283 = vmatprep.subr.bf16.mxu0 %v16196_v36  ;;  %v1332_v36 = vld [vmem:[%s17250_s9 + $0x40] sm:$0xff]  ;;  %s18257_s18 = scalar_lea.vmem %s19475_s20, %s16044_s17 }
  0xdf   : > { %1243 = vmatpush1.bf16.msra.mxu1 %v16203_v41  ;;  %v1337_v41 = vld [vmem:[%s17250_s9 + $0x68] sm:$0xff]  ;;  %s703_s16 = scalar_lea.vmem %s19481_s21, %s14084_s27 }
  0xe0   : > { %1284 = vmatpush1.bf16.msra.mxu0 %v16194_v39  ;;  %1244 = vmatprep.subr.bf16.mxu1 %v16204_v42  ;;  %v1336_v39 = vld [vmem:[%s17250_s9 + $0x60] sm:$0xff] }
  0xe1   : > { %1285 = vmatprep.subr.bf16.mxu0 %v16202_v40  ;;  %v1333_v40 = vld [vmem:[%s17250_s9 + $0x48] sm:$0xff] }
  0xe3   : > { %1245 = vmatpush1.bf16.msra.mxu1 %v16209_v45  ;;  %v14165_v45 = vcombine.high %v1333_v40, %v1337_v41 }
  0xe4   : > { %1286 = vmatpush1.bf16.msra.mxu0 %v16200_v43  ;;  %1246 = vmatprep.subr.bf16.mxu1 %v16210_v47  ;;  %v1344_v47 = vld [vmem:[%s17250_s9 + $0xa0] sm:$0xff] }
  0xe5   : > { %1287 = vmatprep.subr.bf16.mxu0 %v16208_v44  ;;  %v14163_v44 = vcombine.high %v1332_v36, %v1336_v39 }
  0xe7   : > { %1247 = vmatpush1.bf16.msra.mxu1 %v16215_v49  ;;  %v1345_v49 = vld [vmem:[%s17250_s9 + $0xa8] sm:$0xff] }
  0xe8   : > { %1288 = vmatpush1.bf16.msra.mxu0 %v16206_v46  ;;  %1248 = vmatprep.subr.bf16.mxu1 %v16216_v50  ;;  %v1340_v46 = vld [vmem:[%s17250_s9 + $0x80] sm:$0xff]  ;;  %v14162_v50 = vcombine.low %v1332_v36, %v1336_v39  ;;  %v1389_v36 = vld [vmem:[%s17250_s9 + $0x208] sm:$0xff] }
  0xe9   : > { %1289 = vmatprep.subr.bf16.mxu0 %v16214_v48  ;;  %v1341_v48 = vld [vmem:[%s17250_s9 + $0x88] sm:$0xff] }
  0xeb   : > { %1249 = vmatpush1.bf16.msra.mxu1 %v16221_v53  ;;  %v14173_v53 = vcombine.high %v1341_v48, %v1345_v49 }
  0xec   : > { %1290 = vmatpush1.bf16.msra.mxu0 %v16212_v51  ;;  %1250 = vmatprep.subr.bf16.mxu1 %v16222_v54  ;;  %v14164_v51 = vcombine.low %v1333_v40, %v1337_v41  ;;  %v1348_v54 = vld [vmem:[%s17250_s9 + $0xc0] sm:$0xff] }
  0xed   : > { %1291 = vmatprep.subr.bf16.mxu0 %v16220_v52  ;;  %v14171_v52 = vcombine.high %v1340_v46, %v1344_v47 }
  0xef   : > { %1251 = vmatpush1.bf16.msra.mxu1 %v16227_v57  ;;  %v1353_v57 = vld [vmem:[%s17250_s9 + $0xe8] sm:$0xff] }
  0xf0   : > { %1292 = vmatpush1.bf16.msra.mxu0 %v16218_v55  ;;  %1252 = vmatprep.subr.bf16.mxu1 %v16228_v58  ;;  %v1352_v55 = vld [vmem:[%s17250_s9 + $0xe0] sm:$0xff]  ;;  %v14170_v58 = vcombine.low %v1340_v46, %v1344_v47 }
  0xf1   : > { %1293 = vmatprep.subr.bf16.mxu0 %v16226_v56  ;;  %v1349_v56 = vld [vmem:[%s17250_s9 + $0xc8] sm:$0xff] }
  0xf3   : > { %1253 = vmatpush1.bf16.msra.mxu1 %v16233_v62  ;;  %v1356_v62 = vld [vmem:[%s17250_s9 + $0x100] sm:$0xff] }
  0xf4   : > { %1294 = vmatpush1.bf16.msra.mxu0 %v16224_v59  ;;  %1254 = vmatprep.subr.bf16.mxu1 %v16234_v63  ;;  %v14172_v59 = vcombine.low %v1341_v48, %v1345_v49  ;;  %v1360_v63 = vld [vmem:[%s17250_s9 + $0x120] sm:$0xff] }
  0xf5   : > { %1295 = vmatprep.subr.bf16.mxu0 %v16232_v60  ;;  %v14179_v60 = vcombine.high %v1348_v54, %v1352_v55 }
  0xf7   : > { %1255 = vmatpush1.bf16.msra.mxu1 %v16239_v3  ;;  %v14178_v3 = vcombine.low %v1348_v54, %v1352_v55 }
  0xf8   : > { %1296 = vmatpush1.bf16.msra.mxu0 %v16230_v61  ;;  %1256 = vmatprep.subr.bf16.mxu1 %v16240_v4  ;;  %v14181_v61 = vcombine.high %v1349_v56, %v1353_v57  ;;  %v14180_v4 = vcombine.low %v1349_v56, %v1353_v57 }
  0xf9   : > { %1297 = vmatprep.subr.bf16.mxu0 %v16238_v1  ;;  %v1357_v1 = vld [vmem:[%s17250_s9 + $0x108] sm:$0xff] }
  0xfb   : > { %1257 = vmatpush1.bf16.msra.mxu1 %v16245_v7  ;;  %v1364_v7 = vld [vmem:[%s17250_s9 + $0x140] sm:$0xff] }
  0xfc   : > { %1298 = vmatpush1.bf16.msra.mxu0 %v16236_v2  ;;  %2937 = vmatprep.subr.bf16.mxu1 %v14155_v12  ;;  %v1361_v2 = vld [vmem:[%s17250_s9 + $0x128] sm:$0xff]  ;;  %v14195_v13 = vcombine.high %v1364_v7, %v1368_v8  ;;  %v14194_v22 = vcombine.low %v1364_v7, %v1368_v8 }
  0xfd   : > { %1299 = vmatprep.subr.bf16.mxu0 %v16244_v5  ;;  %v14187_v5 = vcombine.high %v1356_v62, %v1360_v63  ;;  %v14188_v12 = vcombine.low %v1357_v1, %v1361_v2 }
 0x100   : > { %1300 = vmatpush1.bf16.msra.mxu0 %v16242_v6  ;;  %v14189_v6 = vcombine.high %v1357_v1, %v1361_v2 }
 0x101   : > { %3023 = vmatprep.subr.bf16.mxu0 %v14157_v15  ;;  %v1372_v15 = vld [vmem:[%s17250_s9 + $0x180] sm:$0xff] }
 0x196   : > { %v788_v26 = vpop.f32.mrb[0].mxu0 }
 0x197   : > { %v789_v27 = vadd.f32 %v788_v26, %v729_v24  ;;  %v790_v28 = vpop.f32.mrb[1].mxu0  ;;  %v1380_v26 = vld [vmem:[%s17250_s9 + $0x1c0] sm:$0xff] }
 0x198   : > { %v791_v29 = vadd.f32 %v790_v28, %v733_v25  ;;  %v792_v30 = vpop.f32.mrb[2].mxu0  ;;  %v1381_v28 = vld [vmem:[%s17250_s9 + $0x1c8] sm:$0xff] }
 0x199   : > { %v793_v31 = vadd.f32 %v792_v30, %v729_v24  ;;  %v794_v32 = vpop.f32.mrb[3].mxu0  ;;  %v797_v34 = vmax.f32 %v789_v27, 0.0  ;;  %v14203_v24 = vcombine.high %v1372_v15, %v1376_v16  ;;  %v1384_v27 = vld [vmem:[%s17250_s9 + $0x1e0] sm:$0xff]  ;;  %v14202_v30 = vcombine.low %v1372_v15, %v1376_v16 }
 0x19a   : > { %v795_v33 = vadd.f32 %v794_v32, %v733_v25  ;;  %v798_v37 = vmax.f32 %v791_v29, 0.0  ;;  %v14205_v25 = vcombine.high %v1373_v18, %v1377_v19  ;;  %v1385_v29 = vld [vmem:[%s17250_s9 + $0x1e8] sm:$0xff]  ;;  %v14211_v32 = vcombine.high %v1380_v26, %v1384_v27 }
 0x19b   : > { %v799_v35 = vmax.f32 %v793_v31, 0.0  ;;  %v14204_v31 = vcombine.low %v1373_v18, %v1377_v19  ;;  %v14212_v39 = vcombine.low %v1381_v28, %v1385_v29 }
 0x19c   : > { %v800_v38 = vmax.f32 %v795_v33, 0.0  ;;  %v14213_v33 = vcombine.high %v1381_v28, %v1385_v29  ;;  %v1441_v28 = vld [vmem:[%s17250_s9 + $0x3a8] sm:$0xff] }
 0x19d   : > { %v801_v42 = vpack.c.bf16 %v799_v35, %v797_v34  ;;  %v1388_v34 = vld [vmem:[%s17250_s9 + $0x200] sm:$0xff] }
 0x19e   : > { %v802_v43 = vpack.c.bf16 %v800_v38, %v798_v37  ;;  %v1392_v35 = vld [vmem:[%s17250_s9 + $0x220] sm:$0xff]  ;;  %v1393_v37 = vld [vmem:[%s17250_s9 + $0x228] sm:$0xff]  ;;  %v14210_v38 = vcombine.low %v1380_v26, %v1384_v27 }
 0x19f   : > { %v14219_v40 = vcombine.high %v1388_v34, %v1392_v35  ;;  %v14221_v41 = vcombine.high %v1389_v36, %v1393_v37  ;;  %v14218_v46 = vcombine.low %v1388_v34, %v1392_v35  ;;  %v14220_v47 = vcombine.low %v1389_v36, %v1393_v37  ;;  %v1437_v26 = vld [vmem:[%s17250_s9 + $0x388] sm:$0xff] }
 0x1a0   : > { %1258 = vmatprep.mubr.bf16.mxu1 %v802_v43  ;;  %1301 = vmatprep.mubr.bf16.mxu0 %v802_v43  ;;  %v1400_v43 = vld [vmem:[%s17250_s9 + $0x260] sm:$0xff]  ;;  %v1445_v34 = vld [vmem:[%s17250_s9 + $0x3c8] sm:$0xff] }
 0x1a1   : > { %1259 = vmatmul.mubr.bf16.vlgmr.msra.gmra.mrb[0].mxu1 %v801_v42  ;;  %1302 = vmatmul.mubr.bf16.vlgmr.msra.gmra.mrb[4].mxu0 %v801_v42  ;;  %v1396_v42 = vld [vmem:[%s17250_s9 + $0x240] sm:$0xff]  ;;  %v1449_v36 = vld [vmem:[%s17250_s9 + $0x3e8] sm:$0xff] }
 0x1a2   : > { %2938 = vmatpush1.bf16.msra.mxu1 %v14154_v11  ;;  %3024 = vmatpush1.bf16.msra.mxu0 %v14156_v14  ;;  %v14186_v11 = vcombine.low %v1356_v62, %v1360_v63  ;;  %v14197_v14 = vcombine.high %v1365_v9, %v1369_v10  ;;  %v14227_v48 = vcombine.high %v1396_v42, %v1400_v43 }
 0x1a3   : > { %2939 = vmatprep.subr.bf16.mxu1 %v14163_v44  ;;  %3025 = vmatprep.subr.bf16.mxu0 %v14165_v45  ;;  %v1397_v44 = vld [vmem:[%s17250_s9 + $0x248] sm:$0xff]  ;;  %v14226_v54 = vcombine.low %v1396_v42, %v1400_v43 }
 0x1a4   : > { %v1401_v45 = vld [vmem:[%s17250_s9 + $0x268] sm:$0xff] }
 0x1a5   : > { %v14229_v49 = vcombine.high %v1397_v44, %v1401_v45  ;;  %v14228_v55 = vcombine.low %v1397_v44, %v1401_v45  ;;  %v17421_v42 = vld [vmem:[%s17250_s9 + $0x408] sm:$0xff] }
 0x1a6   : > { %2940 = vmatpush1.bf16.msra.mxu1 %v14162_v50  ;;  %3026 = vmatpush1.bf16.msra.mxu0 %v14164_v51  ;;  %v1404_v50 = vld [vmem:[%s17250_s9 + $0x280] sm:$0xff]  ;;  %v17426_v44 = vld [vmem:[%s17250_s9 + $0x428] sm:$0xff] }
 0x1a7   : > { %2941 = vmatprep.subr.bf16.mxu1 %v14171_v52  ;;  %3027 = vmatprep.subr.bf16.mxu0 %v14173_v53  ;;  %v1408_v51 = vld [vmem:[%s17250_s9 + $0x2a0] sm:$0xff]  ;;  %v1405_v52 = vld [vmem:[%s17250_s9 + $0x288] sm:$0xff] }
 0x1a8   : > { %v1409_v53 = vld [vmem:[%s17250_s9 + $0x2a8] sm:$0xff]  ;;  %v14235_v56 = vcombine.high %v1404_v50, %v1408_v51  ;;  %v14234_v62 = vcombine.low %v1404_v50, %v1408_v51  ;;  %v17439_v50 = vsub.s32 4, %v17342_v17  ;;  %v17442_v51 = vsub.s32 6, %v17342_v17 }
 0x1a9   : > { %v14237_v57 = vcombine.high %v1405_v52, %v1409_v53  ;;  %v14236_v63 = vcombine.low %v1405_v52, %v1409_v53 }
 0x1aa   : > { %2942 = vmatpush1.bf16.msra.mxu1 %v14170_v58  ;;  %3028 = vmatpush1.bf16.msra.mxu0 %v14172_v59  ;;  %v1412_v58 = vld [vmem:[%s17250_s9 + $0x2c0] sm:$0xff] }
 0x1ab   : > { %2943 = vmatprep.subr.bf16.mxu1 %v14179_v60  ;;  %3029 = vmatprep.subr.bf16.mxu0 %v14181_v61  ;;  %v1416_v59 = vld [vmem:[%s17250_s9 + $0x2e0] sm:$0xff]  ;;  %v1413_v60 = vld [vmem:[%s17250_s9 + $0x2c8] sm:$0xff] }
 0x1ac   : > { %v1417_v61 = vld [vmem:[%s17250_s9 + $0x2e8] sm:$0xff]  ;;  %v14243_v1 = vcombine.high %v1412_v58, %v1416_v59  ;;  %v14242_v7 = vcombine.low %v1412_v58, %v1416_v59 }
 0x1ad   : > { %v14245_v2 = vcombine.high %v1413_v60, %v1417_v61  ;;  %v14244_v8 = vcombine.low %v1413_v60, %v1417_v61 }
 0x1ae   : > { %2944 = vmatpush1.bf16.msra.mxu1 %v14178_v3  ;;  %3030 = vmatpush1.bf16.msra.mxu0 %v14180_v4  ;;  %v1420_v3 = vld [vmem:[%s17250_s9 + $0x300] sm:$0xff] }
 0x1af   : > { %2945 = vmatprep.subr.bf16.mxu1 %v14187_v5  ;;  %3031 = vmatprep.subr.bf16.mxu0 %v14189_v6  ;;  %v1424_v4 = vld [vmem:[%s17250_s9 + $0x320] sm:$0xff]  ;;  %v1421_v5 = vld [vmem:[%s17250_s9 + $0x308] sm:$0xff] }
 0x1b0   : > { %v1425_v6 = vld [vmem:[%s17250_s9 + $0x328] sm:$0xff]  ;;  %v14251_v9 = vcombine.high %v1420_v3, %v1424_v4  ;;  %v14250_v15 = vcombine.low %v1420_v3, %v1424_v4 }
 0x1b1   : > { %v14253_v10 = vcombine.high %v1421_v5, %v1425_v6  ;;  %v14252_v16 = vcombine.low %v1421_v5, %v1425_v6 }
 0x1b2   : > { %2946 = vmatpush1.bf16.msra.mxu1 %v14186_v11  ;;  %3032 = vmatpush1.bf16.msra.mxu0 %v14188_v12  ;;  %v1428_v11 = vld [vmem:[%s17250_s9 + $0x340] sm:$0xff] }
 0x1b3   : > { %2947 = vmatprep.subr.bf16.mxu1 %v14195_v13  ;;  %3033 = vmatprep.subr.bf16.mxu0 %v14197_v14  ;;  %v1432_v12 = vld [vmem:[%s17250_s9 + $0x360] sm:$0xff]  ;;  %v1429_v13 = vld [vmem:[%s17250_s9 + $0x348] sm:$0xff] }
 0x1b4   : > { %v1433_v14 = vld [vmem:[%s17250_s9 + $0x368] sm:$0xff]  ;;  %v14259_v18 = vcombine.high %v1428_v11, %v1432_v12 }
 0x1b5   : > { %v14261_v19 = vcombine.high %v1429_v13, %v1433_v14 }
 0x1b6   : > { %2948 = vmatpush1.bf16.msra.mxu1 %v14194_v22  ;;  %3034 = vmatpush1.bf16.msra.mxu0 %v14196_v23  ;;  %v14258_v22 = vcombine.low %v1428_v11, %v1432_v12  ;;  %v14260_v23 = vcombine.low %v1429_v13, %v1433_v14 }
 0x1b7   : > { %2949 = vmatprep.subr.bf16.mxu1 %v14203_v24  ;;  %3035 = vmatprep.subr.bf16.mxu0 %v14205_v25  ;;  %v1436_v24 = vld [vmem:[%s17250_s9 + $0x380] sm:$0xff] }
 0x1b8   : > { %v1440_v25 = vld [vmem:[%s17250_s9 + $0x3a0] sm:$0xff] }
 0x1b9   : > { %v14267_v27 = vcombine.high %v1436_v24, %v1440_v25  ;;  %v14266_v29 = vcombine.low %v1436_v24, %v1440_v25 }
 0x1ba   : > { %2950 = vmatpush1.bf16.msra.mxu1 %v14202_v30  ;;  %3036 = vmatpush1.bf16.msra.mxu0 %v14204_v31  ;;  %v14268_v30 = vcombine.low %v1437_v26, %v1441_v28  ;;  %v14269_v31 = vcombine.high %v1437_v26, %v1441_v28  ;;  %v1464_v26 = vld [vmem:[%s17250_s9 + $0x460] sm:$0xff]  ;;  %v1465_v28 = vld [vmem:[%s17250_s9 + $0x468] sm:$0xff] }
 0x1bb   : > { %2951 = vmatprep.subr.bf16.mxu1 %v14211_v32  ;;  %3037 = vmatprep.subr.bf16.mxu0 %v14213_v33  ;;  %v1444_v32 = vld [vmem:[%s17250_s9 + $0x3c0] sm:$0xff] }
 0x1bc   : > { %v1448_v33 = vld [vmem:[%s17250_s9 + $0x3e0] sm:$0xff] }
 0x1bd   : > { %v14275_v35 = vcombine.high %v1444_v32, %v1448_v33  ;;  %v14274_v37 = vcombine.low %v1444_v32, %v1448_v33 }
 0x1be   : > { %2952 = vmatpush1.bf16.msra.mxu1 %v14210_v38  ;;  %3038 = vmatpush1.bf16.msra.mxu0 %v14212_v39  ;;  %v14276_v38 = vcombine.low %v1445_v34, %v1449_v36  ;;  %v14277_v39 = vcombine.high %v1445_v34, %v1449_v36  ;;  %v1472_v34 = vld [vmem:[%s17250_s9 + $0x4a0] sm:$0xff]  ;;  %v1473_v36 = vld [vmem:[%s17250_s9 + $0x4a8] sm:$0xff] }
 0x1bf   : > { %2953 = vmatprep.subr.bf16.mxu1 %v14219_v40  ;;  %3039 = vmatprep.subr.bf16.mxu0 %v14221_v41  ;;  %v17415_v40 = vld [vmem:[%s17250_s9 + $0x400] sm:$0xff] }
 0x1c0   : > { %v17418_v41 = vld [vmem:[%s17250_s9 + $0x420] sm:$0xff] }
 0x1c1   : > { %v14283_v43 = vcombine.high %v17415_v40, %v17418_v41  ;;  %v14282_v45 = vcombine.low %v17415_v40, %v17418_v41  ;;  %v1476_v41 = vld [vmem:[%s17250_s9 + $0x4c0] sm:$0xff] }
 0x1c2   : > { %2954 = vmatpush1.bf16.msra.mxu1 %v14218_v46  ;;  %3040 = vmatpush1.bf16.msra.mxu0 %v14220_v47  ;;  %v14284_v46 = vcombine.low %v17421_v42, %v17426_v44  ;;  %v14285_v47 = vcombine.high %v17421_v42, %v17426_v44  ;;  %v1480_v42 = vld [vmem:[%s17250_s9 + $0x4e0] sm:$0xff]  ;;  %v1481_v44 = vld [vmem:[%s17250_s9 + $0x4e8] sm:$0xff] }
 0x1c3   : > { %2955 = vmatprep.subr.bf16.mxu1 %v14227_v48  ;;  %3041 = vmatprep.subr.bf16.mxu0 %v14229_v49  ;;  %v867_v48 = vld [vmem:[%s680_s19] sm:$0xf] }
 0x1c4   : > { %v868_v49 = vunpack.c.l.bf16 %v867_v48 }
 0x1c6   : > { %2956 = vmatpush1.bf16.msra.mxu1 %v14226_v54  ;;  %3042 = vmatpush1.bf16.msra.mxu0 %v14228_v55  ;;  %v873_v52 = vrot.slane %v868_v49, %v17345_v20  ;;  %v881_v53 = vrot.slane %v868_v49, %v17439_v50  ;;  %v877_v54 = vrot.slane %v868_v49, %v17348_v21 }
 0x1c7   : > { %2957 = vmatprep.subr.bf16.mxu1 %v14235_v56  ;;  %3043 = vmatprep.subr.bf16.mxu0 %v14237_v57  ;;  %v885_v55 = vrot.slane %v868_v49, %v17442_v51  ;;  %v1484_v49 = vld [vmem:[%s17250_s9 + $0x500] sm:$0xff] }
 0x1c8   : > { %v893_v56 = vrot.slane %v873_v52, %v17345_v20  ;;  %v901_v57 = vrot.slane %v881_v53, %v17345_v20  ;;  %v897_v58 = vrot.slane %v877_v54, %v17345_v20  ;;  %v1488_v52 = vld [vmem:[%s17250_s9 + $0x520] sm:$0xff]  ;;  %v1485_v53 = vld [vmem:[%s17250_s9 + $0x508] sm:$0xff] }
 0x1c9   : > { %v905_v59 = vrot.slane %v885_v55, %v17345_v20  ;;  %v1489_v54 = vld [vmem:[%s17250_s9 + $0x528] sm:$0xff]  ;;  %v14306_v55 = vcombine.low %v1476_v41, %v1480_v42 }
 0x1ca   : > { %2958 = vmatpush1.bf16.msra.mxu1 %v14234_v62  ;;  %3044 = vmatpush1.bf16.msra.mxu0 %v14236_v63 }
 0x1cb   : > { %2959 = vmatprep.subr.bf16.mxu1 %v14243_v1  ;;  %3045 = vmatprep.subr.bf16.mxu0 %v14245_v2 }
 0x1ce   : > { %2960 = vmatpush1.bf16.msra.mxu1 %v14242_v7  ;;  %3046 = vmatpush1.bf16.msra.mxu0 %v14244_v8 }
 0x1cf   : > { %2961 = vmatprep.subr.bf16.mxu1 %v14251_v9  ;;  %3047 = vmatprep.subr.bf16.mxu0 %v14253_v10 }
 0x1d2   : > { %2962 = vmatpush1.bf16.msra.mxu1 %v14250_v15  ;;  %3048 = vmatpush1.bf16.msra.mxu0 %v14252_v16 }
 0x1d3   : > { %2963 = vmatprep.subr.bf16.mxu1 %v14259_v18  ;;  %3049 = vmatprep.subr.bf16.mxu0 %v14261_v19 }
 0x1d6   : > { %2964 = vmatpush1.bf16.msra.mxu1 %v14258_v22  ;;  %3050 = vmatpush1.bf16.msra.mxu0 %v14260_v23  ;;  %v1460_v23 = vld [vmem:[%s17250_s9 + $0x440] sm:$0xff] }
 0x1d7   : > { %2965 = vmatprep.subr.bf16.mxu1 %v14267_v27  ;;  %3051 = vmatprep.subr.bf16.mxu0 %v14269_v31  ;;  %v1461_v27 = vld [vmem:[%s17250_s9 + $0x448] sm:$0xff]  ;;  %v1468_v31 = vld [vmem:[%s17250_s9 + $0x480] sm:$0xff]  ;;  %v14291_v32 = vcombine.high %v1460_v23, %v1464_v26 }
 0x1d8   : > { %v14293_v33 = vcombine.high %v1461_v27, %v1465_v28 }
 0x1da   : > { %2966 = vmatpush1.bf16.msra.mxu1 %v14266_v29  ;;  %3052 = vmatpush1.bf16.msra.mxu0 %v14268_v30 }
 0x1db   : > { %2967 = vmatprep.subr.bf16.mxu1 %v14275_v35  ;;  %3053 = vmatprep.subr.bf16.mxu0 %v14277_v39  ;;  %v1469_v35 = vld [vmem:[%s17250_s9 + $0x488] sm:$0xff]  ;;  %v14299_v39 = vcombine.high %v1468_v31, %v1472_v34 }
 0x1dc   : > { %v14301_v40 = vcombine.high %v1469_v35, %v1473_v36 }
 0x1de   : > { %2968 = vmatpush1.bf16.msra.mxu1 %v14274_v37  ;;  %3054 = vmatpush1.bf16.msra.mxu0 %v14276_v38  ;;  %v14290_v37 = vcombine.low %v1460_v23, %v1464_v26  ;;  %v14292_v38 = vcombine.low %v1461_v27, %v1465_v28  ;;  %v1520_v23 = vld [vmem:[%s17250_s9 + $0x620] sm:$0xff]  ;;  %v1517_v26 = vld [vmem:[%s17250_s9 + $0x608] sm:$0xff] }
 0x1df   : > { %2980 = vmatprep.subr.bf16.mxu1 %v14283_v43  ;;  %3066 = vmatprep.subr.bf16.mxu0 %v14285_v47  ;;  %v1477_v43 = vld [vmem:[%s17250_s9 + $0x4c8] sm:$0xff]  ;;  %v14307_v47 = vcombine.high %v1476_v41, %v1480_v42  ;;  %v1532_v42 = vld [vmem:[%s17250_s9 + $0x680] sm:$0xff] }
 0x1e0   : > { %v14309_v48 = vcombine.high %v1477_v43, %v1481_v44  ;;  %v1521_v27 = vld [vmem:[%s17250_s9 + $0x628] sm:$0xff] }
 0x274   : > { %v1260_v60 = vpop.f32.mrb[0].mxu1  ;;  %v1303_v61 = vpop.f32.mrb[4].mxu0 }
 0x275   : > { %v1261_v17 = vadd.f32 %v1260_v60, %v893_v56  ;;  %v1304_v62 = vadd.f32 %v1303_v61, %v901_v57  ;;  %v1262_v63 = vpop.f32.mrb[1].mxu1  ;;  %v1305_v1 = vpop.f32.mrb[5].mxu0  ;;  %v1496_v60 = vld [vmem:[%s17250_s9 + $0x560] sm:$0xff]  ;;  %v1493_v61 = vld [vmem:[%s17250_s9 + $0x548] sm:$0xff] }
 0x276   : > { %v1263_v2 = vadd.f32 %v1262_v63, %v897_v58  ;;  %v1306_v3 = vadd.f32 %v1305_v1, %v905_v59  ;;  %v1264_v4 = vpop.f32.mrb[2].mxu1  ;;  %v1307_v5 = vpop.f32.mrb[6].mxu0  ;;  %v14316_v63 = vcombine.low %v1485_v53, %v1489_v54 }
 0x277   : > { %v1265_v6 = vadd.f32 %v1264_v4, %v893_v56  ;;  %v1308_v7 = vadd.f32 %v1307_v5, %v901_v57  ;;  %v1266_v8 = vpop.f32.mrb[3].mxu1  ;;  %v1309_v9 = vpop.f32.mrb[7].mxu0  ;;  %v1312_v12 = vmax.f32 %v1261_v17, 0.0  ;;  %v1314_v13 = vmax.f32 %v1304_v62, 0.0  ;;  %v1497_v17 = vld [vmem:[%s17250_s9 + $0x568] sm:$0xff]  ;;  %v1504_v4 = vld [vmem:[%s17250_s9 + $0x5a0] sm:$0xff] }
 0x278   : > { %v1267_v10 = vadd.f32 %v1266_v8, %v897_v58  ;;  %v1310_v11 = vadd.f32 %v1309_v9, %v905_v59  ;;  %v1313_v16 = vmax.f32 %v1263_v2, 0.0  ;;  %v1315_v18 = vmax.f32 %v1306_v3, 0.0  ;;  %v1492_v59 = vld [vmem:[%s17250_s9 + $0x540] sm:$0xff]  ;;  %v1501_v5 = vld [vmem:[%s17250_s9 + $0x588] sm:$0xff] }
 0x279   : > { %v1316_v14 = vmax.f32 %v1265_v6, 0.0  ;;  %v1318_v15 = vmax.f32 %v1308_v7, 0.0  ;;  %v14308_v56 = vcombine.low %v1477_v43, %v1481_v44  ;;  %v14315_v57 = vcombine.high %v1484_v49, %v1488_v52  ;;  %v1500_v3 = vld [vmem:[%s17250_s9 + $0x580] sm:$0xff]  ;;  %v1505_v6 = vld [vmem:[%s17250_s9 + $0x5a8] sm:$0xff] }
 0x27a   : > { %v1317_v19 = vmax.f32 %v1267_v10, 0.0  ;;  %v1319_v22 = vmax.f32 %v1310_v11, 0.0  ;;  %v14317_v58 = vcombine.high %v1485_v53, %v1489_v54  ;;  %v14314_v62 = vcombine.low %v1484_v49, %v1488_v52  ;;  %v1508_v11 = vld [vmem:[%s17250_s9 + $0x5c0] sm:$0xff]  ;;  %v1533_v44 = vld [vmem:[%s17250_s9 + $0x688] sm:$0xff] }
 0x27b   : > { %v17453_v24 = vpack.c.bf16 %v1316_v14, %v1312_v12  ;;  %v17455_v25 = vpack.c.bf16 %v1318_v15, %v1314_v13  ;;  %v14323_v1 = vcombine.high %v1492_v59, %v1496_v60  ;;  %v14325_v2 = vcombine.high %v1493_v61, %v1497_v17  ;;  %v1512_v12 = vld [vmem:[%s17250_s9 + $0x5e0] sm:$0xff]  ;;  %v1509_v13 = vld [vmem:[%s17250_s9 + $0x5c8] sm:$0xff] }
 0x27c   : > { %v17460_v29 = vpack.c.bf16 %v1317_v19, %v1313_v16  ;;  %v17462_v30 = vpack.c.bf16 %v1319_v22, %v1315_v18  ;;  %v14322_v7 = vcombine.low %v1492_v59, %v1496_v60  ;;  %v14324_v8 = vcombine.low %v1493_v61, %v1497_v17  ;;  %v1513_v14 = vld [vmem:[%s17250_s9 + $0x5e8] sm:$0xff]  ;;  %v1516_v22 = vld [vmem:[%s17250_s9 + $0x600] sm:$0xff] }
 0x27d   : > { %v14331_v9 = vcombine.high %v1500_v3, %v1504_v4  ;;  %v14333_v10 = vcombine.high %v1501_v5, %v1505_v6  ;;  %v14330_v15 = vcombine.low %v1500_v3, %v1504_v4  ;;  %v14332_v16 = vcombine.low %v1501_v5, %v1505_v6  ;;  %v1536_v43 = vld [vmem:[%s17250_s9 + $0x6a0] sm:$0xff]  ;;  %v1541_v54 = vld [vmem:[%s17250_s9 + $0x6c8] sm:$0xff] }
 0x27e   : > { %2969 = vmatprep.mubr.bf16.mxu1 %v17460_v29  ;;  %3055 = vmatprep.mubr.bf16.mxu0 %v17460_v29  ;;  %v14339_v18 = vcombine.high %v1508_v11, %v1512_v12  ;;  %v14341_v19 = vcombine.high %v1509_v13, %v1513_v14  ;;  %v14338_v28 = vcombine.low %v1508_v11, %v1512_v12  ;;  %v1540_v52 = vld [vmem:[%s17250_s9 + $0x6c0] sm:$0xff]  ;;  %v1549_v17 = vld [vmem:[%s17250_s9 + $0x708] sm:$0xff] }
 0x27f   : > { %2970 = vmatmul.mubr.bf16.vlgmr.msra.gmra.mrb[4].mxu1 %v17453_v24  ;;  %3056 = vmatmul.mubr.bf16.vlgmr.msra.gmra.mrb[8].mxu0 %v17453_v24  ;;  %v1544_v53 = vld [vmem:[%s17250_s9 + $0x6e0] sm:$0xff]  ;;  %v1557_v6 = vld [vmem:[%s17250_s9 + $0x748] sm:$0xff] }
 0x280   : > { %2981 = vmatpush1.bf16.msra.mxu1 %v14282_v45  ;;  %3067 = vmatpush1.bf16.msra.mxu0 %v14284_v46  ;;  %v14298_v45 = vcombine.low %v1468_v31, %v1472_v34  ;;  %v14300_v46 = vcombine.low %v1469_v35, %v1473_v36  ;;  %v14340_v31 = vcombine.low %v1509_v13, %v1513_v14  ;;  %v1524_v34 = vld [vmem:[%s17250_s9 + $0x640] sm:$0xff]  ;;  %v1525_v36 = vld [vmem:[%s17250_s9 + $0x648] sm:$0xff] }
 0x281   : > { %3012 = vmatprep.mubr.bf16.mxu1 %v17462_v30  ;;  %3098 = vmatprep.mubr.bf16.mxu0 %v17462_v30  ;;  %v1528_v35 = vld [vmem:[%s17250_s9 + $0x660] sm:$0xff]  ;;  %v1565_v14 = vld [vmem:[%s17250_s9 + $0x788] sm:$0xff] }
 0x282   : > { %2982 = vmatprep.subr.bf16.mxu1 %v14291_v32  ;;  %3068 = vmatprep.subr.bf16.mxu0 %v14293_v33  ;;  %v14347_v32 = vcombine.high %v1516_v22, %v1520_v23  ;;  %v14349_v33 = vcombine.high %v1517_v26, %v1521_v27  ;;  %v1548_v60 = vld [vmem:[%s17250_s9 + $0x700] sm:$0xff] }
 0x283   : > { %v1552_v61 = vld [vmem:[%s17250_s9 + $0x720] sm:$0xff] }
 0x284   : > { %2983 = vmatpush1.bf16.msra.mxu1 %v14290_v37  ;;  %3069 = vmatpush1.bf16.msra.mxu0 %v14292_v38  ;;  %v1529_v37 = vld [vmem:[%s17250_s9 + $0x668] sm:$0xff]  ;;  %v14346_v38 = vcombine.low %v1516_v22, %v1520_v23  ;;  %v1556_v4 = vld [vmem:[%s17250_s9 + $0x740] sm:$0xff] }
 0x285   : > { %2984 = vmatprep.subr.bf16.mxu1 %v14299_v39  ;;  %3070 = vmatprep.subr.bf16.mxu0 %v14301_v40  ;;  %v14348_v39 = vcombine.low %v1517_v26, %v1521_v27  ;;  %v14355_v40 = vcombine.high %v1524_v34, %v1528_v35  ;;  %v14357_v41 = vcombine.high %v1525_v36, %v1529_v37  ;;  %v1560_v5 = vld [vmem:[%s17250_s9 + $0x760] sm:$0xff]  ;;  %v1573_v27 = vld [vmem:[%s17250_s9 + $0x7c8] sm:$0xff] }
 0x286   : > { %v1564_v12 = vld [vmem:[%s17250_s9 + $0x780] sm:$0xff] }
 0x287   : > { %v1568_v13 = vld [vmem:[%s17250_s9 + $0x7a0] sm:$0xff] }
 0x288   : > { %2985 = vmatpush1.bf16.msra.mxu1 %v14298_v45  ;;  %3071 = vmatpush1.bf16.msra.mxu0 %v14300_v46  ;;  %v1537_v45 = vld [vmem:[%s17250_s9 + $0x6a8] sm:$0xff]  ;;  %v14354_v46 = vcombine.low %v1524_v34, %v1528_v35  ;;  %v1572_v23 = vld [vmem:[%s17250_s9 + $0x7c0] sm:$0xff]  ;;  %v1326_v35 = vld [vmem:[%s17250_s9 + $0x10] sm:$0xff] }
 0x289   : > { %2986 = vmatprep.subr.bf16.mxu1 %v14307_v47  ;;  %3072 = vmatprep.subr.bf16.mxu0 %v14309_v48  ;;  %v14356_v47 = vcombine.low %v1525_v36, %v1529_v37  ;;  %v14363_v48 = vcombine.high %v1532_v42, %v1536_v43  ;;  %v14365_v49 = vcombine.high %v1533_v44, %v1537_v45  ;;  %v1576_v26 = vld [vmem:[%s17250_s9 + $0x7e0] sm:$0xff]  ;;  %v1330_v36 = vld [vmem:[%s17250_s9 + $0x30] sm:$0xff]  ;;  %v1327_v37 = vld [vmem:[%s17250_s9 + $0x18] sm:$0xff] }
 0x28c   : > { %2987 = vmatpush1.bf16.msra.mxu1 %v14306_v55  ;;  %3073 = vmatpush1.bf16.msra.mxu0 %v14308_v56  ;;  %v1545_v55 = vld [vmem:[%s17250_s9 + $0x6e8] sm:$0xff]  ;;  %v14362_v56 = vcombine.low %v1532_v42, %v1536_v43  ;;  %v1334_v43 = vld [vmem:[%s17250_s9 + $0x50] sm:$0xff] }
 0x28d   : > { %2988 = vmatprep.subr.bf16.mxu1 %v14315_v57  ;;  %3074 = vmatprep.subr.bf16.mxu0 %v14317_v58  ;;  %v14364_v57 = vcombine.low %v1533_v44, %v1537_v45  ;;  %v14371_v58 = vcombine.high %v1540_v52, %v1544_v53  ;;  %v14373_v59 = vcombine.high %v1541_v54, %v1545_v55  ;;  %v1338_v44 = vld [vmem:[%s17250_s9 + $0x70] sm:$0xff]  ;;  %v1335_v45 = vld [vmem:[%s17250_s9 + $0x58] sm:$0xff] }
 0x290   : > { %2989 = vmatpush1.bf16.msra.mxu1 %v14314_v62  ;;  %3075 = vmatpush1.bf16.msra.mxu0 %v14316_v63  ;;  %v1553_v62 = vld [vmem:[%s17250_s9 + $0x728] sm:$0xff]  ;;  %v14370_v63 = vcombine.low %v1540_v52, %v1544_v53  ;;  %v1342_v53 = vld [vmem:[%s17250_s9 + $0x90] sm:$0xff] }
 0x291   : > { %2990 = vmatprep.subr.bf16.mxu1 %v14323_v1  ;;  %3076 = vmatprep.subr.bf16.mxu0 %v14325_v2  ;;  %v14372_v1 = vcombine.low %v1541_v54, %v1545_v55  ;;  %v14379_v2 = vcombine.high %v1548_v60, %v1552_v61  ;;  %v14381_v3 = vcombine.high %v1549_v17, %v1553_v62  ;;  %v1346_v54 = vld [vmem:[%s17250_s9 + $0xb0] sm:$0xff]  ;;  %v1343_v55 = vld [vmem:[%s17250_s9 + $0x98] sm:$0xff] }
 0x294   : > { %2991 = vmatpush1.bf16.msra.mxu1 %v14322_v7  ;;  %3077 = vmatpush1.bf16.msra.mxu0 %v14324_v8  ;;  %v1561_v7 = vld [vmem:[%s17250_s9 + $0x768] sm:$0xff]  ;;  %v14378_v8 = vcombine.low %v1548_v60, %v1552_v61  ;;  %v1350_v61 = vld [vmem:[%s17250_s9 + $0xd0] sm:$0xff] }
 0x295   : > { %2992 = vmatprep.subr.bf16.mxu1 %v14331_v9  ;;  %3078 = vmatprep.subr.bf16.mxu0 %v14333_v10  ;;  %v14380_v9 = vcombine.low %v1549_v17, %v1553_v62  ;;  %v14387_v10 = vcombine.high %v1556_v4, %v1560_v5  ;;  %v14389_v11 = vcombine.high %v1557_v6, %v1561_v7  ;;  %v1354_v17 = vld [vmem:[%s17250_s9 + $0xf0] sm:$0xff]  ;;  %v1351_v62 = vld [vmem:[%s17250_s9 + $0xd8] sm:$0xff] }
 0x298   : > { %2993 = vmatpush1.bf16.msra.mxu1 %v14330_v15  ;;  %3079 = vmatpush1.bf16.msra.mxu0 %v14332_v16  ;;  %v1569_v15 = vld [vmem:[%s17250_s9 + $0x7a8] sm:$0xff]  ;;  %v14386_v16 = vcombine.low %v1556_v4, %v1560_v5  ;;  %v1362_v5 = vld [vmem:[%s17250_s9 + $0x130] sm:$0xff] }
 0x299   : > { %2994 = vmatprep.subr.bf16.mxu1 %v14339_v18  ;;  %3080 = vmatprep.subr.bf16.mxu0 %v14341_v19  ;;  %v14388_v18 = vcombine.low %v1557_v6, %v1561_v7  ;;  %v14395_v19 = vcombine.high %v1564_v12, %v1568_v13  ;;  %v14397_v22 = vcombine.high %v1565_v14, %v1569_v15  ;;  %v1359_v6 = vld [vmem:[%s17250_s9 + $0x118] sm:$0xff] }
 0x29a   : > { %v1363_v7 = vld [vmem:[%s17250_s9 + $0x138] sm:$0xff] }
 0x29c   : > { %2995 = vmatpush1.bf16.msra.mxu1 %v14338_v28  ;;  %3081 = vmatpush1.bf16.msra.mxu0 %v14340_v31  ;;  %v1577_v28 = vld [vmem:[%s17250_s9 + $0x7e8] sm:$0xff]  ;;  %v14394_v31 = vcombine.low %v1564_v12, %v1568_v13  ;;  %v14193_v12 = vcombine.high %v1359_v6, %v1363_v7  ;;  %v1370_v13 = vld [vmem:[%s17250_s9 + $0x170] sm:$0xff] }
 0x29d   : > { %2996 = vmatprep.subr.bf16.mxu1 %v14347_v32  ;;  %3082 = vmatprep.subr.bf16.mxu0 %v14349_v33  ;;  %v14396_v32 = vcombine.low %v1565_v14, %v1569_v15  ;;  %v14403_v33 = vcombine.high %v1572_v23, %v1576_v26  ;;  %v14405_v34 = vcombine.high %v1573_v27, %v1577_v28  ;;  %v1367_v14 = vld [vmem:[%s17250_s9 + $0x158] sm:$0xff] }
 0x29e   : > { %v1371_v15 = vld [vmem:[%s17250_s9 + $0x178] sm:$0xff] }
 0x2a0   : > { %2997 = vmatpush1.bf16.msra.mxu1 %v14346_v38  ;;  %3083 = vmatpush1.bf16.msra.mxu0 %v14348_v39  ;;  %v1331_v38 = vld [vmem:[%s17250_s9 + $0x38] sm:$0xff]  ;;  %v14402_v39 = vcombine.low %v1572_v23, %v1576_v26  ;;  %v14201_v23 = vcombine.high %v1367_v14, %v1371_v15  ;;  %v1378_v26 = vld [vmem:[%s17250_s9 + $0x1b0] sm:$0xff] }
 0x2a1   : > { %2998 = vmatprep.subr.bf16.mxu1 %v14355_v40  ;;  %3084 = vmatprep.subr.bf16.mxu0 %v14357_v41  ;;  %v14404_v40 = vcombine.low %v1573_v27, %v1577_v28  ;;  %v14159_v41 = vcombine.high %v1326_v35, %v1330_v36  ;;  %v14161_v42 = vcombine.high %v1327_v37, %v1331_v38  ;;  %v1375_v27 = vld [vmem:[%s17250_s9 + $0x198] sm:$0xff] }
 0x2a2   : > { %v1379_v28 = vld [vmem:[%s17250_s9 + $0x1b8] sm:$0xff] }
 0x2a4   : > { %2999 = vmatpush1.bf16.msra.mxu1 %v14354_v46  ;;  %3085 = vmatpush1.bf16.msra.mxu0 %v14356_v47  ;;  %v1339_v46 = vld [vmem:[%s17250_s9 + $0x78] sm:$0xff]  ;;  %v14158_v47 = vcombine.low %v1326_v35, %v1330_v36  ;;  %v1386_v35 = vld [vmem:[%s17250_s9 + $0x1f0] sm:$0xff]  ;;  %v14209_v36 = vcombine.high %v1375_v27, %v1379_v28 }
 0x2a5   : > { %3000 = vmatprep.subr.bf16.mxu1 %v14363_v48  ;;  %3086 = vmatprep.subr.bf16.mxu0 %v14365_v49  ;;  %v14160_v48 = vcombine.low %v1327_v37, %v1331_v38  ;;  %v14167_v49 = vcombine.high %v1334_v43, %v1338_v44  ;;  %v14169_v52 = vcombine.high %v1335_v45, %v1339_v46  ;;  %v1383_v37 = vld [vmem:[%s17250_s9 + $0x1d8] sm:$0xff] }
 0x2a6   : > { %v1387_v38 = vld [vmem:[%s17250_s9 + $0x1f8] sm:$0xff] }
 0x2a8   : > { %3001 = vmatpush1.bf16.msra.mxu1 %v14362_v56  ;;  %3087 = vmatpush1.bf16.msra.mxu0 %v14364_v57  ;;  %v1347_v56 = vld [vmem:[%s17250_s9 + $0xb8] sm:$0xff]  ;;  %v14166_v57 = vcombine.low %v1334_v43, %v1338_v44  ;;  %v1394_v43 = vld [vmem:[%s17250_s9 + $0x230] sm:$0xff] }
 0x2a9   : > { %3002 = vmatprep.subr.bf16.mxu1 %v14371_v58  ;;  %3088 = vmatprep.subr.bf16.mxu0 %v14373_v59  ;;  %v14168_v58 = vcombine.low %v1335_v45, %v1339_v46  ;;  %v14175_v59 = vcombine.high %v1342_v53, %v1346_v54  ;;  %v14177_v60 = vcombine.high %v1343_v55, %v1347_v56  ;;  %v1391_v44 = vld [vmem:[%s17250_s9 + $0x218] sm:$0xff] }
 0x2aa   : > { %v14217_v45 = vcombine.high %v1383_v37, %v1387_v38  ;;  %v1395_v46 = vld [vmem:[%s17250_s9 + $0x238] sm:$0xff] }
 0x2ac   : > { %3003 = vmatpush1.bf16.msra.mxu1 %v14370_v63  ;;  %3089 = vmatpush1.bf16.msra.mxu0 %v14372_v1  ;;  %v1355_v63 = vld [vmem:[%s17250_s9 + $0xf8] sm:$0xff]  ;;  %v14174_v1 = vcombine.low %v1342_v53, %v1346_v54  ;;  %v1402_v53 = vld [vmem:[%s17250_s9 + $0x270] sm:$0xff] }
 0x2ad   : > { %3004 = vmatprep.subr.bf16.mxu1 %v14379_v2  ;;  %3090 = vmatprep.subr.bf16.mxu0 %v14381_v3  ;;  %v14183_v2 = vcombine.high %v1350_v61, %v1354_v17  ;;  %v1358_v3 = vld [vmem:[%s17250_s9 + $0x110] sm:$0xff]  ;;  %v14185_v4 = vcombine.high %v1351_v62, %v1355_v63  ;;  %v1399_v54 = vld [vmem:[%s17250_s9 + $0x258] sm:$0xff] }
 0x2b0   : > { %3005 = vmatpush1.bf16.msra.mxu1 %v14378_v8  ;;  %3091 = vmatpush1.bf16.msra.mxu0 %v14380_v9  ;;  %v14182_v8 = vcombine.low %v1350_v61, %v1354_v17  ;;  %v14184_v9 = vcombine.low %v1351_v62, %v1355_v63  ;;  %v1410_v61 = vld [vmem:[%s17250_s9 + $0x2b0] sm:$0xff]  ;;  %v1407_v17 = vld [vmem:[%s17250_s9 + $0x298] sm:$0xff] }
 0x2b1   : > { %3006 = vmatprep.subr.bf16.mxu1 %v14387_v10  ;;  %3092 = vmatprep.subr.bf16.mxu0 %v14389_v11  ;;  %v14191_v10 = vcombine.high %v1358_v3, %v1362_v5  ;;  %v1366_v11 = vld [vmem:[%s17250_s9 + $0x150] sm:$0xff]  ;;  %v1411_v63 = vld [vmem:[%s17250_s9 + $0x2b8] sm:$0xff] }
 0x2b4   : > { %3007 = vmatpush1.bf16.msra.mxu1 %v14386_v16  ;;  %3093 = vmatpush1.bf16.msra.mxu0 %v14388_v18  ;;  %v14190_v16 = vcombine.low %v1358_v3, %v1362_v5  ;;  %v14192_v18 = vcombine.low %v1359_v6, %v1363_v7  ;;  %v1414_v3 = vld [vmem:[%s17250_s9 + $0x2d0] sm:$0xff]  ;;  %v1415_v5 = vld [vmem:[%s17250_s9 + $0x2d8] sm:$0xff]  ;;  %v14241_v6 = vcombine.high %v1407_v17, %v1411_v63 }
 0x2b5   : > { %3008 = vmatprep.subr.bf16.mxu1 %v14395_v19  ;;  %3094 = vmatprep.subr.bf16.mxu0 %v14397_v22  ;;  %v14199_v19 = vcombine.high %v1366_v11, %v1370_v13  ;;  %v1374_v22 = vld [vmem:[%s17250_s9 + $0x190] sm:$0xff]  ;;  %v1419_v7 = vld [vmem:[%s17250_s9 + $0x2f8] sm:$0xff] }
 0x2b8   : > { %3009 = vmatpush1.bf16.msra.mxu1 %v14394_v31  ;;  %3095 = vmatpush1.bf16.msra.mxu0 %v14396_v32  ;;  %v14198_v31 = vcombine.low %v1366_v11, %v1370_v13  ;;  %v14200_v32 = vcombine.low %v1367_v14, %v1371_v15  ;;  %v1422_v11 = vld [vmem:[%s17250_s9 + $0x310] sm:$0xff]  ;;  %v1423_v13 = vld [vmem:[%s17250_s9 + $0x318] sm:$0xff]  ;;  %v14249_v14 = vcombine.high %v1415_v5, %v1419_v7 }
 0x2b9   : > { %3010 = vmatprep.subr.bf16.mxu1 %v14403_v33  ;;  %3096 = vmatprep.subr.bf16.mxu0 %v14405_v34  ;;  %v14207_v33 = vcombine.high %v1374_v22, %v1378_v26  ;;  %v1382_v34 = vld [vmem:[%s17250_s9 + $0x1d0] sm:$0xff]  ;;  %v1427_v15 = vld [vmem:[%s17250_s9 + $0x338] sm:$0xff] }
 0x2bc   : > { %3011 = vmatpush1.bf16.msra.mxu1 %v14402_v39  ;;  %3097 = vmatpush1.bf16.msra.mxu0 %v14404_v40  ;;  %v14206_v39 = vcombine.low %v1374_v22, %v1378_v26  ;;  %v14208_v40 = vcombine.low %v1375_v27, %v1379_v28  ;;  %v1430_v22 = vld [vmem:[%s17250_s9 + $0x350] sm:$0xff]  ;;  %v1431_v26 = vld [vmem:[%s17250_s9 + $0x358] sm:$0xff]  ;;  %v14257_v27 = vcombine.high %v1423_v13, %v1427_v15 }
 0x2bd   : > { %3109 = vmatprep.subr.bf16.mxu1 %v14159_v41  ;;  %3195 = vmatprep.subr.bf16.mxu0 %v14161_v42  ;;  %v14215_v41 = vcombine.high %v1382_v34, %v1386_v35  ;;  %v1390_v42 = vld [vmem:[%s17250_s9 + $0x210] sm:$0xff]  ;;  %v1435_v28 = vld [vmem:[%s17250_s9 + $0x378] sm:$0xff] }
 0x2bf   : > { %3013 = vmatmul.mubr.bf16.vlgmr.msra.gmra.mrb[4].mxu1 %v17455_v25  ;;  %3099 = vmatmul.mubr.bf16.vlgmr.msra.gmra.mrb[8].mxu0 %v17455_v25 }
 0x2c0   : > { %3110 = vmatpush1.bf16.msra.mxu1 %v14158_v47  ;;  %3141 = vmatprep.mubr.bf16.mxu1 %v17460_v29  ;;  %v14214_v47 = vcombine.low %v1382_v34, %v1386_v35  ;;  %v1438_v34 = vld [vmem:[%s17250_s9 + $0x390] sm:$0xff] }
 0x2c1   : > { %3196 = vmatpush1.bf16.msra.mxu0 %v14160_v48  ;;  %3227 = vmatprep.mubr.bf16.mxu0 %v17460_v29  ;;  %v14176_v29 = vcombine.low %v1343_v55, %v1347_v56  ;;  %v14216_v48 = vcombine.low %v1383_v37, %v1387_v38  ;;  %v14225_v55 = vcombine.high %v1391_v44, %v1395_v46  ;;  %v1403_v56 = vld [vmem:[%s17250_s9 + $0x278] sm:$0xff]  ;;  %v1442_v35 = vld [vmem:[%s17250_s9 + $0x3b0] sm:$0xff] }
 0x2c2   : > { %3111 = vmatprep.subr.bf16.mxu1 %v14167_v49  ;;  %3197 = vmatprep.subr.bf16.mxu0 %v14169_v52  ;;  %v14223_v49 = vcombine.high %v1390_v42, %v1394_v43  ;;  %v1398_v52 = vld [vmem:[%s17250_s9 + $0x250] sm:$0xff]  ;;  %v14233_v62 = vcombine.high %v1399_v54, %v1403_v56  ;;  %v14265_v37 = vcombine.high %v1431_v26, %v1435_v28  ;;  %v1443_v38 = vld [vmem:[%s17250_s9 + $0x3b8] sm:$0xff] }
 0x2c4   : > { %3112 = vmatpush1.bf16.msra.mxu1 %v14166_v57  ;;  %v14222_v57 = vcombine.low %v1390_v42, %v1394_v43  ;;  %v1446_v42 = vld [vmem:[%s17250_s9 + $0x3d0] sm:$0xff] }
 0x2c5   : > { %3198 = vmatpush1.bf16.msra.mxu0 %v14168_v58  ;;  %3113 = vmatprep.subr.bf16.mxu1 %v14175_v59  ;;  %v14224_v58 = vcombine.low %v1391_v44, %v1395_v46  ;;  %v14231_v59 = vcombine.high %v1398_v52, %v1402_v53  ;;  %v1450_v43 = vld [vmem:[%s17250_s9 + $0x3f0] sm:$0xff]  ;;  %v1447_v44 = vld [vmem:[%s17250_s9 + $0x3d8] sm:$0xff] }
 0x2c6   : > { %3199 = vmatprep.subr.bf16.mxu0 %v14177_v60  ;;  %v1406_v60 = vld [vmem:[%s17250_s9 + $0x290] sm:$0xff]  ;;  %v1451_v46 = vld [vmem:[%s17250_s9 + $0x3f8] sm:$0xff] }
 0x2c8   : > { %3114 = vmatpush1.bf16.msra.mxu1 %v14174_v1  ;;  %v14230_v1 = vcombine.low %v1398_v52, %v1402_v53  ;;  %v14279_v53 = vcombine.high %v1446_v42, %v1450_v43 }
 0x2c9   : > { %3200 = vmatpush1.bf16.msra.mxu0 %v14176_v29  ;;  %3115 = vmatprep.subr.bf16.mxu1 %v14183_v2  ;;  %v14232_v29 = vcombine.low %v1399_v54, %v1403_v56  ;;  %v14239_v2 = vcombine.high %v1406_v60, %v1410_v61  ;;  %v1455_v54 = vld [vmem:[%s17250_s9 + $0x418] sm:$0xff] }
 0x2ca   : > { %3201 = vmatprep.subr.bf16.mxu0 %v14185_v4  ;;  %v1418_v4 = vld [vmem:[%s17250_s9 + $0x2f0] sm:$0xff]  ;;  %v1459_v56 = vld [vmem:[%s17250_s9 + $0x438] sm:$0xff] }
 0x2cc   : > { %3116 = vmatpush1.bf16.msra.mxu1 %v14182_v8  ;;  %v14238_v8 = vcombine.low %v1406_v60, %v1410_v61  ;;  %v1462_v60 = vld [vmem:[%s17250_s9 + $0x450] sm:$0xff] }
 0x2cd   : > { %3202 = vmatpush1.bf16.msra.mxu0 %v14184_v9  ;;  %3117 = vmatprep.subr.bf16.mxu1 %v14191_v10  ;;  %v14240_v9 = vcombine.low %v1407_v17, %v1411_v63  ;;  %v14247_v10 = vcombine.high %v1414_v3, %v1418_v4  ;;  %v1466_v61 = vld [vmem:[%s17250_s9 + $0x470] sm:$0xff]  ;;  %v14289_v17 = vcombine.high %v1455_v54, %v1459_v56  ;;  %v1467_v63 = vld [vmem:[%s17250_s9 + $0x478] sm:$0xff] }
 0x2ce   : > { %3203 = vmatprep.subr.bf16.mxu0 %v14193_v12  ;;  %v1426_v12 = vld [vmem:[%s17250_s9 + $0x330] sm:$0xff] }
 0x2d0   : > { %3118 = vmatpush1.bf16.msra.mxu1 %v14190_v16  ;;  %v14246_v16 = vcombine.low %v1414_v3, %v1418_v4  ;;  %v14288_v3 = vcombine.low %v1455_v54, %v1459_v56  ;;  %v1471_v4 = vld [vmem:[%s17250_s9 + $0x498] sm:$0xff]  ;;  %v1518_v56 = vld [vmem:[%s17250_s9 + $0x610] sm:$0xff] }
 0x2d1   : > { %3204 = vmatpush1.bf16.msra.mxu0 %v14192_v18  ;;  %3119 = vmatprep.subr.bf16.mxu1 %v14199_v19  ;;  %v14248_v18 = vcombine.low %v1415_v5, %v1419_v7  ;;  %v14255_v19 = vcombine.high %v1422_v11, %v1426_v12  ;;  %v1475_v5 = vld [vmem:[%s17250_s9 + $0x4b8] sm:$0xff] }
 0x2d2   : > { %3205 = vmatprep.subr.bf16.mxu0 %v14201_v23  ;;  %v1434_v23 = vld [vmem:[%s17250_s9 + $0x370] sm:$0xff] }
 0x2d4   : > { %3120 = vmatpush1.bf16.msra.mxu1 %v14198_v31  ;;  %v14254_v31 = vcombine.low %v1422_v11, %v1426_v12 }
 0x2d5   : > { %3206 = vmatpush1.bf16.msra.mxu0 %v14200_v32  ;;  %3121 = vmatprep.subr.bf16.mxu1 %v14207_v33  ;;  %v14256_v32 = vcombine.low %v1423_v13, %v1427_v15  ;;  %v14263_v33 = vcombine.high %v1430_v22, %v1434_v23  ;;  %v1479_v13 = vld [vmem:[%s17250_s9 + $0x4d8] sm:$0xff]  ;;  %v14305_v15 = vcombine.high %v1471_v4, %v1475_v5 }
 0x2d6   : > { %3207 = vmatprep.subr.bf16.mxu0 %v14209_v36  ;;  %v1439_v36 = vld [vmem:[%s17250_s9 + $0x398] sm:$0xff] }
 0x2d7   : > { %v14272_v52 = vcombine.low %v1439_v36, %v1443_v38 }
 0x2d8   : > { %3122 = vmatpush1.bf16.msra.mxu1 %v14206_v39  ;;  %v14262_v39 = vcombine.low %v1430_v22, %v1434_v23  ;;  %v1487_v23 = vld [vmem:[%s17250_s9 + $0x518] sm:$0xff] }
 0x2d9   : > { %3208 = vmatpush1.bf16.msra.mxu0 %v14208_v40  ;;  %3123 = vmatprep.subr.bf16.mxu1 %v14215_v41  ;;  %v14264_v40 = vcombine.low %v1431_v26, %v1435_v28  ;;  %v14271_v41 = vcombine.high %v1438_v34, %v1442_v35  ;;  %v1491_v26 = vld [vmem:[%s17250_s9 + $0x538] sm:$0xff]  ;;  %v1494_v28 = vld [vmem:[%s17250_s9 + $0x550] sm:$0xff] }
 0x2da   : > { %3209 = vmatprep.subr.bf16.mxu0 %v14217_v45  ;;  %v14273_v45 = vcombine.high %v1439_v36, %v1443_v38  ;;  %v14321_v36 = vcombine.high %v1487_v23, %v1491_v26  ;;  %v1502_v38 = vld [vmem:[%s17250_s9 + $0x590] sm:$0xff] }
 0x2dc   : > { %3124 = vmatpush1.bf16.msra.mxu1 %v14214_v47  ;;  %v14270_v47 = vcombine.low %v1438_v34, %v1442_v35  ;;  %v1495_v34 = vld [vmem:[%s17250_s9 + $0x558] sm:$0xff] }
 0x2dd   : > { %3210 = vmatpush1.bf16.msra.mxu0 %v14216_v48  ;;  %3125 = vmatprep.subr.bf16.mxu1 %v14223_v49  ;;  %v1454_v48 = vld [vmem:[%s17250_s9 + $0x410] sm:$0xff]  ;;  %v1499_v35 = vld [vmem:[%s17250_s9 + $0x578] sm:$0xff] }
 0x2de   : > { %3211 = vmatprep.subr.bf16.mxu0 %v14225_v55  ;;  %v1458_v49 = vld [vmem:[%s17250_s9 + $0x430] sm:$0xff]  ;;  %v14281_v55 = vcombine.high %v1447_v44, %v1451_v46 }
 0x2e0   : > { %3126 = vmatpush1.bf16.msra.mxu1 %v14222_v57  ;;  %v14278_v57 = vcombine.low %v1446_v42, %v1450_v43  ;;  %v1503_v42 = vld [vmem:[%s17250_s9 + $0x598] sm:$0xff] }
 0x2e1   : > { %3212 = vmatpush1.bf16.msra.mxu0 %v14224_v58  ;;  %3127 = vmatprep.subr.bf16.mxu1 %v14231_v59  ;;  %v14280_v58 = vcombine.low %v1447_v44, %v1451_v46  ;;  %v14287_v59 = vcombine.high %v1454_v48, %v1458_v49  ;;  %v1507_v43 = vld [vmem:[%s17250_s9 + $0x5b8] sm:$0xff]  ;;  %v14329_v44 = vcombine.high %v1495_v34, %v1499_v35  ;;  %v1510_v46 = vld [vmem:[%s17250_s9 + $0x5d0] sm:$0xff] }
 0x2e2   : > { %3213 = vmatprep.subr.bf16.mxu0 %v14233_v62  ;;  %v1463_v62 = vld [vmem:[%s17250_s9 + $0x458] sm:$0xff]  ;;  %v14337_v54 = vcombine.high %v1503_v42, %v1507_v43 }
 0x2e3   : > { %v14297_v7 = vcombine.high %v1463_v62, %v1467_v63  ;;  %v14296_v11 = vcombine.low %v1463_v62, %v1467_v63  ;;  %v1526_v63 = vld [vmem:[%s17250_s9 + $0x650] sm:$0xff] }
 0x2e4   : > { %3128 = vmatpush1.bf16.msra.mxu1 %v14230_v1  ;;  %v14286_v1 = vcombine.low %v1454_v48, %v1458_v49  ;;  %v14328_v48 = vcombine.low %v1495_v34, %v1499_v35  ;;  %v1555_v34 = vld [vmem:[%s17250_s9 + $0x738] sm:$0xff] }
 0x2e5   : > { %3214 = vmatpush1.bf16.msra.mxu0 %v14232_v29  ;;  %3129 = vmatprep.subr.bf16.mxu1 %v14239_v2  ;;  %v1470_v29 = vld [vmem:[%s17250_s9 + $0x490] sm:$0xff] }
 0x2e6   : > { %3215 = vmatprep.subr.bf16.mxu0 %v14241_v6  ;;  %v1474_v2 = vld [vmem:[%s17250_s9 + $0x4b0] sm:$0xff]  ;;  %v14295_v6 = vcombine.high %v1462_v60, %v1466_v61 }
 0x2e7   : > { %v14303_v12 = vcombine.high %v1470_v29, %v1474_v2 }
 0x2e8   : > { %3130 = vmatpush1.bf16.msra.mxu1 %v14238_v8  ;;  %v14294_v8 = vcombine.low %v1462_v60, %v1466_v61  ;;  %v1519_v60 = vld [vmem:[%s17250_s9 + $0x618] sm:$0xff] }
 0x2e9   : > { %3216 = vmatpush1.bf16.msra.mxu0 %v14240_v9  ;;  %3131 = vmatprep.subr.bf16.mxu1 %v14247_v10  ;;  %v1478_v9 = vld [vmem:[%s17250_s9 + $0x4d0] sm:$0xff]  ;;  %v1523_v61 = vld [vmem:[%s17250_s9 + $0x638] sm:$0xff] }
 0x2ea   : > { %3217 = vmatprep.subr.bf16.mxu0 %v14249_v14  ;;  %v1482_v10 = vld [vmem:[%s17250_s9 + $0x4f0] sm:$0xff]  ;;  %v1483_v14 = vld [vmem:[%s17250_s9 + $0x4f8] sm:$0xff] }
 0x2eb   : > { %v14311_v22 = vcombine.high %v1478_v9, %v1482_v10 }
 0x2ec   : > { %3132 = vmatpush1.bf16.msra.mxu1 %v14246_v16  ;;  %v1486_v16 = vld [vmem:[%s17250_s9 + $0x510] sm:$0xff] }
 0x2ed   : > { %3218 = vmatpush1.bf16.msra.mxu0 %v14248_v18  ;;  %3133 = vmatprep.subr.bf16.mxu1 %v14255_v19  ;;  %v1490_v18 = vld [vmem:[%s17250_s9 + $0x530] sm:$0xff]  ;;  %v14304_v19 = vcombine.low %v1471_v4, %v1475_v5  ;;  %v1531_v4 = vld [vmem:[%s17250_s9 + $0x678] sm:$0xff]  ;;  %v14353_v5 = vcombine.high %v1519_v60, %v1523_v61 }
 0x2ee   : > { %3219 = vmatprep.subr.bf16.mxu0 %v14257_v27  ;;  %v14310_v27 = vcombine.low %v1478_v9, %v1482_v10  ;;  %v1538_v10 = vld [vmem:[%s17250_s9 + $0x6b0] sm:$0xff] }
 0x2f0   : > { %3134 = vmatpush1.bf16.msra.mxu1 %v14254_v31  ;;  %v1498_v31 = vld [vmem:[%s17250_s9 + $0x570] sm:$0xff] }
 0x2f1   : > { %3220 = vmatpush1.bf16.msra.mxu0 %v14256_v32  ;;  %3135 = vmatprep.subr.bf16.mxu1 %v14263_v33  ;;  %v14312_v32 = vcombine.low %v1479_v13, %v1483_v14  ;;  %v14319_v33 = vcombine.high %v1486_v16, %v1490_v18 }
 0x2f2   : > { %3221 = vmatprep.subr.bf16.mxu0 %v14265_v37  ;;  %v14318_v37 = vcombine.low %v1486_v16, %v1490_v18  ;;  %v1542_v18 = vld [vmem:[%s17250_s9 + $0x6d0] sm:$0xff] }
 0x2f4   : > { %3136 = vmatpush1.bf16.msra.mxu1 %v14262_v39  ;;  %v1506_v39 = vld [vmem:[%s17250_s9 + $0x5b0] sm:$0xff] }
 0x2f5   : > { %3222 = vmatpush1.bf16.msra.mxu0 %v14264_v40  ;;  %3137 = vmatprep.subr.bf16.mxu1 %v14271_v41  ;;  %v14320_v40 = vcombine.low %v1487_v23, %v1491_v26  ;;  %v14327_v41 = vcombine.high %v1494_v28, %v1498_v31  ;;  %v14335_v49 = vcombine.high %v1502_v38, %v1506_v39  ;;  %v1547_v23 = vld [vmem:[%s17250_s9 + $0x6f8] sm:$0xff] }
 0x2f6   : > { %3223 = vmatprep.subr.bf16.mxu0 %v14273_v45  ;;  %v14326_v45 = vcombine.low %v1494_v28, %v1498_v31  ;;  %v1550_v31 = vld [vmem:[%s17250_s9 + $0x710] sm:$0xff] }
 0x2f8   : > { %3138 = vmatpush1.bf16.msra.mxu1 %v14270_v47  ;;  %v1514_v47 = vld [vmem:[%s17250_s9 + $0x5f0] sm:$0xff] }
 0x2f9   : > { %3224 = vmatpush1.bf16.msra.mxu0 %v14272_v52  ;;  %3139 = vmatprep.subr.bf16.mxu1 %v14279_v53  ;;  %v1511_v52 = vld [vmem:[%s17250_s9 + $0x5d8] sm:$0xff]  ;;  %v14342_v62 = vcombine.low %v1510_v46, %v1514_v47 }
 0x2fa   : > { %3225 = vmatprep.subr.bf16.mxu0 %v14281_v55  ;;  %v1515_v53 = vld [vmem:[%s17250_s9 + $0x5f8] sm:$0xff]  ;;  %v14334_v55 = vcombine.low %v1502_v38, %v1506_v39  ;;  %v1558_v39 = vld [vmem:[%s17250_s9 + $0x750] sm:$0xff] }
 0x2fc   : > { %3140 = vmatpush1.bf16.msra.mxu1 %v14278_v57  ;;  %v1522_v57 = vld [vmem:[%s17250_s9 + $0x630] sm:$0xff] }
 0x2fd   : > { %3226 = vmatpush1.bf16.msra.mxu0 %v14280_v58  ;;  %3152 = vmatprep.subr.bf16.mxu1 %v14287_v59  ;;  %v14336_v58 = vcombine.low %v1503_v42, %v1507_v43  ;;  %v14343_v59 = vcombine.high %v1510_v46, %v1514_v47  ;;  %v1563_v42 = vld [vmem:[%s17250_s9 + $0x778] sm:$0xff]  ;;  %v1566_v47 = vld [vmem:[%s17250_s9 + $0x790] sm:$0xff] }
 0x2fe   : > { %3238 = vmatprep.subr.bf16.mxu0 %v14289_v17  ;;  %v14345_v17 = vcombine.high %v1511_v52, %v1515_v53 }
 0x2ff   : > { %3142 = vmatmul.mubr.bf16.vlgmr.msra.gmra.mrb[8].mxu1 %v17453_v24 }
 0x300   : > { %3228 = vmatmul.mubr.bf16.vlgmr.msra.gmra.mrb[12].mxu0 %v17453_v24  ;;  %3153 = vmatpush1.bf16.msra.mxu1 %v14286_v1  ;;  %v14302_v24 = vcombine.low %v1470_v29, %v1474_v2  ;;  %v1530_v1 = vld [vmem:[%s17250_s9 + $0x670] sm:$0xff]  ;;  %v14344_v29 = vcombine.low %v1511_v52, %v1515_v53  ;;  %v14351_v2 = vcombine.high %v1518_v56, %v1522_v57  ;;  %v1571_v52 = vld [vmem:[%s17250_s9 + $0x7b8] sm:$0xff] }
 0x301   : > { %3184 = vmatprep.mubr.bf16.mxu1 %v17462_v30  ;;  %3239 = vmatpush1.bf16.msra.mxu0 %v14288_v3  ;;  %v1527_v3 = vld [vmem:[%s17250_s9 + $0x658] sm:$0xff]  ;;  %v14359_v9 = vcombine.high %v1526_v63, %v1530_v1 }
 0x302   : > { %3270 = vmatprep.mubr.bf16.mxu0 %v17462_v30  ;;  %3154 = vmatprep.subr.bf16.mxu1 %v14295_v6  ;;  %v14313_v30 = vcombine.high %v1479_v13, %v1483_v14  ;;  %v14350_v6 = vcombine.low %v1518_v56, %v1522_v57  ;;  %v1539_v13 = vld [vmem:[%s17250_s9 + $0x6b8] sm:$0xff]  ;;  %v14358_v14 = vcombine.low %v1526_v63, %v1530_v1  ;;  %v1574_v57 = vld [vmem:[%s17250_s9 + $0x7d0] sm:$0xff] }
 0x303   : > { %3240 = vmatprep.subr.bf16.mxu0 %v14297_v7  ;;  %v1534_v7 = vld [vmem:[%s17250_s9 + $0x690] sm:$0xff]  ;;  %v16248_v1 = vld [vmem:[%s17547_s1 + $0x4] ss:$20 sps:$4 sm:$0xff]  }
 0x304   : > { %3155 = vmatpush1.bf16.msra.mxu1 %v14294_v8  ;;  %v14352_v8 = vcombine.low %v1519_v60, %v1523_v61  ;;  %v14366_v26 = vcombine.low %v1534_v7, %v1538_v10  ;;  %v1579_v60 = vld [vmem:[%s17250_s9 + $0x7f8] sm:$0xff] }
 0x305   : > { %3241 = vmatpush1.bf16.msra.mxu0 %v14296_v11  ;;  %3156 = vmatprep.subr.bf16.mxu1 %v14303_v12  ;;  %v14361_v11 = vcombine.high %v1527_v3, %v1531_v4  ;;  %v1535_v12 = vld [vmem:[%s17250_s9 + $0x698] sm:$0xff] }
 0x306   : > { %3242 = vmatprep.subr.bf16.mxu0 %v14305_v15  ;;  %v14360_v15 = vcombine.low %v1527_v3, %v1531_v4  ;;  %v14369_v16 = vcombine.high %v1535_v12, %v1539_v13  ;;  %v16246_v3 = vld [vmem:[%s17547_s1] ss:$20 sps:$4 sm:$0xff]  }
 0x307   : > { %v16251_v4 = vld [vmem:[%s17547_s1 + $0xc] ss:$20 sps:$4 sm:$0xff]  }
 0x308   : > { %3157 = vmatpush1.bf16.msra.mxu1 %v14302_v24  ;;  %v14367_v24 = vcombine.high %v1534_v7, %v1538_v10  ;;  %v16252_v7 = vld [vmem:[%s17547_s1 + $0x28] ss:$20 sps:$4 sm:$0xff]  }
 0x309   : > { %3243 = vmatpush1.bf16.msra.mxu0 %v14304_v19  ;;  %3158 = vmatprep.subr.bf16.mxu1 %v14311_v22  ;;  %v1546_v19 = vld [vmem:[%s17250_s9 + $0x6f0] sm:$0xff]  ;;  %v1543_v22 = vld [vmem:[%s17250_s9 + $0x6d8] sm:$0xff] }
 0x30a   : > { %3244 = vmatprep.subr.bf16.mxu0 %v14313_v30  ;;  %v14368_v30 = vcombine.low %v1535_v12, %v1539_v13  ;;  %v14377_v28 = vcombine.high %v1543_v22, %v1547_v23  ;;  %v14374_v35 = vcombine.low %v1542_v18, %v1546_v19  ;;  %v16260_v10 = vld [vmem:[%s17547_s1 + $0x54] ss:$20 sps:$4 sm:$0xff]   ;;  %v16263_v12 = vld [vmem:[%s17547_s1 + $0x5c] ss:$20 sps:$4 sm:$0xff]   ;;  %v16261_v13 = vld [vmem:[%s17547_s1 + $0x58] ss:$20 sps:$4 sm:$0xff]  }
 0x30c   : > { %3159 = vmatpush1.bf16.msra.mxu1 %v14310_v27  ;;  %v14375_v27 = vcombine.high %v1542_v18, %v1546_v19  ;;  %v16270_v18 = vld [vmem:[%s17547_s1 + $0xa0] ss:$20 sps:$4 sm:$0xff]  }
 0x30d   : > { %3245 = vmatpush1.bf16.msra.mxu0 %v14312_v32  ;;  %3160 = vmatprep.subr.bf16.mxu1 %v14319_v33  ;;  %v1554_v32 = vld [vmem:[%s17250_s9 + $0x730] sm:$0xff]  ;;  %v1551_v33 = vld [vmem:[%s17250_s9 + $0x718] sm:$0xff]  ;;  %v16275_v19 = vld [vmem:[%s17547_s1 + $0xac] ss:$20 sps:$4 sm:$0xff]  }
 0x30e   : > { %3246 = vmatprep.subr.bf16.mxu0 %v14321_v36  ;;  %v14376_v36 = vcombine.low %v1543_v22, %v1547_v23  ;;  %v14385_v38 = vcombine.high %v1551_v33, %v1555_v34  ;;  %v14382_v43 = vcombine.low %v1550_v31, %v1554_v32  ;;  %v16273_v22 = vld [vmem:[%s17547_s1 + $0xa8] ss:$20 sps:$4 sm:$0xff]   ;;  %v16278_v23 = vld [vmem:[%s17547_s1 + $0xcc] ss:$20 sps:$4 sm:$0xff]  }
 0x310   : > { %3161 = vmatpush1.bf16.msra.mxu1 %v14318_v37  ;;  %v14383_v37 = vcombine.high %v1550_v31, %v1554_v32  ;;  %v16282_v31 = vld [vmem:[%s17547_s1 + $0xf0] ss:$20 sps:$4 sm:$0xff]  }
 0x311   : > { %3247 = vmatpush1.bf16.msra.mxu0 %v14320_v40  ;;  %3162 = vmatprep.subr.bf16.mxu1 %v14327_v41  ;;  %v1562_v40 = vld [vmem:[%s17250_s9 + $0x770] sm:$0xff]  ;;  %v1559_v41 = vld [vmem:[%s17250_s9 + $0x758] sm:$0xff] }
 0x312   : > { %3248 = vmatprep.subr.bf16.mxu0 %v14329_v44  ;;  %v14384_v44 = vcombine.low %v1551_v33, %v1555_v34  ;;  %v14393_v46 = vcombine.high %v1559_v41, %v1563_v42  ;;  %v14390_v53 = vcombine.low %v1558_v39, %v1562_v40  ;;  %v16287_v32 = vld [vmem:[%s17547_s1 + $0xfc] ss:$20 sps:$4 sm:$0xff]   ;;  %v16285_v33 = vld [vmem:[%s17547_s1 + $0xf8] ss:$20 sps:$4 sm:$0xff]  }
 0x313   : > { %v16290_v34 = vld [vmem:[%s17547_s1 + $0x11c] ss:$20 sps:$4 sm:$0xff]  }
 0x314   : > { %3163 = vmatpush1.bf16.msra.mxu1 %v14326_v45  ;;  %v14391_v45 = vcombine.high %v1558_v39, %v1562_v40  ;;  %v16299_v39 = vld [vmem:[%s17547_s1 + $0x14c] ss:$20 sps:$4 sm:$0xff]  }
 0x315   : > { %3249 = vmatpush1.bf16.msra.mxu0 %v14328_v48  ;;  %3164 = vmatprep.subr.bf16.mxu1 %v14335_v49  ;;  %v1570_v48 = vld [vmem:[%s17250_s9 + $0x7b0] sm:$0xff]  ;;  %v1567_v49 = vld [vmem:[%s17250_s9 + $0x798] sm:$0xff] }
 0x316   : > { %3250 = vmatprep.subr.bf16.mxu0 %v14337_v54  ;;  %v14392_v54 = vcombine.low %v1559_v41, %v1563_v42  ;;  %v14401_v56 = vcombine.high %v1567_v49, %v1571_v52  ;;  %v14398_v61 = vcombine.low %v1566_v47, %v1570_v48  ;;  %v16294_v40 = vld [vmem:[%s17547_s1 + $0x140] ss:$20 sps:$4 sm:$0xff]   ;;  %v16297_v41 = vld [vmem:[%s17547_s1 + $0x148] ss:$20 sps:$4 sm:$0xff]  }
 0x317   : > { %v16302_v42 = vld [vmem:[%s17547_s1 + $0x16c] ss:$20 sps:$4 sm:$0xff]  }
 0x318   : > { %3165 = vmatpush1.bf16.msra.mxu1 %v14334_v55  ;;  %v14399_v55 = vcombine.high %v1566_v47, %v1570_v48  ;;  %v16306_v47 = vld [vmem:[%s17547_s1 + $0x190] ss:$20 sps:$4 sm:$0xff]  }
 0x319   : > { %3251 = vmatpush1.bf16.msra.mxu0 %v14336_v58  ;;  %3166 = vmatprep.subr.bf16.mxu1 %v14343_v59  ;;  %v1578_v58 = vld [vmem:[%s17250_s9 + $0x7f0] sm:$0xff]  ;;  %v1575_v59 = vld [vmem:[%s17250_s9 + $0x7d8] sm:$0xff]  ;;  %s684_s9 = scalar_lea.vmem %s19474_s15, %s14083_s23 }
 0x31a   : > { %3252 = vmatprep.subr.bf16.mxu0 %v14345_v17  ;;  %v14400_v17 = vcombine.low %v1567_v49, %v1571_v52  ;;  %v14409_v63 = vcombine.high %v1575_v59, %v1579_v60  ;;  %v16311_v48 = vld [vmem:[%s17547_s1 + $0x19c] ss:$20 sps:$4 sm:$0xff]   ;;  %v16309_v49 = vld [vmem:[%s17547_s1 + $0x198] ss:$20 sps:$4 sm:$0xff]  }
 0x31b   : > { %v16314_v52 = vld [vmem:[%s17547_s1 + $0x1bc] ss:$20 sps:$4 sm:$0xff]  }
 0x31c   : > { %3167 = vmatpush1.bf16.msra.mxu1 %v14342_v62  ;;  %v14407_v62 = vcombine.high %v1574_v57, %v1578_v58 }
 0x31d   : > { %3253 = vmatpush1.bf16.msra.mxu0 %v14344_v29  ;;  %3168 = vmatprep.subr.bf16.mxu1 %v14351_v2  ;;  %v14406_v29 = vcombine.low %v1574_v57, %v1578_v58  ;;  %v14408_v2 = vcombine.low %v1575_v59, %v1579_v60  ;;  %v16318_v57 = vld [vmem:[%s17547_s1 + $0x1e0] ss:$20 sps:$4 sm:$0xff]   ;;  %v16321_v59 = vld [vmem:[%s17547_s1 + $0x1e8] ss:$20 sps:$4 sm:$0xff]  }
 0x31e   : > { %3254 = vmatprep.subr.bf16.mxu0 %v14353_v5  ;;  %v16249_v5 = vld [vmem:[%s17547_s1 + $0x8] ss:$20 sps:$4 sm:$0xff]   ;;  %v16323_v58 = vld [vmem:[%s17547_s1 + $0x1ec] ss:$20 sps:$4 sm:$0xff]  }
 0x31f   : > { %v16326_v60 = vld [vmem:[%s17547_s1 + $0x20c] ss:$20 sps:$4 sm:$0xff]  }
 0x320   : > { %3169 = vmatpush1.bf16.msra.mxu1 %v14350_v6  ;;  %v16254_v6 = vld [vmem:[%s17547_s1 + $0x2c] ss:$20 sps:$4 sm:$0xff]  }
 0x321   : > { %3255 = vmatpush1.bf16.msra.mxu0 %v14352_v8  ;;  %3170 = vmatprep.subr.bf16.mxu1 %v14359_v9  ;;  %v16257_v8 = vld [vmem:[%s17547_s1 + $0x34] ss:$20 sps:$4 sm:$0xff]   ;;  %v16255_v9 = vld [vmem:[%s17547_s1 + $0x30] ss:$20 sps:$4 sm:$0xff]  }
 0x322   : > { %3256 = vmatprep.subr.bf16.mxu0 %v14361_v11  ;;  %v16258_v11 = vld [vmem:[%s17547_s1 + $0x50] ss:$20 sps:$4 sm:$0xff]  }
 0x324   : > { %3171 = vmatpush1.bf16.msra.mxu1 %v14358_v14  ;;  %v16266_v14 = vld [vmem:[%s17547_s1 + $0x7c] ss:$20 sps:$4 sm:$0xff]  }
 0x325   : > { %3257 = vmatpush1.bf16.msra.mxu0 %v14360_v15  ;;  %3172 = vmatprep.subr.bf16.mxu1 %v14367_v24  ;;  %v16264_v15 = vld [vmem:[%s17547_s1 + $0x78] ss:$20 sps:$4 sm:$0xff]   ;;  %v16267_v24 = vld [vmem:[%s17547_s1 + $0x80] ss:$20 sps:$4 sm:$0xff]  }
 0x326   : > { %3258 = vmatprep.subr.bf16.mxu0 %v14369_v16  ;;  %v16272_v16 = vld [vmem:[%s17547_s1 + $0xa4] ss:$20 sps:$4 sm:$0xff]  }
 0x328   : > { %3173 = vmatpush1.bf16.msra.mxu1 %v14366_v26  ;;  %v16276_v26 = vld [vmem:[%s17547_s1 + $0xc8] ss:$20 sps:$4 sm:$0xff]  }
 0x329   : > { %3259 = vmatpush1.bf16.msra.mxu0 %v14368_v30  ;;  %3174 = vmatprep.subr.bf16.mxu1 %v14375_v27  ;;  %v16281_v30 = vld [vmem:[%s17547_s1 + $0xd4] ss:$20 sps:$4 sm:$0xff]   ;;  %v16279_v27 = vld [vmem:[%s17547_s1 + $0xd0] ss:$20 sps:$4 sm:$0xff]  }
 0x32a   : > { %3260 = vmatprep.subr.bf16.mxu0 %v14377_v28  ;;  %v16284_v28 = vld [vmem:[%s17547_s1 + $0xf4] ss:$20 sps:$4 sm:$0xff]  }
 0x32c   : > { %3175 = vmatpush1.bf16.msra.mxu1 %v14374_v35  ;;  %v16288_v35 = vld [vmem:[%s17547_s1 + $0x118] ss:$20 sps:$4 sm:$0xff]  }
 0x32d   : > { %3261 = vmatpush1.bf16.msra.mxu0 %v14376_v36  ;;  %3176 = vmatprep.subr.bf16.mxu1 %v14383_v37  ;;  %v16293_v36 = vld [vmem:[%s17547_s1 + $0x124] ss:$20 sps:$4 sm:$0xff]   ;;  %v16291_v37 = vld [vmem:[%s17547_s1 + $0x120] ss:$20 sps:$4 sm:$0xff]  }
 0x32e   : > { %3262 = vmatprep.subr.bf16.mxu0 %v14385_v38  ;;  %v16296_v38 = vld [vmem:[%s17547_s1 + $0x144] ss:$20 sps:$4 sm:$0xff]  }
 0x330   : > { %3177 = vmatpush1.bf16.msra.mxu1 %v14382_v43  ;;  %v16300_v43 = vld [vmem:[%s17547_s1 + $0x168] ss:$20 sps:$4 sm:$0xff]  }
 0x331   : > { %3263 = vmatpush1.bf16.msra.mxu0 %v14384_v44  ;;  %3178 = vmatprep.subr.bf16.mxu1 %v14391_v45  ;;  %v16305_v44 = vld [vmem:[%s17547_s1 + $0x174] ss:$20 sps:$4 sm:$0xff]   ;;  %v16303_v45 = vld [vmem:[%s17547_s1 + $0x170] ss:$20 sps:$4 sm:$0xff]  }
 0x332   : > { %3264 = vmatprep.subr.bf16.mxu0 %v14393_v46  ;;  %v16308_v46 = vld [vmem:[%s17547_s1 + $0x194] ss:$20 sps:$4 sm:$0xff]  }
 0x334   : > { %3179 = vmatpush1.bf16.msra.mxu1 %v14390_v53  ;;  %v16312_v53 = vld [vmem:[%s17547_s1 + $0x1b8] ss:$20 sps:$4 sm:$0xff]  }
 0x335   : > { %3265 = vmatpush1.bf16.msra.mxu0 %v14392_v54  ;;  %3180 = vmatprep.subr.bf16.mxu1 %v14399_v55  ;;  %v16317_v54 = vld [vmem:[%s17547_s1 + $0x1c4] ss:$20 sps:$4 sm:$0xff]   ;;  %v16315_v55 = vld [vmem:[%s17547_s1 + $0x1c0] ss:$20 sps:$4 sm:$0xff]  }
 0x336   : > { %3266 = vmatprep.subr.bf16.mxu0 %v14401_v56  ;;  %v16320_v56 = vld [vmem:[%s17547_s1 + $0x1e4] ss:$20 sps:$4 sm:$0xff]  }
 0x338   : > { %3181 = vmatpush1.bf16.msra.mxu1 %v14398_v61  ;;  %v16324_v61 = vld [vmem:[%s17547_s1 + $0x208] ss:$20 sps:$4 sm:$0xff]  }
 0x339   : > { %3267 = vmatpush1.bf16.msra.mxu0 %v14400_v17  ;;  %3182 = vmatprep.subr.bf16.mxu1 %v14407_v62  ;;  %v16329_v17 = vld [vmem:[%s17547_s1 + $0x214] ss:$20 sps:$4 sm:$0xff]   ;;  %v16327_v62 = vld [vmem:[%s17547_s1 + $0x210] ss:$20 sps:$4 sm:$0xff]  }
 0x33a   : > { %3268 = vmatprep.subr.bf16.mxu0 %v14409_v63  ;;  %v16332_v63 = vld [vmem:[%s17547_s1 + $0x234] ss:$20 sps:$4 sm:$0xff]  }
 0x33c   : > { %3183 = vmatpush1.bf16.msra.mxu1 %v14406_v29  ;;  %v16335_v29 = vld [vmem:[%s17547_s1 + $0x23c] ss:$20 sps:$4 sm:$0xff]  }
 0x33d   : > { %3269 = vmatpush1.bf16.msra.mxu0 %v14408_v2  ;;  %5419 = vmatprep.subr.bf16.mxu1 %v16248_v1  ;;  %v16330_v1 = vld [vmem:[%s17547_s1 + $0x230] ss:$20 sps:$4 sm:$0xff]   ;;  %v16333_v2 = vld [vmem:[%s17547_s1 + $0x238] ss:$20 sps:$4 sm:$0xff]  }
 0x33e   : > { %5591 = vmatprep.subr.bf16.mxu0 %v16251_v4  ;;  %v16341_v4 = vld [vmem:[%s17547_s1 + $0x264] ss:$20 sps:$4 sm:$0xff]  }
 0x33f   : > { %3185 = vmatmul.mubr.bf16.vlgmr.msra.gmra.mrb[8].mxu1 %v17455_v25 }
 0x340   : > { %3271 = vmatmul.mubr.bf16.vlgmr.msra.gmra.mrb[12].mxu0 %v17455_v25  ;;  %5420 = vmatpush1.bf16.msra.mxu1 %v16246_v3  ;;  %v16269_v25 = vld [vmem:[%s17547_s1 + $0x84] ss:$20 sps:$4 sm:$0xff]   ;;  %v16338_v3 = vld [vmem:[%s17547_s1 + $0x25c] ss:$20 sps:$4 sm:$0xff]  }
 0x341   : > { %5592 = vmatpush1.bf16.msra.mxu0 %v16249_v5  ;;  %5421 = vmatprep.subr.bf16.mxu1 %v16254_v6  ;;  %v16336_v5 = vld [vmem:[%s17547_s1 + $0x258] ss:$20 sps:$4 sm:$0xff]   ;;  %v16339_v6 = vld [vmem:[%s17547_s1 + $0x260] ss:$20 sps:$4 sm:$0xff]  }
 0x342   : > { %5593 = vmatprep.subr.bf16.mxu0 %v16257_v8  ;;  %v16347_v8 = vld [vmem:[%s17547_s1 + $0x28c] ss:$20 sps:$4 sm:$0xff]  }
 0x344   : > { %5422 = vmatpush1.bf16.msra.mxu1 %v16252_v7  ;;  %v16344_v7 = vld [vmem:[%s17547_s1 + $0x284] ss:$20 sps:$4 sm:$0xff]  }
 0x345   : > { %5594 = vmatpush1.bf16.msra.mxu0 %v16255_v9  ;;  %5423 = vmatprep.subr.bf16.mxu1 %v16260_v10  ;;  %v17737_v9 = vld [vmem:[%s684_s9] sm:$0xff] }
 0x346   : > { %5595 = vmatprep.subr.bf16.mxu0 %v16263_v12  ;;  %v1581_v10 = vunpack.c.l.bf16 %v17737_v9 }
 0x348   : > { %5424 = vmatpush1.bf16.msra.mxu1 %v16258_v11  ;;  %v1588_v11 = vrot.slane %v1581_v10, %v17345_v20  ;;  %v1596_v12 = vrot.slane %v1581_v10, %v17439_v50 }
 0x349   : > { %5596 = vmatpush1.bf16.msra.mxu0 %v16261_v13  ;;  %5425 = vmatprep.subr.bf16.mxu1 %v16266_v14  ;;  %v1592_v13 = vrot.slane %v1581_v10, %v17348_v21  ;;  %v1600_v14 = vrot.slane %v1581_v10, %v17442_v51  ;;  %v16375_v10 = vld [vmem:[%s17547_s1 + $0x350] ss:$20 sps:$4 sm:$0xff]  }
 0x34a   : > { %5597 = vmatprep.subr.bf16.mxu0 %v16269_v25  ;;  %v1636_v25 = vrot.slane %v1596_v12, %v17345_v20  ;;  %v16383_v12 = vld [vmem:[%s17547_s1 + $0x37c] ss:$20 sps:$4 sm:$0xff]  }
 0x34c   : > { %5426 = vmatpush1.bf16.msra.mxu1 %v16264_v15  ;;  %v1628_v15 = vrot.slane %v1588_v11, %v17345_v20  ;;  %v16380_v11 = vld [vmem:[%s17547_s1 + $0x374] ss:$20 sps:$4 sm:$0xff]  }
 0x34d   : > { %5598 = vmatpush1.bf16.msra.mxu0 %v16267_v24  ;;  %5427 = vmatprep.subr.bf16.mxu1 %v16272_v16  ;;  %v1632_v24 = vrot.slane %v1592_v13, %v17345_v20  ;;  %v1640_v16 = vrot.slane %v1600_v14, %v17345_v20  ;;  %v16378_v13 = vld [vmem:[%s17547_s1 + $0x370] ss:$20 sps:$4 sm:$0xff]   ;;  %v16381_v14 = vld [vmem:[%s17547_s1 + $0x378] ss:$20 sps:$4 sm:$0xff]  }
 0x34e   : > { %5599 = vmatprep.subr.bf16.mxu0 %v16275_v19 }
 0x350   : > { %5428 = vmatpush1.bf16.msra.mxu1 %v16270_v18 }
 0x351   : > { %5600 = vmatpush1.bf16.msra.mxu0 %v16273_v22  ;;  %5429 = vmatprep.subr.bf16.mxu1 %v16278_v23 }
 0x352   : > { %5601 = vmatprep.subr.bf16.mxu0 %v16281_v30 }
 0x354   : > { %5430 = vmatpush1.bf16.msra.mxu1 %v16276_v26 }
 0x355   : > { %5602 = vmatpush1.bf16.msra.mxu0 %v16279_v27  ;;  %5431 = vmatprep.subr.bf16.mxu1 %v16284_v28 }
 0x356   : > { %5603 = vmatprep.subr.bf16.mxu0 %v16287_v32 }
 0x358   : > { %5432 = vmatpush1.bf16.msra.mxu1 %v16282_v31 }
 0x359   : > { %5604 = vmatpush1.bf16.msra.mxu0 %v16285_v33  ;;  %5433 = vmatprep.subr.bf16.mxu1 %v16290_v34 }
 0x35a   : > { %5605 = vmatprep.subr.bf16.mxu0 %v16293_v36 }
 0x35c   : > { %5434 = vmatpush1.bf16.msra.mxu1 %v16288_v35 }
 0x35d   : > { %5606 = vmatpush1.bf16.msra.mxu0 %v16291_v37  ;;  %5435 = vmatprep.subr.bf16.mxu1 %v16296_v38 }
 0x35e   : > { %5607 = vmatprep.subr.bf16.mxu0 %v16299_v39 }
 0x360   : > { %5436 = vmatpush1.bf16.msra.mxu1 %v16294_v40 }
 0x361   : > { %5608 = vmatpush1.bf16.msra.mxu0 %v16297_v41  ;;  %5437 = vmatprep.subr.bf16.mxu1 %v16302_v42 }
 0x362   : > { %5609 = vmatprep.subr.bf16.mxu0 %v16305_v44 }
 0x364   : > { %5438 = vmatpush1.bf16.msra.mxu1 %v16300_v43 }
 0x365   : > { %5610 = vmatpush1.bf16.msra.mxu0 %v16303_v45  ;;  %5439 = vmatprep.subr.bf16.mxu1 %v16308_v46 }
 0x366   : > { %5611 = vmatprep.subr.bf16.mxu0 %v16311_v48 }
 0x368   : > { %5440 = vmatpush1.bf16.msra.mxu1 %v16306_v47 }
 0x369   : > { %5612 = vmatpush1.bf16.msra.mxu0 %v16309_v49  ;;  %5441 = vmatprep.subr.bf16.mxu1 %v16314_v52 }
 0x36a   : > { %5613 = vmatprep.subr.bf16.mxu0 %v16317_v54  ;;  %v16345_v54 = vld [vmem:[%s17547_s1 + $0x288] ss:$20 sps:$4 sm:$0xff]  }
 0x36c   : > { %5442 = vmatpush1.bf16.msra.mxu1 %v16312_v53  ;;  %v16342_v53 = vld [vmem:[%s17547_s1 + $0x280] ss:$20 sps:$4 sm:$0xff]  }
 0x36d   : > { %5614 = vmatpush1.bf16.msra.mxu0 %v16315_v55  ;;  %5443 = vmatprep.subr.bf16.mxu1 %v16320_v56  ;;  %v16350_v55 = vld [vmem:[%s17547_s1 + $0x2ac] ss:$20 sps:$4 sm:$0xff]   ;;  %v16353_v56 = vld [vmem:[%s17547_s1 + $0x2b4] ss:$20 sps:$4 sm:$0xff]  }
 0x36e   : > { %5615 = vmatprep.subr.bf16.mxu0 %v16323_v58  ;;  %v16351_v58 = vld [vmem:[%s17547_s1 + $0x2b0] ss:$20 sps:$4 sm:$0xff]  }
 0x370   : > { %5444 = vmatpush1.bf16.msra.mxu1 %v16318_v57  ;;  %v16348_v57 = vld [vmem:[%s17547_s1 + $0x2a8] ss:$20 sps:$4 sm:$0xff]  }
 0x371   : > { %5616 = vmatpush1.bf16.msra.mxu0 %v16321_v59  ;;  %5445 = vmatprep.subr.bf16.mxu1 %v16326_v60  ;;  %v16356_v59 = vld [vmem:[%s17547_s1 + $0x2d4] ss:$20 sps:$4 sm:$0xff]   ;;  %v16359_v60 = vld [vmem:[%s17547_s1 + $0x2dc] ss:$20 sps:$4 sm:$0xff]  }
 0x372   : > { %5617 = vmatprep.subr.bf16.mxu0 %v16329_v17  ;;  %v16357_v17 = vld [vmem:[%s17547_s1 + $0x2d8] ss:$20 sps:$4 sm:$0xff]  }
 0x374   : > { %5446 = vmatpush1.bf16.msra.mxu1 %v16324_v61  ;;  %v16354_v61 = vld [vmem:[%s17547_s1 + $0x2d0] ss:$20 sps:$4 sm:$0xff]  }
 0x375   : > { %5618 = vmatpush1.bf16.msra.mxu0 %v16327_v62  ;;  %5447 = vmatprep.subr.bf16.mxu1 %v16332_v63  ;;  %v16362_v62 = vld [vmem:[%s17547_s1 + $0x2fc] ss:$20 sps:$4 sm:$0xff]   ;;  %v16365_v63 = vld [vmem:[%s17547_s1 + $0x304] ss:$20 sps:$4 sm:$0xff]  }
 0x376   : > { %5619 = vmatprep.subr.bf16.mxu0 %v16335_v29  ;;  %v16363_v29 = vld [vmem:[%s17547_s1 + $0x300] ss:$20 sps:$4 sm:$0xff]  }
 0x378   : > { %5448 = vmatpush1.bf16.msra.mxu1 %v16330_v1  ;;  %v16360_v1 = vld [vmem:[%s17547_s1 + $0x2f8] ss:$20 sps:$4 sm:$0xff]  }
 0x379   : > { %5620 = vmatpush1.bf16.msra.mxu0 %v16333_v2  ;;  %5449 = vmatprep.subr.bf16.mxu1 %v16338_v3  ;;  %v16368_v2 = vld [vmem:[%s17547_s1 + $0x324] ss:$20 sps:$4 sm:$0xff]   ;;  %v16371_v3 = vld [vmem:[%s17547_s1 + $0x32c] ss:$20 sps:$4 sm:$0xff]  }
 0x37a   : > { %5621 = vmatprep.subr.bf16.mxu0 %v16341_v4  ;;  %v16366_v4 = vld [vmem:[%s17547_s1 + $0x320] ss:$20 sps:$4 sm:$0xff]  }
 0x37c   : > { %5450 = vmatpush1.bf16.msra.mxu1 %v16336_v5  ;;  %v16369_v5 = vld [vmem:[%s17547_s1 + $0x328] ss:$20 sps:$4 sm:$0xff]  }
 0x37d   : > { %5622 = vmatpush1.bf16.msra.mxu0 %v16339_v6  ;;  %5462 = vmatprep.subr.bf16.mxu1 %v16344_v7  ;;  %v16374_v6 = vld [vmem:[%s17547_s1 + $0x34c] ss:$20 sps:$4 sm:$0xff]   ;;  %v16377_v7 = vld [vmem:[%s17547_s1 + $0x354] ss:$20 sps:$4 sm:$0xff]  }
 0x37e   : > { %5634 = vmatprep.subr.bf16.mxu0 %v16347_v8  ;;  %v16372_v8 = vld [vmem:[%s17547_s1 + $0x348] ss:$20 sps:$4 sm:$0xff]  }
 0x392   : > { %v3014_v18 = vpop.f32.mrb[4].mxu1  ;;  %v3100_v19 = vpop.f32.mrb[8].mxu0 }
 0x393   : > { %v15849_v22 = vadd.f32 %v3014_v18, %v1628_v15  ;;  %v15853_v23 = vadd.f32 %v3100_v19, %v1636_v25  ;;  %v3016_v26 = vpop.f32.mrb[5].mxu1  ;;  %v3102_v30 = vpop.f32.mrb[9].mxu0  ;;  %v16392_v18 = vld [vmem:[%s17547_s1 + $0x3c4] ss:$20 sps:$4 sm:$0xff]   ;;  %v16395_v19 = vld [vmem:[%s17547_s1 + $0x3cc] ss:$20 sps:$4 sm:$0xff]  }
 0x394   : > { %v15850_v27 = vadd.f32 %v3016_v26, %v1632_v24  ;;  %v15854_v28 = vadd.f32 %v3102_v30, %v1640_v16  ;;  %v3018_v31 = vpop.f32.mrb[6].mxu1  ;;  %v3104_v32 = vpop.f32.mrb[10].mxu0  ;;  %v16398_v26 = vld [vmem:[%s17547_s1 + $0x3ec] ss:$20 sps:$4 sm:$0xff]   ;;  %v16401_v30 = vld [vmem:[%s17547_s1 + $0x3f4] ss:$20 sps:$4 sm:$0xff]  }
 0x395   : > { %v15851_v33 = vadd.f32 %v3018_v31, %v1628_v15  ;;  %v15855_v34 = vadd.f32 %v3104_v32, %v1636_v25  ;;  %v3020_v35 = vpop.f32.mrb[7].mxu1  ;;  %v3106_v36 = vpop.f32.mrb[11].mxu0  ;;  %v3281_v39 = vmax.f32 %v15849_v22, 0.0  ;;  %v3283_v40 = vmax.f32 %v15853_v23, 0.0  ;;  %v16386_v15 = vld [vmem:[%s17547_s1 + $0x39c] ss:$20 sps:$4 sm:$0xff]  }
 0x396   : > { %v15852_v37 = vadd.f32 %v3020_v35, %v1632_v24  ;;  %v15856_v38 = vadd.f32 %v3106_v36, %v1640_v16  ;;  %v3282_v43 = vmax.f32 %v15850_v27, 0.0  ;;  %v3284_v44 = vmax.f32 %v15854_v28, 0.0  ;;  %v16389_v25 = vld [vmem:[%s17547_s1 + $0x3a4] ss:$20 sps:$4 sm:$0xff]   ;;  %v16387_v16 = vld [vmem:[%s17547_s1 + $0x3a0] ss:$20 sps:$4 sm:$0xff]  }
 0x397   : > { %v3289_v41 = vmax.f32 %v15851_v33, 0.0  ;;  %v3291_v42 = vmax.f32 %v15855_v34, 0.0  ;;  %v16384_v24 = vld [vmem:[%s17547_s1 + $0x398] ss:$20 sps:$4 sm:$0xff]   ;;  %v16390_v22 = vld [vmem:[%s17547_s1 + $0x3c0] ss:$20 sps:$4 sm:$0xff]  }
 0x398   : > { %v3290_v45 = vmax.f32 %v15852_v37, 0.0  ;;  %v3292_v46 = vmax.f32 %v15856_v38, 0.0  ;;  %v16393_v23 = vld [vmem:[%s17547_s1 + $0x3c8] ss:$20 sps:$4 sm:$0xff]   ;;  %v16399_v28 = vld [vmem:[%s17547_s1 + $0x3f0] ss:$20 sps:$4 sm:$0xff]  }
 0x399   : > { %v17748_v47 = vpack.c.bf16 %v3289_v41, %v3281_v39  ;;  %v17750_v48 = vpack.c.bf16 %v3291_v42, %v3283_v40  ;;  %v16396_v27 = vld [vmem:[%s17547_s1 + $0x3e8] ss:$20 sps:$4 sm:$0xff]   ;;  %v16402_v33 = vld [vmem:[%s17547_s1 + $0x410] ss:$20 sps:$4 sm:$0xff]   ;;  %v16405_v34 = vld [vmem:[%s17547_s1 + $0x418] ss:$20 sps:$4 sm:$0xff]  }
 0x39a   : > { %v17752_v49 = vpack.c.bf16 %v3290_v45, %v3282_v43  ;;  %v17754_v52 = vpack.c.bf16 %v3292_v46, %v3284_v44  ;;  %v16404_v31 = vld [vmem:[%s17547_s1 + $0x414] ss:$20 sps:$4 sm:$0xff]   ;;  %v16407_v32 = vld [vmem:[%s17547_s1 + $0x41c] ss:$20 sps:$4 sm:$0xff]   ;;  %v16413_v36 = vld [vmem:[%s17547_s1 + $0x444] ss:$20 sps:$4 sm:$0xff]  }
 0x39b   : > { %v16410_v35 = vld [vmem:[%s17547_s1 + $0x43c] ss:$20 sps:$4 sm:$0xff]   ;;  %v16408_v37 = vld [vmem:[%s17547_s1 + $0x438] ss:$20 sps:$4 sm:$0xff]   ;;  %v16411_v38 = vld [vmem:[%s17547_s1 + $0x440] ss:$20 sps:$4 sm:$0xff]  }
 0x39c   : > { %5451 = vmatprep.mubr.bf16.mxu1 %v17752_v49  ;;  %5623 = vmatprep.mubr.bf16.mxu0 %v17752_v49  ;;  %v16416_v39 = vld [vmem:[%s17547_s1 + $0x464] ss:$20 sps:$4 sm:$0xff]   ;;  %v16419_v40 = vld [vmem:[%s17547_s1 + $0x46c] ss:$20 sps:$4 sm:$0xff]   ;;  %v16417_v42 = vld [vmem:[%s17547_s1 + $0x468] ss:$20 sps:$4 sm:$0xff]  }
 0x39d   : > { %5452 = vmatmul.mubr.bf16.vlgmr.msra.gmra.mrb[12].mxu1 %v17748_v47  ;;  %5624 = vmatmul.mubr.bf16.vlgmr.msra.gmra.mrb[16].mxu0 %v17748_v47  ;;  %v16414_v41 = vld [vmem:[%s17547_s1 + $0x460] ss:$20 sps:$4 sm:$0xff]   ;;  %v16420_v45 = vld [vmem:[%s17547_s1 + $0x488] ss:$20 sps:$4 sm:$0xff]   ;;  %v16423_v46 = vld [vmem:[%s17547_s1 + $0x490] ss:$20 sps:$4 sm:$0xff]  }
 0x39e   : > { %5463 = vmatpush1.bf16.msra.mxu1 %v16342_v53  ;;  %5635 = vmatpush1.bf16.msra.mxu0 %v16345_v54  ;;  %v16422_v43 = vld [vmem:[%s17547_s1 + $0x48c] ss:$20 sps:$4 sm:$0xff]   ;;  %v16425_v44 = vld [vmem:[%s17547_s1 + $0x494] ss:$20 sps:$4 sm:$0xff]   ;;  %v16431_v54 = vld [vmem:[%s17547_s1 + $0x4bc] ss:$20 sps:$4 sm:$0xff]  }
 0x39f   : > { %5494 = vmatprep.mubr.bf16.mxu1 %v17754_v52  ;;  %5666 = vmatprep.mubr.bf16.mxu0 %v17754_v52  ;;  %v16428_v53 = vld [vmem:[%s17547_s1 + $0x4b4] ss:$20 sps:$4 sm:$0xff]  }
 0x3a0   : > { %5464 = vmatprep.subr.bf16.mxu1 %v16350_v55  ;;  %5636 = vmatprep.subr.bf16.mxu0 %v16353_v56  ;;  %v16426_v55 = vld [vmem:[%s17547_s1 + $0x4b0] ss:$20 sps:$4 sm:$0xff]   ;;  %v16429_v56 = vld [vmem:[%s17547_s1 + $0x4b8] ss:$20 sps:$4 sm:$0xff]  }
 0x3a2   : > { %5465 = vmatpush1.bf16.msra.mxu1 %v16348_v57  ;;  %5637 = vmatpush1.bf16.msra.mxu0 %v16351_v58  ;;  %v16434_v57 = vld [vmem:[%s17547_s1 + $0x4dc] ss:$20 sps:$4 sm:$0xff]   ;;  %v16437_v58 = vld [vmem:[%s17547_s1 + $0x4e4] ss:$20 sps:$4 sm:$0xff]  }
 0x3a3   : > { %5466 = vmatprep.subr.bf16.mxu1 %v16356_v59  ;;  %5638 = vmatprep.subr.bf16.mxu0 %v16359_v60  ;;  %v16432_v59 = vld [vmem:[%s17547_s1 + $0x4d8] ss:$20 sps:$4 sm:$0xff]   ;;  %v16435_v60 = vld [vmem:[%s17547_s1 + $0x4e0] ss:$20 sps:$4 sm:$0xff]  }
 0x3a6   : > { %5467 = vmatpush1.bf16.msra.mxu1 %v16354_v61  ;;  %5639 = vmatpush1.bf16.msra.mxu0 %v16357_v17  ;;  %v16440_v61 = vld [vmem:[%s17547_s1 + $0x504] ss:$20 sps:$4 sm:$0xff]   ;;  %v16443_v17 = vld [vmem:[%s17547_s1 + $0x50c] ss:$20 sps:$4 sm:$0xff]  }
 0x3a7   : > { %5468 = vmatprep.subr.bf16.mxu1 %v16362_v62  ;;  %5640 = vmatprep.subr.bf16.mxu0 %v16365_v63  ;;  %v16438_v62 = vld [vmem:[%s17547_s1 + $0x500] ss:$20 sps:$4 sm:$0xff]   ;;  %v16441_v63 = vld [vmem:[%s17547_s1 + $0x508] ss:$20 sps:$4 sm:$0xff]  }
 0x3aa   : > { %5469 = vmatpush1.bf16.msra.mxu1 %v16360_v1  ;;  %5641 = vmatpush1.bf16.msra.mxu0 %v16363_v29  ;;  %v16446_v1 = vld [vmem:[%s17547_s1 + $0x52c] ss:$20 sps:$4 sm:$0xff]   ;;  %v16449_v29 = vld [vmem:[%s17547_s1 + $0x534] ss:$20 sps:$4 sm:$0xff]  }
 0x3ab   : > { %5470 = vmatprep.subr.bf16.mxu1 %v16368_v2  ;;  %5642 = vmatprep.subr.bf16.mxu0 %v16371_v3  ;;  %v16444_v2 = vld [vmem:[%s17547_s1 + $0x528] ss:$20 sps:$4 sm:$0xff]   ;;  %v16447_v3 = vld [vmem:[%s17547_s1 + $0x530] ss:$20 sps:$4 sm:$0xff]  }
 0x3ae   : > { %5471 = vmatpush1.bf16.msra.mxu1 %v16366_v4  ;;  %5643 = vmatpush1.bf16.msra.mxu0 %v16369_v5  ;;  %v16452_v4 = vld [vmem:[%s17547_s1 + $0x554] ss:$20 sps:$4 sm:$0xff]   ;;  %v16455_v5 = vld [vmem:[%s17547_s1 + $0x55c] ss:$20 sps:$4 sm:$0xff]  }
 0x3af   : > { %5472 = vmatprep.subr.bf16.mxu1 %v16374_v6  ;;  %5644 = vmatprep.subr.bf16.mxu0 %v16377_v7  ;;  %v16450_v6 = vld [vmem:[%s17547_s1 + $0x550] ss:$20 sps:$4 sm:$0xff]   ;;  %v16453_v7 = vld [vmem:[%s17547_s1 + $0x558] ss:$20 sps:$4 sm:$0xff]  }
 0x3b2   : > { %5473 = vmatpush1.bf16.msra.mxu1 %v16372_v8  ;;  %5645 = vmatpush1.bf16.msra.mxu0 %v16375_v10  ;;  %v16458_v8 = vld [vmem:[%s17547_s1 + $0x57c] ss:$20 sps:$4 sm:$0xff]   ;;  %v16461_v10 = vld [vmem:[%s17547_s1 + $0x584] ss:$20 sps:$4 sm:$0xff]  }
 0x3b3   : > { %5474 = vmatprep.subr.bf16.mxu1 %v16380_v11  ;;  %5646 = vmatprep.subr.bf16.mxu0 %v16383_v12  ;;  %v16456_v11 = vld [vmem:[%s17547_s1 + $0x578] ss:$20 sps:$4 sm:$0xff]   ;;  %v16459_v12 = vld [vmem:[%s17547_s1 + $0x580] ss:$20 sps:$4 sm:$0xff]  }
 0x3b6   : > { %5475 = vmatpush1.bf16.msra.mxu1 %v16378_v13  ;;  %5647 = vmatpush1.bf16.msra.mxu0 %v16381_v14  ;;  %v16464_v13 = vld [vmem:[%s17547_s1 + $0x5a4] ss:$20 sps:$4 sm:$0xff]   ;;  %v16467_v14 = vld [vmem:[%s17547_s1 + $0x5ac] ss:$20 sps:$4 sm:$0xff]  }
 0x3b7   : > { %5476 = vmatprep.subr.bf16.mxu1 %v16386_v15  ;;  %5648 = vmatprep.subr.bf16.mxu0 %v16389_v25  ;;  %v16462_v15 = vld [vmem:[%s17547_s1 + $0x5a0] ss:$20 sps:$4 sm:$0xff]   ;;  %v16465_v25 = vld [vmem:[%s17547_s1 + $0x5a8] ss:$20 sps:$4 sm:$0xff]  }
 0x3ba   : > { %5477 = vmatpush1.bf16.msra.mxu1 %v16384_v24  ;;  %5649 = vmatpush1.bf16.msra.mxu0 %v16387_v16  ;;  %v16470_v24 = vld [vmem:[%s17547_s1 + $0x5cc] ss:$20 sps:$4 sm:$0xff]   ;;  %v16473_v16 = vld [vmem:[%s17547_s1 + $0x5d4] ss:$20 sps:$4 sm:$0xff]  }
 0x3bb   : > { %5478 = vmatprep.subr.bf16.mxu1 %v16392_v18  ;;  %5650 = vmatprep.subr.bf16.mxu0 %v16395_v19  ;;  %v16468_v18 = vld [vmem:[%s17547_s1 + $0x5c8] ss:$20 sps:$4 sm:$0xff]   ;;  %v16471_v19 = vld [vmem:[%s17547_s1 + $0x5d0] ss:$20 sps:$4 sm:$0xff]  }
 0x3be   : > { %5479 = vmatpush1.bf16.msra.mxu1 %v16390_v22  ;;  %5651 = vmatpush1.bf16.msra.mxu0 %v16393_v23  ;;  %v16476_v22 = vld [vmem:[%s17547_s1 + $0x5f4] ss:$20 sps:$4 sm:$0xff]   ;;  %v16479_v23 = vld [vmem:[%s17547_s1 + $0x5fc] ss:$20 sps:$4 sm:$0xff]  }
 0x3bf   : > { %5480 = vmatprep.subr.bf16.mxu1 %v16398_v26  ;;  %5652 = vmatprep.subr.bf16.mxu0 %v16401_v30  ;;  %v16474_v26 = vld [vmem:[%s17547_s1 + $0x5f0] ss:$20 sps:$4 sm:$0xff]   ;;  %v16477_v30 = vld [vmem:[%s17547_s1 + $0x5f8] ss:$20 sps:$4 sm:$0xff]  }
 0x3c2   : > { %5481 = vmatpush1.bf16.msra.mxu1 %v16396_v27  ;;  %5653 = vmatpush1.bf16.msra.mxu0 %v16399_v28  ;;  %v16482_v27 = vld [vmem:[%s17547_s1 + $0x61c] ss:$20 sps:$4 sm:$0xff]   ;;  %v16485_v28 = vld [vmem:[%s17547_s1 + $0x624] ss:$20 sps:$4 sm:$0xff]  }
 0x3c3   : > { %5482 = vmatprep.subr.bf16.mxu1 %v16404_v31  ;;  %5654 = vmatprep.subr.bf16.mxu0 %v16407_v32  ;;  %v16480_v31 = vld [vmem:[%s17547_s1 + $0x618] ss:$20 sps:$4 sm:$0xff]   ;;  %v16483_v32 = vld [vmem:[%s17547_s1 + $0x620] ss:$20 sps:$4 sm:$0xff]  }
 0x3c6   : > { %5483 = vmatpush1.bf16.msra.mxu1 %v16402_v33  ;;  %5655 = vmatpush1.bf16.msra.mxu0 %v16405_v34  ;;  %v16488_v33 = vld [vmem:[%s17547_s1 + $0x644] ss:$20 sps:$4 sm:$0xff]   ;;  %v16491_v34 = vld [vmem:[%s17547_s1 + $0x64c] ss:$20 sps:$4 sm:$0xff]  }
 0x3c7   : > { %5484 = vmatprep.subr.bf16.mxu1 %v16410_v35  ;;  %5656 = vmatprep.subr.bf16.mxu0 %v16413_v36  ;;  %v16486_v35 = vld [vmem:[%s17547_s1 + $0x640] ss:$20 sps:$4 sm:$0xff]   ;;  %v16489_v36 = vld [vmem:[%s17547_s1 + $0x648] ss:$20 sps:$4 sm:$0xff]  }
 0x3ca   : > { %5485 = vmatpush1.bf16.msra.mxu1 %v16408_v37  ;;  %5657 = vmatpush1.bf16.msra.mxu0 %v16411_v38  ;;  %v16494_v37 = vld [vmem:[%s17547_s1 + $0x66c] ss:$20 sps:$4 sm:$0xff]   ;;  %v16497_v38 = vld [vmem:[%s17547_s1 + $0x674] ss:$20 sps:$4 sm:$0xff]  }
 0x3cb   : > { %5486 = vmatprep.subr.bf16.mxu1 %v16416_v39  ;;  %5658 = vmatprep.subr.bf16.mxu0 %v16419_v40  ;;  %v16492_v39 = vld [vmem:[%s17547_s1 + $0x668] ss:$20 sps:$4 sm:$0xff]   ;;  %v16495_v40 = vld [vmem:[%s17547_s1 + $0x670] ss:$20 sps:$4 sm:$0xff]  }
 0x3ce   : > { %5487 = vmatpush1.bf16.msra.mxu1 %v16414_v41  ;;  %5659 = vmatpush1.bf16.msra.mxu0 %v16417_v42  ;;  %v16500_v41 = vld [vmem:[%s17547_s1 + $0x694] ss:$20 sps:$4 sm:$0xff]   ;;  %v16503_v42 = vld [vmem:[%s17547_s1 + $0x69c] ss:$20 sps:$4 sm:$0xff]  }
 0x3cf   : > { %5488 = vmatprep.subr.bf16.mxu1 %v16422_v43  ;;  %5660 = vmatprep.subr.bf16.mxu0 %v16425_v44  ;;  %v16498_v43 = vld [vmem:[%s17547_s1 + $0x690] ss:$20 sps:$4 sm:$0xff]   ;;  %v16501_v44 = vld [vmem:[%s17547_s1 + $0x698] ss:$20 sps:$4 sm:$0xff]  }
 0x3d2   : > { %5489 = vmatpush1.bf16.msra.mxu1 %v16420_v45  ;;  %5661 = vmatpush1.bf16.msra.mxu0 %v16423_v46  ;;  %v16506_v45 = vld [vmem:[%s17547_s1 + $0x6bc] ss:$20 sps:$4 sm:$0xff]   ;;  %v16509_v46 = vld [vmem:[%s17547_s1 + $0x6c4] ss:$20 sps:$4 sm:$0xff]  }
 0x3d3   : > { %5490 = vmatprep.subr.bf16.mxu1 %v16428_v53  ;;  %5662 = vmatprep.subr.bf16.mxu0 %v16431_v54  ;;  %v16504_v53 = vld [vmem:[%s17547_s1 + $0x6b8] ss:$20 sps:$4 sm:$0xff]   ;;  %v16507_v54 = vld [vmem:[%s17547_s1 + $0x6c0] ss:$20 sps:$4 sm:$0xff]  }
 0x3d6   : > { %5491 = vmatpush1.bf16.msra.mxu1 %v16426_v55  ;;  %5663 = vmatpush1.bf16.msra.mxu0 %v16429_v56  ;;  %v16512_v55 = vld [vmem:[%s17547_s1 + $0x6e4] ss:$20 sps:$4 sm:$0xff]   ;;  %v16515_v56 = vld [vmem:[%s17547_s1 + $0x6ec] ss:$20 sps:$4 sm:$0xff]  }
 0x3d7   : > { %5492 = vmatprep.subr.bf16.mxu1 %v16434_v57  ;;  %5664 = vmatprep.subr.bf16.mxu0 %v16437_v58  ;;  %v1582_v57 = vunpack.c.h.bf16 %v17737_v9  ;;  %v16510_v58 = vld [vmem:[%s17547_s1 + $0x6e0] ss:$20 sps:$4 sm:$0xff]   ;;  %v16516_v9 = vld [vmem:[%s17547_s1 + $0x708] ss:$20 sps:$4 sm:$0xff]  }
 0x3da   : > { %5493 = vmatpush1.bf16.msra.mxu1 %v16432_v59  ;;  %5665 = vmatpush1.bf16.msra.mxu0 %v16435_v60  ;;  %v16513_v59 = vld [vmem:[%s17547_s1 + $0x6e8] ss:$20 sps:$4 sm:$0xff]   ;;  %v16518_v60 = vld [vmem:[%s17547_s1 + $0x70c] ss:$20 sps:$4 sm:$0xff]  }
 0x3db   : > { %5505 = vmatprep.subr.bf16.mxu1 %v16440_v61  ;;  %5677 = vmatprep.subr.bf16.mxu0 %v16443_v17  ;;  %v16521_v61 = vld [vmem:[%s17547_s1 + $0x714] ss:$20 sps:$4 sm:$0xff]   ;;  %v1604_v17 = vrot.slane %v1582_v57, %v17345_v20 }
 0x3dd   : > { %5495 = vmatmul.mubr.bf16.vlgmr.msra.gmra.mrb[12].mxu1 %v17750_v48  ;;  %5667 = vmatmul.mubr.bf16.vlgmr.msra.gmra.mrb[16].mxu0 %v17750_v48 }
 0x3de   : > { %5506 = vmatpush1.bf16.msra.mxu1 %v16438_v62  ;;  %5678 = vmatpush1.bf16.msra.mxu0 %v16441_v63  ;;  %v1612_v62 = vrot.slane %v1582_v57, %v17439_v50  ;;  %v1608_v63 = vrot.slane %v1582_v57, %v17348_v21 }
 0x3df   : > { %5507 = vmatprep.subr.bf16.mxu1 %v16446_v1  ;;  %5679 = vmatprep.subr.bf16.mxu0 %v16449_v29  ;;  %v1616_v1 = vrot.slane %v1582_v57, %v17442_v51  ;;  %v16519_v29 = vld [vmem:[%s17547_s1 + $0x710] ss:$20 sps:$4 sm:$0xff]   ;;  %v16542_v57 = vld [vmem:[%s17547_s1 + $0x7ac] ss:$20 sps:$4 sm:$0xff]  }
 0x3e2   : > { %5508 = vmatpush1.bf16.msra.mxu1 %v16444_v2  ;;  %5680 = vmatpush1.bf16.msra.mxu0 %v16447_v3  ;;  %v1644_v2 = vrot.slane %v1604_v17, %v17345_v20  ;;  %v16524_v3 = vld [vmem:[%s17547_s1 + $0x734] ss:$20 sps:$4 sm:$0xff]   ;;  %v16551_v17 = vld [vmem:[%s17547_s1 + $0x7dc] ss:$20 sps:$4 sm:$0xff]  }
 0x3e3   : > { %5509 = vmatprep.subr.bf16.mxu1 %v16452_v4  ;;  %5681 = vmatprep.subr.bf16.mxu0 %v16455_v5  ;;  %v16527_v4 = vld [vmem:[%s17547_s1 + $0x73c] ss:$20 sps:$4 sm:$0xff]   ;;  %v1652_v5 = vrot.slane %v1612_v62, %v17345_v20 }
 0x3e4   : > { %v16546_v62 = vld [vmem:[%s17547_s1 + $0x7d0] ss:$20 sps:$4 sm:$0xff]  }
 0x3e6   : > { %5510 = vmatpush1.bf16.msra.mxu1 %v16450_v6  ;;  %5682 = vmatpush1.bf16.msra.mxu0 %v16453_v7  ;;  %v1648_v6 = vrot.slane %v1608_v63, %v17345_v20  ;;  %v1656_v7 = vrot.slane %v1616_v1, %v17345_v20  ;;  %v16549_v63 = vld [vmem:[%s17547_s1 + $0x7d8] ss:$20 sps:$4 sm:$0xff]   ;;  %v16554_v1 = vld [vmem:[%s17547_s1 + $0x7fc] ss:$20 sps:$4 sm:$0xff]  }
 0x3e7   : > { %5511 = vmatprep.subr.bf16.mxu1 %v16458_v8  ;;  %5683 = vmatprep.subr.bf16.mxu0 %v16461_v10  ;;  %v16522_v10 = vld [vmem:[%s17547_s1 + $0x730] ss:$20 sps:$4 sm:$0xff]  }
 0x3ea   : > { %5512 = vmatpush1.bf16.msra.mxu1 %v16456_v11  ;;  %5684 = vmatpush1.bf16.msra.mxu0 %v16459_v12  ;;  %v16525_v11 = vld [vmem:[%s17547_s1 + $0x738] ss:$20 sps:$4 sm:$0xff]  }
 0x3eb   : > { %5513 = vmatprep.subr.bf16.mxu1 %v16464_v13  ;;  %5685 = vmatprep.subr.bf16.mxu0 %v16467_v14 }
 0x3ee   : > { %5514 = vmatpush1.bf16.msra.mxu1 %v16462_v15  ;;  %5686 = vmatpush1.bf16.msra.mxu0 %v16465_v25  ;;  %v16530_v15 = vld [vmem:[%s17547_s1 + $0x75c] ss:$20 sps:$4 sm:$0xff]   ;;  %v16533_v25 = vld [vmem:[%s17547_s1 + $0x764] ss:$20 sps:$4 sm:$0xff]  }
 0x3ef   : > { %5515 = vmatprep.subr.bf16.mxu1 %v16470_v24  ;;  %5687 = vmatprep.subr.bf16.mxu0 %v16473_v16 }
 0x3f2   : > { %5516 = vmatpush1.bf16.msra.mxu1 %v16468_v18  ;;  %5688 = vmatpush1.bf16.msra.mxu0 %v16471_v19 }
 0x3f3   : > { %5517 = vmatprep.subr.bf16.mxu1 %v16476_v22  ;;  %5689 = vmatprep.subr.bf16.mxu0 %v16479_v23 }
 0x3f6   : > { %5518 = vmatpush1.bf16.msra.mxu1 %v16474_v26  ;;  %5690 = vmatpush1.bf16.msra.mxu0 %v16477_v30 }
 0x3f7   : > { %5519 = vmatprep.subr.bf16.mxu1 %v16482_v27  ;;  %5691 = vmatprep.subr.bf16.mxu0 %v16485_v28 }
 0x3fa   : > { %5520 = vmatpush1.bf16.msra.mxu1 %v16480_v31  ;;  %5692 = vmatpush1.bf16.msra.mxu0 %v16483_v32  ;;  %v16528_v32 = vld [vmem:[%s17547_s1 + $0x758] ss:$20 sps:$4 sm:$0xff]  }
 0x3fb   : > { %5521 = vmatprep.subr.bf16.mxu1 %v16488_v33  ;;  %5693 = vmatprep.subr.bf16.mxu0 %v16491_v34  ;;  %v16531_v33 = vld [vmem:[%s17547_s1 + $0x760] ss:$20 sps:$4 sm:$0xff]  }
 0x3fe   : > { %5522 = vmatpush1.bf16.msra.mxu1 %v16486_v35  ;;  %5694 = vmatpush1.bf16.msra.mxu0 %v16489_v36 }
 0x3ff   : > { %5523 = vmatprep.subr.bf16.mxu1 %v16494_v37  ;;  %5695 = vmatprep.subr.bf16.mxu0 %v16497_v38  ;;  %v16536_v37 = vld [vmem:[%s17547_s1 + $0x784] ss:$20 sps:$4 sm:$0xff]   ;;  %v16539_v38 = vld [vmem:[%s17547_s1 + $0x78c] ss:$20 sps:$4 sm:$0xff]  }
 0x402   : > { %5524 = vmatpush1.bf16.msra.mxu1 %v16492_v39  ;;  %5696 = vmatpush1.bf16.msra.mxu0 %v16495_v40 }
 0x403   : > { %5525 = vmatprep.subr.bf16.mxu1 %v16500_v41  ;;  %5697 = vmatprep.subr.bf16.mxu0 %v16503_v42 }
 0x406   : > { %5526 = vmatpush1.bf16.msra.mxu1 %v16498_v43  ;;  %5698 = vmatpush1.bf16.msra.mxu0 %v16501_v44 }
 0x407   : > { %5527 = vmatprep.subr.bf16.mxu1 %v16506_v45  ;;  %5699 = vmatprep.subr.bf16.mxu0 %v16509_v46 }
 0x40a   : > { %5528 = vmatpush1.bf16.msra.mxu1 %v16504_v53  ;;  %5700 = vmatpush1.bf16.msra.mxu0 %v16507_v54  ;;  %v16534_v54 = vld [vmem:[%s17547_s1 + $0x780] ss:$20 sps:$4 sm:$0xff]  }
 0x40b   : > { %5529 = vmatprep.subr.bf16.mxu1 %v16512_v55  ;;  %5701 = vmatprep.subr.bf16.mxu0 %v16515_v56  ;;  %v16537_v55 = vld [vmem:[%s17547_s1 + $0x788] ss:$20 sps:$4 sm:$0xff]  }
 0x40e   : > { %5530 = vmatpush1.bf16.msra.mxu1 %v16510_v58  ;;  %5702 = vmatpush1.bf16.msra.mxu0 %v16513_v59  ;;  %v16545_v58 = vld [vmem:[%s17547_s1 + $0x7b4] ss:$20 sps:$4 sm:$0xff]  }
 0x40f   : > { %5531 = vmatprep.subr.bf16.mxu1 %v16518_v60  ;;  %5703 = vmatprep.subr.bf16.mxu0 %v16521_v61  ;;  %v16540_v59 = vld [vmem:[%s17547_s1 + $0x7a8] ss:$20 sps:$4 sm:$0xff]   ;;  %v16543_v60 = vld [vmem:[%s17547_s1 + $0x7b0] ss:$20 sps:$4 sm:$0xff]  }
 0x410   : > { %v16548_v61 = vld [vmem:[%s17547_s1 + $0x7d4] ss:$20 sps:$4 sm:$0xff]  }
 0x412   : > { %5532 = vmatpush1.bf16.msra.mxu1 %v16516_v9  ;;  %5704 = vmatpush1.bf16.msra.mxu0 %v16519_v29  ;;  %v3186_v8 = vpop.f32.mrb[8].mxu1  ;;  %v16557_v9 = vld [vmem:[%s17547_s1 + $0x804] ss:$20 sps:$4 sm:$0xff]  }
 0x413   : > { %v15857_v12 = vadd.f32 %v3186_v8, %v1644_v2  ;;  %v3272_v13 = vpop.f32.mrb[12].mxu0  ;;  %v3188_v14 = vpop.f32.mrb[9].mxu1  ;;  %5533 = vmatprep.subr.bf16.mxu1 %v16524_v3  ;;  %5705 = vmatprep.subr.bf16.mxu0 %v16527_v4  ;;  %v16552_v29 = vld [vmem:[%s17547_s1 + $0x7f8] ss:$20 sps:$4 sm:$0xff]   ;;  %v16569_v8 = vld [vmem:[%s17547_s1 + $0x854] ss:$20 sps:$4 sm:$0xff]  }
 0x414   : > { %v15861_v24 = vadd.f32 %v3272_v13, %v1652_v5  ;;  %v15858_v16 = vadd.f32 %v3188_v14, %v1648_v6  ;;  %v3274_v18 = vpop.f32.mrb[13].mxu0  ;;  %v3190_v19 = vpop.f32.mrb[10].mxu1  ;;  %v16560_v3 = vld [vmem:[%s17547_s1 + $0x824] ss:$20 sps:$4 sm:$0xff]   ;;  %v16563_v4 = vld [vmem:[%s17547_s1 + $0x82c] ss:$20 sps:$4 sm:$0xff]  }
 0x415   : > { %v15862_v22 = vadd.f32 %v3274_v18, %v1656_v7  ;;  %v15859_v23 = vadd.f32 %v3190_v19, %v1644_v2  ;;  %v3276_v26 = vpop.f32.mrb[14].mxu0  ;;  %v3192_v30 = vpop.f32.mrb[11].mxu1  ;;  %v3285_v34 = vmax.f32 %v15857_v12, 0.0  ;;  %v16555_v2 = vld [vmem:[%s17547_s1 + $0x800] ss:$20 sps:$4 sm:$0xff]  }
 0x416   : > { %v15863_v27 = vadd.f32 %v3276_v26, %v1652_v5  ;;  %v15860_v28 = vadd.f32 %v3192_v30, %v1648_v6  ;;  %v3278_v31 = vpop.f32.mrb[15].mxu0  ;;  %5534 = vmatpush1.bf16.msra.mxu1 %v16522_v10  ;;  %5706 = vmatpush1.bf16.msra.mxu0 %v16525_v11  ;;  %v3287_v39 = vmax.f32 %v15861_v24, 0.0  ;;  %v3286_v40 = vmax.f32 %v15858_v16, 0.0  ;;  %v16558_v5 = vld [vmem:[%s17547_s1 + $0x820] ss:$20 sps:$4 sm:$0xff]  }
 0x417   : > { %v3293_v35 = vmax.f32 %v15859_v23, 0.0  ;;  %v15864_v36 = vadd.f32 %v3278_v31, %v1656_v7  ;;  %5535 = vmatprep.subr.bf16.mxu1 %v16530_v15  ;;  %5707 = vmatprep.subr.bf16.mxu0 %v16533_v25  ;;  %v3288_v43 = vmax.f32 %v15862_v22, 0.0  ;;  %v16561_v6 = vld [vmem:[%s17547_s1 + $0x828] ss:$20 sps:$4 sm:$0xff]   ;;  %v16566_v7 = vld [vmem:[%s17547_s1 + $0x84c] ss:$20 sps:$4 sm:$0xff]  }
 0x418   : > { %v3295_v41 = vmax.f32 %v15863_v27, 0.0  ;;  %v3294_v42 = vmax.f32 %v15860_v28, 0.0  ;;  %v16564_v10 = vld [vmem:[%s17547_s1 + $0x848] ss:$20 sps:$4 sm:$0xff]   ;;  %v16567_v11 = vld [vmem:[%s17547_s1 + $0x850] ss:$20 sps:$4 sm:$0xff]  }
 0x419   : > { %v17901_v44 = vpack.c.bf16 %v3293_v35, %v3285_v34  ;;  %v3296_v45 = vmax.f32 %v15864_v36, 0.0  ;;  %v16572_v12 = vld [vmem:[%s17547_s1 + $0x874] ss:$20 sps:$4 sm:$0xff]   ;;  %v16575_v13 = vld [vmem:[%s17547_s1 + $0x87c] ss:$20 sps:$4 sm:$0xff]  }
 0x41a   : > { %v17903_v46 = vpack.c.bf16 %v3295_v41, %v3287_v39  ;;  %v17905_v53 = vpack.c.bf16 %v3294_v42, %v3286_v40  ;;  %5536 = vmatpush1.bf16.msra.mxu1 %v16528_v32  ;;  %5708 = vmatpush1.bf16.msra.mxu0 %v16531_v33  ;;  %v16570_v14 = vld [vmem:[%s17547_s1 + $0x870] ss:$20 sps:$4 sm:$0xff]   ;;  %v16573_v15 = vld [vmem:[%s17547_s1 + $0x878] ss:$20 sps:$4 sm:$0xff]   ;;  %v16579_v18 = vld [vmem:[%s17547_s1 + $0x8a0] ss:$20 sps:$4 sm:$0xff]  }
 0x41b   : > { %v17909_v56 = vpack.c.bf16 %v3296_v45, %v3288_v43  ;;  %5548 = vmatprep.subr.bf16.mxu1 %v16536_v37  ;;  %5720 = vmatprep.subr.bf16.mxu0 %v16539_v38  ;;  %v16578_v25 = vld [vmem:[%s17547_s1 + $0x89c] ss:$20 sps:$4 sm:$0xff]   ;;  %v16581_v24 = vld [vmem:[%s17547_s1 + $0x8a4] ss:$20 sps:$4 sm:$0xff]   ;;  %v16587_v22 = vld [vmem:[%s17547_s1 + $0x8cc] ss:$20 sps:$4 sm:$0xff]  }
 0x41c   : > { %5537 = vmatprep.mubr.bf16.mxu1 %v17905_v53  ;;  %5709 = vmatprep.mubr.bf16.mxu0 %v17905_v53  ;;  %v16576_v16 = vld [vmem:[%s17547_s1 + $0x898] ss:$20 sps:$4 sm:$0xff]   ;;  %v16582_v23 = vld [vmem:[%s17547_s1 + $0x8c0] ss:$20 sps:$4 sm:$0xff]   ;;  %v16585_v26 = vld [vmem:[%s17547_s1 + $0x8c8] ss:$20 sps:$4 sm:$0xff]  }
 0x41d   : > { %5538 = vmatmul.mubr.bf16.vlgmr.msra.gmra.mrb[12].mxu1 %v17901_v44  ;;  %5710 = vmatmul.mubr.bf16.vlgmr.msra.gmra.mrb[16].mxu0 %v17901_v44  ;;  %v16584_v19 = vld [vmem:[%s17547_s1 + $0x8c4] ss:$20 sps:$4 sm:$0xff]   ;;  %v16590_v30 = vld [vmem:[%s17547_s1 + $0x8ec] ss:$20 sps:$4 sm:$0xff]   ;;  %v16593_v27 = vld [vmem:[%s17547_s1 + $0x8f4] ss:$20 sps:$4 sm:$0xff]  }
 0x41e   : > { %5549 = vmatpush1.bf16.msra.mxu1 %v16534_v54  ;;  %5721 = vmatpush1.bf16.msra.mxu0 %v16537_v55  ;;  %v16588_v28 = vld [vmem:[%s17547_s1 + $0x8e8] ss:$20 sps:$4 sm:$0xff]   ;;  %v16591_v31 = vld [vmem:[%s17547_s1 + $0x8f0] ss:$20 sps:$4 sm:$0xff]   ;;  %v16597_v35 = vld [vmem:[%s17547_s1 + $0x918] ss:$20 sps:$4 sm:$0xff]  }
 0x41f   : > { %5580 = vmatprep.mubr.bf16.mxu1 %v17909_v56  ;;  %5752 = vmatprep.mubr.bf16.mxu0 %v17909_v56  ;;  %v16596_v32 = vld [vmem:[%s17547_s1 + $0x914] ss:$20 sps:$4 sm:$0xff]   ;;  %v16599_v33 = vld [vmem:[%s17547_s1 + $0x91c] ss:$20 sps:$4 sm:$0xff]   ;;  %v16605_v37 = vld [vmem:[%s17547_s1 + $0x944] ss:$20 sps:$4 sm:$0xff]  }
 0x420   : > { %5550 = vmatprep.subr.bf16.mxu1 %v16542_v57  ;;  %5722 = vmatprep.subr.bf16.mxu0 %v16545_v58  ;;  %v16594_v34 = vld [vmem:[%s17547_s1 + $0x910] ss:$20 sps:$4 sm:$0xff]   ;;  %v16600_v38 = vld [vmem:[%s17547_s1 + $0x938] ss:$20 sps:$4 sm:$0xff]   ;;  %v16603_v39 = vld [vmem:[%s17547_s1 + $0x940] ss:$20 sps:$4 sm:$0xff]  }
 0x421   : > { %v16602_v36 = vld [vmem:[%s17547_s1 + $0x93c] ss:$20 sps:$4 sm:$0xff]   ;;  %v16608_v40 = vld [vmem:[%s17547_s1 + $0x964] ss:$20 sps:$4 sm:$0xff]   ;;  %v16611_v41 = vld [vmem:[%s17547_s1 + $0x96c] ss:$20 sps:$4 sm:$0xff]  }
 0x422   : > { %5551 = vmatpush1.bf16.msra.mxu1 %v16540_v59  ;;  %5723 = vmatpush1.bf16.msra.mxu0 %v16543_v60  ;;  %v16606_v42 = vld [vmem:[%s17547_s1 + $0x960] ss:$20 sps:$4 sm:$0xff]   ;;  %v16609_v43 = vld [vmem:[%s17547_s1 + $0x968] ss:$20 sps:$4 sm:$0xff]   ;;  %v16615_v57 = vld [vmem:[%s17547_s1 + $0x990] ss:$20 sps:$4 sm:$0xff]  }
 0x423   : > { %5552 = vmatprep.subr.bf16.mxu1 %v16548_v61  ;;  %5724 = vmatprep.subr.bf16.mxu0 %v16551_v17  ;;  %v16614_v45 = vld [vmem:[%s17547_s1 + $0x98c] ss:$20 sps:$4 sm:$0xff]   ;;  %v16617_v54 = vld [vmem:[%s17547_s1 + $0x994] ss:$20 sps:$4 sm:$0xff]   ;;  %v16623_v59 = vld [vmem:[%s17547_s1 + $0x9bc] ss:$20 sps:$4 sm:$0xff]  }
 0x424   : > { %v16612_v55 = vld [vmem:[%s17547_s1 + $0x988] ss:$20 sps:$4 sm:$0xff]   ;;  %v16618_v60 = vld [vmem:[%s17547_s1 + $0x9b0] ss:$20 sps:$4 sm:$0xff]   ;;  %v16621_v61 = vld [vmem:[%s17547_s1 + $0x9b8] ss:$20 sps:$4 sm:$0xff]  }
 0x425   : > { %v16620_v58 = vld [vmem:[%s17547_s1 + $0x9b4] ss:$20 sps:$4 sm:$0xff]   ;;  %v16626_v17 = vld [vmem:[%s17547_s1 + $0x9dc] ss:$20 sps:$4 sm:$0xff]  }
 0x426   : > { %5553 = vmatpush1.bf16.msra.mxu1 %v16546_v62  ;;  %5725 = vmatpush1.bf16.msra.mxu0 %v16549_v63  ;;  %v16629_v62 = vld [vmem:[%s17547_s1 + $0x9e4] ss:$20 sps:$4 sm:$0xff]  }
 0x427   : > { %5554 = vmatprep.subr.bf16.mxu1 %v16554_v1  ;;  %5726 = vmatprep.subr.bf16.mxu0 %v16557_v9  ;;  %v16624_v63 = vld [vmem:[%s17547_s1 + $0x9d8] ss:$20 sps:$4 sm:$0xff]   ;;  %v16627_v1 = vld [vmem:[%s17547_s1 + $0x9e0] ss:$20 sps:$4 sm:$0xff]   ;;  %v16630_v9 = vld [vmem:[%s17547_s1 + $0x150] ss:$20 sps:$4 sm:$0xff]  }
 0x42a   : > { %5555 = vmatpush1.bf16.msra.mxu1 %v16552_v29  ;;  %5727 = vmatpush1.bf16.msra.mxu0 %v16555_v2  ;;  %v16631_v29 = vld [vmem:[%s17547_s1 + $0x3d0] ss:$20 sps:$4 sm:$0xff]  }
 0x42b   : > { %5556 = vmatprep.subr.bf16.mxu1 %v16560_v3  ;;  %5728 = vmatprep.subr.bf16.mxu0 %v16563_v4  ;;  %v16632_v2 = vld [vmem:[%s17547_s1 + $0x10] ss:$20 sps:$4 sm:$0xff]   ;;  %v16634_v4 = vld [vmem:[%s17547_s1 + $0x178] ss:$20 sps:$4 sm:$0xff]  }
 0x42c   : > { %v16633_v3 = vld [vmem:[%s17547_s1 + $0x290] ss:$20 sps:$4 sm:$0xff]  }
 0x42e   : > { %5557 = vmatpush1.bf16.msra.mxu1 %v16558_v5  ;;  %5729 = vmatpush1.bf16.msra.mxu0 %v16561_v6  ;;  %v16635_v5 = vld [vmem:[%s17547_s1 + $0x3f8] ss:$20 sps:$4 sm:$0xff]  }
 0x42f   : > { %5558 = vmatprep.subr.bf16.mxu1 %v16566_v7  ;;  %5730 = vmatprep.subr.bf16.mxu0 %v16569_v8  ;;  %v16636_v6 = vld [vmem:[%s17547_s1 + $0x38] ss:$20 sps:$4 sm:$0xff]   ;;  %v16638_v8 = vld [vmem:[%s17547_s1 + $0x1a0] ss:$20 sps:$4 sm:$0xff]  }
 0x430   : > { %v16637_v7 = vld [vmem:[%s17547_s1 + $0x2b8] ss:$20 sps:$4 sm:$0xff]  }
 0x432   : > { %5559 = vmatpush1.bf16.msra.mxu1 %v16564_v10  ;;  %5731 = vmatpush1.bf16.msra.mxu0 %v16567_v11  ;;  %v16639_v10 = vld [vmem:[%s17547_s1 + $0x420] ss:$20 sps:$4 sm:$0xff]  }
 0x433   : > { %5560 = vmatprep.subr.bf16.mxu1 %v16572_v12  ;;  %5732 = vmatprep.subr.bf16.mxu0 %v16575_v13  ;;  %v16640_v11 = vld [vmem:[%s17547_s1 + $0x60] ss:$20 sps:$4 sm:$0xff]   ;;  %v16642_v13 = vld [vmem:[%s17547_s1 + $0x1c8] ss:$20 sps:$4 sm:$0xff]  }
 0x434   : > { %v16641_v12 = vld [vmem:[%s17547_s1 + $0x2e0] ss:$20 sps:$4 sm:$0xff]  }
 0x436   : > { %5561 = vmatpush1.bf16.msra.mxu1 %v16570_v14  ;;  %5733 = vmatpush1.bf16.msra.mxu0 %v16573_v15  ;;  %v16643_v14 = vld [vmem:[%s17547_s1 + $0x448] ss:$20 sps:$4 sm:$0xff]  }
 0x437   : > { %5562 = vmatprep.subr.bf16.mxu1 %v16578_v25  ;;  %5734 = vmatprep.subr.bf16.mxu0 %v16581_v24  ;;  %v16644_v15 = vld [vmem:[%s17547_s1 + $0x88] ss:$20 sps:$4 sm:$0xff]   ;;  %v16646_v24 = vld [vmem:[%s17547_s1 + $0x1f0] ss:$20 sps:$4 sm:$0xff]  }
 0x438   : > { %v16645_v25 = vld [vmem:[%s17547_s1 + $0x308] ss:$20 sps:$4 sm:$0xff]  }
 0x43a   : > { %5563 = vmatpush1.bf16.msra.mxu1 %v16576_v16  ;;  %5735 = vmatpush1.bf16.msra.mxu0 %v16579_v18  ;;  %v16647_v16 = vld [vmem:[%s17547_s1 + $0x470] ss:$20 sps:$4 sm:$0xff]  }
 0x43b   : > { %5564 = vmatprep.subr.bf16.mxu1 %v16584_v19  ;;  %5736 = vmatprep.subr.bf16.mxu0 %v16587_v22  ;;  %v16648_v18 = vld [vmem:[%s17547_s1 + $0xb0] ss:$20 sps:$4 sm:$0xff]   ;;  %v16650_v22 = vld [vmem:[%s17547_s1 + $0x218] ss:$20 sps:$4 sm:$0xff]  }
 0x43c   : > { %v16649_v19 = vld [vmem:[%s17547_s1 + $0x330] ss:$20 sps:$4 sm:$0xff]  }
 0x43e   : > { %5565 = vmatpush1.bf16.msra.mxu1 %v16582_v23  ;;  %5737 = vmatpush1.bf16.msra.mxu0 %v16585_v26  ;;  %v16651_v23 = vld [vmem:[%s17547_s1 + $0x498] ss:$20 sps:$4 sm:$0xff]  }
 0x43f   : > { %5566 = vmatprep.subr.bf16.mxu1 %v16590_v30  ;;  %5738 = vmatprep.subr.bf16.mxu0 %v16593_v27  ;;  %v16652_v26 = vld [vmem:[%s17547_s1 + $0xd8] ss:$20 sps:$4 sm:$0xff]   ;;  %v16654_v27 = vld [vmem:[%s17547_s1 + $0x240] ss:$20 sps:$4 sm:$0xff]  }
 0x440   : > { %v16653_v30 = vld [vmem:[%s17547_s1 + $0x358] ss:$20 sps:$4 sm:$0xff]  }
 0x442   : > { %5567 = vmatpush1.bf16.msra.mxu1 %v16588_v28  ;;  %5739 = vmatpush1.bf16.msra.mxu0 %v16591_v31  ;;  %v16655_v28 = vld [vmem:[%s17547_s1 + $0x4c0] ss:$20 sps:$4 sm:$0xff]  }
 0x443   : > { %5568 = vmatprep.subr.bf16.mxu1 %v16596_v32  ;;  %5740 = vmatprep.subr.bf16.mxu0 %v16599_v33  ;;  %v16656_v31 = vld [vmem:[%s17547_s1 + $0x100] ss:$20 sps:$4 sm:$0xff]   ;;  %v16658_v33 = vld [vmem:[%s17547_s1 + $0x268] ss:$20 sps:$4 sm:$0xff]  }
 0x444   : > { %v16657_v32 = vld [vmem:[%s17547_s1 + $0x380] ss:$20 sps:$4 sm:$0xff]  }
 0x446   : > { %5569 = vmatpush1.bf16.msra.mxu1 %v16594_v34  ;;  %5741 = vmatpush1.bf16.msra.mxu0 %v16597_v35  ;;  %v16659_v34 = vld [vmem:[%s17547_s1 + $0x4e8] ss:$20 sps:$4 sm:$0xff]  }
 0x447   : > { %5570 = vmatprep.subr.bf16.mxu1 %v16602_v36  ;;  %5742 = vmatprep.subr.bf16.mxu0 %v16605_v37  ;;  %v16660_v35 = vld [vmem:[%s17547_s1 + $0x128] ss:$20 sps:$4 sm:$0xff]   ;;  %v16662_v37 = vld [vmem:[%s17547_s1 + $0x650] ss:$20 sps:$4 sm:$0xff]  }
 0x448   : > { %v16661_v36 = vld [vmem:[%s17547_s1 + $0x3a8] ss:$20 sps:$4 sm:$0xff]  }
 0x44a   : > { %5571 = vmatpush1.bf16.msra.mxu1 %v16600_v38  ;;  %5743 = vmatpush1.bf16.msra.mxu0 %v16603_v39  ;;  %v16663_v38 = vld [vmem:[%s17547_s1 + $0x8d0] ss:$20 sps:$4 sm:$0xff]  }
 0x44b   : > { %5572 = vmatprep.subr.bf16.mxu1 %v16608_v40  ;;  %5744 = vmatprep.subr.bf16.mxu0 %v16611_v41  ;;  %v16664_v39 = vld [vmem:[%s17547_s1 + $0x510] ss:$20 sps:$4 sm:$0xff]   ;;  %v16666_v41 = vld [vmem:[%s17547_s1 + $0x678] ss:$20 sps:$4 sm:$0xff]  }
 0x44c   : > { %v16665_v40 = vld [vmem:[%s17547_s1 + $0x790] ss:$20 sps:$4 sm:$0xff]  }
 0x44e   : > { %5573 = vmatpush1.bf16.msra.mxu1 %v16606_v42  ;;  %5745 = vmatpush1.bf16.msra.mxu0 %v16609_v43  ;;  %v16667_v42 = vld [vmem:[%s17547_s1 + $0x8f8] ss:$20 sps:$4 sm:$0xff]  }
 0x44f   : > { %5574 = vmatprep.subr.bf16.mxu1 %v16614_v45  ;;  %5746 = vmatprep.subr.bf16.mxu0 %v16617_v54  ;;  %v16668_v43 = vld [vmem:[%s17547_s1 + $0x538] ss:$20 sps:$4 sm:$0xff]   ;;  %v16670_v54 = vld [vmem:[%s17547_s1 + $0x6a0] ss:$20 sps:$4 sm:$0xff]  }
 0x450   : > { %v16669_v45 = vld [vmem:[%s17547_s1 + $0x7b8] ss:$20 sps:$4 sm:$0xff]  }
 0x452   : > { %5575 = vmatpush1.bf16.msra.mxu1 %v16612_v55  ;;  %5747 = vmatpush1.bf16.msra.mxu0 %v16615_v57  ;;  %v16671_v55 = vld [vmem:[%s17547_s1 + $0x920] ss:$20 sps:$4 sm:$0xff]  }
 0x453   : > { %5576 = vmatprep.subr.bf16.mxu1 %v16620_v58  ;;  %5748 = vmatprep.subr.bf16.mxu0 %v16623_v59  ;;  %v16672_v57 = vld [vmem:[%s17547_s1 + $0x560] ss:$20 sps:$4 sm:$0xff]   ;;  %v16674_v59 = vld [vmem:[%s17547_s1 + $0x6c8] ss:$20 sps:$4 sm:$0xff]  }
 0x454   : > { %v16673_v58 = vld [vmem:[%s17547_s1 + $0x7e0] ss:$20 sps:$4 sm:$0xff]  }
 0x456   : > { %5577 = vmatpush1.bf16.msra.mxu1 %v16618_v60  ;;  %5749 = vmatpush1.bf16.msra.mxu0 %v16621_v61  ;;  %v16675_v60 = vld [vmem:[%s17547_s1 + $0x948] ss:$20 sps:$4 sm:$0xff]  }
 0x457   : > { %5578 = vmatprep.subr.bf16.mxu1 %v16626_v17  ;;  %5750 = vmatprep.subr.bf16.mxu0 %v16629_v62  ;;  %v16676_v61 = vld [vmem:[%s17547_s1 + $0x588] ss:$20 sps:$4 sm:$0xff]   ;;  %v16678_v62 = vld [vmem:[%s17547_s1 + $0x6f0] ss:$20 sps:$4 sm:$0xff]  }
 0x458   : > { %v16677_v17 = vld [vmem:[%s17547_s1 + $0x808] ss:$20 sps:$4 sm:$0xff]  }
 0x45a   : > { %5579 = vmatpush1.bf16.msra.mxu1 %v16624_v63  ;;  %5751 = vmatpush1.bf16.msra.mxu0 %v16627_v1  ;;  %v16679_v63 = vld [vmem:[%s17547_s1 + $0x970] ss:$20 sps:$4 sm:$0xff]  }
 0x45b   : > { %15761 = vmatprep.subr.bf16.mxu1 %v16630_v9  ;;  %15783 = vmatprep.subr.bf16.mxu0 %v16631_v29  ;;  %v16680_v1 = vld [vmem:[%s17547_s1 + $0x5b0] ss:$20 sps:$4 sm:$0xff]   ;;  %v16682_v29 = vld [vmem:[%s17547_s1 + $0x718] ss:$20 sps:$4 sm:$0xff]  }
 0x45c   : > { %v16681_v9 = vld [vmem:[%s17547_s1 + $0x830] ss:$20 sps:$4 sm:$0xff]  }
 0x45d   : > { %5581 = vmatmul.mubr.bf16.vlgmr.msra.gmra.mrb[12].mxu1 %v17903_v46  ;;  %5753 = vmatmul.mubr.bf16.vlgmr.msra.gmra.mrb[16].mxu0 %v17903_v46 }
 0x45e   : > { %15762 = vmatpush3.bf16.msra.mxu1 %v16632_v2  ;;  %5795 = vmatprep.mubr.bf16.mxu1 %v17752_v49  ;;  %v16683_v2 = vld [vmem:[%s17547_s1 + $0x998] ss:$20 sps:$4 sm:$0xff]  }
 0x45f   : > { %15784 = vmatpush3.bf16.msra.mxu0 %v16633_v3  ;;  %5836 = vmatprep.mubr.bf16.mxu0 %v17754_v52  ;;  %v16684_v3 = vld [vmem:[%s17547_s1 + $0x5d8] ss:$20 sps:$4 sm:$0xff]  }
 0x460   : > { %15763 = vmatprep.subr.bf16.mxu1 %v16634_v4  ;;  %15785 = vmatprep.subr.bf16.mxu0 %v16635_v5  ;;  %v16685_v4 = vld [vmem:[%s17547_s1 + $0x858] ss:$20 sps:$4 sm:$0xff]   ;;  %v16686_v5 = vld [vmem:[%s17547_s1 + $0x740] ss:$20 sps:$4 sm:$0xff]  }
 0x462   : > { %15764 = vmatpush3.bf16.msra.mxu1 %v16636_v6  ;;  %v16687_v6 = vld [vmem:[%s17547_s1 + $0x9c0] ss:$20 sps:$4 sm:$0xff]  }
 0x463   : > { %15786 = vmatpush3.bf16.msra.mxu0 %v16637_v7  ;;  %15765 = vmatprep.subr.bf16.mxu1 %v16638_v8  ;;  %v16688_v7 = vld [vmem:[%s17547_s1 + $0x600] ss:$20 sps:$4 sm:$0xff]  }
 0x464   : > { %15787 = vmatprep.subr.bf16.mxu0 %v16639_v10  ;;  %v16689_v8 = vld [vmem:[%s17547_s1 + $0x880] ss:$20 sps:$4 sm:$0xff]   ;;  %v16690_v10 = vld [vmem:[%s17547_s1 + $0x768] ss:$20 sps:$4 sm:$0xff]  }
 0x466   : > { %15766 = vmatpush3.bf16.msra.mxu1 %v16640_v11  ;;  %v16691_v11 = vld [vmem:[%s17547_s1 + $0x9e8] ss:$20 sps:$4 sm:$0xff]  }
 0x467   : > { %15788 = vmatpush3.bf16.msra.mxu0 %v16641_v12  ;;  %15767 = vmatprep.subr.bf16.mxu1 %v16642_v13  ;;  %v5965_v12 = vld [vmem:[%s17252_s7] sm:$0xff] }
 0x468   : > { %15789 = vmatprep.subr.bf16.mxu0 %v16643_v14  ;;  %v5973_v13 = vld [vmem:[%s17252_s7 + $0x40] sm:$0xff]  ;;  %v5966_v14 = vld [vmem:[%s17252_s7 + $0x8] sm:$0xff] }
 0x46a   : > { %15768 = vmatpush3.bf16.msra.mxu1 %v16644_v15  ;;  %v5974_v15 = vld [vmem:[%s17252_s7 + $0x48] sm:$0xff] }
 0x46b   : > { %15790 = vmatpush3.bf16.msra.mxu0 %v16645_v25  ;;  %15769 = vmatprep.subr.bf16.mxu1 %v16646_v24  ;;  %v16692_v25 = vld [vmem:[%s17547_s1 + $0x628] ss:$20 sps:$4 sm:$0xff]  }
 0x46c   : > { %15791 = vmatprep.subr.bf16.mxu0 %v16647_v16  ;;  %v16693_v24 = vld [vmem:[%s17547_s1 + $0x8a8] ss:$20 sps:$4 sm:$0xff]   ;;  %v14731_v16 = vcombine.high %v5965_v12, %v5973_v13  ;;  %s18587_s1 = scalar_lea.vmem %s19478_s30, %s14084_s27 }
 0x46e   : > { %15770 = vmatpush3.bf16.msra.mxu1 %v16648_v18  ;;  %v14733_v18 = vcombine.high %v5966_v14, %v5974_v15 }
 0x46f   : > { %15792 = vmatpush3.bf16.msra.mxu0 %v16649_v19  ;;  %15771 = vmatprep.subr.bf16.mxu1 %v16650_v22  ;;  %v5981_v19 = vld [vmem:[%s17252_s7 + $0x80] sm:$0xff] }
 0x470   : > { %15793 = vmatprep.subr.bf16.mxu0 %v16651_v23  ;;  %v5989_v22 = vld [vmem:[%s17252_s7 + $0xc0] sm:$0xff]  ;;  %v14730_v23 = vcombine.low %v5965_v12, %v5973_v13  ;;  %v6070_v12 = vld [vmem:[%s17252_s7 + $0x348] sm:$0xff] }
 0x472   : > { %15772 = vmatpush3.bf16.msra.mxu1 %v16652_v26  ;;  %v5982_v26 = vld [vmem:[%s17252_s7 + $0x88] sm:$0xff] }
 0x473   : > { %15794 = vmatpush3.bf16.msra.mxu0 %v16653_v30  ;;  %15773 = vmatprep.subr.bf16.mxu1 %v16654_v27  ;;  %v5990_v30 = vld [vmem:[%s17252_s7 + $0xc8] sm:$0xff]  ;;  %v14732_v27 = vcombine.low %v5966_v14, %v5974_v15 }
 0x474   : > { %15795 = vmatprep.subr.bf16.mxu0 %v16655_v28  ;;  %v14747_v28 = vcombine.high %v5981_v19, %v5989_v22 }
 0x476   : > { %15774 = vmatpush3.bf16.msra.mxu1 %v16656_v31  ;;  %v5997_v31 = vld [vmem:[%s17252_s7 + $0x100] sm:$0xff] }
 0x477   : > { %15796 = vmatpush3.bf16.msra.mxu0 %v16657_v32  ;;  %15775 = vmatprep.subr.bf16.mxu1 %v16658_v33  ;;  %v6005_v32 = vld [vmem:[%s17252_s7 + $0x140] sm:$0xff]  ;;  %v14749_v33 = vcombine.high %v5982_v26, %v5990_v30 }
 0x478   : > { %15797 = vmatprep.subr.bf16.mxu0 %v16659_v34  ;;  %v5998_v34 = vld [vmem:[%s17252_s7 + $0x108] sm:$0xff] }
 0x47a   : > { %15776 = vmatpush3.bf16.msra.mxu1 %v16660_v35  ;;  %v6006_v35 = vld [vmem:[%s17252_s7 + $0x148] sm:$0xff] }
 0x47b   : > { %15798 = vmatpush3.bf16.msra.mxu0 %v16661_v36  ;;  %15805 = vmatprep.subr.bf16.mxu1 %v16662_v37  ;;  %v14746_v36 = vcombine.low %v5981_v19, %v5989_v22  ;;  %v14748_v37 = vcombine.low %v5982_v26, %v5990_v30  ;;  %v6086_v19 = vld [vmem:[%s17252_s7 + $0x3c8] sm:$0xff] }
 0x47c   : > { %15827 = vmatprep.subr.bf16.mxu0 %v16663_v38  ;;  %v14763_v38 = vcombine.high %v5997_v31, %v6005_v32 }
 0x47d   : > { %5796 = vmatmul.mubr.bf16.vlgmr.msra.gmra.mrb[16].mxu1 %v17748_v47 }
 0x47e   : > { %5837 = vmatmul.mubr.bf16.vlgmr.msra.gmra.mrb[20].mxu0 %v17750_v48  ;;  %15806 = vmatpush3.bf16.msra.mxu1 %v16664_v39  ;;  %v14765_v39 = vcombine.high %v5998_v34, %v6006_v35 }
 0x47f   : > { %5877 = vmatprep.mubr.bf16.mxu1 %v17905_v53  ;;  %15828 = vmatpush3.bf16.msra.mxu0 %v16665_v40  ;;  %v6013_v40 = vld [vmem:[%s17252_s7 + $0x180] sm:$0xff] }
 0x480   : > { %5918 = vmatprep.mubr.bf16.mxu0 %v17909_v56  ;;  %15807 = vmatprep.subr.bf16.mxu1 %v16666_v41  ;;  %v6021_v41 = vld [vmem:[%s17252_s7 + $0x1c0] sm:$0xff] }
 0x481   : > { %15829 = vmatprep.subr.bf16.mxu0 %v16667_v42  ;;  %v6014_v42 = vld [vmem:[%s17252_s7 + $0x188] sm:$0xff] }
 0x482   : > { %15808 = vmatpush3.bf16.msra.mxu1 %v16668_v43  ;;  %v6022_v43 = vld [vmem:[%s17252_s7 + $0x1c8] sm:$0xff] }
 0x483   : > { %15830 = vmatpush3.bf16.msra.mxu0 %v16669_v45  ;;  %15809 = vmatprep.subr.bf16.mxu1 %v16670_v54  ;;  %v14762_v45 = vcombine.low %v5997_v31, %v6005_v32  ;;  %v14764_v54 = vcombine.low %v5998_v34, %v6006_v35  ;;  %v6094_v31 = vld [vmem:[%s17252_s7 + $0x408] sm:$0xff] }
 0x484   : > { %15831 = vmatprep.subr.bf16.mxu0 %v16671_v55  ;;  %v14779_v55 = vcombine.high %v6013_v40, %v6021_v41  ;;  %v6102_v32 = vld [vmem:[%s17252_s7 + $0x448] sm:$0xff] }
 0x486   : > { %15810 = vmatpush3.bf16.msra.mxu1 %v16672_v57  ;;  %v14781_v57 = vcombine.high %v6014_v42, %v6022_v43 }
 0x487   : > { %15832 = vmatpush3.bf16.msra.mxu0 %v16673_v58  ;;  %15811 = vmatprep.subr.bf16.mxu1 %v16674_v59  ;;  %v6029_v58 = vld [vmem:[%s17252_s7 + $0x200] sm:$0xff] }
 0x488   : > { %15833 = vmatprep.subr.bf16.mxu0 %v16675_v60  ;;  %v6037_v59 = vld [vmem:[%s17252_s7 + $0x240] sm:$0xff]  ;;  %v6030_v60 = vld [vmem:[%s17252_s7 + $0x208] sm:$0xff] }
 0x48a   : > { %15812 = vmatpush3.bf16.msra.mxu1 %v16676_v61  ;;  %v6038_v61 = vld [vmem:[%s17252_s7 + $0x248] sm:$0xff] }
 0x48b   : > { %15834 = vmatpush3.bf16.msra.mxu0 %v16677_v17  ;;  %15813 = vmatprep.subr.bf16.mxu1 %v16678_v62  ;;  %v14778_v17 = vcombine.low %v6013_v40, %v6021_v41  ;;  %v14780_v62 = vcombine.low %v6014_v42, %v6022_v43  ;;  %v6118_v40 = vld [vmem:[%s17252_s7 + $0x4c8] sm:$0xff]  ;;  %v14860_v42 = vcombine.low %v6094_v31, %v6102_v32 }
 0x48c   : > { %15835 = vmatprep.subr.bf16.mxu0 %v16679_v63  ;;  %v14795_v63 = vcombine.high %v6029_v58, %v6037_v59 }
 0x48e   : > { %15814 = vmatpush3.bf16.msra.mxu1 %v16680_v1  ;;  %v14797_v1 = vcombine.high %v6030_v60, %v6038_v61 }
 0x48f   : > { %15836 = vmatpush3.bf16.msra.mxu0 %v16681_v9  ;;  %15815 = vmatprep.subr.bf16.mxu1 %v16682_v29  ;;  %v6045_v9 = vld [vmem:[%s17252_s7 + $0x280] sm:$0xff] }
 0x490   : > { %15837 = vmatprep.subr.bf16.mxu0 %v16683_v2  ;;  %v6053_v29 = vld [vmem:[%s17252_s7 + $0x2c0] sm:$0xff]  ;;  %v6046_v2 = vld [vmem:[%s17252_s7 + $0x288] sm:$0xff] }
 0x491   : > { %v14810_v13 = vcombine.low %v6045_v9, %v6053_v29 }
 0x492   : > { %15816 = vmatpush3.bf16.msra.mxu1 %v16684_v3  ;;  %v6054_v3 = vld [vmem:[%s17252_s7 + $0x2c8] sm:$0xff] }
 0x493   : > { %15838 = vmatpush3.bf16.msra.mxu0 %v16685_v4  ;;  %15817 = vmatprep.subr.bf16.mxu1 %v16686_v5  ;;  %v14794_v4 = vcombine.low %v6029_v58, %v6037_v59  ;;  %v14796_v5 = vcombine.low %v6030_v60, %v6038_v61  ;;  %v14812_v14 = vcombine.low %v6046_v2, %v6054_v3  ;;  %v6134_v58 = vld [vmem:[%s17252_s7 + $0x548] sm:$0xff] }
 0x494   : > { %15839 = vmatprep.subr.bf16.mxu0 %v16687_v6  ;;  %v14811_v6 = vcombine.high %v6045_v9, %v6053_v29  ;;  %v6150_v9 = vld [vmem:[%s17252_s7 + $0x5c8] sm:$0xff] }
 0x496   : > { %15818 = vmatpush3.bf16.msra.mxu1 %v16688_v7  ;;  %v14813_v7 = vcombine.high %v6046_v2, %v6054_v3 }
 0x497   : > { %15840 = vmatpush3.bf16.msra.mxu0 %v16689_v8  ;;  %15819 = vmatprep.subr.bf16.mxu1 %v16690_v10  ;;  %v6061_v8 = vld [vmem:[%s17252_s7 + $0x300] sm:$0xff] }
 0x498   : > { %15841 = vmatprep.subr.bf16.mxu0 %v16691_v11  ;;  %v6069_v10 = vld [vmem:[%s17252_s7 + $0x340] sm:$0xff]  ;;  %v6062_v11 = vld [vmem:[%s17252_s7 + $0x308] sm:$0xff] }
 0x499   : > { %v14827_v15 = vcombine.high %v6061_v8, %v6069_v10  ;;  %v14826_v22 = vcombine.low %v6061_v8, %v6069_v10  ;;  %v6166_v8 = vld [vmem:[%s17252_s7 + $0x648] sm:$0xff] }
 0x49a   : > { %15820 = vmatpush3.bf16.msra.mxu1 %v16692_v25  ;;  %v14829_v25 = vcombine.high %v6062_v11, %v6070_v12 }
 0x49b   : > { %15842 = vmatpush3.bf16.msra.mxu0 %v16693_v24  ;;  %12263 = vmatprep.subr.bf16.mxu1 %v14731_v16  ;;  %v6077_v24 = vld [vmem:[%s17252_s7 + $0x380] sm:$0xff] }
 0x49c   : > { %12435 = vmatprep.subr.bf16.mxu0 %v14733_v18  ;;  %v6085_v16 = vld [vmem:[%s17252_s7 + $0x3c0] sm:$0xff]  ;;  %v6078_v18 = vld [vmem:[%s17252_s7 + $0x388] sm:$0xff] }
 0x49d   : > { %5878 = vmatmul.mubr.bf16.vlgmr.msra.gmra.mrb[20].mxu1 %v17901_v44  ;;  %v14843_v26 = vcombine.high %v6077_v24, %v6085_v16  ;;  %v14845_v30 = vcombine.high %v6078_v18, %v6086_v19  ;;  %v14844_v34 = vcombine.low %v6078_v18, %v6086_v19 }
 0x49e   : > { %5919 = vmatmul.mubr.bf16.vlgmr.msra.gmra.mrb[24].mxu0 %v17903_v46  ;;  %12264 = vmatpush1.bf16.msra.mxu1 %v14730_v23  ;;  %v14828_v23 = vcombine.low %v6062_v11, %v6070_v12 }
 0x49f   : > { %12295 = vmatprep.mubr.bf16.mxu1 %v17752_v49  ;;  %12436 = vmatpush1.bf16.msra.mxu0 %v14732_v27  ;;  %v6093_v27 = vld [vmem:[%s17252_s7 + $0x400] sm:$0xff] }
 0x4a0   : > { %12467 = vmatprep.mubr.bf16.mxu0 %v17752_v49  ;;  %12265 = vmatprep.subr.bf16.mxu1 %v14747_v28  ;;  %v6101_v28 = vld [vmem:[%s17252_s7 + $0x440] sm:$0xff] }
 0x4a1   : > { %12437 = vmatprep.subr.bf16.mxu0 %v14749_v33  ;;  %v14842_v33 = vcombine.low %v6077_v24, %v6085_v16  ;;  %v14859_v35 = vcombine.high %v6093_v27, %v6101_v28  ;;  %v14858_v41 = vcombine.low %v6093_v27, %v6101_v28  ;;  %v6182_v24 = vld [vmem:[%s17252_s7 + $0x6c8] sm:$0xff] }
 0x4a2   : > { %12266 = vmatpush1.bf16.msra.mxu1 %v14746_v36  ;;  %v14861_v36 = vcombine.high %v6094_v31, %v6102_v32  ;;  %v6198_v27 = vld [vmem:[%s17252_s7 + $0x748] sm:$0xff] }
 0x4a3   : > { %12438 = vmatpush1.bf16.msra.mxu0 %v14748_v37  ;;  %12267 = vmatprep.subr.bf16.mxu1 %v14763_v38  ;;  %v6109_v37 = vld [vmem:[%s17252_s7 + $0x480] sm:$0xff] }
 0x4a4   : > { %12439 = vmatprep.subr.bf16.mxu0 %v14765_v39  ;;  %v6117_v38 = vld [vmem:[%s17252_s7 + $0x4c0] sm:$0xff]  ;;  %v6110_v39 = vld [vmem:[%s17252_s7 + $0x488] sm:$0xff] }
 0x4a5   : > { %v14875_v43 = vcombine.high %v6109_v37, %v6117_v38  ;;  %v14874_v59 = vcombine.low %v6109_v37, %v6117_v38  ;;  %v14876_v60 = vcombine.low %v6110_v39, %v6118_v40  ;;  %v6214_v37 = vld [vmem:[%s17252_s7 + $0x7c8] sm:$0xff] }
 0x4a6   : > { %12268 = vmatpush1.bf16.msra.mxu1 %v14762_v45  ;;  %v14877_v45 = vcombine.high %v6110_v39, %v6118_v40 }
 0x4a7   : > { %12440 = vmatpush1.bf16.msra.mxu0 %v14764_v54  ;;  %12269 = vmatprep.subr.bf16.mxu1 %v14779_v55  ;;  %v6125_v54 = vld [vmem:[%s17252_s7 + $0x500] sm:$0xff] }
 0x4a8   : > { %12441 = vmatprep.subr.bf16.mxu0 %v14781_v57  ;;  %v6133_v55 = vld [vmem:[%s17252_s7 + $0x540] sm:$0xff]  ;;  %v6126_v57 = vld [vmem:[%s17252_s7 + $0x508] sm:$0xff] }
 0x4a9   : > { %v14891_v61 = vcombine.high %v6125_v54, %v6133_v55  ;;  %v14890_v29 = vcombine.low %v6125_v54, %v6133_v55  ;;  %v14892_v2 = vcombine.low %v6126_v57, %v6134_v58  ;;  %v6230_v54 = vld [vmem:[%s17252_s7 + $0x848] sm:$0xff] }
 0x4aa   : > { %12270 = vmatpush1.bf16.msra.mxu1 %v14778_v17  ;;  %v14893_v17 = vcombine.high %v6126_v57, %v6134_v58 }
 0x4ab   : > { %12442 = vmatpush1.bf16.msra.mxu0 %v14780_v62  ;;  %12271 = vmatprep.subr.bf16.mxu1 %v14795_v63  ;;  %v6141_v62 = vld [vmem:[%s17252_s7 + $0x580] sm:$0xff] }
 0x4ac   : > { %12443 = vmatprep.subr.bf16.mxu0 %v14797_v1  ;;  %v6149_v63 = vld [vmem:[%s17252_s7 + $0x5c0] sm:$0xff]  ;;  %v6142_v1 = vld [vmem:[%s17252_s7 + $0x588] sm:$0xff] }
 0x4ad   : > { %v14907_v3 = vcombine.high %v6141_v62, %v6149_v63  ;;  %v14906_v10 = vcombine.low %v6141_v62, %v6149_v63  ;;  %v14908_v11 = vcombine.low %v6142_v1, %v6150_v9  ;;  %v6238_v62 = vld [vmem:[%s17252_s7 + $0x888] sm:$0xff] }
 0x4ae   : > { %12272 = vmatpush1.bf16.msra.mxu1 %v14794_v4  ;;  %v14909_v4 = vcombine.high %v6142_v1, %v6150_v9  ;;  %v6246_v63 = vld [vmem:[%s17252_s7 + $0x8c8] sm:$0xff] }
 0x4af   : > { %12444 = vmatpush1.bf16.msra.mxu0 %v14796_v5  ;;  %12273 = vmatprep.subr.bf16.mxu1 %v14811_v6  ;;  %v6157_v5 = vld [vmem:[%s17252_s7 + $0x600] sm:$0xff] }
 0x4b0   : > { %12445 = vmatprep.subr.bf16.mxu0 %v14813_v7  ;;  %v6165_v6 = vld [vmem:[%s17252_s7 + $0x640] sm:$0xff]  ;;  %v6158_v7 = vld [vmem:[%s17252_s7 + $0x608] sm:$0xff] }
 0x4b1   : > { %v14923_v12 = vcombine.high %v6157_v5, %v6165_v6  ;;  %v14922_v16 = vcombine.low %v6157_v5, %v6165_v6  ;;  %v14924_v18 = vcombine.low %v6158_v7, %v6166_v8  ;;  %v6262_v5 = vld [vmem:[%s17252_s7 + $0x948] sm:$0xff] }
 0x4b2   : > { %12274 = vmatpush1.bf16.msra.mxu1 %v14810_v13  ;;  %v14925_v13 = vcombine.high %v6158_v7, %v6166_v8  ;;  %v15004_v7 = vcombine.low %v6238_v62, %v6246_v63 }
 0x4b3   : > { %12446 = vmatpush1.bf16.msra.mxu0 %v14812_v14  ;;  %12275 = vmatprep.subr.bf16.mxu1 %v14827_v15  ;;  %v6173_v14 = vld [vmem:[%s17252_s7 + $0x680] sm:$0xff] }
 0x4b4   : > { %12447 = vmatprep.subr.bf16.mxu0 %v14829_v25  ;;  %v6181_v15 = vld [vmem:[%s17252_s7 + $0x6c0] sm:$0xff]  ;;  %v6174_v25 = vld [vmem:[%s17252_s7 + $0x688] sm:$0xff] }
 0x4b5   : > { %v14939_v19 = vcombine.high %v6173_v14, %v6181_v15  ;;  %v14938_v28 = vcombine.low %v6173_v14, %v6181_v15  ;;  %v14940_v31 = vcombine.low %v6174_v25, %v6182_v24  ;;  %v6278_v14 = vld [vmem:[%s17252_s7 + $0x9c8] sm:$0xff] }
 0x4b6   : > { %12276 = vmatpush1.bf16.msra.mxu1 %v14826_v22  ;;  %v14941_v22 = vcombine.high %v6174_v25, %v6182_v24 }
 0x4b7   : > { %12448 = vmatpush1.bf16.msra.mxu0 %v14828_v23  ;;  %12277 = vmatprep.subr.bf16.mxu1 %v14843_v26  ;;  %v6189_v23 = vld [vmem:[%s17252_s7 + $0x700] sm:$0xff] }
 0x4b8   : > { %12449 = vmatprep.subr.bf16.mxu0 %v14845_v30  ;;  %v6197_v26 = vld [vmem:[%s17252_s7 + $0x740] sm:$0xff]  ;;  %v6190_v30 = vld [vmem:[%s17252_s7 + $0x708] sm:$0xff] }
 0x4b9   : > { %v14955_v32 = vcombine.high %v6189_v23, %v6197_v26  ;;  %v14954_v38 = vcombine.low %v6189_v23, %v6197_v26  ;;  %v14956_v39 = vcombine.low %v6190_v30, %v6198_v27  ;;  %v6294_v23 = vld [vmem:[%s17252_s7 + $0xa48] sm:$0xff] }
 0x4ba   : > { %12278 = vmatpush1.bf16.msra.mxu1 %v14842_v33  ;;  %v14957_v33 = vcombine.high %v6190_v30, %v6198_v27 }
 0x4bb   : > { %12450 = vmatpush1.bf16.msra.mxu0 %v14844_v34  ;;  %12279 = vmatprep.subr.bf16.mxu1 %v14859_v35  ;;  %v6205_v34 = vld [vmem:[%s17252_s7 + $0x780] sm:$0xff] }
 0x4bc   : > { %12451 = vmatprep.subr.bf16.mxu0 %v14861_v36  ;;  %v6213_v35 = vld [vmem:[%s17252_s7 + $0x7c0] sm:$0xff]  ;;  %v6206_v36 = vld [vmem:[%s17252_s7 + $0x788] sm:$0xff] }
 0x4bd   : > { %v14971_v40 = vcombine.high %v6205_v34, %v6213_v35  ;;  %v14970_v55 = vcombine.low %v6205_v34, %v6213_v35  ;;  %v14972_v57 = vcombine.low %v6206_v36, %v6214_v37  ;;  %v6310_v34 = vld [vmem:[%s17252_s7 + $0xac8] sm:$0xff] }
 0x4be   : > { %12280 = vmatpush1.bf16.msra.mxu1 %v14858_v41  ;;  %v14973_v41 = vcombine.high %v6206_v36, %v6214_v37 }
 0x4bf   : > { %12452 = vmatpush1.bf16.msra.mxu0 %v14860_v42  ;;  %12281 = vmatprep.subr.bf16.mxu1 %v14875_v43  ;;  %v6221_v42 = vld [vmem:[%s17252_s7 + $0x800] sm:$0xff] }
 0x4c0   : > { %12453 = vmatprep.subr.bf16.mxu0 %v14877_v45  ;;  %v6229_v43 = vld [vmem:[%s17252_s7 + $0x840] sm:$0xff]  ;;  %v6222_v45 = vld [vmem:[%s17252_s7 + $0x808] sm:$0xff] }
 0x4c1   : > { %v14987_v58 = vcombine.high %v6221_v42, %v6229_v43  ;;  %v14988_v1 = vcombine.low %v6222_v45, %v6230_v54 }
 0x4c2   : > { %12282 = vmatpush1.bf16.msra.mxu1 %v14874_v59  ;;  %v14989_v59 = vcombine.high %v6222_v45, %v6230_v54 }
 0x4c3   : > { %12454 = vmatpush1.bf16.msra.mxu0 %v14876_v60  ;;  %12283 = vmatprep.subr.bf16.mxu1 %v14891_v61  ;;  %v6237_v60 = vld [vmem:[%s17252_s7 + $0x880] sm:$0xff] }
 0x4c4   : > { %12455 = vmatprep.subr.bf16.mxu0 %v14893_v17  ;;  %v6245_v61 = vld [vmem:[%s17252_s7 + $0x8c0] sm:$0xff]  ;;  %v14986_v17 = vcombine.low %v6221_v42, %v6229_v43  ;;  %v6326_v42 = vld [vmem:[%s17252_s7 + $0xb48] sm:$0xff] }
 0x4c5   : > { %v15003_v9 = vcombine.high %v6237_v60, %v6245_v61  ;;  %v15002_v6 = vcombine.low %v6237_v60, %v6245_v61  ;;  %v6342_v60 = vld [vmem:[%s17252_s7 + $0xbc8] sm:$0xff] }
 0x4c6   : > { %12284 = vmatpush1.bf16.msra.mxu1 %v14890_v29  ;;  %v6253_v29 = vld [vmem:[%s17252_s7 + $0x900] sm:$0xff] }
 0x4c7   : > { %12456 = vmatpush1.bf16.msra.mxu0 %v14892_v2  ;;  %12285 = vmatprep.subr.bf16.mxu1 %v14907_v3  ;;  %v6261_v2 = vld [vmem:[%s17252_s7 + $0x940] sm:$0xff]  ;;  %v15005_v3 = vcombine.high %v6238_v62, %v6246_v63 }
 0x4c8   : > { %12457 = vmatprep.subr.bf16.mxu0 %v14909_v4  ;;  %v6254_v4 = vld [vmem:[%s17252_s7 + $0x908] sm:$0xff]  ;;  %v15019_v8 = vcombine.high %v6253_v29, %v6261_v2  ;;  %v15018_v15 = vcombine.low %v6253_v29, %v6261_v2 }
 0x4c9   : > { %v15020_v25 = vcombine.low %v6254_v4, %v6262_v5  ;;  %v6350_v29 = vld [vmem:[%s17252_s7 + $0xc08] sm:$0xff] }
 0x4ca   : > { %12286 = vmatpush1.bf16.msra.mxu1 %v14906_v10  ;;  %v15021_v10 = vcombine.high %v6254_v4, %v6262_v5  ;;  %v6358_v2 = vld [vmem:[%s17252_s7 + $0xc48] sm:$0xff] }
 0x4cb   : > { %12458 = vmatpush1.bf16.msra.mxu0 %v14908_v11  ;;  %12287 = vmatprep.subr.bf16.mxu1 %v14923_v12  ;;  %v6269_v11 = vld [vmem:[%s17252_s7 + $0x980] sm:$0xff] }
 0x4cc   : > { %12459 = vmatprep.subr.bf16.mxu0 %v14925_v13  ;;  %v6277_v12 = vld [vmem:[%s17252_s7 + $0x9c0] sm:$0xff]  ;;  %v6270_v13 = vld [vmem:[%s17252_s7 + $0x988] sm:$0xff] }
 0x4cd   : > { %v15035_v24 = vcombine.high %v6269_v11, %v6277_v12  ;;  %v15034_v26 = vcombine.low %v6269_v11, %v6277_v12  ;;  %v15036_v30 = vcombine.low %v6270_v13, %v6278_v14  ;;  %v6374_v11 = vld [vmem:[%s17252_s7 + $0xcc8] sm:$0xff] }
 0x4ce   : > { %12288 = vmatpush1.bf16.msra.mxu1 %v14922_v16  ;;  %v15037_v16 = vcombine.high %v6270_v13, %v6278_v14  ;;  %v15116_v13 = vcombine.low %v6350_v29, %v6358_v2 }
 0x4cf   : > { %12460 = vmatpush1.bf16.msra.mxu0 %v14924_v18  ;;  %12289 = vmatprep.subr.bf16.mxu1 %v14939_v19  ;;  %v6285_v18 = vld [vmem:[%s17252_s7 + $0xa00] sm:$0xff] }
 0x4d0   : > { %12461 = vmatprep.subr.bf16.mxu0 %v14941_v22  ;;  %v6293_v19 = vld [vmem:[%s17252_s7 + $0xa40] sm:$0xff]  ;;  %v6286_v22 = vld [vmem:[%s17252_s7 + $0xa08] sm:$0xff] }
 0x4d1   : > { %v15051_v27 = vcombine.high %v6285_v18, %v6293_v19  ;;  %v15050_v35 = vcombine.low %v6285_v18, %v6293_v19  ;;  %v15052_v36 = vcombine.low %v6286_v22, %v6294_v23  ;;  %v6390_v18 = vld [vmem:[%s17252_s7 + $0xd48] sm:$0xff] }
 0x4d2   : > { %12290 = vmatpush1.bf16.msra.mxu1 %v14938_v28  ;;  %v15053_v28 = vcombine.high %v6286_v22, %v6294_v23 }
 0x4d3   : > { %12462 = vmatpush1.bf16.msra.mxu0 %v14940_v31  ;;  %12291 = vmatprep.subr.bf16.mxu1 %v14955_v32  ;;  %v6301_v31 = vld [vmem:[%s17252_s7 + $0xa80] sm:$0xff] }
 0x4d4   : > { %12463 = vmatprep.subr.bf16.mxu0 %v14957_v33  ;;  %v6309_v32 = vld [vmem:[%s17252_s7 + $0xac0] sm:$0xff]  ;;  %v6302_v33 = vld [vmem:[%s17252_s7 + $0xa88] sm:$0xff] }
 0x4d5   : > { %v15067_v37 = vcombine.high %v6301_v31, %v6309_v32  ;;  %v15066_v43 = vcombine.low %v6301_v31, %v6309_v32  ;;  %v15068_v45 = vcombine.low %v6302_v33, %v6310_v34  ;;  %v6406_v31 = vld [vmem:[%s17252_s7 + $0xdc8] sm:$0xff] }
 0x4d6   : > { %12292 = vmatpush1.bf16.msra.mxu1 %v14954_v38  ;;  %v15069_v38 = vcombine.high %v6302_v33, %v6310_v34 }
 0x4d7   : > { %12464 = vmatpush1.bf16.msra.mxu0 %v14956_v39  ;;  %12293 = vmatprep.subr.bf16.mxu1 %v14971_v40  ;;  %v6317_v39 = vld [vmem:[%s17252_s7 + $0xb00] sm:$0xff] }
 0x4d8   : > { %12465 = vmatprep.subr.bf16.mxu0 %v14973_v41  ;;  %v6325_v40 = vld [vmem:[%s17252_s7 + $0xb40] sm:$0xff]  ;;  %v6318_v41 = vld [vmem:[%s17252_s7 + $0xb08] sm:$0xff] }
 0x4d9   : > { %v15083_v54 = vcombine.high %v6317_v39, %v6325_v40  ;;  %v15082_v61 = vcombine.low %v6317_v39, %v6325_v40  ;;  %v6422_v39 = vld [vmem:[%s17252_s7 + $0xe48] sm:$0xff] }
 0x4da   : > { %12294 = vmatpush1.bf16.msra.mxu1 %v14970_v55  ;;  %v15085_v55 = vcombine.high %v6318_v41, %v6326_v42 }
 0x4db   : > { %12466 = vmatpush1.bf16.msra.mxu0 %v14972_v57  ;;  %12306 = vmatprep.subr.bf16.mxu1 %v14987_v58  ;;  %v6333_v57 = vld [vmem:[%s17252_s7 + $0xb80] sm:$0xff] }
 0x4dc   : > { %12478 = vmatprep.subr.bf16.mxu0 %v14989_v59  ;;  %v6341_v58 = vld [vmem:[%s17252_s7 + $0xbc0] sm:$0xff]  ;;  %v6334_v59 = vld [vmem:[%s17252_s7 + $0xb88] sm:$0xff] }
 0x4dd   : > { %12296 = vmatmul.mubr.bf16.vlgmr.msra.gmra.mrb[24].mxu1 %v17748_v47  ;;  %v15099_v62 = vcombine.high %v6333_v57, %v6341_v58  ;;  %v15101_v63 = vcombine.high %v6334_v59, %v6342_v60  ;;  %v15100_v4 = vcombine.low %v6334_v59, %v6342_v60 }
 0x4de   : > { %12468 = vmatmul.mubr.bf16.vlgmr.msra.gmra.mrb[28].mxu0 %v17748_v47  ;;  %12307 = vmatpush1.bf16.msra.mxu1 %v14986_v17  ;;  %v15084_v17 = vcombine.low %v6318_v41, %v6326_v42 }
 0x4df   : > { %12338 = vmatprep.mubr.bf16.mxu1 %v17754_v52  ;;  %12479 = vmatpush1.bf16.msra.mxu0 %v14988_v1  ;;  %v6349_v1 = vld [vmem:[%s17252_s7 + $0xc00] sm:$0xff] }
 0x4e0   : > { %12510 = vmatprep.mubr.bf16.mxu0 %v17754_v52  ;;  %12308 = vmatprep.subr.bf16.mxu1 %v15003_v9  ;;  %v6357_v9 = vld [vmem:[%s17252_s7 + $0xc40] sm:$0xff] }
 0x4e1   : > { %12480 = vmatprep.subr.bf16.mxu0 %v15005_v3  ;;  %v15098_v3 = vcombine.low %v6333_v57, %v6341_v58  ;;  %v15115_v5 = vcombine.high %v6349_v1, %v6357_v9  ;;  %v15114_v12 = vcombine.low %v6349_v1, %v6357_v9  ;;  %v6438_v57 = vld [vmem:[%s17252_s7 + $0xec8] sm:$0xff] }
 0x4e2   : > { %12309 = vmatpush1.bf16.msra.mxu1 %v15002_v6  ;;  %v15117_v6 = vcombine.high %v6350_v29, %v6358_v2  ;;  %v6454_v1 = vld [vmem:[%s17252_s7 + $0xf48] sm:$0xff] }
 0x4e3   : > { %12481 = vmatpush1.bf16.msra.mxu0 %v15004_v7  ;;  %12310 = vmatprep.subr.bf16.mxu1 %v15019_v8  ;;  %v6365_v7 = vld [vmem:[%s17252_s7 + $0xc80] sm:$0xff] }
 0x4e4   : > { %12482 = vmatprep.subr.bf16.mxu0 %v15021_v10  ;;  %v6373_v8 = vld [vmem:[%s17252_s7 + $0xcc0] sm:$0xff]  ;;  %v6366_v10 = vld [vmem:[%s17252_s7 + $0xc88] sm:$0xff] }
 0x4e5   : > { %v15131_v14 = vcombine.high %v6365_v7, %v6373_v8  ;;  %v15130_v19 = vcombine.low %v6365_v7, %v6373_v8  ;;  %v15132_v22 = vcombine.low %v6366_v10, %v6374_v11  ;;  %v6470_v7 = vld [vmem:[%s17252_s7 + $0xfc8] sm:$0xff] }
 0x4e6   : > { %12311 = vmatpush1.bf16.msra.mxu1 %v15018_v15  ;;  %v15133_v15 = vcombine.high %v6366_v10, %v6374_v11 }
 0x4e7   : > { %12483 = vmatpush1.bf16.msra.mxu0 %v15020_v25  ;;  %12312 = vmatprep.subr.bf16.mxu1 %v15035_v24  ;;  %v6381_v25 = vld [vmem:[%s17252_s7 + $0xd00] sm:$0xff] }
 0x4e8   : > { %12484 = vmatprep.subr.bf16.mxu0 %v15037_v16  ;;  %v6389_v24 = vld [vmem:[%s17252_s7 + $0xd40] sm:$0xff]  ;;  %v6382_v16 = vld [vmem:[%s17252_s7 + $0xd08] sm:$0xff] }
 0x4e9   : > { %v15147_v23 = vcombine.high %v6381_v25, %v6389_v24  ;;  %v15146_v32 = vcombine.low %v6381_v25, %v6389_v24  ;;  %v15148_v33 = vcombine.low %v6382_v16, %v6390_v18  ;;  %v6486_v25 = vld [vmem:[%s17252_s7 + $0x1048] sm:$0xff] }
 0x4ea   : > { %12313 = vmatpush1.bf16.msra.mxu1 %v15034_v26  ;;  %v15149_v26 = vcombine.high %v6382_v16, %v6390_v18 }
 0x4eb   : > { %12485 = vmatpush1.bf16.msra.mxu0 %v15036_v30  ;;  %12314 = vmatprep.subr.bf16.mxu1 %v15051_v27  ;;  %v6397_v30 = vld [vmem:[%s17252_s7 + $0xd80] sm:$0xff] }
 0x4ec   : > { %12486 = vmatprep.subr.bf16.mxu0 %v15053_v28  ;;  %v6405_v27 = vld [vmem:[%s17252_s7 + $0xdc0] sm:$0xff]  ;;  %v6398_v28 = vld [vmem:[%s17252_s7 + $0xd88] sm:$0xff] }
 0x4ed   : > { %v15163_v34 = vcombine.high %v6397_v30, %v6405_v27  ;;  %v15162_v40 = vcombine.low %v6397_v30, %v6405_v27  ;;  %v15164_v41 = vcombine.low %v6398_v28, %v6406_v31  ;;  %v6494_v30 = vld [vmem:[%s17252_s7 + $0x1088] sm:$0xff] }
 0x4ee   : > { %12315 = vmatpush1.bf16.msra.mxu1 %v15050_v35  ;;  %v15165_v35 = vcombine.high %v6398_v28, %v6406_v31  ;;  %v6502_v27 = vld [vmem:[%s17252_s7 + $0x10c8] sm:$0xff] }
 0x4ef   : > { %12487 = vmatpush1.bf16.msra.mxu0 %v15052_v36  ;;  %12316 = vmatprep.subr.bf16.mxu1 %v15067_v37  ;;  %v6413_v36 = vld [vmem:[%s17252_s7 + $0xe00] sm:$0xff] }
 0x4f0   : > { %12488 = vmatprep.subr.bf16.mxu0 %v15069_v38  ;;  %v6421_v37 = vld [vmem:[%s17252_s7 + $0xe40] sm:$0xff]  ;;  %v6414_v38 = vld [vmem:[%s17252_s7 + $0xe08] sm:$0xff] }
 0x4f1   : > { %v15179_v42 = vcombine.high %v6413_v36, %v6421_v37  ;;  %v15178_v58 = vcombine.low %v6413_v36, %v6421_v37  ;;  %v15180_v59 = vcombine.low %v6414_v38, %v6422_v39  ;;  %v6518_v36 = vld [vmem:[%s17252_s7 + $0x1148] sm:$0xff] }
 0x4f2   : > { %12317 = vmatpush1.bf16.msra.mxu1 %v15066_v43  ;;  %v15181_v43 = vcombine.high %v6414_v38, %v6422_v39  ;;  %v15260_v38 = vcombine.low %v6494_v30, %v6502_v27 }
 0x4f3   : > { %12489 = vmatpush1.bf16.msra.mxu0 %v15068_v45  ;;  %12318 = vmatprep.subr.bf16.mxu1 %v15083_v54  ;;  %v6429_v45 = vld [vmem:[%s17252_s7 + $0xe80] sm:$0xff] }
 0x4f4   : > { %12490 = vmatprep.subr.bf16.mxu0 %v15085_v55  ;;  %v6437_v54 = vld [vmem:[%s17252_s7 + $0xec0] sm:$0xff]  ;;  %v6430_v55 = vld [vmem:[%s17252_s7 + $0xe88] sm:$0xff] }
 0x4f5   : > { %v15195_v60 = vcombine.high %v6429_v45, %v6437_v54  ;;  %v15194_v9 = vcombine.low %v6429_v45, %v6437_v54  ;;  %v15196_v29 = vcombine.low %v6430_v55, %v6438_v57  ;;  %v6534_v45 = vld [vmem:[%s17252_s7 + $0x11c8] sm:$0xff] }
 0x4f6   : > { %12319 = vmatpush1.bf16.msra.mxu1 %v15082_v61  ;;  %v15197_v61 = vcombine.high %v6430_v55, %v6438_v57 }
 0x4f7   : > { %12491 = vmatpush1.bf16.msra.mxu0 %v15084_v17  ;;  %12320 = vmatprep.subr.bf16.mxu1 %v15099_v62  ;;  %v6445_v17 = vld [vmem:[%s17252_s7 + $0xf00] sm:$0xff] }
 0x4f8   : > { %12492 = vmatprep.subr.bf16.mxu0 %v15101_v63  ;;  %v6453_v62 = vld [vmem:[%s17252_s7 + $0xf40] sm:$0xff]  ;;  %v6446_v63 = vld [vmem:[%s17252_s7 + $0xf08] sm:$0xff] }
 0x4f9   : > { %v15211_v2 = vcombine.high %v6445_v17, %v6453_v62  ;;  %v15210_v8 = vcombine.low %v6445_v17, %v6453_v62  ;;  %v15212_v10 = vcombine.low %v6446_v63, %v6454_v1  ;;  %v6550_v17 = vld [vmem:[%s17252_s7 + $0x1248] sm:$0xff] }
 0x4fa   : > { %12321 = vmatpush1.bf16.msra.mxu1 %v15098_v3  ;;  %v15213_v3 = vcombine.high %v6446_v63, %v6454_v1 }
 0x4fb   : > { %12493 = vmatpush1.bf16.msra.mxu0 %v15100_v4  ;;  %12322 = vmatprep.subr.bf16.mxu1 %v15115_v5  ;;  %v6461_v4 = vld [vmem:[%s17252_s7 + $0xf80] sm:$0xff] }
 0x4fc   : > { %12494 = vmatprep.subr.bf16.mxu0 %v15117_v6  ;;  %v6469_v5 = vld [vmem:[%s17252_s7 + $0xfc0] sm:$0xff]  ;;  %v6462_v6 = vld [vmem:[%s17252_s7 + $0xf88] sm:$0xff] }
 0x4fd   : > { %v15227_v11 = vcombine.high %v6461_v4, %v6469_v5  ;;  %v15226_v24 = vcombine.low %v6461_v4, %v6469_v5  ;;  %v15228_v16 = vcombine.low %v6462_v6, %v6470_v7  ;;  %v6566_v4 = vld [vmem:[%s17252_s7 + $0x12c8] sm:$0xff] }
 0x4fe   : > { %12323 = vmatpush1.bf16.msra.mxu1 %v15114_v12  ;;  %v15229_v12 = vcombine.high %v6462_v6, %v6470_v7 }
 0x4ff   : > { %12495 = vmatpush1.bf16.msra.mxu0 %v15116_v13  ;;  %12324 = vmatprep.subr.bf16.mxu1 %v15131_v14  ;;  %v6477_v13 = vld [vmem:[%s17252_s7 + $0x1000] sm:$0xff] }
 0x500   : > { %12496 = vmatprep.subr.bf16.mxu0 %v15133_v15  ;;  %v6485_v14 = vld [vmem:[%s17252_s7 + $0x1040] sm:$0xff]  ;;  %v6478_v15 = vld [vmem:[%s17252_s7 + $0x1008] sm:$0xff] }
 0x501   : > { %v15243_v18 = vcombine.high %v6477_v13, %v6485_v14  ;;  %v15244_v28 = vcombine.low %v6478_v15, %v6486_v25 }
 0x502   : > { %12325 = vmatpush1.bf16.msra.mxu1 %v15130_v19  ;;  %v15245_v19 = vcombine.high %v6478_v15, %v6486_v25 }
 0x503   : > { %12497 = vmatpush1.bf16.msra.mxu0 %v15132_v22  ;;  %12326 = vmatprep.subr.bf16.mxu1 %v15147_v23  ;;  %v6493_v22 = vld [vmem:[%s17252_s7 + $0x1080] sm:$0xff] }
 0x504   : > { %12498 = vmatprep.subr.bf16.mxu0 %v15149_v26  ;;  %v6501_v23 = vld [vmem:[%s17252_s7 + $0x10c0] sm:$0xff]  ;;  %v15242_v26 = vcombine.low %v6477_v13, %v6485_v14  ;;  %v6582_v13 = vld [vmem:[%s17252_s7 + $0x1348] sm:$0xff] }
 0x505   : > { %v15259_v31 = vcombine.high %v6493_v22, %v6501_v23  ;;  %v15258_v37 = vcombine.low %v6493_v22, %v6501_v23  ;;  %v6597_v22 = vld [vmem:[%s17252_s7 + $0x13c0] sm:$0xff] }
 0x506   : > { %12327 = vmatpush1.bf16.msra.mxu1 %v15146_v32  ;;  %v6509_v32 = vld [vmem:[%s17252_s7 + $0x1100] sm:$0xff] }
 0x507   : > { %12499 = vmatpush1.bf16.msra.mxu0 %v15148_v33  ;;  %12328 = vmatprep.subr.bf16.mxu1 %v15163_v34  ;;  %v6517_v33 = vld [vmem:[%s17252_s7 + $0x1140] sm:$0xff]  ;;  %v15261_v34 = vcombine.high %v6494_v30, %v6502_v27  ;;  %v6590_v30 = vld [vmem:[%s17252_s7 + $0x1388] sm:$0xff] }
 0x508   : > { %12500 = vmatprep.subr.bf16.mxu0 %v15165_v35  ;;  %v6510_v35 = vld [vmem:[%s17252_s7 + $0x1108] sm:$0xff]  ;;  %v15275_v39 = vcombine.high %v6509_v32, %v6517_v33  ;;  %v15274_v54 = vcombine.low %v6509_v32, %v6517_v33 }
 0x509   : > { %v15276_v55 = vcombine.low %v6510_v35, %v6518_v36  ;;  %v6598_v27 = vld [vmem:[%s17252_s7 + $0x13c8] sm:$0xff] }
 0x50a   : > { %12329 = vmatpush1.bf16.msra.mxu1 %v15162_v40  ;;  %v15277_v40 = vcombine.high %v6510_v35, %v6518_v36 }
 0x50b   : > { %12501 = vmatpush1.bf16.msra.mxu0 %v15164_v41  ;;  %12330 = vmatprep.subr.bf16.mxu1 %v15179_v42  ;;  %v6525_v41 = vld [vmem:[%s17252_s7 + $0x1180] sm:$0xff] }
 0x50c   : > { %12502 = vmatprep.subr.bf16.mxu0 %v15181_v43  ;;  %v6533_v42 = vld [vmem:[%s17252_s7 + $0x11c0] sm:$0xff]  ;;  %v6526_v43 = vld [vmem:[%s17252_s7 + $0x1188] sm:$0xff] }
 0x50d   : > { %v15291_v57 = vcombine.high %v6525_v41, %v6533_v42  ;;  %v15290_v62 = vcombine.low %v6525_v41, %v6533_v42  ;;  %v15292_v63 = vcombine.low %v6526_v43, %v6534_v45  ;;  %v6614_v41 = vld [vmem:[%s17252_s7 + $0x1448] sm:$0xff] }
 0x50e   : > { %12331 = vmatpush1.bf16.msra.mxu1 %v15178_v58  ;;  %v15293_v58 = vcombine.high %v6526_v43, %v6534_v45  ;;  %v15356_v43 = vcombine.low %v6590_v30, %v6598_v27 }
 0x50f   : > { %12503 = vmatpush1.bf16.msra.mxu0 %v15180_v59  ;;  %12332 = vmatprep.subr.bf16.mxu1 %v15195_v60  ;;  %v6541_v59 = vld [vmem:[%s17252_s7 + $0x1200] sm:$0xff] }
 0x510   : > { %12504 = vmatprep.subr.bf16.mxu0 %v15197_v61  ;;  %v6549_v60 = vld [vmem:[%s17252_s7 + $0x1240] sm:$0xff]  ;;  %v6542_v61 = vld [vmem:[%s17252_s7 + $0x1208] sm:$0xff] }
 0x511   : > { %v15307_v1 = vcombine.high %v6541_v59, %v6549_v60  ;;  %v15306_v5 = vcombine.low %v6541_v59, %v6549_v60  ;;  %v15308_v6 = vcombine.low %v6542_v61, %v6550_v17  ;;  %v6630_v59 = vld [vmem:[%s17252_s7 + $0x14c8] sm:$0xff] }
 0x512   : > { %12333 = vmatpush1.bf16.msra.mxu1 %v15194_v9  ;;  %v15309_v9 = vcombine.high %v6542_v61, %v6550_v17 }
 0x513   : > { %12505 = vmatpush1.bf16.msra.mxu0 %v15196_v29  ;;  %12334 = vmatprep.subr.bf16.mxu1 %v15211_v2  ;;  %v6557_v29 = vld [vmem:[%s17252_s7 + $0x1280] sm:$0xff] }
 0x514   : > { %12506 = vmatprep.subr.bf16.mxu0 %v15213_v3  ;;  %v6565_v2 = vld [vmem:[%s17252_s7 + $0x12c0] sm:$0xff]  ;;  %v6558_v3 = vld [vmem:[%s17252_s7 + $0x1288] sm:$0xff] }
 0x515   : > { %v15323_v7 = vcombine.high %v6557_v29, %v6565_v2  ;;  %v15322_v14 = vcombine.low %v6557_v29, %v6565_v2  ;;  %v15324_v15 = vcombine.low %v6558_v3, %v6566_v4  ;;  %v6646_v29 = vld [vmem:[%s17252_s7 + $0x1548] sm:$0xff] }
 0x516   : > { %12335 = vmatpush1.bf16.msra.mxu1 %v15210_v8  ;;  %v15325_v8 = vcombine.high %v6558_v3, %v6566_v4 }
 0x517   : > { %12507 = vmatpush1.bf16.msra.mxu0 %v15212_v10  ;;  %12336 = vmatprep.subr.bf16.mxu1 %v15227_v11  ;;  %v6573_v10 = vld [vmem:[%s17252_s7 + $0x1300] sm:$0xff] }
 0x518   : > { %12508 = vmatprep.subr.bf16.mxu0 %v15229_v12  ;;  %v6581_v11 = vld [vmem:[%s17252_s7 + $0x1340] sm:$0xff]  ;;  %v6574_v12 = vld [vmem:[%s17252_s7 + $0x1308] sm:$0xff] }
 0x519   : > { %v15339_v25 = vcombine.high %v6573_v10, %v6581_v11  ;;  %v15338_v32 = vcombine.low %v6573_v10, %v6581_v11  ;;  %v15340_v35 = vcombine.low %v6574_v12, %v6582_v13  ;;  %v6662_v10 = vld [vmem:[%s17252_s7 + $0x15c8] sm:$0xff] }
 0x51a   : > { %12337 = vmatpush1.bf16.msra.mxu1 %v15226_v24 }
 0x51b   : > { %12509 = vmatpush1.bf16.msra.mxu0 %v15228_v16  ;;  %12349 = vmatprep.subr.bf16.mxu1 %v15243_v18  ;;  %v15341_v18 = vcombine.high %v6574_v12, %v6582_v13 }
 0x51c   : > { %12521 = vmatprep.subr.bf16.mxu0 %v15245_v19  ;;  %v6589_v19 = vld [vmem:[%s17252_s7 + $0x1380] sm:$0xff] }
 0x51d   : > { %12339 = vmatmul.mubr.bf16.vlgmr.msra.gmra.mrb[24].mxu1 %v17750_v48  ;;  %v15355_v36 = vcombine.high %v6589_v19, %v6597_v22  ;;  %v15354_v42 = vcombine.low %v6589_v19, %v6597_v22  ;;  %v6678_v19 = vld [vmem:[%s17252_s7 + $0x1648] sm:$0xff] }
 0x51e   : > { %12511 = vmatmul.mubr.bf16.vlgmr.msra.gmra.mrb[28].mxu0 %v17750_v48  ;;  %12350 = vmatpush1.bf16.msra.mxu1 %v15242_v26 }
 0x51f   : > { %12381 = vmatprep.mubr.bf16.mxu1 %v17905_v53  ;;  %12522 = vmatpush1.bf16.msra.mxu0 %v15244_v28 }
 0x520   : > { %12553 = vmatprep.mubr.bf16.mxu0 %v17905_v53  ;;  %12351 = vmatprep.subr.bf16.mxu1 %v15259_v31 }
 0x521   : > { %12523 = vmatprep.subr.bf16.mxu0 %v15261_v34 }
 0x522   : > { %12352 = vmatpush1.bf16.msra.mxu1 %v15258_v37  ;;  %v15357_v37 = vcombine.high %v6590_v30, %v6598_v27  ;;  %v3705_v30 = vld [vmem:[%s18257_s18] sm:$0x1f] }
 0x523   : > { %12524 = vmatpush1.bf16.msra.mxu0 %v15260_v38  ;;  %12353 = vmatprep.subr.bf16.mxu1 %v15275_v39  ;;  %v6605_v38 = vld [vmem:[%s17252_s7 + $0x1400] sm:$0xff] }
 0x524   : > { %12525 = vmatprep.subr.bf16.mxu0 %v15277_v40  ;;  %v6613_v39 = vld [vmem:[%s17252_s7 + $0x1440] sm:$0xff]  ;;  %v6606_v40 = vld [vmem:[%s17252_s7 + $0x1408] sm:$0xff] }
 0x525   : > { %v15371_v45 = vcombine.high %v6605_v38, %v6613_v39  ;;  %v15370_v60 = vcombine.low %v6605_v38, %v6613_v39  ;;  %v15372_v61 = vcombine.low %v6606_v40, %v6614_v41  ;;  %v6693_v38 = vld [vmem:[%s17252_s7 + $0x16c0] sm:$0xff]  ;;  %v6686_v39 = vld [vmem:[%s17252_s7 + $0x1688] sm:$0xff] }
 0x526   : > { %12354 = vmatpush1.bf16.msra.mxu1 %v15274_v54  ;;  %v15373_v54 = vcombine.high %v6606_v40, %v6614_v41  ;;  %v6694_v40 = vld [vmem:[%s17252_s7 + $0x16c8] sm:$0xff] }
 0x527   : > { %12526 = vmatpush1.bf16.msra.mxu0 %v15276_v55  ;;  %12355 = vmatprep.subr.bf16.mxu1 %v15291_v57  ;;  %v6621_v55 = vld [vmem:[%s17252_s7 + $0x1480] sm:$0xff] }
 0x528   : > { %12527 = vmatprep.subr.bf16.mxu0 %v15293_v58  ;;  %v6629_v57 = vld [vmem:[%s17252_s7 + $0x14c0] sm:$0xff]  ;;  %v6622_v58 = vld [vmem:[%s17252_s7 + $0x1488] sm:$0xff] }
 0x529   : > { %v15387_v17 = vcombine.high %v6621_v55, %v6629_v57  ;;  %v15386_v2 = vcombine.low %v6621_v55, %v6629_v57  ;;  %v15388_v3 = vcombine.low %v6622_v58, %v6630_v59  ;;  %v6701_v55 = vld [vmem:[%s17252_s7 + $0x1700] sm:$0xff] }
 0x52a   : > { %12356 = vmatpush1.bf16.msra.mxu1 %v15290_v62  ;;  %v15389_v62 = vcombine.high %v6622_v58, %v6630_v59  ;;  %v6709_v57 = vld [vmem:[%s17252_s7 + $0x1740] sm:$0xff]  ;;  %v6702_v58 = vld [vmem:[%s17252_s7 + $0x1708] sm:$0xff] }
 0x52b   : > { %12528 = vmatpush1.bf16.msra.mxu0 %v15292_v63  ;;  %12357 = vmatprep.subr.bf16.mxu1 %v15307_v1  ;;  %v6637_v63 = vld [vmem:[%s17252_s7 + $0x1500] sm:$0xff]  ;;  %v6710_v59 = vld [vmem:[%s17252_s7 + $0x1748] sm:$0xff] }
 0x52c   : > { %12529 = vmatprep.subr.bf16.mxu0 %v15309_v9  ;;  %v6645_v1 = vld [vmem:[%s17252_s7 + $0x1540] sm:$0xff]  ;;  %v6638_v9 = vld [vmem:[%s17252_s7 + $0x1508] sm:$0xff] }
 0x52d   : > { %v15403_v4 = vcombine.high %v6637_v63, %v6645_v1  ;;  %v15402_v11 = vcombine.low %v6637_v63, %v6645_v1  ;;  %v15404_v12 = vcombine.low %v6638_v9, %v6646_v29  ;;  %v15469_v1 = vcombine.high %v6702_v58, %v6710_v59 }
 0x52e   : > { %12358 = vmatpush1.bf16.msra.mxu1 %v15306_v5  ;;  %v15405_v5 = vcombine.high %v6638_v9, %v6646_v29  ;;  %v6717_v9 = vld [vmem:[%s17252_s7 + $0x1780] sm:$0xff] }
 0x52f   : > { %12530 = vmatpush1.bf16.msra.mxu0 %v15308_v6  ;;  %12359 = vmatprep.subr.bf16.mxu1 %v15323_v7  ;;  %v6653_v6 = vld [vmem:[%s17252_s7 + $0x1580] sm:$0xff] }
 0x530   : > { %v18217_v24 = vpop.f32.mrb[12].mxu1  ;;  %v18219_v16 = vpop.f32.mrb[16].mxu0  ;;  %12531 = vmatprep.subr.bf16.mxu0 %v15325_v8  ;;  %v6661_v7 = vld [vmem:[%s17252_s7 + $0x15c0] sm:$0xff]  ;;  %v6654_v8 = vld [vmem:[%s17252_s7 + $0x1588] sm:$0xff] }
 0x531   : > { %v18223_v23 = vpop.f32.mrb[13].mxu1  ;;  %v18225_v26 = vpop.f32.mrb[17].mxu0  ;;  %v15419_v13 = vcombine.high %v6653_v6, %v6661_v7  ;;  %v15418_v22 = vcombine.low %v6653_v6, %v6661_v7  ;;  %v15420_v27 = vcombine.low %v6654_v8, %v6662_v10  ;;  %v6725_v29 = vld [vmem:[%s17252_s7 + $0x17c0] sm:$0xff] }
 0x532   : > { %v18229_v28 = vpop.f32.mrb[14].mxu1  ;;  %v18231_v31 = vpop.f32.mrb[18].mxu0  ;;  %12360 = vmatpush1.bf16.msra.mxu1 %v15322_v14  ;;  %v15421_v14 = vcombine.high %v6654_v8, %v6662_v10  ;;  %v15466_v10 = vcombine.low %v6701_v55, %v6709_v57 }
 0x533   : > { %12532 = vmatpush1.bf16.msra.mxu0 %v15324_v15  ;;  %v18233_v33 = vpop.f32.mrb[15].mxu1  ;;  %v18235_v34 = vpop.f32.mrb[19].mxu0  ;;  %12361 = vmatprep.subr.bf16.mxu1 %v15339_v25  ;;  %v6669_v15 = vld [vmem:[%s17252_s7 + $0x1600] sm:$0xff] }
 0x534   : > { %12533 = vmatprep.subr.bf16.mxu0 %v15341_v18  ;;  %v6677_v25 = vld [vmem:[%s17252_s7 + $0x1640] sm:$0xff]  ;;  %v6670_v18 = vld [vmem:[%s17252_s7 + $0x1608] sm:$0xff] }
 0x535   : > { %v15434_v41 = vcombine.low %v6669_v15, %v6677_v25 }
 0x536   : > { %12362 = vmatpush1.bf16.msra.mxu1 %v15338_v32  ;;  %v15435_v32 = vcombine.high %v6669_v15, %v6677_v25  ;;  %v15483_v15 = vcombine.high %v6717_v9, %v6725_v29 }
 0x537   : > { %12534 = vmatpush1.bf16.msra.mxu0 %v15340_v35  ;;  %12363 = vmatprep.subr.bf16.mxu1 %v15355_v36  ;;  %v15437_v35 = vcombine.high %v6670_v18, %v6678_v19  ;;  %v3707_v36 = vunpack.c.h.bf16 %v3705_v30  ;;  %v6733_v30 = vld [vmem:[%s17252_s7 + $0x1800] sm:$0xff] }
 0x538   : > { %12535 = vmatprep.subr.bf16.mxu0 %v15357_v37  ;;  %v6685_v37 = vld [vmem:[%s17252_s7 + $0x1680] sm:$0xff] }
 0x53a   : > { %12364 = vmatpush1.bf16.msra.mxu1 %v15354_v42  ;;  %v15436_v42 = vcombine.low %v6670_v18, %v6678_v19 }
 0x53b   : > { %12536 = vmatpush1.bf16.msra.mxu0 %v15356_v43  ;;  %12365 = vmatprep.subr.bf16.mxu1 %v15371_v45  ;;  %v15451_v43 = vcombine.high %v6685_v37, %v6693_v38  ;;  %v3729_v45 = vrot.slane %v3707_v36, %v17345_v20  ;;  %v6742_v36 = vld [vmem:[%s17252_s7 + $0x1848] sm:$0xff] }
 0x53c   : > { %12537 = vmatprep.subr.bf16.mxu0 %v15373_v54  ;;  %v15453_v54 = vcombine.high %v6686_v39, %v6694_v40 }
 0x53d   : > { %v3754_v63 = vrot.slane %v3729_v45, %v17345_v20  ;;  %v6749_v45 = vld [vmem:[%s17252_s7 + $0x1880] sm:$0xff] }
 0x53e   : > { %12366 = vmatpush1.bf16.msra.mxu1 %v15370_v60  ;;  %v15450_v60 = vcombine.low %v6685_v37, %v6693_v38 }
 0x53f   : > { %12538 = vmatpush1.bf16.msra.mxu0 %v15372_v61  ;;  %12367 = vmatprep.subr.bf16.mxu1 %v15387_v17  ;;  %v15452_v61 = vcombine.low %v6686_v39, %v6694_v40  ;;  %v15467_v17 = vcombine.high %v6701_v55, %v6709_v57  ;;  %v15482_v39 = vcombine.low %v6717_v9, %v6725_v29  ;;  %v6750_v57 = vld [vmem:[%s17252_s7 + $0x1888] sm:$0xff] }
 0x540   : > { %12539 = vmatprep.subr.bf16.mxu0 %v15389_v62 }
 0x542   : > { %12368 = vmatpush1.bf16.msra.mxu1 %v15386_v2 }
 0x543   : > { %12540 = vmatpush1.bf16.msra.mxu0 %v15388_v3  ;;  %12369 = vmatprep.subr.bf16.mxu1 %v15403_v4  ;;  %v6718_v4 = vld [vmem:[%s17252_s7 + $0x1788] sm:$0xff] }
 0x544   : > { %12541 = vmatprep.subr.bf16.mxu0 %v15405_v5  ;;  %v6726_v5 = vld [vmem:[%s17252_s7 + $0x17c8] sm:$0xff] }
 0x545   : > { %v15484_v40 = vcombine.low %v6718_v4, %v6726_v5 }
 0x546   : > { %12370 = vmatpush1.bf16.msra.mxu1 %v15402_v11 }
 0x547   : > { %12542 = vmatpush1.bf16.msra.mxu0 %v15404_v12  ;;  %12371 = vmatprep.subr.bf16.mxu1 %v15419_v13 }
 0x548   : > { %12543 = vmatprep.subr.bf16.mxu0 %v15421_v14  ;;  %v15468_v14 = vcombine.low %v6702_v58, %v6710_v59  ;;  %v6758_v58 = vld [vmem:[%s17252_s7 + $0x18c8] sm:$0xff] }
 0x549   : > { %v15516_v29 = vcombine.low %v6750_v57, %v6758_v58 }
 0x54a   : > { %12372 = vmatpush1.bf16.msra.mxu1 %v15418_v22  ;;  %v15485_v22 = vcombine.high %v6718_v4, %v6726_v5  ;;  %v6781_v4 = vld [vmem:[%s17252_s7 + $0x1980] sm:$0xff] }
 0x54b   : > { %12544 = vmatpush1.bf16.msra.mxu0 %v15420_v27  ;;  %12373 = vmatprep.subr.bf16.mxu1 %v15435_v32  ;;  %v6741_v27 = vld [vmem:[%s17252_s7 + $0x1840] sm:$0xff] }
 0x54c   : > { %12545 = vmatprep.subr.bf16.mxu0 %v15437_v35  ;;  %v6734_v35 = vld [vmem:[%s17252_s7 + $0x1808] sm:$0xff]  ;;  %v15498_v55 = vcombine.low %v6733_v30, %v6741_v27  ;;  %v6789_v5 = vld [vmem:[%s17252_s7 + $0x19c0] sm:$0xff] }
 0x54d   : > { %v15500_v59 = vcombine.low %v6734_v35, %v6742_v36 }
 0x54e   : > { %12374 = vmatpush1.bf16.msra.mxu1 %v15434_v41  ;;  %v15499_v41 = vcombine.high %v6733_v30, %v6741_v27  ;;  %v6813_v27 = vld [vmem:[%s17252_s7 + $0x1a80] sm:$0xff] }
 0x54f   : > { %12546 = vmatpush1.bf16.msra.mxu0 %v15436_v42  ;;  %12375 = vmatprep.subr.bf16.mxu1 %v15451_v43  ;;  %v15501_v43 = vcombine.high %v6734_v35, %v6742_v36  ;;  %v6814_v35 = vld [vmem:[%s17252_s7 + $0x1a88] sm:$0xff] }
 0x550   : > { %v15777_v62 = vpop.f32.mrb[16].mxu1  ;;  %12547 = vmatprep.subr.bf16.mxu0 %v15453_v54  ;;  %v6757_v54 = vld [vmem:[%s17252_s7 + $0x18c0] sm:$0xff]  ;;  %v6822_v36 = vld [vmem:[%s17252_s7 + $0x1ac8] sm:$0xff] }
 0x551   : > { %v15799_v2 = vpop.f32.mrb[20].mxu0  ;;  %v15778_v3 = vpop.f32.mrb[17].mxu1  ;;  %v15514_v9 = vcombine.low %v6749_v45, %v6757_v54 }
 0x552   : > { %v15779_v6 = vadd.f32 %v15778_v3, %v15777_v62  ;;  %v15800_v7 = vpop.f32.mrb[21].mxu0  ;;  %v15780_v8 = vpop.f32.mrb[18].mxu1  ;;  %12376 = vmatpush1.bf16.msra.mxu1 %v15450_v60  ;;  %v15515_v60 = vcombine.high %v6749_v45, %v6757_v54  ;;  %v15517_v62 = vcombine.high %v6750_v57, %v6758_v58  ;;  %v6837_v45 = vld [vmem:[%s17252_s7 + $0x1b40] sm:$0xff]  ;;  %v6830_v54 = vld [vmem:[%s17252_s7 + $0x1b08] sm:$0xff]  ;;  %v15580_v58 = vcombine.low %v6814_v35, %v6822_v36 }
 0x553   : > { %v15801_v11 = vadd.f32 %v15800_v7, %v15799_v2  ;;  %v15802_v12 = vpop.f32.mrb[22].mxu0  ;;  %12548 = vmatpush1.bf16.msra.mxu0 %v15452_v61  ;;  %v15781_v13 = vpop.f32.mrb[19].mxu1  ;;  %12377 = vmatprep.subr.bf16.mxu1 %v15467_v17  ;;  %v6765_v61 = vld [vmem:[%s17252_s7 + $0x1900] sm:$0xff]  ;;  %v6790_v7 = vld [vmem:[%s17252_s7 + $0x19c8] sm:$0xff] }
 0x554   : > { %v5798_v25 = vadd.f32 %v15779_v6, %v3754_v63  ;;  %v15782_v18 = vadd.f32 %v15781_v13, %v15780_v8  ;;  %v15803_v19 = vpop.f32.mrb[23].mxu0  ;;  %12549 = vmatprep.subr.bf16.mxu0 %v15469_v1  ;;  %v6773_v17 = vld [vmem:[%s17252_s7 + $0x1940] sm:$0xff]  ;;  %v6774_v1 = vld [vmem:[%s17252_s7 + $0x1948] sm:$0xff] }
 0x555   : > { %v15804_v32 = vadd.f32 %v15803_v19, %v15802_v12  ;;  %v15531_v2 = vcombine.high %v6765_v61, %v6773_v17  ;;  %v6782_v6 = vld [vmem:[%s17252_s7 + $0x1988] sm:$0xff]  ;;  %v15530_v8 = vcombine.low %v6765_v61, %v6773_v17  ;;  %v6797_v13 = vld [vmem:[%s17252_s7 + $0x1a00] sm:$0xff] }
 0x556   : > { %v18282_v37 = vadd.f32 %v15801_v11, %v5798_v25  ;;  %v5801_v38 = vadd.f32 %v15782_v18, %v3754_v63  ;;  %12378 = vmatpush1.bf16.msra.mxu1 %v15466_v10  ;;  %v6766_v63 = vld [vmem:[%s17252_s7 + $0x1908] sm:$0xff]  ;;  %v15547_v11 = vcombine.high %v6781_v4, %v6789_v5  ;;  %v15549_v12 = vcombine.high %v6782_v6, %v6790_v7 }
 0x557   : > { %12550 = vmatpush1.bf16.msra.mxu0 %v15468_v14  ;;  %12379 = vmatprep.subr.bf16.mxu1 %v15483_v15  ;;  %v15533_v3 = vcombine.high %v6766_v63, %v6774_v1  ;;  %v15532_v10 = vcombine.low %v6766_v63, %v6774_v1  ;;  %v6805_v14 = vld [vmem:[%s17252_s7 + $0x1a40] sm:$0xff]  ;;  %v6798_v15 = vld [vmem:[%s17252_s7 + $0x1a08] sm:$0xff]  ;;  %v15546_v18 = vcombine.low %v6781_v4, %v6789_v5  ;;  %v16926_v1 = vmov 1  }
 0x558   : > { %v18284_v42 = vadd.f32 %v15804_v32, %v5801_v38  ;;  %12551 = vmatprep.subr.bf16.mxu0 %v15485_v22  ;;  %v6806_v25 = vld [vmem:[%s17252_s7 + $0x1a48] sm:$0xff]  ;;  %v15548_v19 = vcombine.low %v6782_v6, %v6790_v7  ;;  %v15563_v22 = vcombine.high %v6797_v13, %v6805_v14  ;;  %v6821_v32 = vld [vmem:[%s17252_s7 + $0x1ac0] sm:$0xff]  ;;  %v15562_v38 = vcombine.low %v6797_v13, %v6805_v14 }
 0x559   : > { %v15565_v30 = vcombine.high %v6798_v15, %v6806_v25  ;;  %v15578_v57 = vcombine.low %v6813_v27, %v6821_v32  ;;  %v6853_v63 = vld [vmem:[%s17252_s7 + $0x1bc0] sm:$0xff]  ;;  %16137 = vset.pattern.permute.xlu1 %v16926_v1 }
 0x55a   : > { %12380 = vmatpush1.bf16.msra.mxu1 %v15482_v39  ;;  %v15564_v39 = vcombine.low %v6798_v15, %v6806_v25  ;;  %v13642_v14 = vld [vmem:[%s19476_s29 + $0x8] sm:$0xff] }
 0x55b   : > { %12552 = vmatpush1.bf16.msra.mxu0 %v15484_v40  ;;  %12392 = vmatprep.subr.bf16.mxu1 %v15499_v41  ;;  %v15579_v40 = vcombine.high %v6813_v27, %v6821_v32  ;;  %v15581_v41 = vcombine.high %v6814_v35, %v6822_v36  ;;  %v6862_v32 = vld [vmem:[%s17252_s7 + $0x1c08] sm:$0xff] }
 0x55c   : > { %12564 = vmatprep.subr.bf16.mxu0 %v15501_v43  ;;  %v6829_v43 = vld [vmem:[%s17252_s7 + $0x1b00] sm:$0xff]  ;;  %v6870_v35 = vld [vmem:[%s17252_s7 + $0x1c48] sm:$0xff] }
 0x55d   : > { %12382 = vmatmul.mubr.bf16.vlgmr.msra.gmra.mrb[24].mxu1 %v17901_v44  ;;  %v15594_v7 = vcombine.low %v6829_v43, %v6837_v45 }
 0x55e   : > { %12554 = vmatmul.mubr.bf16.vlgmr.msra.gmra.mrb[28].mxu0 %v17901_v44  ;;  %12393 = vmatpush1.bf16.msra.mxu1 %v15498_v55  ;;  %v6838_v55 = vld [vmem:[%s17252_s7 + $0x1b48] sm:$0xff] }
 0x55f   : > { %12424 = vmatprep.mubr.bf16.mxu1 %v17909_v56  ;;  %12565 = vmatpush1.bf16.msra.mxu0 %v15500_v59  ;;  %v15595_v59 = vcombine.high %v6829_v43, %v6837_v45  ;;  %v15597_v17 = vcombine.high %v6830_v54, %v6838_v55  ;;  %v6877_v43 = vld [vmem:[%s17252_s7 + $0x1c80] sm:$0xff] }
 0x560   : > { %12596 = vmatprep.mubr.bf16.mxu0 %v17909_v56  ;;  %12394 = vmatprep.subr.bf16.mxu1 %v15515_v60  ;;  %v13641_v60 = vld [vmem:[%s19476_s29] sm:$0xff]  ;;  %v6885_v45 = vld [vmem:[%s17252_s7 + $0x1cc0] sm:$0xff] }
 0x561   : > { %12566 = vmatprep.subr.bf16.mxu0 %v15517_v62  ;;  %v6845_v62 = vld [vmem:[%s17252_s7 + $0x1b80] sm:$0xff]  ;;  %13658 = vperm.xlu1 %16137, %v13641_v60   ;;  %v15642_v1 = vcombine.low %v6877_v43, %v6885_v45 }
 0x562   : > { %12395 = vmatpush1.bf16.msra.mxu1 %v15514_v9  ;;  %13645 = vperm.xlu0 %16136, %v13641_v60   ;;  %v15611_v13 = vcombine.high %v6845_v62, %v6853_v63 }
 0x563   : > { %12567 = vmatpush1.bf16.msra.mxu0 %v15516_v29  ;;  %12396 = vmatprep.subr.bf16.mxu1 %v15531_v2  ;;  %v6846_v2 = vld [vmem:[%s17252_s7 + $0x1b88] sm:$0xff] }
 0x564   : > { %12568 = vmatprep.subr.bf16.mxu0 %v15533_v3  ;;  %v6854_v3 = vld [vmem:[%s17252_s7 + $0x1bc8] sm:$0xff] }
 0x565   : > { %13662 = vperm.xlu1 %16137, %v13642_v14  }
 0x566   : > { %12397 = vmatpush1.bf16.msra.mxu1 %v15530_v8  ;;  %13650 = vperm.xlu0 %16136, %v13642_v14   ;;  %v6926_v14 = vld [vmem:[%s17252_s7 + $0x1e08] sm:$0xff] }
 0x567   : > { %12569 = vmatpush1.bf16.msra.mxu0 %v15532_v10  ;;  %12398 = vmatprep.subr.bf16.mxu1 %v15547_v11 }
 0x568   : > { %12570 = vmatprep.subr.bf16.mxu0 %v15549_v12  ;;  %v15596_v12 = vcombine.low %v6830_v54, %v6838_v55  ;;  %v6878_v55 = vld [vmem:[%s17252_s7 + $0x1c88] sm:$0xff] }
 0x56a   : > { %12399 = vmatpush1.bf16.msra.mxu1 %v15546_v18 }
 0x56b   : > { %12571 = vmatpush1.bf16.msra.mxu0 %v15548_v19  ;;  %12400 = vmatprep.subr.bf16.mxu1 %v15563_v22  ;;  %v15613_v19 = vcombine.high %v6846_v2, %v6854_v3  ;;  %v6861_v22 = vld [vmem:[%s17252_s7 + $0x1c00] sm:$0xff] }
 0x56c   : > { %12572 = vmatprep.subr.bf16.mxu0 %v15565_v30  ;;  %v6869_v30 = vld [vmem:[%s17252_s7 + $0x1c40] sm:$0xff] }
 0x56e   : > { %12401 = vmatpush1.bf16.msra.mxu1 %v15562_v38  ;;  %v15610_v38 = vcombine.low %v6845_v62, %v6853_v63  ;;  %v6894_v62 = vld [vmem:[%s17252_s7 + $0x1d08] sm:$0xff] }
 0x56f   : > { %12573 = vmatpush1.bf16.msra.mxu0 %v15564_v39  ;;  %12402 = vmatprep.subr.bf16.mxu1 %v15579_v40  ;;  %v15612_v39 = vcombine.low %v6846_v2, %v6854_v3  ;;  %v15627_v40 = vcombine.high %v6861_v22, %v6869_v30  ;;  %v6902_v63 = vld [vmem:[%s17252_s7 + $0x1d48] sm:$0xff]  ;;  %v6909_v3 = vld [vmem:[%s17252_s7 + $0x1d80] sm:$0xff] }
 0x570   : > { %v15821_v61 = vpop.f32.mrb[20].mxu1  ;;  %12574 = vmatprep.subr.bf16.mxu0 %v15581_v41  ;;  %v15629_v41 = vcombine.high %v6862_v32, %v6870_v35  ;;  %v15661_v2 = vcombine.high %v6894_v62, %v6902_v63 }
 0x571   : > { %v15843_v9 = vpop.f32.mrb[24].mxu0  ;;  %v15822_v29 = vpop.f32.mrb[21].mxu1 }
 0x572   : > { %v15823_v4 = vadd.f32 %v15822_v29, %v15821_v61  ;;  %v15844_v5 = vpop.f32.mrb[25].mxu0  ;;  %v15824_v6 = vpop.f32.mrb[22].mxu1  ;;  %12403 = vmatpush1.bf16.msra.mxu1 %v15578_v57  ;;  %v15626_v57 = vcombine.low %v6861_v22, %v6869_v30  ;;  %v6893_v61 = vld [vmem:[%s17252_s7 + $0x1d00] sm:$0xff] }
 0x573   : > { %v15845_v8 = vadd.f32 %v15844_v5, %v15843_v9  ;;  %v15846_v10 = vpop.f32.mrb[26].mxu0  ;;  %12575 = vmatpush1.bf16.msra.mxu0 %v15580_v58  ;;  %v15825_v11 = vpop.f32.mrb[23].mxu1  ;;  %12404 = vmatprep.subr.bf16.mxu1 %v15595_v59  ;;  %v15628_v58 = vcombine.low %v6862_v32, %v6870_v35  ;;  %v15643_v59 = vcombine.high %v6877_v43, %v6885_v45  ;;  %v6910_v5 = vld [vmem:[%s17252_s7 + $0x1d88] sm:$0xff]  ;;  %v6941_v30 = vld [vmem:[%s17252_s7 + $0x1e80] sm:$0xff] }
 0x574   : > { %v5880_v15 = vadd.f32 %v15823_v4, %v18282_v37  ;;  %v15826_v25 = vadd.f32 %v15825_v11, %v15824_v6  ;;  %v15847_v18 = vpop.f32.mrb[27].mxu0  ;;  %12576 = vmatprep.subr.bf16.mxu0 %v15597_v17  ;;  %v6901_v17 = vld [vmem:[%s17252_s7 + $0x1d40] sm:$0xff]  ;;  %v6918_v6 = vld [vmem:[%s17252_s7 + $0x1dc8] sm:$0xff] }
 0x575   : > { %v15848_v27 = vadd.f32 %v15847_v18, %v15846_v10  ;;  %v15659_v29 = vcombine.high %v6893_v61, %v6901_v17  ;;  %v6917_v4 = vld [vmem:[%s17252_s7 + $0x1dc0] sm:$0xff]  ;;  %v15677_v11 = vcombine.high %v6910_v5, %v6918_v6  ;;  %v15676_v18 = vcombine.low %v6910_v5, %v6918_v6  ;;  %v6942_v32 = vld [vmem:[%s17252_s7 + $0x1e88] sm:$0xff]  ;;  %v5976_v5 = vld [vmem:[%s17252_s7 + $0x58] sm:$0xff] }
 0x576   : > { %v5883_v36 = vadd.f32 %v15826_v25, %v18284_v42  ;;  %12405 = vmatpush1.bf16.msra.mxu1 %v15594_v7  ;;  %v18330_v37 = vadd.f32 %v15845_v8, %v5880_v15  ;;  %v6886_v42 = vld [vmem:[%s17252_s7 + $0x1cc8] sm:$0xff]  ;;  %v15658_v7 = vcombine.low %v6893_v61, %v6901_v17  ;;  %v15660_v8 = vcombine.low %v6894_v62, %v6902_v63  ;;  %v6965_v43 = vld [vmem:[%s17252_s7 + $0x1f40] sm:$0xff] }
 0x577   : > { %12577 = vmatpush1.bf16.msra.mxu0 %v15596_v12  ;;  %12406 = vmatprep.subr.bf16.mxu1 %v15611_v13  ;;  %v15645_v60 = vcombine.high %v6878_v55, %v6886_v42  ;;  %v15644_v9 = vcombine.low %v6878_v55, %v6886_v42  ;;  %v15675_v10 = vcombine.high %v6909_v3, %v6917_v4  ;;  %v6925_v12 = vld [vmem:[%s17252_s7 + $0x1e00] sm:$0xff]  ;;  %v6934_v15 = vld [vmem:[%s17252_s7 + $0x1e48] sm:$0xff] }
 0x578   : > { %12578 = vmatprep.subr.bf16.mxu0 %v15613_v19  ;;  %v18334_v54 = vadd.f32 %v15848_v27, %v5883_v36  ;;  %v6933_v13 = vld [vmem:[%s17252_s7 + $0x1e40] sm:$0xff]  ;;  %v15674_v25 = vcombine.low %v6909_v3, %v6917_v4  ;;  %v15693_v22 = vcombine.high %v6926_v14, %v6934_v15  ;;  %v6950_v35 = vld [vmem:[%s17252_s7 + $0x1ec8] sm:$0xff]  ;;  %v5975_v3 = vld [vmem:[%s17252_s7 + $0x50] sm:$0xff] }
 0x579   : > { %v15691_v19 = vcombine.high %v6925_v12, %v6933_v13  ;;  %v6949_v27 = vld [vmem:[%s17252_s7 + $0x1ec0] sm:$0xff]  ;;  %v15690_v36 = vcombine.low %v6925_v12, %v6933_v13  ;;  %v6958_v45 = vld [vmem:[%s17252_s7 + $0x1f08] sm:$0xff]  ;;  %v5968_v4 = vld [vmem:[%s17252_s7 + $0x18] sm:$0xff] }
 0x57a   : > { %19477 = vst [vmem:[#allocation19_spill] sm:$0xff] %v18334_v54  ;;  %12407 = vmatpush1.bf16.msra.mxu1 %v15610_v38  ;;  %v15692_v38 = vcombine.low %v6926_v14, %v6934_v15  ;;  %v6966_v55 = vld [vmem:[%s17252_s7 + $0x1f48] sm:$0xff]  ;;  %v15706_v42 = vcombine.low %v6941_v30, %v6949_v27  ;;  %v6981_v61 = vld [vmem:[%s17252_s7 + $0x1fc0] sm:$0xff]  ;;  %v5991_v12 = vld [vmem:[%s17252_s7 + $0xd0] sm:$0xff] }
 0x57b   : > { %12579 = vmatpush1.bf16.msra.mxu0 %v15612_v39  ;;  %12408 = vmatprep.subr.bf16.mxu1 %v15627_v40  ;;  %v15707_v39 = vcombine.high %v6941_v30, %v6949_v27  ;;  %v15709_v40 = vcombine.high %v6942_v32, %v6950_v35  ;;  %v6974_v17 = vld [vmem:[%s17252_s7 + $0x1f88] sm:$0xff]  ;;  %v5984_v14 = vld [vmem:[%s17252_s7 + $0x98] sm:$0xff] }
 0x57c   : > { %12580 = vmatprep.subr.bf16.mxu0 %v15629_v41  ;;  %v6957_v41 = vld [vmem:[%s17252_s7 + $0x1f00] sm:$0xff]  ;;  %v6982_v62 = vld [vmem:[%s17252_s7 + $0x1fc8] sm:$0xff]  ;;  %v5992_v15 = vld [vmem:[%s17252_s7 + $0xd8] sm:$0xff] }
 0x57d   : > { %v15722_v63 = vcombine.low %v6957_v41, %v6965_v43  ;;  %v14753_v30 = vcombine.high %v5984_v14, %v5992_v15  ;;  %v6000_v27 = vld [vmem:[%s17252_s7 + $0x118] sm:$0xff] }
 0x57e   : > { %12409 = vmatpush1.bf16.msra.mxu1 %v15626_v57  ;;  %v15708_v57 = vcombine.low %v6942_v32, %v6950_v35  ;;  %v6008_v32 = vld [vmem:[%s17252_s7 + $0x158] sm:$0xff] }
 0x57f   : > { %12581 = vmatpush1.bf16.msra.mxu0 %v15628_v58  ;;  %12410 = vmatprep.subr.bf16.mxu1 %v15643_v59  ;;  %v15723_v58 = vcombine.high %v6957_v41, %v6965_v43  ;;  %v15725_v59 = vcombine.high %v6958_v45, %v6966_v55  ;;  %v6023_v41 = vld [vmem:[%s17252_s7 + $0x1d0] sm:$0xff]  ;;  %v6016_v43 = vld [vmem:[%s17252_s7 + $0x198] sm:$0xff] }
 0x580   : > { %12582 = vmatprep.subr.bf16.mxu0 %v15645_v60  ;;  %v6973_v60 = vld [vmem:[%s17252_s7 + $0x1f80] sm:$0xff] }
 0x581   : > { %v15738_v6 = vcombine.low %v6973_v60, %v6981_v61 }
 0x582   : > { %12411 = vmatpush1.bf16.msra.mxu1 %v15642_v1  ;;  %v15724_v1 = vcombine.low %v6958_v45, %v6966_v55  ;;  %v6024_v45 = vld [vmem:[%s17252_s7 + $0x1d8] sm:$0xff] }
 0x583   : > { %12583 = vmatpush1.bf16.msra.mxu0 %v15644_v9  ;;  %12412 = vmatprep.subr.bf16.mxu1 %v15659_v29  ;;  %v15739_v9 = vcombine.high %v6973_v60, %v6981_v61  ;;  %v15741_v29 = vcombine.high %v6974_v17, %v6982_v62  ;;  %v6039_v60 = vld [vmem:[%s17252_s7 + $0x250] sm:$0xff]  ;;  %v6032_v61 = vld [vmem:[%s17252_s7 + $0x218] sm:$0xff] }
 0x584   : > { %12584 = vmatprep.subr.bf16.mxu0 %v15661_v2  ;;  %v5967_v2 = vld [vmem:[%s17252_s7 + $0x10] sm:$0xff] }
 0x585   : > { %v14734_v13 = vcombine.low %v5967_v2, %v5975_v3 }
 0x586   : > { %12413 = vmatpush1.bf16.msra.mxu1 %v15658_v7  ;;  %v15740_v7 = vcombine.low %v6974_v17, %v6982_v62  ;;  %v6040_v17 = vld [vmem:[%s17252_s7 + $0x258] sm:$0xff] }
 0x587   : > { %12585 = vmatpush1.bf16.msra.mxu0 %v15660_v8  ;;  %12414 = vmatprep.subr.bf16.mxu1 %v15675_v10  ;;  %v14735_v8 = vcombine.high %v5967_v2, %v5975_v3  ;;  %v14737_v10 = vcombine.high %v5968_v4, %v5976_v5  ;;  %v6055_v2 = vld [vmem:[%s17252_s7 + $0x2d0] sm:$0xff]  ;;  %v6048_v3 = vld [vmem:[%s17252_s7 + $0x298] sm:$0xff] }
 0x588   : > { %12586 = vmatprep.subr.bf16.mxu0 %v15677_v11  ;;  %v5983_v11 = vld [vmem:[%s17252_s7 + $0x90] sm:$0xff] }
 0x589   : > { %v14750_v35 = vcombine.low %v5983_v11, %v5991_v12 }
 0x58a   : > { %12415 = vmatpush1.bf16.msra.mxu1 %v15674_v25  ;;  %v14736_v25 = vcombine.low %v5968_v4, %v5976_v5  ;;  %v6056_v4 = vld [vmem:[%s17252_s7 + $0x2d8] sm:$0xff] }
 0x58b   : > { %12587 = vmatpush1.bf16.msra.mxu0 %v15676_v18  ;;  %12416 = vmatprep.subr.bf16.mxu1 %v15691_v19  ;;  %v14751_v18 = vcombine.high %v5983_v11, %v5991_v12  ;;  %v5999_v19 = vld [vmem:[%s17252_s7 + $0x110] sm:$0xff]  ;;  %v6064_v12 = vld [vmem:[%s17252_s7 + $0x318] sm:$0xff] }
 0x58c   : > { %12588 = vmatprep.subr.bf16.mxu0 %v15693_v22  ;;  %v6007_v22 = vld [vmem:[%s17252_s7 + $0x150] sm:$0xff] }
 0x58d   : > { %v14766_v55 = vcombine.low %v5999_v19, %v6007_v22  ;;  %v6071_v11 = vld [vmem:[%s17252_s7 + $0x350] sm:$0xff] }
 0x58e   : > { %12417 = vmatpush1.bf16.msra.mxu1 %v15690_v36  ;;  %v14752_v36 = vcombine.low %v5984_v14, %v5992_v15  ;;  %v14816_v15 = vcombine.low %v6048_v3, %v6056_v4 }
 0x58f   : > { %12589 = vmatpush1.bf16.msra.mxu0 %v15692_v38  ;;  %12418 = vmatprep.subr.bf16.mxu1 %v15707_v39  ;;  %v14767_v38 = vcombine.high %v5999_v19, %v6007_v22  ;;  %v14769_v39 = vcombine.high %v6000_v27, %v6008_v32  ;;  %v6079_v19 = vld [vmem:[%s17252_s7 + $0x390] sm:$0xff] }
 0x590   : > { %12590 = vmatprep.subr.bf16.mxu0 %v15709_v40  ;;  %v6015_v40 = vld [vmem:[%s17252_s7 + $0x190] sm:$0xff] }
 0x591   : > { %v14782_v62 = vcombine.low %v6015_v40, %v6023_v41  ;;  %v6087_v22 = vld [vmem:[%s17252_s7 + $0x3d0] sm:$0xff] }
 0x592   : > { %12419 = vmatpush1.bf16.msra.mxu1 %v15706_v42  ;;  %v14768_v42 = vcombine.low %v6000_v27, %v6008_v32  ;;  %v6088_v27 = vld [vmem:[%s17252_s7 + $0x3d8] sm:$0xff] }
 0x593   : > { %12591 = vmatpush1.bf16.msra.mxu0 %v15708_v57  ;;  %12420 = vmatprep.subr.bf16.mxu1 %v15723_v58  ;;  %v14783_v57 = vcombine.high %v6015_v40, %v6023_v41  ;;  %v14785_v58 = vcombine.high %v6016_v43, %v6024_v45  ;;  %v6103_v40 = vld [vmem:[%s17252_s7 + $0x450] sm:$0xff]  ;;  %v6096_v41 = vld [vmem:[%s17252_s7 + $0x418] sm:$0xff] }
 0x594   : > { %12592 = vmatprep.subr.bf16.mxu0 %v15725_v59  ;;  %v6031_v59 = vld [vmem:[%s17252_s7 + $0x210] sm:$0xff] }
 0x595   : > { %v14798_v5 = vcombine.low %v6031_v59, %v6039_v60 }
 0x596   : > { %12421 = vmatpush1.bf16.msra.mxu1 %v15722_v63  ;;  %v14784_v63 = vcombine.low %v6016_v43, %v6024_v45  ;;  %v6104_v43 = vld [vmem:[%s17252_s7 + $0x458] sm:$0xff]  ;;  %v14846_v45 = vcombine.low %v6079_v19, %v6087_v22 }
 0x597   : > { %12593 = vmatpush1.bf16.msra.mxu0 %v15724_v1  ;;  %12422 = vmatprep.subr.bf16.mxu1 %v15739_v9  ;;  %v14799_v1 = vcombine.high %v6031_v59, %v6039_v60  ;;  %v14801_v9 = vcombine.high %v6032_v61, %v6040_v17  ;;  %v6119_v59 = vld [vmem:[%s17252_s7 + $0x4d0] sm:$0xff]  ;;  %v6112_v60 = vld [vmem:[%s17252_s7 + $0x498] sm:$0xff] }
 0x598   : > { %12594 = vmatprep.subr.bf16.mxu0 %v15741_v29  ;;  %v6047_v29 = vld [vmem:[%s17252_s7 + $0x290] sm:$0xff] }
 0x599   : > { %v14814_v14 = vcombine.low %v6047_v29, %v6055_v2 }
 0x59a   : > { %12423 = vmatpush1.bf16.msra.mxu1 %v15738_v6  ;;  %v14800_v6 = vcombine.low %v6032_v61, %v6040_v17  ;;  %v6120_v61 = vld [vmem:[%s17252_s7 + $0x4d8] sm:$0xff] }
 0x59b   : > { %12595 = vmatpush1.bf16.msra.mxu0 %v15740_v7  ;;  %12607 = vmatprep.subr.bf16.mxu1 %v14735_v8  ;;  %v14815_v7 = vcombine.high %v6047_v29, %v6055_v2  ;;  %v14817_v8 = vcombine.high %v6048_v3, %v6056_v4  ;;  %v6135_v29 = vld [vmem:[%s17252_s7 + $0x550] sm:$0xff]  ;;  %v6128_v2 = vld [vmem:[%s17252_s7 + $0x518] sm:$0xff] }
 0x59c   : > { %12779 = vmatprep.subr.bf16.mxu0 %v14737_v10  ;;  %v6063_v10 = vld [vmem:[%s17252_s7 + $0x310] sm:$0xff]  ;;  %v6136_v3 = vld [vmem:[%s17252_s7 + $0x558] sm:$0xff] }
 0x59d   : > { %12425 = vmatmul.mubr.bf16.vlgmr.msra.gmra.mrb[24].mxu1 %v17903_v46  ;;  %v14830_v32 = vcombine.low %v6063_v10, %v6071_v11 }
 0x59e   : > { %12597 = vmatmul.mubr.bf16.vlgmr.msra.gmra.mrb[28].mxu0 %v17903_v46  ;;  %12608 = vmatpush1.bf16.msra.mxu1 %v14734_v13  ;;  %v6072_v13 = vld [vmem:[%s17252_s7 + $0x358] sm:$0xff] }
 0x59f   : > { %12639 = vmatprep.mubr.bf16.mxu1 %v17752_v49  ;;  %12780 = vmatpush1.bf16.msra.mxu0 %v14736_v25  ;;  %v14831_v25 = vcombine.high %v6063_v10, %v6071_v11  ;;  %v6151_v10 = vld [vmem:[%s17252_s7 + $0x5d0] sm:$0xff]  ;;  %v6144_v11 = vld [vmem:[%s17252_s7 + $0x598] sm:$0xff] }
 0x5a0   : > { %12811 = vmatprep.mubr.bf16.mxu0 %v17752_v49  ;;  %12609 = vmatprep.subr.bf16.mxu1 %v14751_v18  ;;  %v14833_v18 = vcombine.high %v6064_v12, %v6072_v13 }
 0x5a1   : > { %12781 = vmatprep.subr.bf16.mxu0 %v14753_v30  ;;  %v6080_v30 = vld [vmem:[%s17252_s7 + $0x398] sm:$0xff] }
 0x5a2   : > { %12610 = vmatpush1.bf16.msra.mxu1 %v14750_v35  ;;  %v14832_v35 = vcombine.low %v6064_v12, %v6072_v13  ;;  %v6152_v12 = vld [vmem:[%s17252_s7 + $0x5d8] sm:$0xff] }
 0x5a3   : > { %12782 = vmatpush1.bf16.msra.mxu0 %v14752_v36  ;;  %12611 = vmatprep.subr.bf16.mxu1 %v14767_v38  ;;  %v14847_v36 = vcombine.high %v6079_v19, %v6087_v22  ;;  %v14849_v38 = vcombine.high %v6080_v30, %v6088_v27  ;;  %v6167_v19 = vld [vmem:[%s17252_s7 + $0x650] sm:$0xff]  ;;  %v6160_v22 = vld [vmem:[%s17252_s7 + $0x618] sm:$0xff] }
 0x5a4   : > { %12783 = vmatprep.subr.bf16.mxu0 %v14769_v39  ;;  %v6095_v39 = vld [vmem:[%s17252_s7 + $0x410] sm:$0xff] }
 0x5a5   : > { %v14862_v17 = vcombine.low %v6095_v39, %v6103_v40 }
 0x5a6   : > { %12612 = vmatpush1.bf16.msra.mxu1 %v14766_v55  ;;  %v14848_v55 = vcombine.low %v6080_v30, %v6088_v27  ;;  %v6168_v30 = vld [vmem:[%s17252_s7 + $0x658] sm:$0xff] }
 0x5a7   : > { %12784 = vmatpush1.bf16.msra.mxu0 %v14768_v42  ;;  %12613 = vmatprep.subr.bf16.mxu1 %v14783_v57  ;;  %v14863_v42 = vcombine.high %v6095_v39, %v6103_v40  ;;  %v14865_v57 = vcombine.high %v6096_v41, %v6104_v43  ;;  %v6183_v39 = vld [vmem:[%s17252_s7 + $0x6d0] sm:$0xff]  ;;  %v6176_v40 = vld [vmem:[%s17252_s7 + $0x698] sm:$0xff] }
 0x5a8   : > { %12785 = vmatprep.subr.bf16.mxu0 %v14785_v58  ;;  %v6111_v58 = vld [vmem:[%s17252_s7 + $0x490] sm:$0xff] }
 0x5a9   : > { %v14878_v4 = vcombine.low %v6111_v58, %v6119_v59 }
 0x5aa   : > { %12614 = vmatpush1.bf16.msra.mxu1 %v14782_v62  ;;  %v14864_v62 = vcombine.low %v6096_v41, %v6104_v43  ;;  %v6184_v41 = vld [vmem:[%s17252_s7 + $0x6d8] sm:$0xff] }
 0x5ab   : > { %12786 = vmatpush1.bf16.msra.mxu0 %v14784_v63  ;;  %12615 = vmatprep.subr.bf16.mxu1 %v14799_v1  ;;  %v14879_v63 = vcombine.high %v6111_v58, %v6119_v59  ;;  %v14881_v1 = vcombine.high %v6112_v60, %v6120_v61  ;;  %v6199_v58 = vld [vmem:[%s17252_s7 + $0x750] sm:$0xff]  ;;  %v6192_v59 = vld [vmem:[%s17252_s7 + $0x718] sm:$0xff] }
 0x5ac   : > { %12787 = vmatprep.subr.bf16.mxu0 %v14801_v9  ;;  %v6127_v9 = vld [vmem:[%s17252_s7 + $0x510] sm:$0xff] }
 0x5ad   : > { %v14894_v13 = vcombine.low %v6127_v9, %v6135_v29 }
 0x5ae   : > { %12616 = vmatpush1.bf16.msra.mxu1 %v14798_v5  ;;  %v14880_v5 = vcombine.low %v6112_v60, %v6120_v61  ;;  %v6200_v60 = vld [vmem:[%s17252_s7 + $0x758] sm:$0xff] }
 0x5af   : > { %12788 = vmatpush1.bf16.msra.mxu0 %v14800_v6  ;;  %12617 = vmatprep.subr.bf16.mxu1 %v14815_v7  ;;  %v14895_v6 = vcombine.high %v6127_v9, %v6135_v29  ;;  %v14897_v7 = vcombine.high %v6128_v2, %v6136_v3  ;;  %v6215_v9 = vld [vmem:[%s17252_s7 + $0x7d0] sm:$0xff]  ;;  %v6208_v29 = vld [vmem:[%s17252_s7 + $0x798] sm:$0xff] }
 0x5b0   : > { %12789 = vmatprep.subr.bf16.mxu0 %v14817_v8  ;;  %v6143_v8 = vld [vmem:[%s17252_s7 + $0x590] sm:$0xff] }
 0x5b1   : > { %v14910_v27 = vcombine.low %v6143_v8, %v6151_v10 }
 0x5b2   : > { %12618 = vmatpush1.bf16.msra.mxu1 %v14814_v14  ;;  %v14896_v14 = vcombine.low %v6128_v2, %v6136_v3  ;;  %v6216_v2 = vld [vmem:[%s17252_s7 + $0x7d8] sm:$0xff] }
 0x5b3   : > { %12790 = vmatpush1.bf16.msra.mxu0 %v14816_v15  ;;  %12619 = vmatprep.subr.bf16.mxu1 %v14831_v25  ;;  %v14911_v15 = vcombine.high %v6143_v8, %v6151_v10  ;;  %v14913_v25 = vcombine.high %v6144_v11, %v6152_v12  ;;  %v6231_v8 = vld [vmem:[%s17252_s7 + $0x850] sm:$0xff]  ;;  %v6224_v10 = vld [vmem:[%s17252_s7 + $0x818] sm:$0xff] }
 0x5b4   : > { %12791 = vmatprep.subr.bf16.mxu0 %v14833_v18  ;;  %v6159_v18 = vld [vmem:[%s17252_s7 + $0x610] sm:$0xff] }
 0x5b5   : > { %v14926_v43 = vcombine.low %v6159_v18, %v6167_v19 }
 0x5b6   : > { %12620 = vmatpush1.bf16.msra.mxu1 %v14830_v32  ;;  %v14912_v32 = vcombine.low %v6144_v11, %v6152_v12  ;;  %v6232_v11 = vld [vmem:[%s17252_s7 + $0x858] sm:$0xff] }
 0x5b7   : > { %12792 = vmatpush1.bf16.msra.mxu0 %v14832_v35  ;;  %12621 = vmatprep.subr.bf16.mxu1 %v14847_v36  ;;  %v14927_v35 = vcombine.high %v6159_v18, %v6167_v19  ;;  %v14929_v36 = vcombine.high %v6160_v22, %v6168_v30  ;;  %v6247_v18 = vld [vmem:[%s17252_s7 + $0x8d0] sm:$0xff] }
 0x5b8   : > { %12793 = vmatprep.subr.bf16.mxu0 %v14849_v38  ;;  %v6175_v38 = vld [vmem:[%s17252_s7 + $0x690] sm:$0xff] }
 0x5b9   : > { %v14942_v61 = vcombine.low %v6175_v38, %v6183_v39 }
 0x5ba   : > { %12622 = vmatpush1.bf16.msra.mxu1 %v14846_v45  ;;  %v14928_v45 = vcombine.low %v6160_v22, %v6168_v30  ;;  %v6240_v22 = vld [vmem:[%s17252_s7 + $0x898] sm:$0xff] }
 0x5bb   : > { %12794 = vmatpush1.bf16.msra.mxu0 %v14848_v55  ;;  %12623 = vmatprep.subr.bf16.mxu1 %v14863_v42  ;;  %v14943_v55 = vcombine.high %v6175_v38, %v6183_v39  ;;  %v14945_v42 = vcombine.high %v6176_v40, %v6184_v41  ;;  %v6248_v30 = vld [vmem:[%s17252_s7 + $0x8d8] sm:$0xff] }
 0x5bc   : > { %12795 = vmatprep.subr.bf16.mxu0 %v14865_v57  ;;  %v6191_v57 = vld [vmem:[%s17252_s7 + $0x710] sm:$0xff]  ;;  %v15009_v38 = vcombine.high %v6240_v22, %v6248_v30  ;;  %v6256_v39 = vld [vmem:[%s17252_s7 + $0x918] sm:$0xff] }
 0x5bd   : > { %v14958_v3 = vcombine.low %v6191_v57, %v6199_v58 }
 0x5be   : > { %12624 = vmatpush1.bf16.msra.mxu1 %v14862_v17  ;;  %v14944_v17 = vcombine.low %v6176_v40, %v6184_v41  ;;  %v6264_v40 = vld [vmem:[%s17252_s7 + $0x958] sm:$0xff] }
 0x5bf   : > { %12796 = vmatpush1.bf16.msra.mxu0 %v14864_v62  ;;  %12625 = vmatprep.subr.bf16.mxu1 %v14879_v63  ;;  %v14959_v62 = vcombine.high %v6191_v57, %v6199_v58  ;;  %v14961_v63 = vcombine.high %v6192_v59, %v6200_v60  ;;  %v6279_v57 = vld [vmem:[%s17252_s7 + $0x9d0] sm:$0xff]  ;;  %v6272_v58 = vld [vmem:[%s17252_s7 + $0x998] sm:$0xff] }
 0x5c0   : > { %12797 = vmatprep.subr.bf16.mxu0 %v14881_v1  ;;  %v6207_v1 = vld [vmem:[%s17252_s7 + $0x790] sm:$0xff] }
 0x5c1   : > { %v14974_v12 = vcombine.low %v6207_v1, %v6215_v9 }
 0x5c2   : > { %12626 = vmatpush1.bf16.msra.mxu1 %v14878_v4  ;;  %v14960_v4 = vcombine.low %v6192_v59, %v6200_v60  ;;  %v6280_v59 = vld [vmem:[%s17252_s7 + $0x9d8] sm:$0xff] }
 0x5c3   : > { %12798 = vmatpush1.bf16.msra.mxu0 %v14880_v5  ;;  %12627 = vmatprep.subr.bf16.mxu1 %v14895_v6  ;;  %v14975_v5 = vcombine.high %v6207_v1, %v6215_v9  ;;  %v14977_v6 = vcombine.high %v6208_v29, %v6216_v2  ;;  %v6295_v1 = vld [vmem:[%s17252_s7 + $0xa50] sm:$0xff]  ;;  %v6288_v9 = vld [vmem:[%s17252_s7 + $0xa18] sm:$0xff] }
 0x5c4   : > { %12799 = vmatprep.subr.bf16.mxu0 %v14897_v7  ;;  %v6223_v7 = vld [vmem:[%s17252_s7 + $0x810] sm:$0xff] }
 0x5c5   : > { %v14990_v19 = vcombine.low %v6223_v7, %v6231_v8 }
 0x5c6   : > { %12628 = vmatpush1.bf16.msra.mxu1 %v14894_v13  ;;  %v14976_v13 = vcombine.low %v6208_v29, %v6216_v2  ;;  %v6296_v29 = vld [vmem:[%s17252_s7 + $0xa58] sm:$0xff] }
 0x5c7   : > { %12800 = vmatpush1.bf16.msra.mxu0 %v14896_v14  ;;  %12629 = vmatprep.subr.bf16.mxu1 %v14911_v15  ;;  %v14991_v14 = vcombine.high %v6223_v7, %v6231_v8  ;;  %v14993_v15 = vcombine.high %v6224_v10, %v6232_v11  ;;  %v6311_v7 = vld [vmem:[%s17252_s7 + $0xad0] sm:$0xff]  ;;  %v6304_v8 = vld [vmem:[%s17252_s7 + $0xa98] sm:$0xff] }
 0x5c8   : > { %12801 = vmatprep.subr.bf16.mxu0 %v14913_v25  ;;  %v6239_v25 = vld [vmem:[%s17252_s7 + $0x890] sm:$0xff] }
 0x5c9   : > { %v15006_v41 = vcombine.low %v6239_v25, %v6247_v18 }
 0x5ca   : > { %12630 = vmatpush1.bf16.msra.mxu1 %v14910_v27  ;;  %v14992_v27 = vcombine.low %v6224_v10, %v6232_v11  ;;  %v6312_v10 = vld [vmem:[%s17252_s7 + $0xad8] sm:$0xff] }
 0x5cb   : > { %12802 = vmatpush1.bf16.msra.mxu0 %v14912_v32  ;;  %12631 = vmatprep.subr.bf16.mxu1 %v14927_v35  ;;  %v15007_v32 = vcombine.high %v6239_v25, %v6247_v18  ;;  %v6255_v35 = vld [vmem:[%s17252_s7 + $0x910] sm:$0xff]  ;;  %v6320_v18 = vld [vmem:[%s17252_s7 + $0xb18] sm:$0xff] }
 0x5cc   : > { %12803 = vmatprep.subr.bf16.mxu0 %v14929_v36  ;;  %v6263_v36 = vld [vmem:[%s17252_s7 + $0x950] sm:$0xff] }
 0x5cd   : > { %v15022_v60 = vcombine.low %v6255_v35, %v6263_v36  ;;  %v6327_v25 = vld [vmem:[%s17252_s7 + $0xb50] sm:$0xff] }
 0x5ce   : > { %12632 = vmatpush1.bf16.msra.mxu1 %v14926_v43  ;;  %v15008_v43 = vcombine.low %v6240_v22, %v6248_v30  ;;  %v15072_v30 = vcombine.low %v6304_v8, %v6312_v10 }
 0x5cf   : > { %12804 = vmatpush1.bf16.msra.mxu0 %v14928_v45  ;;  %12633 = vmatprep.subr.bf16.mxu1 %v14943_v55  ;;  %v15023_v45 = vcombine.high %v6255_v35, %v6263_v36  ;;  %v15025_v55 = vcombine.high %v6256_v39, %v6264_v40  ;;  %v6335_v35 = vld [vmem:[%s17252_s7 + $0xb90] sm:$0xff] }
 0x5d0   : > { %12805 = vmatprep.subr.bf16.mxu0 %v14945_v42  ;;  %v6271_v42 = vld [vmem:[%s17252_s7 + $0x990] sm:$0xff] }
 0x5d1   : > { %v15038_v2 = vcombine.low %v6271_v42, %v6279_v57  ;;  %v6343_v36 = vld [vmem:[%s17252_s7 + $0xbd0] sm:$0xff] }
 0x5d2   : > { %12634 = vmatpush1.bf16.msra.mxu1 %v14942_v61  ;;  %v15024_v61 = vcombine.low %v6256_v39, %v6264_v40  ;;  %v6344_v39 = vld [vmem:[%s17252_s7 + $0xbd8] sm:$0xff] }
 0x5d3   : > { %12806 = vmatpush1.bf16.msra.mxu0 %v14944_v17  ;;  %12635 = vmatprep.subr.bf16.mxu1 %v14959_v62  ;;  %v15039_v17 = vcombine.high %v6271_v42, %v6279_v57  ;;  %v15041_v62 = vcombine.high %v6272_v58, %v6280_v59  ;;  %v6359_v42 = vld [vmem:[%s17252_s7 + $0xc50] sm:$0xff]  ;;  %v6352_v57 = vld [vmem:[%s17252_s7 + $0xc18] sm:$0xff] }
 0x5d4   : > { %12807 = vmatprep.subr.bf16.mxu0 %v14961_v63  ;;  %v6287_v63 = vld [vmem:[%s17252_s7 + $0xa10] sm:$0xff] }
 0x5d5   : > { %v15054_v11 = vcombine.low %v6287_v63, %v6295_v1 }
 0x5d6   : > { %12636 = vmatpush1.bf16.msra.mxu1 %v14958_v3  ;;  %v15040_v3 = vcombine.low %v6272_v58, %v6280_v59  ;;  %v6360_v58 = vld [vmem:[%s17252_s7 + $0xc58] sm:$0xff]  ;;  %v15102_v59 = vcombine.low %v6335_v35, %v6343_v36 }
 0x5d7   : > { %12808 = vmatpush1.bf16.msra.mxu0 %v14960_v4  ;;  %12637 = vmatprep.subr.bf16.mxu1 %v14975_v5  ;;  %v15055_v4 = vcombine.high %v6287_v63, %v6295_v1  ;;  %v15057_v5 = vcombine.high %v6288_v9, %v6296_v29  ;;  %v6375_v63 = vld [vmem:[%s17252_s7 + $0xcd0] sm:$0xff]  ;;  %v6368_v1 = vld [vmem:[%s17252_s7 + $0xc98] sm:$0xff] }
 0x5d8   : > { %12809 = vmatprep.subr.bf16.mxu0 %v14977_v6  ;;  %v6303_v6 = vld [vmem:[%s17252_s7 + $0xa90] sm:$0xff] }
 0x5d9   : > { %v15070_v22 = vcombine.low %v6303_v6, %v6311_v7 }
 0x5da   : > { %12638 = vmatpush1.bf16.msra.mxu1 %v14974_v12  ;;  %v15056_v12 = vcombine.low %v6288_v9, %v6296_v29  ;;  %v6376_v9 = vld [vmem:[%s17252_s7 + $0xcd8] sm:$0xff] }
 0x5db   : > { %12810 = vmatpush1.bf16.msra.mxu0 %v14976_v13  ;;  %12650 = vmatprep.subr.bf16.mxu1 %v14991_v14  ;;  %v15071_v13 = vcombine.high %v6303_v6, %v6311_v7  ;;  %v15073_v14 = vcombine.high %v6304_v8, %v6312_v10  ;;  %v6391_v6 = vld [vmem:[%s17252_s7 + $0xd50] sm:$0xff]  ;;  %v6384_v7 = vld [vmem:[%s17252_s7 + $0xd18] sm:$0xff] }
 0x5dc   : > { %12822 = vmatprep.subr.bf16.mxu0 %v14993_v15  ;;  %v6319_v15 = vld [vmem:[%s17252_s7 + $0xb10] sm:$0xff]  ;;  %v6392_v8 = vld [vmem:[%s17252_s7 + $0xd58] sm:$0xff] }
 0x5dd   : > { %12640 = vmatmul.mubr.bf16.vlgmr.msra.gmra.mrb[28].mxu1 %v17748_v47  ;;  %v15086_v40 = vcombine.low %v6319_v15, %v6327_v25 }
 0x5de   : > { %12812 = vmatmul.mubr.bf16.vlgmr.msra.gmra.mrb[32].mxu0 %v17748_v47  ;;  %12651 = vmatpush1.bf16.msra.mxu1 %v14990_v19  ;;  %v6328_v19 = vld [vmem:[%s17252_s7 + $0xb58] sm:$0xff] }
 0x5df   : > { %12682 = vmatprep.mubr.bf16.mxu1 %v17754_v52  ;;  %12823 = vmatpush1.bf16.msra.mxu0 %v14992_v27  ;;  %v15087_v27 = vcombine.high %v6319_v15, %v6327_v25  ;;  %v6407_v15 = vld [vmem:[%s17252_s7 + $0xdd0] sm:$0xff]  ;;  %v6400_v25 = vld [vmem:[%s17252_s7 + $0xd98] sm:$0xff] }
 0x5e0   : > { %12854 = vmatprep.mubr.bf16.mxu0 %v17754_v52  ;;  %12652 = vmatprep.subr.bf16.mxu1 %v15007_v32  ;;  %v15089_v32 = vcombine.high %v6320_v18, %v6328_v19 }
 0x5e1   : > { %12824 = vmatprep.subr.bf16.mxu0 %v15009_v38  ;;  %v6336_v38 = vld [vmem:[%s17252_s7 + $0xb98] sm:$0xff] }
 0x5e2   : > { %12653 = vmatpush1.bf16.msra.mxu1 %v15006_v41  ;;  %v15088_v41 = vcombine.low %v6320_v18, %v6328_v19  ;;  %v6408_v18 = vld [vmem:[%s17252_s7 + $0xdd8] sm:$0xff] }
 0x5e3   : > { %12825 = vmatpush1.bf16.msra.mxu0 %v15008_v43  ;;  %12654 = vmatprep.subr.bf16.mxu1 %v15023_v45  ;;  %v15103_v43 = vcombine.high %v6335_v35, %v6343_v36  ;;  %v15105_v45 = vcombine.high %v6336_v38, %v6344_v39  ;;  %v6423_v35 = vld [vmem:[%s17252_s7 + $0xe50] sm:$0xff]  ;;  %v6416_v36 = vld [vmem:[%s17252_s7 + $0xe18] sm:$0xff] }
 0x5e4   : > { %12826 = vmatprep.subr.bf16.mxu0 %v15025_v55  ;;  %v6351_v55 = vld [vmem:[%s17252_s7 + $0xc10] sm:$0xff] }
 0x5e5   : > { %v15118_v29 = vcombine.low %v6351_v55, %v6359_v42 }
 0x5e6   : > { %12655 = vmatpush1.bf16.msra.mxu1 %v15022_v60  ;;  %v15104_v60 = vcombine.low %v6336_v38, %v6344_v39  ;;  %v6424_v38 = vld [vmem:[%s17252_s7 + $0xe58] sm:$0xff] }
 0x5e7   : > { %12827 = vmatpush1.bf16.msra.mxu0 %v15024_v61  ;;  %12656 = vmatprep.subr.bf16.mxu1 %v15039_v17  ;;  %v15119_v61 = vcombine.high %v6351_v55, %v6359_v42  ;;  %v15121_v17 = vcombine.high %v6352_v57, %v6360_v58  ;;  %v6439_v55 = vld [vmem:[%s17252_s7 + $0xed0] sm:$0xff]  ;;  %v6432_v42 = vld [vmem:[%s17252_s7 + $0xe98] sm:$0xff] }
 0x5e8   : > { %12828 = vmatprep.subr.bf16.mxu0 %v15041_v62  ;;  %v6367_v62 = vld [vmem:[%s17252_s7 + $0xc90] sm:$0xff] }
 0x5e9   : > { %v15134_v10 = vcombine.low %v6367_v62, %v6375_v63 }
 0x5ea   : > { %12657 = vmatpush1.bf16.msra.mxu1 %v15038_v2  ;;  %v15120_v2 = vcombine.low %v6352_v57, %v6360_v58  ;;  %v6440_v57 = vld [vmem:[%s17252_s7 + $0xed8] sm:$0xff] }
 0x5eb   : > { %12829 = vmatpush1.bf16.msra.mxu0 %v15040_v3  ;;  %12658 = vmatprep.subr.bf16.mxu1 %v15055_v4  ;;  %v15135_v3 = vcombine.high %v6367_v62, %v6375_v63  ;;  %v15137_v4 = vcombine.high %v6368_v1, %v6376_v9  ;;  %v6455_v62 = vld [vmem:[%s17252_s7 + $0xf50] sm:$0xff]  ;;  %v6448_v63 = vld [vmem:[%s17252_s7 + $0xf18] sm:$0xff] }
 0x5ec   : > { %12830 = vmatprep.subr.bf16.mxu0 %v15057_v5  ;;  %v6383_v5 = vld [vmem:[%s17252_s7 + $0xd10] sm:$0xff] }
 0x5ed   : > { %v15150_v19 = vcombine.low %v6383_v5, %v6391_v6 }
 0x5ee   : > { %12659 = vmatpush1.bf16.msra.mxu1 %v15054_v11  ;;  %v15136_v11 = vcombine.low %v6368_v1, %v6376_v9  ;;  %v6456_v1 = vld [vmem:[%s17252_s7 + $0xf58] sm:$0xff] }
 0x5ef   : > { %12831 = vmatpush1.bf16.msra.mxu0 %v15056_v12  ;;  %12660 = vmatprep.subr.bf16.mxu1 %v15071_v13  ;;  %v15151_v12 = vcombine.high %v6383_v5, %v6391_v6  ;;  %v15153_v13 = vcombine.high %v6384_v7, %v6392_v8  ;;  %v6471_v5 = vld [vmem:[%s17252_s7 + $0xfd0] sm:$0xff]  ;;  %v6464_v6 = vld [vmem:[%s17252_s7 + $0xf98] sm:$0xff] }
 0x5f0   : > { %12832 = vmatprep.subr.bf16.mxu0 %v15073_v14  ;;  %v6399_v14 = vld [vmem:[%s17252_s7 + $0xd90] sm:$0xff] }
 0x5f1   : > { %v15166_v39 = vcombine.low %v6399_v14, %v6407_v15 }
 0x5f2   : > { %12661 = vmatpush1.bf16.msra.mxu1 %v15070_v22  ;;  %v15152_v22 = vcombine.low %v6384_v7, %v6392_v8  ;;  %v6472_v7 = vld [vmem:[%s17252_s7 + $0xfd8] sm:$0xff] }
 0x5f3   : > { %12833 = vmatpush1.bf16.msra.mxu0 %v15072_v30  ;;  %12662 = vmatprep.subr.bf16.mxu1 %v15087_v27  ;;  %v15167_v30 = vcombine.high %v6399_v14, %v6407_v15  ;;  %v15169_v27 = vcombine.high %v6400_v25, %v6408_v18  ;;  %v6487_v14 = vld [vmem:[%s17252_s7 + $0x1050] sm:$0xff]  ;;  %v6480_v15 = vld [vmem:[%s17252_s7 + $0x1018] sm:$0xff] }
 0x5f4   : > { %12834 = vmatprep.subr.bf16.mxu0 %v15089_v32  ;;  %v6415_v32 = vld [vmem:[%s17252_s7 + $0xe10] sm:$0xff] }
 0x5f5   : > { %v15182_v58 = vcombine.low %v6415_v32, %v6423_v35 }
 0x5f6   : > { %12663 = vmatpush1.bf16.msra.mxu1 %v15086_v40  ;;  %v15168_v40 = vcombine.low %v6400_v25, %v6408_v18  ;;  %v6488_v25 = vld [vmem:[%s17252_s7 + $0x1058] sm:$0xff] }
 0x5f7   : > { %12835 = vmatpush1.bf16.msra.mxu0 %v15088_v41  ;;  %12664 = vmatprep.subr.bf16.mxu1 %v15103_v43  ;;  %v15183_v41 = vcombine.high %v6415_v32, %v6423_v35  ;;  %v15185_v43 = vcombine.high %v6416_v36, %v6424_v38  ;;  %v6503_v32 = vld [vmem:[%s17252_s7 + $0x10d0] sm:$0xff] }
 0x5f8   : > { %12836 = vmatprep.subr.bf16.mxu0 %v15105_v45  ;;  %v6431_v45 = vld [vmem:[%s17252_s7 + $0xe90] sm:$0xff] }
 0x5f9   : > { %v15198_v9 = vcombine.low %v6431_v45, %v6439_v55 }
 0x5fa   : > { %12665 = vmatpush1.bf16.msra.mxu1 %v15102_v59  ;;  %v15184_v59 = vcombine.low %v6416_v36, %v6424_v38  ;;  %v6496_v36 = vld [vmem:[%s17252_s7 + $0x1098] sm:$0xff] }
 0x5fb   : > { %12837 = vmatpush1.bf16.msra.mxu0 %v15104_v60  ;;  %12666 = vmatprep.subr.bf16.mxu1 %v15119_v61  ;;  %v15199_v60 = vcombine.high %v6431_v45, %v6439_v55  ;;  %v15201_v61 = vcombine.high %v6432_v42, %v6440_v57  ;;  %v6504_v38 = vld [vmem:[%s17252_s7 + $0x10d8] sm:$0xff] }
 0x5fc   : > { %12838 = vmatprep.subr.bf16.mxu0 %v15121_v17  ;;  %v6447_v17 = vld [vmem:[%s17252_s7 + $0xf10] sm:$0xff]  ;;  %v15265_v45 = vcombine.high %v6496_v36, %v6504_v38  ;;  %v6512_v55 = vld [vmem:[%s17252_s7 + $0x1118] sm:$0xff] }
 0x5fd   : > { %v15214_v8 = vcombine.low %v6447_v17, %v6455_v62 }
 0x5fe   : > { %12667 = vmatpush1.bf16.msra.mxu1 %v15118_v29  ;;  %v15200_v29 = vcombine.low %v6432_v42, %v6440_v57  ;;  %v6520_v42 = vld [vmem:[%s17252_s7 + $0x1158] sm:$0xff] }
 0x5ff   : > { %12839 = vmatpush1.bf16.msra.mxu0 %v15120_v2  ;;  %12668 = vmatprep.subr.bf16.mxu1 %v15135_v3  ;;  %v15215_v2 = vcombine.high %v6447_v17, %v6455_v62  ;;  %v15217_v3 = vcombine.high %v6448_v63, %v6456_v1  ;;  %v6535_v17 = vld [vmem:[%s17252_s7 + $0x11d0] sm:$0xff]  ;;  %v6528_v62 = vld [vmem:[%s17252_s7 + $0x1198] sm:$0xff] }
 0x600   : > { %12840 = vmatprep.subr.bf16.mxu0 %v15137_v4  ;;  %v6463_v4 = vld [vmem:[%s17252_s7 + $0xf90] sm:$0xff] }
 0x601   : > { %v15230_v18 = vcombine.low %v6463_v4, %v6471_v5 }
 0x602   : > { %12669 = vmatpush1.bf16.msra.mxu1 %v15134_v10  ;;  %v15216_v10 = vcombine.low %v6448_v63, %v6456_v1  ;;  %v6536_v63 = vld [vmem:[%s17252_s7 + $0x11d8] sm:$0xff] }
 0x603   : > { %12841 = vmatpush1.bf16.msra.mxu0 %v15136_v11  ;;  %12670 = vmatprep.subr.bf16.mxu1 %v15151_v12  ;;  %v15231_v11 = vcombine.high %v6463_v4, %v6471_v5  ;;  %v15233_v12 = vcombine.high %v6464_v6, %v6472_v7  ;;  %v6551_v4 = vld [vmem:[%s17252_s7 + $0x1250] sm:$0xff]  ;;  %v6544_v5 = vld [vmem:[%s17252_s7 + $0x1218] sm:$0xff] }
 0x604   : > { %12842 = vmatprep.subr.bf16.mxu0 %v15153_v13  ;;  %v6479_v13 = vld [vmem:[%s17252_s7 + $0x1010] sm:$0xff] }
 0x605   : > { %v15246_v35 = vcombine.low %v6479_v13, %v6487_v14 }
 0x606   : > { %12671 = vmatpush1.bf16.msra.mxu1 %v15150_v19  ;;  %v15232_v19 = vcombine.low %v6464_v6, %v6472_v7  ;;  %v6552_v6 = vld [vmem:[%s17252_s7 + $0x1258] sm:$0xff] }
 0x607   : > { %12843 = vmatpush1.bf16.msra.mxu0 %v15152_v22  ;;  %12672 = vmatprep.subr.bf16.mxu1 %v15167_v30  ;;  %v15247_v22 = vcombine.high %v6479_v13, %v6487_v14  ;;  %v15249_v30 = vcombine.high %v6480_v15, %v6488_v25  ;;  %v6567_v13 = vld [vmem:[%s17252_s7 + $0x12d0] sm:$0xff]  ;;  %v6560_v14 = vld [vmem:[%s17252_s7 + $0x1298] sm:$0xff] }
 0x608   : > { %12844 = vmatprep.subr.bf16.mxu0 %v15169_v27  ;;  %v6495_v27 = vld [vmem:[%s17252_s7 + $0x1090] sm:$0xff] }
 0x609   : > { %v15262_v57 = vcombine.low %v6495_v27, %v6503_v32 }
 0x60a   : > { %12673 = vmatpush1.bf16.msra.mxu1 %v15166_v39  ;;  %v15248_v39 = vcombine.low %v6480_v15, %v6488_v25  ;;  %v6568_v15 = vld [vmem:[%s17252_s7 + $0x12d8] sm:$0xff] }
 0x60b   : > { %12845 = vmatpush1.bf16.msra.mxu0 %v15168_v40  ;;  %12674 = vmatprep.subr.bf16.mxu1 %v15183_v41  ;;  %v15263_v40 = vcombine.high %v6495_v27, %v6503_v32  ;;  %v6511_v41 = vld [vmem:[%s17252_s7 + $0x1110] sm:$0xff]  ;;  %v6576_v32 = vld [vmem:[%s17252_s7 + $0x1318] sm:$0xff] }
 0x60c   : > { %12846 = vmatprep.subr.bf16.mxu0 %v15185_v43  ;;  %v6519_v43 = vld [vmem:[%s17252_s7 + $0x1150] sm:$0xff] }
 0x60d   : > { %v15278_v1 = vcombine.low %v6511_v41, %v6519_v43  ;;  %v6583_v27 = vld [vmem:[%s17252_s7 + $0x1350] sm:$0xff] }
 0x60e   : > { %12675 = vmatpush1.bf16.msra.mxu1 %v15182_v58  ;;  %v15264_v58 = vcombine.low %v6496_v36, %v6504_v38  ;;  %v15328_v38 = vcombine.low %v6560_v14, %v6568_v15 }
 0x60f   : > { %12847 = vmatpush1.bf16.msra.mxu0 %v15184_v59  ;;  %12676 = vmatprep.subr.bf16.mxu1 %v15199_v60  ;;  %v15279_v59 = vcombine.high %v6511_v41, %v6519_v43  ;;  %v15281_v60 = vcombine.high %v6512_v55, %v6520_v42  ;;  %v6591_v41 = vld [vmem:[%s17252_s7 + $0x1390] sm:$0xff] }
 0x610   : > { %12848 = vmatprep.subr.bf16.mxu0 %v15201_v61  ;;  %v6527_v61 = vld [vmem:[%s17252_s7 + $0x1190] sm:$0xff] }
 0x611   : > { %v15294_v7 = vcombine.low %v6527_v61, %v6535_v17  ;;  %v6599_v43 = vld [vmem:[%s17252_s7 + $0x13d0] sm:$0xff] }
 0x612   : > { %12677 = vmatpush1.bf16.msra.mxu1 %v15198_v9  ;;  %v15280_v9 = vcombine.low %v6512_v55, %v6520_v42  ;;  %v6600_v55 = vld [vmem:[%s17252_s7 + $0x13d8] sm:$0xff] }
 0x613   : > { %12849 = vmatpush1.bf16.msra.mxu0 %v15200_v29  ;;  %12678 = vmatprep.subr.bf16.mxu1 %v15215_v2  ;;  %v15295_v29 = vcombine.high %v6527_v61, %v6535_v17  ;;  %v15297_v2 = vcombine.high %v6528_v62, %v6536_v63  ;;  %v6615_v61 = vld [vmem:[%s17252_s7 + $0x1450] sm:$0xff]  ;;  %v6608_v17 = vld [vmem:[%s17252_s7 + $0x1418] sm:$0xff] }
 0x614   : > { %12850 = vmatprep.subr.bf16.mxu0 %v15217_v3  ;;  %v6543_v3 = vld [vmem:[%s17252_s7 + $0x1210] sm:$0xff] }
 0x615   : > { %v15310_v25 = vcombine.low %v6543_v3, %v6551_v4 }
 0x616   : > { %12679 = vmatpush1.bf16.msra.mxu1 %v15214_v8  ;;  %v15296_v8 = vcombine.low %v6528_v62, %v6536_v63  ;;  %v6616_v62 = vld [vmem:[%s17252_s7 + $0x1458] sm:$0xff]  ;;  %v15358_v63 = vcombine.low %v6591_v41, %v6599_v43 }
 0x617   : > { %12851 = vmatpush1.bf16.msra.mxu0 %v15216_v10  ;;  %12680 = vmatprep.subr.bf16.mxu1 %v15231_v11  ;;  %v15311_v10 = vcombine.high %v6543_v3, %v6551_v4  ;;  %v15313_v11 = vcombine.high %v6544_v5, %v6552_v6  ;;  %v6631_v3 = vld [vmem:[%s17252_s7 + $0x14d0] sm:$0xff]  ;;  %v6624_v4 = vld [vmem:[%s17252_s7 + $0x1498] sm:$0xff] }
 0x618   : > { %12852 = vmatprep.subr.bf16.mxu0 %v15233_v12  ;;  %v6559_v12 = vld [vmem:[%s17252_s7 + $0x1290] sm:$0xff] }
 0x619   : > { %v15326_v36 = vcombine.low %v6559_v12, %v6567_v13 }
 0x61a   : > { %12681 = vmatpush1.bf16.msra.mxu1 %v15230_v18  ;;  %v15312_v18 = vcombine.low %v6544_v5, %v6552_v6  ;;  %v6632_v5 = vld [vmem:[%s17252_s7 + $0x14d8] sm:$0xff] }
 0x61b   : > { %12853 = vmatpush1.bf16.msra.mxu0 %v15232_v19  ;;  %12693 = vmatprep.subr.bf16.mxu1 %v15247_v22  ;;  %v15327_v19 = vcombine.high %v6559_v12, %v6567_v13  ;;  %v15329_v22 = vcombine.high %v6560_v14, %v6568_v15  ;;  %v6647_v12 = vld [vmem:[%s17252_s7 + $0x1550] sm:$0xff]  ;;  %v6640_v13 = vld [vmem:[%s17252_s7 + $0x1518] sm:$0xff] }
 0x61c   : > { %12865 = vmatprep.subr.bf16.mxu0 %v15249_v30  ;;  %v6575_v30 = vld [vmem:[%s17252_s7 + $0x1310] sm:$0xff]  ;;  %v6648_v14 = vld [vmem:[%s17252_s7 + $0x1558] sm:$0xff] }
 0x61d   : > { %12683 = vmatmul.mubr.bf16.vlgmr.msra.gmra.mrb[28].mxu1 %v17750_v48  ;;  %v15342_v42 = vcombine.low %v6575_v30, %v6583_v27 }
 0x61e   : > { %12855 = vmatmul.mubr.bf16.vlgmr.msra.gmra.mrb[32].mxu0 %v17750_v48  ;;  %12694 = vmatpush1.bf16.msra.mxu1 %v15246_v35  ;;  %v6584_v35 = vld [vmem:[%s17252_s7 + $0x1358] sm:$0xff] }
 0x61f   : > { %12725 = vmatprep.mubr.bf16.mxu1 %v17905_v53  ;;  %12866 = vmatpush1.bf16.msra.mxu0 %v15248_v39  ;;  %v15343_v39 = vcombine.high %v6575_v30, %v6583_v27  ;;  %v6663_v30 = vld [vmem:[%s17252_s7 + $0x15d0] sm:$0xff]  ;;  %v6656_v27 = vld [vmem:[%s17252_s7 + $0x1598] sm:$0xff] }
 0x620   : > { %12897 = vmatprep.mubr.bf16.mxu0 %v17905_v53  ;;  %12695 = vmatprep.subr.bf16.mxu1 %v15263_v40  ;;  %v15345_v40 = vcombine.high %v6576_v32, %v6584_v35 }
 0x621   : > { %12867 = vmatprep.subr.bf16.mxu0 %v15265_v45  ;;  %v6592_v45 = vld [vmem:[%s17252_s7 + $0x1398] sm:$0xff] }
 0x622   : > { %12696 = vmatpush1.bf16.msra.mxu1 %v15262_v57  ;;  %v15344_v57 = vcombine.low %v6576_v32, %v6584_v35  ;;  %v6664_v32 = vld [vmem:[%s17252_s7 + $0x15d8] sm:$0xff] }
 0x623   : > { %12868 = vmatpush1.bf16.msra.mxu0 %v15264_v58  ;;  %12697 = vmatprep.subr.bf16.mxu1 %v15279_v59  ;;  %v15359_v58 = vcombine.high %v6591_v41, %v6599_v43  ;;  %v15361_v59 = vcombine.high %v6592_v45, %v6600_v55  ;;  %v6679_v41 = vld [vmem:[%s17252_s7 + $0x1650] sm:$0xff]  ;;  %v6672_v43 = vld [vmem:[%s17252_s7 + $0x1618] sm:$0xff] }
 0x624   : > { %12869 = vmatprep.subr.bf16.mxu0 %v15281_v60  ;;  %v6607_v60 = vld [vmem:[%s17252_s7 + $0x1410] sm:$0xff] }
 0x625   : > { %v15374_v6 = vcombine.low %v6607_v60, %v6615_v61 }
 0x626   : > { %12698 = vmatpush1.bf16.msra.mxu1 %v15278_v1  ;;  %v15360_v1 = vcombine.low %v6592_v45, %v6600_v55  ;;  %v6680_v45 = vld [vmem:[%s17252_s7 + $0x1658] sm:$0xff] }
 0x627   : > { %12870 = vmatpush1.bf16.msra.mxu0 %v15280_v9  ;;  %12699 = vmatprep.subr.bf16.mxu1 %v15295_v29  ;;  %v15375_v9 = vcombine.high %v6607_v60, %v6615_v61  ;;  %v15377_v29 = vcombine.high %v6608_v17, %v6616_v62  ;;  %v6695_v60 = vld [vmem:[%s17252_s7 + $0x16d0] sm:$0xff]  ;;  %v6688_v61 = vld [vmem:[%s17252_s7 + $0x1698] sm:$0xff] }
 0x628   : > { %12871 = vmatprep.subr.bf16.mxu0 %v15297_v2  ;;  %v6623_v2 = vld [vmem:[%s17252_s7 + $0x1490] sm:$0xff] }
 0x629   : > { %v15390_v15 = vcombine.low %v6623_v2, %v6631_v3 }
 0x62a   : > { %12700 = vmatpush1.bf16.msra.mxu1 %v15294_v7  ;;  %v15376_v7 = vcombine.low %v6608_v17, %v6616_v62  ;;  %v6696_v17 = vld [vmem:[%s17252_s7 + $0x16d8] sm:$0xff] }
 0x62b   : > { %12872 = vmatpush1.bf16.msra.mxu0 %v15296_v8  ;;  %12701 = vmatprep.subr.bf16.mxu1 %v15311_v10  ;;  %v15391_v8 = vcombine.high %v6623_v2, %v6631_v3  ;;  %v15393_v10 = vcombine.high %v6624_v4, %v6632_v5  ;;  %v6711_v2 = vld [vmem:[%s17252_s7 + $0x1750] sm:$0xff]  ;;  %v6704_v3 = vld [vmem:[%s17252_s7 + $0x1718] sm:$0xff] }
 0x62c   : > { %12873 = vmatprep.subr.bf16.mxu0 %v15313_v11  ;;  %v6639_v11 = vld [vmem:[%s17252_s7 + $0x1510] sm:$0xff] }
 0x62d   : > { %v15406_v35 = vcombine.low %v6639_v11, %v6647_v12 }
 0x62e   : > { %12702 = vmatpush1.bf16.msra.mxu1 %v15310_v25  ;;  %v15392_v25 = vcombine.low %v6624_v4, %v6632_v5  ;;  %v6712_v4 = vld [vmem:[%s17252_s7 + $0x1758] sm:$0xff] }
 0x62f   : > { %12874 = vmatpush1.bf16.msra.mxu0 %v15312_v18  ;;  %12703 = vmatprep.subr.bf16.mxu1 %v15327_v19  ;;  %v15407_v18 = vcombine.high %v6639_v11, %v6647_v12  ;;  %v15409_v19 = vcombine.high %v6640_v13, %v6648_v14  ;;  %v6727_v11 = vld [vmem:[%s17252_s7 + $0x17d0] sm:$0xff]  ;;  %v6720_v12 = vld [vmem:[%s17252_s7 + $0x1798] sm:$0xff] }
 0x630   : > { %12875 = vmatprep.subr.bf16.mxu0 %v15329_v22  ;;  %v6655_v22 = vld [vmem:[%s17252_s7 + $0x1590] sm:$0xff] }
 0x631   : > { %v15422_v55 = vcombine.low %v6655_v22, %v6663_v30 }
 0x632   : > { %12704 = vmatpush1.bf16.msra.mxu1 %v15326_v36  ;;  %v15408_v36 = vcombine.low %v6640_v13, %v6648_v14  ;;  %v6728_v13 = vld [vmem:[%s17252_s7 + $0x17d8] sm:$0xff] }
 0x633   : > { %12876 = vmatpush1.bf16.msra.mxu0 %v15328_v38  ;;  %12705 = vmatprep.subr.bf16.mxu1 %v15343_v39  ;;  %v15423_v38 = vcombine.high %v6655_v22, %v6663_v30  ;;  %v15425_v39 = vcombine.high %v6656_v27, %v6664_v32  ;;  %v6743_v22 = vld [vmem:[%s17252_s7 + $0x1850] sm:$0xff]  ;;  %v6736_v30 = vld [vmem:[%s17252_s7 + $0x1818] sm:$0xff] }
 0x634   : > { %12877 = vmatprep.subr.bf16.mxu0 %v15345_v40  ;;  %v6671_v40 = vld [vmem:[%s17252_s7 + $0x1610] sm:$0xff] }
 0x635   : > { %v15438_v62 = vcombine.low %v6671_v40, %v6679_v41 }
 0x636   : > { %12706 = vmatpush1.bf16.msra.mxu1 %v15342_v42  ;;  %v15424_v42 = vcombine.low %v6656_v27, %v6664_v32  ;;  %v6744_v27 = vld [vmem:[%s17252_s7 + $0x1858] sm:$0xff] }
 0x637   : > { %12878 = vmatpush1.bf16.msra.mxu0 %v15344_v57  ;;  %12707 = vmatprep.subr.bf16.mxu1 %v15359_v58  ;;  %v15439_v57 = vcombine.high %v6671_v40, %v6679_v41  ;;  %v15441_v58 = vcombine.high %v6672_v43, %v6680_v45  ;;  %v6759_v40 = vld [vmem:[%s17252_s7 + $0x18d0] sm:$0xff] }
 0x638   : > { %12879 = vmatprep.subr.bf16.mxu0 %v15361_v59  ;;  %v6687_v59 = vld [vmem:[%s17252_s7 + $0x1690] sm:$0xff] }
 0x639   : > { %v15454_v5 = vcombine.low %v6687_v59, %v6695_v60 }
 0x63a   : > { %12708 = vmatpush1.bf16.msra.mxu1 %v15358_v63  ;;  %v15440_v63 = vcombine.low %v6672_v43, %v6680_v45  ;;  %v6752_v43 = vld [vmem:[%s17252_s7 + $0x1898] sm:$0xff] }
 0x63b   : > { %12880 = vmatpush1.bf16.msra.mxu0 %v15360_v1  ;;  %12709 = vmatprep.subr.bf16.mxu1 %v15375_v9  ;;  %v15455_v1 = vcombine.high %v6687_v59, %v6695_v60  ;;  %v15457_v9 = vcombine.high %v6688_v61, %v6696_v17  ;;  %v6760_v45 = vld [vmem:[%s17252_s7 + $0x18d8] sm:$0xff] }
 0x63c   : > { %12881 = vmatprep.subr.bf16.mxu0 %v15377_v29  ;;  %v6703_v29 = vld [vmem:[%s17252_s7 + $0x1710] sm:$0xff]  ;;  %v15521_v59 = vcombine.high %v6752_v43, %v6760_v45  ;;  %v6768_v60 = vld [vmem:[%s17252_s7 + $0x1918] sm:$0xff] }
 0x63d   : > { %v15470_v14 = vcombine.low %v6703_v29, %v6711_v2 }
 0x63e   : > { %12710 = vmatpush1.bf16.msra.mxu1 %v15374_v6  ;;  %v15456_v6 = vcombine.low %v6688_v61, %v6696_v17  ;;  %v6776_v61 = vld [vmem:[%s17252_s7 + $0x1958] sm:$0xff] }
 0x63f   : > { %12882 = vmatpush1.bf16.msra.mxu0 %v15376_v7  ;;  %12711 = vmatprep.subr.bf16.mxu1 %v15391_v8  ;;  %v15471_v7 = vcombine.high %v6703_v29, %v6711_v2  ;;  %v15473_v8 = vcombine.high %v6704_v3, %v6712_v4  ;;  %v6791_v29 = vld [vmem:[%s17252_s7 + $0x19d0] sm:$0xff]  ;;  %v6784_v2 = vld [vmem:[%s17252_s7 + $0x1998] sm:$0xff] }
 0x640   : > { %12883 = vmatprep.subr.bf16.mxu0 %v15393_v10  ;;  %v6719_v10 = vld [vmem:[%s17252_s7 + $0x1790] sm:$0xff] }
 0x641   : > { %v15486_v32 = vcombine.low %v6719_v10, %v6727_v11 }
 0x642   : > { %12712 = vmatpush1.bf16.msra.mxu1 %v15390_v15  ;;  %v15472_v15 = vcombine.low %v6704_v3, %v6712_v4  ;;  %v6792_v3 = vld [vmem:[%s17252_s7 + $0x19d8] sm:$0xff] }
 0x643   : > { %12884 = vmatpush1.bf16.msra.mxu0 %v15392_v25  ;;  %12713 = vmatprep.subr.bf16.mxu1 %v15407_v18  ;;  %v15487_v25 = vcombine.high %v6719_v10, %v6727_v11  ;;  %v15489_v18 = vcombine.high %v6720_v12, %v6728_v13  ;;  %v6799_v10 = vld [vmem:[%s17252_s7 + $0x1a10] sm:$0xff] }
 0x644   : > { %12885 = vmatprep.subr.bf16.mxu0 %v15409_v19  ;;  %v6735_v19 = vld [vmem:[%s17252_s7 + $0x1810] sm:$0xff] }
 0x645   : > { %v15502_v41 = vcombine.low %v6735_v19, %v6743_v22  ;;  %v6807_v11 = vld [vmem:[%s17252_s7 + $0x1a50] sm:$0xff] }
 0x646   : > { %12714 = vmatpush1.bf16.msra.mxu1 %v15406_v35  ;;  %v15488_v35 = vcombine.low %v6720_v12, %v6728_v13  ;;  %v6800_v12 = vld [vmem:[%s17252_s7 + $0x1a18] sm:$0xff] }
 0x647   : > { %12886 = vmatpush1.bf16.msra.mxu0 %v15408_v36  ;;  %12715 = vmatprep.subr.bf16.mxu1 %v15423_v38  ;;  %v15503_v36 = vcombine.high %v6735_v19, %v6743_v22  ;;  %v15505_v38 = vcombine.high %v6736_v30, %v6744_v27  ;;  %v6808_v13 = vld [vmem:[%s17252_s7 + $0x1a58] sm:$0xff]  ;;  %v6815_v22 = vld [vmem:[%s17252_s7 + $0x1a90] sm:$0xff] }
 0x648   : > { %12887 = vmatprep.subr.bf16.mxu0 %v15425_v39  ;;  %v6751_v39 = vld [vmem:[%s17252_s7 + $0x1890] sm:$0xff]  ;;  %v15569_v19 = vcombine.high %v6800_v12, %v6808_v13 }
 0x649   : > { %v15518_v17 = vcombine.low %v6751_v39, %v6759_v40 }
 0x64a   : > { %12716 = vmatpush1.bf16.msra.mxu1 %v15422_v55  ;;  %v15504_v55 = vcombine.low %v6736_v30, %v6744_v27  ;;  %v6823_v30 = vld [vmem:[%s17252_s7 + $0x1ad0] sm:$0xff]  ;;  %v18601_v27 = vpop.permute.xlu1 %13658 }
 0x64b   : > { %12888 = vmatpush1.bf16.msra.mxu0 %v15424_v42  ;;  %12717 = vmatprep.subr.bf16.mxu1 %v15439_v57  ;;  %v15519_v42 = vcombine.high %v6751_v39, %v6759_v40  ;;  %v6767_v57 = vld [vmem:[%s17252_s7 + $0x1910] sm:$0xff]  ;;  %v18610_v39 = vpop.permute.xlu0 %13645 }
 0x64c   : > { %12889 = vmatprep.subr.bf16.mxu0 %v15441_v58  ;;  %v6775_v58 = vld [vmem:[%s17252_s7 + $0x1950] sm:$0xff] }
 0x64d   : > { %v15534_v4 = vcombine.low %v6767_v57, %v6775_v58 }
 0x64e   : > { %12718 = vmatpush1.bf16.msra.mxu1 %v15438_v62  ;;  %v15520_v62 = vcombine.low %v6752_v43, %v6760_v45  ;;  %v15568_v43 = vcombine.low %v6800_v12, %v6808_v13 }
 0x64f   : > { %12890 = vmatpush1.bf16.msra.mxu0 %v15440_v63  ;;  %12719 = vmatprep.subr.bf16.mxu1 %v15455_v1  ;;  %v15535_v63 = vcombine.high %v6767_v57, %v6775_v58  ;;  %v15537_v1 = vcombine.high %v6768_v60, %v6776_v61  ;;  %v18618_v57 = vld [vmem:[%s17252_s7 + $0x1b10] sm:$0xff]  ;;  %v13651_v12 = vpop.permute.xlu0 %13650 }
 0x650   : > { %12891 = vmatprep.subr.bf16.mxu0 %v15457_v9  ;;  %v6783_v9 = vld [vmem:[%s17252_s7 + $0x1990] sm:$0xff] }
 0x651   : > { %v18621_v58 = vld [vmem:[%s17252_s7 + $0x1b50] sm:$0xff] }
 0x652   : > { %12720 = vmatpush1.bf16.msra.mxu1 %v15454_v5  ;;  %v6989_v5 = vld [vmem:[%s18587_s1] sm:$0xff]  ;;  %v15598_v13 = vcombine.low %v18618_v57, %v18621_v58 }
 0x653   : > { %12892 = vmatpush1.bf16.msra.mxu0 %v15456_v6  ;;  %12721 = vmatprep.subr.bf16.mxu1 %v15471_v7  ;;  %v15536_v6 = vcombine.low %v6768_v60, %v6776_v61  ;;  %v15551_v7 = vcombine.high %v6783_v9, %v6791_v29  ;;  %v18625_v61 = vld [vmem:[%s17252_s7 + $0x1b18] sm:$0xff] }
 0x654   : > { %12893 = vmatprep.subr.bf16.mxu0 %v15473_v8  ;;  %v15553_v8 = vcombine.high %v6784_v2, %v6792_v3 }
 0x656   : > { %12722 = vmatpush1.bf16.msra.mxu1 %v15470_v14  ;;  %v6991_v14 = vunpack.c.l.bf16 %v6989_v5 }
 0x657   : > { %12894 = vmatpush1.bf16.msra.mxu0 %v15472_v15  ;;  %12723 = vmatprep.subr.bf16.mxu1 %v15487_v25  ;;  %v15550_v15 = vcombine.low %v6783_v9, %v6791_v29  ;;  %v15552_v25 = vcombine.low %v6784_v2, %v6792_v3  ;;  %v15582_v9 = vcombine.low %v6815_v22, %v6823_v30  ;;  %v18639_v29 = vld [vmem:[%s17252_s7 + $0x1b90] sm:$0xff]  ;;  %v16695_v3 = vld [vmem:[%s19476_s29] sm:$0xff] }
 0x658   : > { %12895 = vmatprep.subr.bf16.mxu0 %v15489_v18  ;;  %v15567_v18 = vcombine.high %v6799_v10, %v6807_v11  ;;  %v7010_v40 = vrot.slane %v6991_v14, %v17439_v50  ;;  %v7014_v45 = vrot.slane %v6991_v14, %v17442_v51  ;;  %v18642_v2 = vld [vmem:[%s17252_s7 + $0x1bd0] sm:$0xff] }
 0x65a   : > { %12724 = vmatpush1.bf16.msra.mxu1 %v15486_v32  ;;  %v7002_v32 = vrot.slane %v6991_v14, %v17345_v20 }
 0x65b   : > { %12896 = vmatpush1.bf16.msra.mxu0 %v15488_v35  ;;  %12736 = vmatprep.subr.bf16.mxu1 %v15503_v36  ;;  %v18605_v35 = vld [vmem:[%s17252_s7 + $0x1a98] sm:$0xff] }
 0x65c   : > { %12908 = vmatprep.subr.bf16.mxu0 %v15505_v38  ;;  %v18608_v36 = vld [vmem:[%s17252_s7 + $0x1ad8] sm:$0xff]  ;;  %v15566_v38 = vcombine.low %v6799_v10, %v6807_v11  ;;  %v7082_v60 = vrot.slane %v7002_v32, %v17345_v20  ;;  %v16928_v32 = vmov 3  }
 0x65d   : > { %12726 = vmatmul.mubr.bf16.vlgmr.msra.gmra.mrb[28].mxu1 %v17901_v44  ;;  %v15584_v5 = vcombine.low %v18605_v35, %v18608_v36  ;;  %v18656_v10 = vld [vmem:[%s17252_s7 + $0x1bd8] sm:$0xff] }
 0x65e   : > { %12898 = vmatmul.mubr.bf16.vlgmr.msra.gmra.mrb[32].mxu0 %v17901_v44  ;;  %12737 = vmatpush1.bf16.msra.mxu1 %v15502_v41  ;;  %v7006_v41 = vrot.slane %v6991_v14, %v17348_v21 }
 0x65f   : > { %12768 = vmatprep.mubr.bf16.mxu1 %v17909_v56  ;;  %12909 = vmatpush1.bf16.msra.mxu0 %v15504_v55  ;;  %v15583_v55 = vcombine.high %v6815_v22, %v6823_v30  ;;  %v15614_v22 = vcombine.low %v18639_v29, %v18642_v2  ;;  %v15615_v30 = vcombine.high %v18639_v29, %v18642_v2  ;;  %v6863_v29 = vld [vmem:[%s17252_s7 + $0x1c10] sm:$0xff] }
 0x660   : > { %12940 = vmatprep.mubr.bf16.mxu0 %v17909_v56  ;;  %12738 = vmatprep.subr.bf16.mxu1 %v15519_v42  ;;  %v15585_v42 = vcombine.high %v18605_v35, %v18608_v36  ;;  %v6871_v2 = vld [vmem:[%s17252_s7 + $0x1c50] sm:$0xff] }
 0x661   : > { %12910 = vmatprep.subr.bf16.mxu0 %v15521_v59  ;;  %v16927_v59 = vmov 2  }
 0x662   : > { %12739 = vmatpush1.bf16.msra.mxu1 %v15518_v17  ;;  %16139 = vset.pattern.permute.xlu1 %v16927_v59  ;;  %v18628_v17 = vld [vmem:[%s17252_s7 + $0x1b58] sm:$0xff] }
 0x663   : > { %12911 = vmatpush1.bf16.msra.mxu0 %v15520_v62  ;;  %12740 = vmatprep.subr.bf16.mxu1 %v15535_v63  ;;  %v18633_v62 = vld [vmem:[%s19476_s29 + $0x8] sm:$0xff]  ;;  %v7090_v63 = vrot.slane %v7010_v40, %v17345_v20  ;;  %v15601_v14 = vcombine.high %v18625_v61, %v18628_v17 }
 0x664   : > { %12912 = vmatprep.subr.bf16.mxu0 %v15537_v1  ;;  %13674 = vperm.xlu1 %16139, %v18633_v62   ;;  %v7086_v1 = vrot.slane %v7006_v41, %v17345_v20 }
 0x665   : > { %16138 = vset.pattern.permute.xlu0 %v16927_v59 }
 0x666   : > { %12741 = vmatpush1.bf16.msra.mxu1 %v15534_v4  ;;  %13670 = vperm.xlu0 %16138, %v16695_v3   ;;  %v7094_v4 = vrot.slane %v7014_v45, %v17345_v20 }
 0x667   : > { %12913 = vmatpush1.bf16.msra.mxu0 %v15536_v6  ;;  %12742 = vmatprep.subr.bf16.mxu1 %v15551_v7  ;;  %v13663_v6 = vpop.permute.xlu1 %13662  ;;  %v15599_v7 = vcombine.high %v18618_v57, %v18621_v58 }
 0x668   : > { %12914 = vmatprep.subr.bf16.mxu0 %v15553_v8  ;;  %v18653_v8 = vld [vmem:[%s17252_s7 + $0x1b98] sm:$0xff]  ;;  %16140 = vset.pattern.permute.xlu1 %v16928_v32 }
 0x669   : > { %v15617_v41 = vcombine.high %v18653_v8, %v18656_v10  ;;  %13682 = vperm.xlu1 %16140, %v16695_v3  }
 0x66a   : > { %12743 = vmatpush1.bf16.msra.mxu1 %v15550_v15  ;;  %16141 = vset.pattern.permute.xlu0 %v16928_v32  ;;  %v15630_v32 = vcombine.low %v6863_v29, %v6871_v2 }
 0x66b   : > { %12915 = vmatpush1.bf16.msra.mxu0 %v15552_v25  ;;  %12744 = vmatprep.subr.bf16.mxu1 %v15567_v18 }
 0x66c   : > { %12916 = vmatprep.subr.bf16.mxu0 %v15569_v19  ;;  %v15600_v19 = vcombine.low %v18625_v61, %v18628_v17  ;;  %13686 = vperm.xlu0 %16141, %v18633_v62   ;;  %v6888_v62 = vld [vmem:[%s17252_s7 + $0x1cd8] sm:$0xff] }
 0x66e   : > { %12745 = vmatpush1.bf16.msra.mxu1 %v15566_v38 }
 0x66f   : > { %12917 = vmatpush1.bf16.msra.mxu0 %v15568_v43  ;;  %12746 = vmatprep.subr.bf16.mxu1 %v15583_v55 }
 0x670   : > { %v12426_v11 = vpop.f32.mrb[24].mxu1  ;;  %12918 = vmatprep.subr.bf16.mxu0 %v15585_v42 }
 0x671   : > { %v15873_v15 = vadd.f32 %v12426_v11, %v7082_v60  ;;  %v12598_v25 = vpop.f32.mrb[28].mxu0  ;;  %v12428_v18 = vpop.f32.mrb[25].mxu1 }
 0x672   : > { %v15877_v35 = vadd.f32 %v12598_v25, %v7090_v63  ;;  %v15874_v36 = vadd.f32 %v12428_v18, %v7086_v1  ;;  %v12600_v38 = vpop.f32.mrb[29].mxu0  ;;  %v12430_v40 = vpop.f32.mrb[26].mxu1  ;;  %12747 = vmatpush1.bf16.msra.mxu1 %v15582_v9  ;;  %v6887_v18 = vld [vmem:[%s17252_s7 + $0x1cd0] sm:$0xff] }
 0x673   : > { %v13653_v43 = vmul.f32 %v15873_v15, %v18610_v39  ;;  %v15878_v45 = vadd.f32 %v12600_v38, %v7094_v4  ;;  %v15875_v55 = vadd.f32 %v12430_v40, %v7082_v60  ;;  %v12602_v42 = vpop.f32.mrb[30].mxu0  ;;  %12919 = vmatpush1.bf16.msra.mxu0 %v15584_v5  ;;  %v12432_v57 = vpop.f32.mrb[27].mxu1  ;;  %12748 = vmatprep.subr.bf16.mxu1 %v15599_v7  ;;  %v6864_v15 = vld [vmem:[%s17252_s7 + $0x1c18] sm:$0xff] }
 0x674   : > { %v13665_v58 = vmul.f32 %v15877_v35, %v18601_v27  ;;  %v13654_v59 = vmul.f32 %v15874_v36, %v18610_v39  ;;  %v15879_v61 = vadd.f32 %v12602_v42, %v7090_v63  ;;  %v15876_v17 = vadd.f32 %v12432_v57, %v7086_v1  ;;  %v12604_v9 = vpop.f32.mrb[31].mxu0  ;;  %12920 = vmatprep.subr.bf16.mxu0 %v15601_v14  ;;  %v6872_v7 = vld [vmem:[%s17252_s7 + $0x1c58] sm:$0xff]  ;;  %v6879_v14 = vld [vmem:[%s17252_s7 + $0x1c90] sm:$0xff] }
 0x675   : > { %v13666_v3 = vmul.f32 %v15878_v45, %v18601_v27  ;;  %v15880_v11 = vadd.f32 %v12604_v9, %v7094_v4  ;;  %v13655_v60 = vmul.f32 %v15875_v55, %v13651_v12  ;;  %v15616_v5 = vcombine.low %v18653_v8, %v18656_v10  ;;  %v6895_v35 = vld [vmem:[%s17252_s7 + $0x1d10] sm:$0xff]  ;;  %v6896_v38 = vld [vmem:[%s17252_s7 + $0x1d18] sm:$0xff] }
 0x676   : > { %v18680_v25 = vadd.f32 %v13665_v58, %v13653_v43  ;;  %v13667_v39 = vmul.f32 %v15879_v61, %v13663_v6  ;;  %v13656_v63 = vmul.f32 %v15876_v17, %v13651_v12  ;;  %12749 = vmatpush1.bf16.msra.mxu1 %v15598_v13  ;;  %v15631_v4 = vcombine.high %v6863_v29, %v6871_v2  ;;  %v6880_v13 = vld [vmem:[%s17252_s7 + $0x1c98] sm:$0xff]  ;;  %v6903_v36 = vld [vmem:[%s17252_s7 + $0x1d50] sm:$0xff] }
 0x677   : > { %v18683_v27 = vadd.f32 %v13666_v3, %v13654_v59  ;;  %v13668_v1 = vmul.f32 %v15880_v11, %v13663_v6  ;;  %12921 = vmatpush1.bf16.msra.mxu0 %v15600_v19  ;;  %12750 = vmatprep.subr.bf16.mxu1 %v15615_v30  ;;  %v15633_v10 = vcombine.high %v6864_v15, %v6872_v7  ;;  %v6904_v40 = vld [vmem:[%s17252_s7 + $0x1d58] sm:$0xff]  ;;  %v6911_v55 = vld [vmem:[%s17252_s7 + $0x1d90] sm:$0xff] }
 0x678   : > { %v18685_v8 = vadd.f32 %v13667_v39, %v13655_v60  ;;  %12922 = vmatprep.subr.bf16.mxu0 %v15617_v41  ;;  %v15632_v6 = vcombine.low %v6864_v15, %v6872_v7  ;;  %v15647_v19 = vcombine.high %v6879_v14, %v6887_v18  ;;  %v15649_v30 = vcombine.high %v6880_v13, %v6888_v62  ;;  %v6919_v42 = vld [vmem:[%s17252_s7 + $0x1dd0] sm:$0xff]  ;;  %v6912_v57 = vld [vmem:[%s17252_s7 + $0x1d98] sm:$0xff] }
 0x679   : > { %v18689_v12 = vadd.f32 %v13668_v1, %v13656_v63  ;;  %v15646_v41 = vcombine.low %v6879_v14, %v6887_v18  ;;  %v15663_v43 = vcombine.high %v6895_v35, %v6903_v36  ;;  %v15665_v45 = vcombine.high %v6896_v38, %v6904_v40  ;;  %v6920_v58 = vld [vmem:[%s17252_s7 + $0x1dd8] sm:$0xff]  ;;  %v6927_v29 = vld [vmem:[%s17252_s7 + $0x1e10] sm:$0xff] }
 0x67a   : > { %12751 = vmatpush1.bf16.msra.mxu1 %v15614_v22  ;;  %v15648_v22 = vcombine.low %v6880_v13, %v6888_v62  ;;  %v15662_v59 = vcombine.low %v6895_v35, %v6903_v36  ;;  %v15664_v61 = vcombine.low %v6896_v38, %v6904_v40  ;;  %v15679_v17 = vcombine.high %v6911_v55, %v6919_v42  ;;  %v6935_v2 = vld [vmem:[%s17252_s7 + $0x1e50] sm:$0xff]  ;;  %v6928_v3 = vld [vmem:[%s17252_s7 + $0x1e18] sm:$0xff] }
 0x67b   : > { %12923 = vmatpush1.bf16.msra.mxu0 %v15616_v5  ;;  %12752 = vmatprep.subr.bf16.mxu1 %v15631_v4  ;;  %v15681_v9 = vcombine.high %v6912_v57, %v6920_v58  ;;  %v6936_v11 = vld [vmem:[%s17252_s7 + $0x1e58] sm:$0xff]  ;;  %v15678_v60 = vcombine.low %v6911_v55, %v6919_v42  ;;  %v15680_v5 = vcombine.low %v6912_v57, %v6920_v58  ;;  %v6943_v39 = vld [vmem:[%s17252_s7 + $0x1e90] sm:$0xff]  ;;  %v5969_v58 = vld [vmem:[%s17252_s7 + $0x20] sm:$0xff] }
 0x67c   : > { %12924 = vmatprep.subr.bf16.mxu0 %v15633_v10  ;;  %v15695_v15 = vcombine.high %v6927_v29, %v6935_v2  ;;  %v15697_v7 = vcombine.high %v6928_v3, %v6936_v11  ;;  %v6951_v63 = vld [vmem:[%s17252_s7 + $0x1ed0] sm:$0xff]  ;;  %v6944_v1 = vld [vmem:[%s17252_s7 + $0x1e98] sm:$0xff]  ;;  %v15694_v10 = vcombine.low %v6927_v29, %v6935_v2  ;;  %v15696_v14 = vcombine.low %v6928_v3, %v6936_v11  ;;  %v5985_v11 = vld [vmem:[%s17252_s7 + $0xa0] sm:$0xff] }
 0x67d   : > { %v6952_v4 = vld [vmem:[%s17252_s7 + $0x1ed8] sm:$0xff]  ;;  %v15711_v18 = vcombine.high %v6943_v39, %v6951_v63  ;;  %v6959_v62 = vld [vmem:[%s17252_s7 + $0x1f10] sm:$0xff] }
 0x67e   : > { %12753 = vmatpush1.bf16.msra.mxu1 %v15630_v32  ;;  %v15713_v13 = vcombine.high %v6944_v1, %v6952_v4  ;;  %v6967_v32 = vld [vmem:[%s17252_s7 + $0x1f50] sm:$0xff]  ;;  %v15712_v35 = vcombine.low %v6944_v1, %v6952_v4  ;;  %v6001_v1 = vld [vmem:[%s17252_s7 + $0x120] sm:$0xff] }
 0x67f   : > { %12925 = vmatpush1.bf16.msra.mxu0 %v15632_v6  ;;  %12754 = vmatprep.subr.bf16.mxu1 %v15647_v19  ;;  %v6960_v6 = vld [vmem:[%s17252_s7 + $0x1f18] sm:$0xff]  ;;  %v15727_v36 = vcombine.high %v6959_v62, %v6967_v32  ;;  %v6975_v40 = vld [vmem:[%s17252_s7 + $0x1f90] sm:$0xff]  ;;  %v6009_v4 = vld [vmem:[%s17252_s7 + $0x160] sm:$0xff] }
 0x680   : > { %12926 = vmatprep.subr.bf16.mxu0 %v15649_v30  ;;  %v6968_v19 = vld [vmem:[%s17252_s7 + $0x1f58] sm:$0xff]  ;;  %v15710_v30 = vcombine.low %v6943_v39, %v6951_v63 }
 0x681   : > { %v15729_v38 = vcombine.high %v6960_v6, %v6968_v19  ;;  %v15728_v55 = vcombine.low %v6960_v6, %v6968_v19  ;;  %v6017_v19 = vld [vmem:[%s17252_s7 + $0x1a0] sm:$0xff] }
 0x682   : > { %12755 = vmatpush1.bf16.msra.mxu1 %v15646_v41  ;;  %v6983_v41 = vld [vmem:[%s17252_s7 + $0x1fd0] sm:$0xff] }
 0x683   : > { %12927 = vmatpush1.bf16.msra.mxu0 %v15648_v22  ;;  %12756 = vmatprep.subr.bf16.mxu1 %v15663_v43  ;;  %v6976_v22 = vld [vmem:[%s17252_s7 + $0x1f98] sm:$0xff]  ;;  %v15743_v42 = vcombine.high %v6975_v40, %v6983_v41 }
 0x684   : > { %12928 = vmatprep.subr.bf16.mxu0 %v15665_v45  ;;  %v6984_v43 = vld [vmem:[%s17252_s7 + $0x1fd8] sm:$0xff]  ;;  %v15726_v45 = vcombine.low %v6959_v62, %v6967_v32  ;;  %v14771_v32 = vcombine.high %v6001_v1, %v6009_v4 }
 0x685   : > { %v15745_v57 = vcombine.high %v6976_v22, %v6984_v43  ;;  %v15744_v29 = vcombine.low %v6976_v22, %v6984_v43  ;;  %v6033_v43 = vld [vmem:[%s17252_s7 + $0x220] sm:$0xff] }
 0x686   : > { %12757 = vmatpush1.bf16.msra.mxu1 %v15662_v59  ;;  %v5977_v59 = vld [vmem:[%s17252_s7 + $0x60] sm:$0xff] }
 0x687   : > { %12929 = vmatpush1.bf16.msra.mxu0 %v15664_v61  ;;  %12758 = vmatprep.subr.bf16.mxu1 %v15679_v17  ;;  %v5970_v61 = vld [vmem:[%s17252_s7 + $0x28] sm:$0xff]  ;;  %v14739_v2 = vcombine.high %v5969_v58, %v5977_v59 }
 0x688   : > { %12930 = vmatprep.subr.bf16.mxu0 %v15681_v9  ;;  %v5978_v17 = vld [vmem:[%s17252_s7 + $0x68] sm:$0xff]  ;;  %v15742_v9 = vcombine.low %v6975_v40, %v6983_v41 }
 0x689   : > { %v14741_v3 = vcombine.high %v5970_v61, %v5978_v17  ;;  %v14740_v39 = vcombine.low %v5970_v61, %v5978_v17  ;;  %v6049_v17 = vld [vmem:[%s17252_s7 + $0x2a0] sm:$0xff] }
 0x68a   : > { %12759 = vmatpush1.bf16.msra.mxu1 %v15678_v60  ;;  %v5993_v60 = vld [vmem:[%s17252_s7 + $0xe0] sm:$0xff] }
 0x68b   : > { %12931 = vmatpush1.bf16.msra.mxu0 %v15680_v5  ;;  %12760 = vmatprep.subr.bf16.mxu1 %v15695_v15  ;;  %v14738_v5 = vcombine.low %v5969_v58, %v5977_v59  ;;  %v5986_v15 = vld [vmem:[%s17252_s7 + $0xa8] sm:$0xff]  ;;  %v14755_v63 = vcombine.high %v5985_v11, %v5993_v60 }
 0x68c   : > { %12932 = vmatprep.subr.bf16.mxu0 %v15697_v7  ;;  %v5994_v7 = vld [vmem:[%s17252_s7 + $0xe8] sm:$0xff] }
 0x68d   : > { %v14756_v62 = vcombine.low %v5986_v15, %v5994_v7 }
 0x68e   : > { %12761 = vmatpush1.bf16.msra.mxu1 %v15694_v10  ;;  %v14757_v10 = vcombine.high %v5986_v15, %v5994_v7  ;;  %v6065_v15 = vld [vmem:[%s17252_s7 + $0x320] sm:$0xff] }
 0x68f   : > { %12933 = vmatpush1.bf16.msra.mxu0 %v15696_v14  ;;  %12762 = vmatprep.subr.bf16.mxu1 %v15711_v18  ;;  %v6002_v14 = vld [vmem:[%s17252_s7 + $0x128] sm:$0xff]  ;;  %v6073_v7 = vld [vmem:[%s17252_s7 + $0x360] sm:$0xff] }
 0x690   : > { %12934 = vmatprep.subr.bf16.mxu0 %v15713_v13  ;;  %v6010_v18 = vld [vmem:[%s17252_s7 + $0x168] sm:$0xff]  ;;  %v14754_v13 = vcombine.low %v5985_v11, %v5993_v60 }
 0x691   : > { %v14773_v6 = vcombine.high %v6002_v14, %v6010_v18  ;;  %v14772_v40 = vcombine.low %v6002_v14, %v6010_v18  ;;  %v6081_v18 = vld [vmem:[%s17252_s7 + $0x3a0] sm:$0xff] }
 0x692   : > { %12763 = vmatpush1.bf16.msra.mxu1 %v15710_v30  ;;  %v6025_v30 = vld [vmem:[%s17252_s7 + $0x1e0] sm:$0xff] }
 0x693   : > { %12935 = vmatpush1.bf16.msra.mxu0 %v15712_v35  ;;  %12764 = vmatprep.subr.bf16.mxu1 %v15727_v36  ;;  %v6018_v35 = vld [vmem:[%s17252_s7 + $0x1a8] sm:$0xff]  ;;  %v14787_v41 = vcombine.high %v6017_v19, %v6025_v30 }
 0x694   : > { %12936 = vmatprep.subr.bf16.mxu0 %v15729_v38  ;;  %v6026_v36 = vld [vmem:[%s17252_s7 + $0x1e8] sm:$0xff]  ;;  %v14770_v38 = vcombine.low %v6001_v1, %v6009_v4 }
 0x695   : > { %v14789_v22 = vcombine.high %v6018_v35, %v6026_v36  ;;  %v14788_v58 = vcombine.low %v6018_v35, %v6026_v36  ;;  %v6097_v36 = vld [vmem:[%s17252_s7 + $0x420] sm:$0xff] }
 0x696   : > { %12765 = vmatpush1.bf16.msra.mxu1 %v15726_v45  ;;  %v6041_v45 = vld [vmem:[%s17252_s7 + $0x260] sm:$0xff] }
 0x697   : > { %12937 = vmatpush1.bf16.msra.mxu0 %v15728_v55  ;;  %12766 = vmatprep.subr.bf16.mxu1 %v15743_v42  ;;  %v6034_v55 = vld [vmem:[%s17252_s7 + $0x228] sm:$0xff]  ;;  %v14803_v59 = vcombine.high %v6033_v43, %v6041_v45 }
 0x698   : > { %12938 = vmatprep.subr.bf16.mxu0 %v15745_v57  ;;  %v6042_v42 = vld [vmem:[%s17252_s7 + $0x268] sm:$0xff]  ;;  %v14786_v57 = vcombine.low %v6017_v19, %v6025_v30 }
 0x699   : > { %v14805_v61 = vcombine.high %v6034_v55, %v6042_v42  ;;  %v14804_v11 = vcombine.low %v6034_v55, %v6042_v42  ;;  %v6113_v42 = vld [vmem:[%s17252_s7 + $0x4a0] sm:$0xff] }
 0x69a   : > { %12767 = vmatpush1.bf16.msra.mxu1 %v15742_v9  ;;  %v6057_v9 = vld [vmem:[%s17252_s7 + $0x2e0] sm:$0xff] }
 0x69b   : > { %12939 = vmatpush1.bf16.msra.mxu0 %v15744_v29  ;;  %12951 = vmatprep.subr.bf16.mxu1 %v14739_v2  ;;  %v6050_v29 = vld [vmem:[%s17252_s7 + $0x2a8] sm:$0xff]  ;;  %v14819_v60 = vcombine.high %v6049_v17, %v6057_v9  ;;  %v14818_v1 = vcombine.low %v6049_v17, %v6057_v9 }
 0x69c   : > { %13123 = vmatprep.subr.bf16.mxu0 %v14741_v3  ;;  %v6058_v2 = vld [vmem:[%s17252_s7 + $0x2e8] sm:$0xff]  ;;  %v14802_v3 = vcombine.low %v6033_v43, %v6041_v45 }
 0x69d   : > { %12769 = vmatmul.mubr.bf16.vlgmr.msra.gmra.mrb[28].mxu1 %v17903_v46  ;;  %v14820_v4 = vcombine.low %v6050_v29, %v6058_v2 }
 0x69e   : > { %12941 = vmatmul.mubr.bf16.vlgmr.msra.gmra.mrb[32].mxu0 %v17903_v46  ;;  %12952 = vmatpush1.bf16.msra.mxu1 %v14738_v5  ;;  %v14821_v5 = vcombine.high %v6050_v29, %v6058_v2  ;;  %v6129_v2 = vld [vmem:[%s17252_s7 + $0x520] sm:$0xff] }
 0x69f   : > { %12983 = vmatprep.mubr.bf16.mxu1 %v17752_v49  ;;  %13124 = vmatpush1.bf16.msra.mxu0 %v14740_v39  ;;  %v6066_v39 = vld [vmem:[%s17252_s7 + $0x328] sm:$0xff] }
 0x6a0   : > { %13155 = vmatprep.mubr.bf16.mxu0 %v17752_v49  ;;  %12953 = vmatprep.subr.bf16.mxu1 %v14755_v63  ;;  %v6074_v63 = vld [vmem:[%s17252_s7 + $0x368] sm:$0xff] }
 0x6a1   : > { %13125 = vmatprep.subr.bf16.mxu0 %v14757_v10  ;;  %v14835_v10 = vcombine.high %v6065_v15, %v6073_v7  ;;  %v14837_v14 = vcombine.high %v6066_v39, %v6074_v63  ;;  %v14836_v19 = vcombine.low %v6066_v39, %v6074_v63  ;;  %v6145_v63 = vld [vmem:[%s17252_s7 + $0x5a0] sm:$0xff] }
 0x6a2   : > { %12954 = vmatpush1.bf16.msra.mxu1 %v14754_v13  ;;  %v6089_v13 = vld [vmem:[%s17252_s7 + $0x3e0] sm:$0xff] }
 0x6a3   : > { %13126 = vmatpush1.bf16.msra.mxu0 %v14756_v62  ;;  %12955 = vmatprep.subr.bf16.mxu1 %v14771_v32  ;;  %v6082_v62 = vld [vmem:[%s17252_s7 + $0x3a8] sm:$0xff]  ;;  %v14851_v30 = vcombine.high %v6081_v18, %v6089_v13 }
 0x6a4   : > { %13127 = vmatprep.subr.bf16.mxu0 %v14773_v6  ;;  %v6090_v32 = vld [vmem:[%s17252_s7 + $0x3e8] sm:$0xff]  ;;  %v14834_v6 = vcombine.low %v6065_v15, %v6073_v7 }
 0x6a5   : > { %v14853_v35 = vcombine.high %v6082_v62, %v6090_v32  ;;  %v14852_v43 = vcombine.low %v6082_v62, %v6090_v32  ;;  %v6161_v32 = vld [vmem:[%s17252_s7 + $0x620] sm:$0xff] }
 0x6a6   : > { %12956 = vmatpush1.bf16.msra.mxu1 %v14770_v38  ;;  %v6105_v38 = vld [vmem:[%s17252_s7 + $0x460] sm:$0xff] }
 0x6a7   : > { %13128 = vmatpush1.bf16.msra.mxu0 %v14772_v40  ;;  %12957 = vmatprep.subr.bf16.mxu1 %v14787_v41  ;;  %v6098_v40 = vld [vmem:[%s17252_s7 + $0x428] sm:$0xff]  ;;  %v14867_v45 = vcombine.high %v6097_v36, %v6105_v38 }
 0x6a8   : > { %13129 = vmatprep.subr.bf16.mxu0 %v14789_v22  ;;  %v6106_v41 = vld [vmem:[%s17252_s7 + $0x468] sm:$0xff]  ;;  %v14850_v22 = vcombine.low %v6081_v18, %v6089_v13 }
 0x6a9   : > { %v14869_v55 = vcombine.high %v6098_v40, %v6106_v41  ;;  %v14868_v17 = vcombine.low %v6098_v40, %v6106_v41  ;;  %v6177_v41 = vld [vmem:[%s17252_s7 + $0x6a0] sm:$0xff] }
 0x6aa   : > { %12958 = vmatpush1.bf16.msra.mxu1 %v14786_v57  ;;  %v6121_v57 = vld [vmem:[%s17252_s7 + $0x4e0] sm:$0xff] }
 0x6ab   : > { %13130 = vmatpush1.bf16.msra.mxu0 %v14788_v58  ;;  %12959 = vmatprep.subr.bf16.mxu1 %v14803_v59  ;;  %v6114_v58 = vld [vmem:[%s17252_s7 + $0x4a8] sm:$0xff]  ;;  %v14883_v9 = vcombine.high %v6113_v42, %v6121_v57 }
 0x6ac   : > { %13131 = vmatprep.subr.bf16.mxu0 %v14805_v61  ;;  %v6122_v59 = vld [vmem:[%s17252_s7 + $0x4e8] sm:$0xff]  ;;  %v14866_v61 = vcombine.low %v6097_v36, %v6105_v38 }
 0x6ad   : > { %v14885_v29 = vcombine.high %v6114_v58, %v6122_v59  ;;  %v14884_v15 = vcombine.low %v6114_v58, %v6122_v59  ;;  %v6193_v59 = vld [vmem:[%s17252_s7 + $0x720] sm:$0xff] }
 0x6ae   : > { %12960 = vmatpush1.bf16.msra.mxu1 %v14802_v3  ;;  %v6137_v3 = vld [vmem:[%s17252_s7 + $0x560] sm:$0xff] }
 0x6af   : > { %13132 = vmatpush1.bf16.msra.mxu0 %v14804_v11  ;;  %12961 = vmatprep.subr.bf16.mxu1 %v14819_v60  ;;  %v6130_v11 = vld [vmem:[%s17252_s7 + $0x528] sm:$0xff]  ;;  %v14899_v7 = vcombine.high %v6129_v2, %v6137_v3 }
 0x6b0   : > { %13133 = vmatprep.subr.bf16.mxu0 %v14821_v5  ;;  %v6138_v60 = vld [vmem:[%s17252_s7 + $0x568] sm:$0xff]  ;;  %v14882_v5 = vcombine.low %v6113_v42, %v6121_v57 }
 0x6b1   : > { %v14901_v39 = vcombine.high %v6130_v11, %v6138_v60  ;;  %v14900_v18 = vcombine.low %v6130_v11, %v6138_v60  ;;  %v6209_v60 = vld [vmem:[%s17252_s7 + $0x7a0] sm:$0xff] }
 0x6b2   : > { %12962 = vmatpush1.bf16.msra.mxu1 %v14818_v1  ;;  %v6153_v1 = vld [vmem:[%s17252_s7 + $0x5e0] sm:$0xff] }
 0x6b3   : > { %13134 = vmatpush1.bf16.msra.mxu0 %v14820_v4  ;;  %12963 = vmatprep.subr.bf16.mxu1 %v14835_v10  ;;  %v6146_v4 = vld [vmem:[%s17252_s7 + $0x5a8] sm:$0xff]  ;;  %v14915_v13 = vcombine.high %v6145_v63, %v6153_v1 }
 0x6b4   : > { %13135 = vmatprep.subr.bf16.mxu0 %v14837_v14  ;;  %v6154_v10 = vld [vmem:[%s17252_s7 + $0x5e8] sm:$0xff]  ;;  %v14898_v14 = vcombine.low %v6129_v2, %v6137_v3 }
 0x6b5   : > { %v14917_v62 = vcombine.high %v6146_v4, %v6154_v10  ;;  %v14916_v36 = vcombine.low %v6146_v4, %v6154_v10  ;;  %v6225_v10 = vld [vmem:[%s17252_s7 + $0x820] sm:$0xff] }
 0x6b6   : > { %12964 = vmatpush1.bf16.msra.mxu1 %v14834_v6  ;;  %v6169_v6 = vld [vmem:[%s17252_s7 + $0x660] sm:$0xff] }
 0x6b7   : > { %13136 = vmatpush1.bf16.msra.mxu0 %v14836_v19  ;;  %12965 = vmatprep.subr.bf16.mxu1 %v14851_v30  ;;  %v6162_v19 = vld [vmem:[%s17252_s7 + $0x628] sm:$0xff]  ;;  %v14931_v38 = vcombine.high %v6161_v32, %v6169_v6 }
 0x6b8   : > { %13137 = vmatprep.subr.bf16.mxu0 %v14853_v35  ;;  %v6170_v30 = vld [vmem:[%s17252_s7 + $0x668] sm:$0xff]  ;;  %v14914_v35 = vcombine.low %v6145_v63, %v6153_v1 }
 0x6b9   : > { %v14933_v40 = vcombine.high %v6162_v19, %v6170_v30  ;;  %v14932_v42 = vcombine.low %v6162_v19, %v6170_v30  ;;  %v6241_v30 = vld [vmem:[%s17252_s7 + $0x8a0] sm:$0xff] }
 0x6ba   : > { %12966 = vmatpush1.bf16.msra.mxu1 %v14850_v22  ;;  %v6185_v22 = vld [vmem:[%s17252_s7 + $0x6e0] sm:$0xff] }
 0x6bb   : > { %13138 = vmatpush1.bf16.msra.mxu0 %v14852_v43  ;;  %12967 = vmatprep.subr.bf16.mxu1 %v14867_v45  ;;  %v6178_v43 = vld [vmem:[%s17252_s7 + $0x6a8] sm:$0xff]  ;;  %v14947_v57 = vcombine.high %v6177_v41, %v6185_v22 }
 0x6bc   : > { %13139 = vmatprep.subr.bf16.mxu0 %v14869_v55  ;;  %v6186_v45 = vld [vmem:[%s17252_s7 + $0x6e8] sm:$0xff]  ;;  %v14930_v55 = vcombine.low %v6161_v32, %v6169_v6 }
 0x6bd   : > { %v14949_v58 = vcombine.high %v6178_v43, %v6186_v45  ;;  %v14948_v2 = vcombine.low %v6178_v43, %v6186_v45  ;;  %v6257_v43 = vld [vmem:[%s17252_s7 + $0x920] sm:$0xff] }
 0x6be   : > { %12968 = vmatpush1.bf16.msra.mxu1 %v14866_v61  ;;  %v6201_v61 = vld [vmem:[%s17252_s7 + $0x760] sm:$0xff] }
 0x6bf   : > { %13140 = vmatpush1.bf16.msra.mxu0 %v14868_v17  ;;  %12969 = vmatprep.subr.bf16.mxu1 %v14883_v9  ;;  %v6194_v17 = vld [vmem:[%s17252_s7 + $0x728] sm:$0xff]  ;;  %v14963_v3 = vcombine.high %v6193_v59, %v6201_v61  ;;  %v6265_v45 = vld [vmem:[%s17252_s7 + $0x960] sm:$0xff] }
 0x6c0   : > { %13141 = vmatprep.subr.bf16.mxu0 %v14885_v29  ;;  %v6202_v9 = vld [vmem:[%s17252_s7 + $0x768] sm:$0xff]  ;;  %v14946_v29 = vcombine.low %v6177_v41, %v6185_v22 }
 0x6c1   : > { %v14965_v11 = vcombine.high %v6194_v17, %v6202_v9  ;;  %v14964_v63 = vcombine.low %v6194_v17, %v6202_v9  ;;  %v6273_v9 = vld [vmem:[%s17252_s7 + $0x9a0] sm:$0xff] }
 0x6c2   : > { %12970 = vmatpush1.bf16.msra.mxu1 %v14882_v5  ;;  %v6217_v5 = vld [vmem:[%s17252_s7 + $0x7e0] sm:$0xff] }
 0x6c3   : > { %13142 = vmatpush1.bf16.msra.mxu0 %v14884_v15  ;;  %12971 = vmatprep.subr.bf16.mxu1 %v14899_v7  ;;  %v6210_v15 = vld [vmem:[%s17252_s7 + $0x7a8] sm:$0xff]  ;;  %v14979_v1 = vcombine.high %v6209_v60, %v6217_v5 }
 0x6c4   : > { %13143 = vmatprep.subr.bf16.mxu0 %v14901_v39  ;;  %v6218_v7 = vld [vmem:[%s17252_s7 + $0x7e8] sm:$0xff]  ;;  %v14962_v39 = vcombine.low %v6193_v59, %v6201_v61  ;;  %v15027_v61 = vcombine.high %v6257_v43, %v6265_v45 }
 0x6c5   : > { %v14981_v4 = vcombine.high %v6210_v15, %v6218_v7  ;;  %v14980_v32 = vcombine.low %v6210_v15, %v6218_v7  ;;  %v6289_v7 = vld [vmem:[%s17252_s7 + $0xa20] sm:$0xff] }
 0x6c6   : > { %12972 = vmatpush1.bf16.msra.mxu1 %v14898_v14  ;;  %v6233_v14 = vld [vmem:[%s17252_s7 + $0x860] sm:$0xff] }
 0x6c7   : > { %13144 = vmatpush1.bf16.msra.mxu0 %v14900_v18  ;;  %12973 = vmatprep.subr.bf16.mxu1 %v14915_v13  ;;  %v6226_v18 = vld [vmem:[%s17252_s7 + $0x828] sm:$0xff]  ;;  %v14995_v6 = vcombine.high %v6225_v10, %v6233_v14 }
 0x6c8   : > { %13145 = vmatprep.subr.bf16.mxu0 %v14917_v62  ;;  %v6234_v13 = vld [vmem:[%s17252_s7 + $0x868] sm:$0xff]  ;;  %v14978_v62 = vcombine.low %v6209_v60, %v6217_v5 }
 0x6c9   : > { %v14997_v19 = vcombine.high %v6226_v18, %v6234_v13  ;;  %v14996_v41 = vcombine.low %v6226_v18, %v6234_v13  ;;  %v6305_v13 = vld [vmem:[%s17252_s7 + $0xaa0] sm:$0xff] }
 0x6ca   : > { %12974 = vmatpush1.bf16.msra.mxu1 %v14914_v35  ;;  %v6249_v35 = vld [vmem:[%s17252_s7 + $0x8e0] sm:$0xff] }
 0x6cb   : > { %13146 = vmatpush1.bf16.msra.mxu0 %v14916_v36  ;;  %12975 = vmatprep.subr.bf16.mxu1 %v14931_v38  ;;  %v14994_v36 = vcombine.low %v6225_v10, %v6233_v14  ;;  %v6242_v38 = vld [vmem:[%s17252_s7 + $0x8a8] sm:$0xff]  ;;  %v15011_v22 = vcombine.high %v6241_v30, %v6249_v35 }
 0x6cc   : > { %13147 = vmatprep.subr.bf16.mxu0 %v14933_v40  ;;  %v6250_v40 = vld [vmem:[%s17252_s7 + $0x8e8] sm:$0xff] }
 0x6cd   : > { %v15012_v59 = vcombine.low %v6242_v38, %v6250_v40 }
 0x6ce   : > { %12976 = vmatpush1.bf16.msra.mxu1 %v14930_v55  ;;  %v15013_v55 = vcombine.high %v6242_v38, %v6250_v40  ;;  %v6321_v38 = vld [vmem:[%s17252_s7 + $0xb20] sm:$0xff] }
 0x6cf   : > { %13148 = vmatpush1.bf16.msra.mxu0 %v14932_v42  ;;  %12977 = vmatprep.subr.bf16.mxu1 %v14947_v57  ;;  %v6258_v42 = vld [vmem:[%s17252_s7 + $0x928] sm:$0xff]  ;;  %v6329_v40 = vld [vmem:[%s17252_s7 + $0xb60] sm:$0xff] }
 0x6d0   : > { %13149 = vmatprep.subr.bf16.mxu0 %v14949_v58  ;;  %v6266_v57 = vld [vmem:[%s17252_s7 + $0x968] sm:$0xff]  ;;  %v15010_v58 = vcombine.low %v6241_v30, %v6249_v35 }
 0x6d1   : > { %v15029_v17 = vcombine.high %v6258_v42, %v6266_v57  ;;  %v15028_v60 = vcombine.low %v6258_v42, %v6266_v57  ;;  %v6337_v57 = vld [vmem:[%s17252_s7 + $0xba0] sm:$0xff] }
 0x6d2   : > { %12978 = vmatpush1.bf16.msra.mxu1 %v14946_v29  ;;  %v6281_v29 = vld [vmem:[%s17252_s7 + $0x9e0] sm:$0xff] }
 0x6d3   : > { %13150 = vmatpush1.bf16.msra.mxu0 %v14948_v2  ;;  %12979 = vmatprep.subr.bf16.mxu1 %v14963_v3  ;;  %v6274_v2 = vld [vmem:[%s17252_s7 + $0x9a8] sm:$0xff]  ;;  %v15043_v5 = vcombine.high %v6273_v9, %v6281_v29 }
 0x6d4   : > { %13151 = vmatprep.subr.bf16.mxu0 %v14965_v11  ;;  %v6282_v3 = vld [vmem:[%s17252_s7 + $0x9e8] sm:$0xff]  ;;  %v15026_v11 = vcombine.low %v6257_v43, %v6265_v45 }
 0x6d5   : > { %v15045_v15 = vcombine.high %v6274_v2, %v6282_v3  ;;  %v15044_v10 = vcombine.low %v6274_v2, %v6282_v3  ;;  %v6353_v3 = vld [vmem:[%s17252_s7 + $0xc20] sm:$0xff] }
 0x6d6   : > { %12980 = vmatpush1.bf16.msra.mxu1 %v14962_v39  ;;  %v6297_v39 = vld [vmem:[%s17252_s7 + $0xa60] sm:$0xff] }
 0x6d7   : > { %13152 = vmatpush1.bf16.msra.mxu0 %v14964_v63  ;;  %12981 = vmatprep.subr.bf16.mxu1 %v14979_v1  ;;  %v6290_v63 = vld [vmem:[%s17252_s7 + $0xa28] sm:$0xff]  ;;  %v15059_v14 = vcombine.high %v6289_v7, %v6297_v39 }
 0x6d8   : > { %13153 = vmatprep.subr.bf16.mxu0 %v14981_v4  ;;  %v6298_v1 = vld [vmem:[%s17252_s7 + $0xa68] sm:$0xff]  ;;  %v15042_v4 = vcombine.low %v6273_v9, %v6281_v29 }
 0x6d9   : > { %v15061_v18 = vcombine.high %v6290_v63, %v6298_v1  ;;  %v15060_v30 = vcombine.low %v6290_v63, %v6298_v1  ;;  %v6369_v1 = vld [vmem:[%s17252_s7 + $0xca0] sm:$0xff] }
 0x6da   : > { %12982 = vmatpush1.bf16.msra.mxu1 %v14978_v62  ;;  %v6313_v62 = vld [vmem:[%s17252_s7 + $0xae0] sm:$0xff] }
 0x6db   : > { %13154 = vmatpush1.bf16.msra.mxu0 %v14980_v32  ;;  %12994 = vmatprep.subr.bf16.mxu1 %v14995_v6  ;;  %v6306_v32 = vld [vmem:[%s17252_s7 + $0xaa8] sm:$0xff]  ;;  %v15075_v35 = vcombine.high %v6305_v13, %v6313_v62  ;;  %v15074_v43 = vcombine.low %v6305_v13, %v6313_v62 }
 0x6dc   : > { %13166 = vmatprep.subr.bf16.mxu0 %v14997_v19  ;;  %v6314_v6 = vld [vmem:[%s17252_s7 + $0xae8] sm:$0xff]  ;;  %v15058_v19 = vcombine.low %v6289_v7, %v6297_v39 }
 0x6dd   : > { %12984 = vmatmul.mubr.bf16.vlgmr.msra.gmra.mrb[32].mxu1 %v17748_v47  ;;  %v15076_v45 = vcombine.low %v6306_v32, %v6314_v6 }
 0x6de   : > { %13156 = vmatmul.mubr.bf16.vlgmr.msra.gmra.mrb[36].mxu0 %v17748_v47  ;;  %12995 = vmatpush1.bf16.msra.mxu1 %v14994_v36  ;;  %v15077_v36 = vcombine.high %v6306_v32, %v6314_v6  ;;  %v6385_v6 = vld [vmem:[%s17252_s7 + $0xd20] sm:$0xff] }
 0x6df   : > { %13026 = vmatprep.mubr.bf16.mxu1 %v17754_v52  ;;  %13167 = vmatpush1.bf16.msra.mxu0 %v14996_v41  ;;  %v6322_v41 = vld [vmem:[%s17252_s7 + $0xb28] sm:$0xff] }
 0x6e0   : > { %13198 = vmatprep.mubr.bf16.mxu0 %v17754_v52  ;;  %12996 = vmatprep.subr.bf16.mxu1 %v15011_v22  ;;  %v6330_v22 = vld [vmem:[%s17252_s7 + $0xb68] sm:$0xff] }
 0x6e1   : > { %13168 = vmatprep.subr.bf16.mxu0 %v15013_v55  ;;  %v15091_v55 = vcombine.high %v6321_v38, %v6329_v40  ;;  %v15093_v42 = vcombine.high %v6322_v41, %v6330_v22  ;;  %v15092_v9 = vcombine.low %v6322_v41, %v6330_v22  ;;  %v6401_v22 = vld [vmem:[%s17252_s7 + $0xda0] sm:$0xff] }
 0x6e2   : > { %12997 = vmatpush1.bf16.msra.mxu1 %v15010_v58  ;;  %v6345_v58 = vld [vmem:[%s17252_s7 + $0xbe0] sm:$0xff] }
 0x6e3   : > { %13169 = vmatpush1.bf16.msra.mxu0 %v15012_v59  ;;  %12998 = vmatprep.subr.bf16.mxu1 %v15027_v61  ;;  %v6338_v59 = vld [vmem:[%s17252_s7 + $0xba8] sm:$0xff]  ;;  %v15107_v29 = vcombine.high %v6337_v57, %v6345_v58 }
 0x6e4   : > { %13170 = vmatprep.subr.bf16.mxu0 %v15029_v17  ;;  %v6346_v61 = vld [vmem:[%s17252_s7 + $0xbe8] sm:$0xff]  ;;  %v15090_v17 = vcombine.low %v6321_v38, %v6329_v40 }
 0x6e5   : > { %v15109_v2 = vcombine.high %v6338_v59, %v6346_v61  ;;  %v15108_v7 = vcombine.low %v6338_v59, %v6346_v61  ;;  %v6417_v61 = vld [vmem:[%s17252_s7 + $0xe20] sm:$0xff] }
 0x6e6   : > { %12999 = vmatpush1.bf16.msra.mxu1 %v15026_v11  ;;  %v6361_v11 = vld [vmem:[%s17252_s7 + $0xc60] sm:$0xff] }
 0x6e7   : > { %13171 = vmatpush1.bf16.msra.mxu0 %v15028_v60  ;;  %13000 = vmatprep.subr.bf16.mxu1 %v15043_v5  ;;  %v6354_v60 = vld [vmem:[%s17252_s7 + $0xc28] sm:$0xff]  ;;  %v15123_v39 = vcombine.high %v6353_v3, %v6361_v11 }
 0x6e8   : > { %13172 = vmatprep.subr.bf16.mxu0 %v15045_v15  ;;  %v6362_v5 = vld [vmem:[%s17252_s7 + $0xc68] sm:$0xff]  ;;  %v15106_v15 = vcombine.low %v6337_v57, %v6345_v58 }
 0x6e9   : > { %v15125_v63 = vcombine.high %v6354_v60, %v6362_v5  ;;  %v15124_v13 = vcombine.low %v6354_v60, %v6362_v5  ;;  %v6433_v5 = vld [vmem:[%s17252_s7 + $0xea0] sm:$0xff] }
 0x6ea   : > { %13001 = vmatpush1.bf16.msra.mxu1 %v15042_v4  ;;  %v6377_v4 = vld [vmem:[%s17252_s7 + $0xce0] sm:$0xff] }
 0x6eb   : > { %13173 = vmatpush1.bf16.msra.mxu0 %v15044_v10  ;;  %13002 = vmatprep.subr.bf16.mxu1 %v15059_v14  ;;  %v6370_v10 = vld [vmem:[%s17252_s7 + $0xca8] sm:$0xff]  ;;  %v15139_v62 = vcombine.high %v6369_v1, %v6377_v4 }
 0x6ec   : > { %13174 = vmatprep.subr.bf16.mxu0 %v15061_v18  ;;  %v6378_v14 = vld [vmem:[%s17252_s7 + $0xce8] sm:$0xff]  ;;  %v15122_v18 = vcombine.low %v6353_v3, %v6361_v11 }
 0x6ed   : > { %v15141_v32 = vcombine.high %v6370_v10, %v6378_v14  ;;  %v15140_v38 = vcombine.low %v6370_v10, %v6378_v14  ;;  %v6449_v14 = vld [vmem:[%s17252_s7 + $0xf20] sm:$0xff] }
 0x6ee   : > { %13003 = vmatpush1.bf16.msra.mxu1 %v15058_v19  ;;  %v6393_v19 = vld [vmem:[%s17252_s7 + $0xd60] sm:$0xff] }
 0x6ef   : > { %13175 = vmatpush1.bf16.msra.mxu0 %v15060_v30  ;;  %13004 = vmatprep.subr.bf16.mxu1 %v15075_v35  ;;  %v6386_v30 = vld [vmem:[%s17252_s7 + $0xd28] sm:$0xff]  ;;  %v15155_v40 = vcombine.high %v6385_v6, %v6393_v19 }
 0x6f0   : > { %13176 = vmatprep.subr.bf16.mxu0 %v15077_v36  ;;  %v6394_v35 = vld [vmem:[%s17252_s7 + $0xd68] sm:$0xff]  ;;  %v15138_v36 = vcombine.low %v6369_v1, %v6377_v4 }
 0x6f1   : > { %v15157_v41 = vcombine.high %v6386_v30, %v6394_v35  ;;  %v15156_v57 = vcombine.low %v6386_v30, %v6394_v35  ;;  %v6465_v35 = vld [vmem:[%s17252_s7 + $0xfa0] sm:$0xff] }
 0x6f2   : > { %13005 = vmatpush1.bf16.msra.mxu1 %v15074_v43  ;;  %v6409_v43 = vld [vmem:[%s17252_s7 + $0xde0] sm:$0xff] }
 0x6f3   : > { %13177 = vmatpush1.bf16.msra.mxu0 %v15076_v45  ;;  %13006 = vmatprep.subr.bf16.mxu1 %v15091_v55  ;;  %v6402_v45 = vld [vmem:[%s17252_s7 + $0xda8] sm:$0xff]  ;;  %v15171_v58 = vcombine.high %v6401_v22, %v6409_v43 }
 0x6f4   : > { %13178 = vmatprep.subr.bf16.mxu0 %v15093_v42  ;;  %v6410_v55 = vld [vmem:[%s17252_s7 + $0xde8] sm:$0xff]  ;;  %v15154_v42 = vcombine.low %v6385_v6, %v6393_v19 }
 0x6f5   : > { %v15173_v59 = vcombine.high %v6402_v45, %v6410_v55  ;;  %v15172_v3 = vcombine.low %v6402_v45, %v6410_v55  ;;  %v6481_v55 = vld [vmem:[%s17252_s7 + $0x1020] sm:$0xff] }
 0x6f6   : > { %13007 = vmatpush1.bf16.msra.mxu1 %v15090_v17  ;;  %v6425_v17 = vld [vmem:[%s17252_s7 + $0xe60] sm:$0xff] }
 0x6f7   : > { %13179 = vmatpush1.bf16.msra.mxu0 %v15092_v9  ;;  %13008 = vmatprep.subr.bf16.mxu1 %v15107_v29  ;;  %v6418_v9 = vld [vmem:[%s17252_s7 + $0xe28] sm:$0xff]  ;;  %v15187_v11 = vcombine.high %v6417_v61, %v6425_v17 }
 0x6f8   : > { %13180 = vmatprep.subr.bf16.mxu0 %v15109_v2  ;;  %v6426_v29 = vld [vmem:[%s17252_s7 + $0xe68] sm:$0xff]  ;;  %v15170_v2 = vcombine.low %v6401_v22, %v6409_v43 }
 0x6f9   : > { %v15189_v60 = vcombine.high %v6418_v9, %v6426_v29  ;;  %v15188_v1 = vcombine.low %v6418_v9, %v6426_v29  ;;  %v6497_v29 = vld [vmem:[%s17252_s7 + $0x10a0] sm:$0xff] }
 0x6fa   : > { %13009 = vmatpush1.bf16.msra.mxu1 %v15106_v15  ;;  %v6441_v15 = vld [vmem:[%s17252_s7 + $0xee0] sm:$0xff] }
 0x6fb   : > { %13181 = vmatpush1.bf16.msra.mxu0 %v15108_v7  ;;  %13010 = vmatprep.subr.bf16.mxu1 %v15123_v39  ;;  %v6434_v7 = vld [vmem:[%s17252_s7 + $0xea8] sm:$0xff]  ;;  %v15203_v4 = vcombine.high %v6433_v5, %v6441_v15 }
 0x6fc   : > { %13182 = vmatprep.subr.bf16.mxu0 %v15125_v63  ;;  %v6442_v39 = vld [vmem:[%s17252_s7 + $0xee8] sm:$0xff]  ;;  %v15186_v63 = vcombine.low %v6417_v61, %v6425_v17 }
 0x6fd   : > { %v15205_v10 = vcombine.high %v6434_v7, %v6442_v39  ;;  %v15204_v6 = vcombine.low %v6434_v7, %v6442_v39  ;;  %v6513_v7 = vld [vmem:[%s17252_s7 + $0x1120] sm:$0xff] }
 0x6fe   : > { %13011 = vmatpush1.bf16.msra.mxu1 %v15122_v18  ;;  %v6457_v18 = vld [vmem:[%s17252_s7 + $0xf60] sm:$0xff] }
 0x6ff   : > { %13183 = vmatpush1.bf16.msra.mxu0 %v15124_v13  ;;  %13012 = vmatprep.subr.bf16.mxu1 %v15139_v62  ;;  %v6450_v13 = vld [vmem:[%s17252_s7 + $0xf28] sm:$0xff]  ;;  %v15219_v19 = vcombine.high %v6449_v14, %v6457_v18  ;;  %v6521_v39 = vld [vmem:[%s17252_s7 + $0x1160] sm:$0xff] }
 0x700   : > { %13184 = vmatprep.subr.bf16.mxu0 %v15141_v32  ;;  %v6458_v62 = vld [vmem:[%s17252_s7 + $0xf68] sm:$0xff]  ;;  %v15202_v32 = vcombine.low %v6433_v5, %v6441_v15 }
 0x701   : > { %v15221_v30 = vcombine.high %v6450_v13, %v6458_v62  ;;  %v15220_v22 = vcombine.low %v6450_v13, %v6458_v62  ;;  %v6529_v62 = vld [vmem:[%s17252_s7 + $0x11a0] sm:$0xff] }
 0x702   : > { %13013 = vmatpush1.bf16.msra.mxu1 %v15138_v36  ;;  %v6473_v36 = vld [vmem:[%s17252_s7 + $0xfe0] sm:$0xff] }
 0x703   : > { %13185 = vmatpush1.bf16.msra.mxu0 %v15140_v38  ;;  %13014 = vmatprep.subr.bf16.mxu1 %v15155_v40  ;;  %v6466_v38 = vld [vmem:[%s17252_s7 + $0xfa8] sm:$0xff]  ;;  %v15235_v43 = vcombine.high %v6465_v35, %v6473_v36 }
 0x704   : > { %13186 = vmatprep.subr.bf16.mxu0 %v15157_v41  ;;  %v6474_v40 = vld [vmem:[%s17252_s7 + $0xfe8] sm:$0xff]  ;;  %v15218_v41 = vcombine.low %v6449_v14, %v6457_v18  ;;  %v15283_v18 = vcombine.high %v6513_v7, %v6521_v39 }
 0x705   : > { %v15237_v45 = vcombine.high %v6466_v38, %v6474_v40  ;;  %v15236_v61 = vcombine.low %v6466_v38, %v6474_v40  ;;  %v6545_v40 = vld [vmem:[%s17252_s7 + $0x1220] sm:$0xff] }
 0x706   : > { %13015 = vmatpush1.bf16.msra.mxu1 %v15154_v42  ;;  %v6489_v42 = vld [vmem:[%s17252_s7 + $0x1060] sm:$0xff] }
 0x707   : > { %13187 = vmatpush1.bf16.msra.mxu0 %v15156_v57  ;;  %13016 = vmatprep.subr.bf16.mxu1 %v15171_v58  ;;  %v6482_v57 = vld [vmem:[%s17252_s7 + $0x1028] sm:$0xff]  ;;  %v15251_v17 = vcombine.high %v6481_v55, %v6489_v42 }
 0x708   : > { %13188 = vmatprep.subr.bf16.mxu0 %v15173_v59  ;;  %v6490_v58 = vld [vmem:[%s17252_s7 + $0x1068] sm:$0xff]  ;;  %v15234_v59 = vcombine.low %v6465_v35, %v6473_v36 }
 0x709   : > { %v15253_v9 = vcombine.high %v6482_v57, %v6490_v58  ;;  %v15252_v5 = vcombine.low %v6482_v57, %v6490_v58  ;;  %v6561_v58 = vld [vmem:[%s17252_s7 + $0x12a0] sm:$0xff] }
 0x70a   : > { %13017 = vmatpush1.bf16.msra.mxu1 %v15170_v2  ;;  %v6505_v2 = vld [vmem:[%s17252_s7 + $0x10e0] sm:$0xff] }
 0x70b   : > { %13189 = vmatpush1.bf16.msra.mxu0 %v15172_v3  ;;  %13018 = vmatprep.subr.bf16.mxu1 %v15187_v11  ;;  %v15250_v3 = vcombine.low %v6481_v55, %v6489_v42  ;;  %v6498_v11 = vld [vmem:[%s17252_s7 + $0x10a8] sm:$0xff]  ;;  %v15267_v15 = vcombine.high %v6497_v29, %v6505_v2 }
 0x70c   : > { %13190 = vmatprep.subr.bf16.mxu0 %v15189_v60  ;;  %v6506_v60 = vld [vmem:[%s17252_s7 + $0x10e8] sm:$0xff] }
 0x70d   : > { %v15268_v14 = vcombine.low %v6498_v11, %v6506_v60 }
 0x70e   : > { %13019 = vmatpush1.bf16.msra.mxu1 %v15186_v63  ;;  %v15269_v63 = vcombine.high %v6498_v11, %v6506_v60  ;;  %v6577_v11 = vld [vmem:[%s17252_s7 + $0x1320] sm:$0xff] }
 0x70f   : > { %13191 = vmatpush1.bf16.msra.mxu0 %v15188_v1  ;;  %13020 = vmatprep.subr.bf16.mxu1 %v15203_v4  ;;  %v6514_v1 = vld [vmem:[%s17252_s7 + $0x1128] sm:$0xff]  ;;  %v6585_v60 = vld [vmem:[%s17252_s7 + $0x1360] sm:$0xff] }
 0x710   : > { %13192 = vmatprep.subr.bf16.mxu0 %v15205_v10  ;;  %v6522_v4 = vld [vmem:[%s17252_s7 + $0x1168] sm:$0xff]  ;;  %v15266_v10 = vcombine.low %v6497_v29, %v6505_v2 }
 0x711   : > { %v15285_v13 = vcombine.high %v6514_v1, %v6522_v4  ;;  %v15284_v35 = vcombine.low %v6514_v1, %v6522_v4  ;;  %v6593_v4 = vld [vmem:[%s17252_s7 + $0x13a0] sm:$0xff] }
 0x712   : > { %13021 = vmatpush1.bf16.msra.mxu1 %v15202_v32  ;;  %v6537_v32 = vld [vmem:[%s17252_s7 + $0x11e0] sm:$0xff] }
 0x713   : > { %13193 = vmatpush1.bf16.msra.mxu0 %v15204_v6  ;;  %13022 = vmatprep.subr.bf16.mxu1 %v15219_v19  ;;  %v6530_v6 = vld [vmem:[%s17252_s7 + $0x11a8] sm:$0xff]  ;;  %v15299_v36 = vcombine.high %v6529_v62, %v6537_v32 }
 0x714   : > { %13194 = vmatprep.subr.bf16.mxu0 %v15221_v30  ;;  %v6538_v19 = vld [vmem:[%s17252_s7 + $0x11e8] sm:$0xff]  ;;  %v15282_v30 = vcombine.low %v6513_v7, %v6521_v39 }
 0x715   : > { %v15301_v38 = vcombine.high %v6530_v6, %v6538_v19  ;;  %v15300_v55 = vcombine.low %v6530_v6, %v6538_v19  ;;  %v6609_v19 = vld [vmem:[%s17252_s7 + $0x1420] sm:$0xff] }
 0x716   : > { %13023 = vmatpush1.bf16.msra.mxu1 %v15218_v41  ;;  %v6553_v41 = vld [vmem:[%s17252_s7 + $0x1260] sm:$0xff] }
 0x717   : > { %13195 = vmatpush1.bf16.msra.mxu0 %v15220_v22  ;;  %13024 = vmatprep.subr.bf16.mxu1 %v15235_v43  ;;  %v6546_v22 = vld [vmem:[%s17252_s7 + $0x1228] sm:$0xff]  ;;  %v15315_v42 = vcombine.high %v6545_v40, %v6553_v41 }
 0x718   : > { %13196 = vmatprep.subr.bf16.mxu0 %v15237_v45  ;;  %v6554_v43 = vld [vmem:[%s17252_s7 + $0x1268] sm:$0xff]  ;;  %v15298_v45 = vcombine.low %v6529_v62, %v6537_v32 }
 0x719   : > { %v15317_v57 = vcombine.high %v6546_v22, %v6554_v43  ;;  %v15316_v29 = vcombine.low %v6546_v22, %v6554_v43  ;;  %v6625_v43 = vld [vmem:[%s17252_s7 + $0x14a0] sm:$0xff] }
 0x71a   : > { %13025 = vmatpush1.bf16.msra.mxu1 %v15234_v59  ;;  %v6569_v59 = vld [vmem:[%s17252_s7 + $0x12e0] sm:$0xff] }
 0x71b   : > { %13197 = vmatpush1.bf16.msra.mxu0 %v15236_v61  ;;  %13037 = vmatprep.subr.bf16.mxu1 %v15251_v17  ;;  %v6562_v61 = vld [vmem:[%s17252_s7 + $0x12a8] sm:$0xff]  ;;  %v15331_v2 = vcombine.high %v6561_v58, %v6569_v59  ;;  %v15330_v7 = vcombine.low %v6561_v58, %v6569_v59 }
 0x71c   : > { %13209 = vmatprep.subr.bf16.mxu0 %v15253_v9  ;;  %v6570_v17 = vld [vmem:[%s17252_s7 + $0x12e8] sm:$0xff]  ;;  %v15314_v9 = vcombine.low %v6545_v40, %v6553_v41 }
 0x71d   : > { %13027 = vmatmul.mubr.bf16.vlgmr.msra.gmra.mrb[32].mxu1 %v17750_v48  ;;  %v15332_v39 = vcombine.low %v6562_v61, %v6570_v17 }
 0x71e   : > { %13199 = vmatmul.mubr.bf16.vlgmr.msra.gmra.mrb[36].mxu0 %v17750_v48  ;;  %13038 = vmatpush1.bf16.msra.mxu1 %v15250_v3  ;;  %v15333_v3 = vcombine.high %v6562_v61, %v6570_v17  ;;  %v6641_v17 = vld [vmem:[%s17252_s7 + $0x1520] sm:$0xff] }
 0x71f   : > { %13069 = vmatprep.mubr.bf16.mxu1 %v17905_v53  ;;  %13210 = vmatpush1.bf16.msra.mxu0 %v15252_v5  ;;  %v6578_v5 = vld [vmem:[%s17252_s7 + $0x1328] sm:$0xff] }
 0x720   : > { %13241 = vmatprep.mubr.bf16.mxu0 %v17905_v53  ;;  %13039 = vmatprep.subr.bf16.mxu1 %v15267_v15  ;;  %v6586_v15 = vld [vmem:[%s17252_s7 + $0x1368] sm:$0xff] }
 0x721   : > { %13211 = vmatprep.subr.bf16.mxu0 %v15269_v63  ;;  %v15347_v63 = vcombine.high %v6577_v11, %v6585_v60  ;;  %v15349_v1 = vcombine.high %v6578_v5, %v6586_v15  ;;  %v15348_v62 = vcombine.low %v6578_v5, %v6586_v15  ;;  %v6657_v15 = vld [vmem:[%s17252_s7 + $0x15a0] sm:$0xff] }
 0x722   : > { %13040 = vmatpush1.bf16.msra.mxu1 %v15266_v10  ;;  %v6601_v10 = vld [vmem:[%s17252_s7 + $0x13e0] sm:$0xff] }
 0x723   : > { %13212 = vmatpush1.bf16.msra.mxu0 %v15268_v14  ;;  %13041 = vmatprep.subr.bf16.mxu1 %v15283_v18  ;;  %v6594_v14 = vld [vmem:[%s17252_s7 + $0x13a8] sm:$0xff]  ;;  %v15363_v32 = vcombine.high %v6593_v4, %v6601_v10 }
 0x724   : > { %13213 = vmatprep.subr.bf16.mxu0 %v15285_v13  ;;  %v6602_v18 = vld [vmem:[%s17252_s7 + $0x13e8] sm:$0xff]  ;;  %v15346_v13 = vcombine.low %v6577_v11, %v6585_v60 }
 0x725   : > { %v15365_v6 = vcombine.high %v6594_v14, %v6602_v18  ;;  %v15364_v40 = vcombine.low %v6594_v14, %v6602_v18  ;;  %v6673_v18 = vld [vmem:[%s17252_s7 + $0x1620] sm:$0xff] }
 0x726   : > { %13042 = vmatpush1.bf16.msra.mxu1 %v15282_v30  ;;  %v6617_v30 = vld [vmem:[%s17252_s7 + $0x1460] sm:$0xff] }
 0x727   : > { %13214 = vmatpush1.bf16.msra.mxu0 %v15284_v35  ;;  %13043 = vmatprep.subr.bf16.mxu1 %v15299_v36  ;;  %v6610_v35 = vld [vmem:[%s17252_s7 + $0x1428] sm:$0xff]  ;;  %v15379_v41 = vcombine.high %v6609_v19, %v6617_v30 }
 0x728   : > { %13215 = vmatprep.subr.bf16.mxu0 %v15301_v38  ;;  %v6618_v36 = vld [vmem:[%s17252_s7 + $0x1468] sm:$0xff]  ;;  %v15362_v38 = vcombine.low %v6593_v4, %v6601_v10 }
 0x729   : > { %v15381_v22 = vcombine.high %v6610_v35, %v6618_v36  ;;  %v15380_v58 = vcombine.low %v6610_v35, %v6618_v36  ;;  %v6689_v36 = vld [vmem:[%s17252_s7 + $0x16a0] sm:$0xff] }
 0x72a   : > { %13044 = vmatpush1.bf16.msra.mxu1 %v15298_v45  ;;  %v6633_v45 = vld [vmem:[%s17252_s7 + $0x14e0] sm:$0xff] }
 0x72b   : > { %13216 = vmatpush1.bf16.msra.mxu0 %v15300_v55  ;;  %13045 = vmatprep.subr.bf16.mxu1 %v15315_v42  ;;  %v6626_v55 = vld [vmem:[%s17252_s7 + $0x14a8] sm:$0xff]  ;;  %v15395_v59 = vcombine.high %v6625_v43, %v6633_v45 }
 0x72c   : > { %13217 = vmatprep.subr.bf16.mxu0 %v15317_v57  ;;  %v6634_v42 = vld [vmem:[%s17252_s7 + $0x14e8] sm:$0xff]  ;;  %v15378_v57 = vcombine.low %v6609_v19, %v6617_v30 }
 0x72d   : > { %v15397_v61 = vcombine.high %v6626_v55, %v6634_v42  ;;  %v15396_v11 = vcombine.low %v6626_v55, %v6634_v42  ;;  %v6705_v42 = vld [vmem:[%s17252_s7 + $0x1720] sm:$0xff] }
 0x72e   : > { %13046 = vmatpush1.bf16.msra.mxu1 %v15314_v9  ;;  %v6649_v9 = vld [vmem:[%s17252_s7 + $0x1560] sm:$0xff] }
 0x72f   : > { %13218 = vmatpush1.bf16.msra.mxu0 %v15316_v29  ;;  %13047 = vmatprep.subr.bf16.mxu1 %v15331_v2  ;;  %v6642_v29 = vld [vmem:[%s17252_s7 + $0x1528] sm:$0xff]  ;;  %v15411_v60 = vcombine.high %v6641_v17, %v6649_v9 }
 0x730   : > { %13219 = vmatprep.subr.bf16.mxu0 %v15333_v3  ;;  %v6650_v2 = vld [vmem:[%s17252_s7 + $0x1568] sm:$0xff]  ;;  %v15394_v3 = vcombine.low %v6625_v43, %v6633_v45 }
 0x731   : > { %v15413_v5 = vcombine.high %v6642_v29, %v6650_v2  ;;  %v15412_v4 = vcombine.low %v6642_v29, %v6650_v2  ;;  %v6721_v2 = vld [vmem:[%s17252_s7 + $0x17a0] sm:$0xff] }
 0x732   : > { %13048 = vmatpush1.bf16.msra.mxu1 %v15330_v7  ;;  %v6665_v7 = vld [vmem:[%s17252_s7 + $0x15e0] sm:$0xff] }
 0x733   : > { %13220 = vmatpush1.bf16.msra.mxu0 %v15332_v39  ;;  %13049 = vmatprep.subr.bf16.mxu1 %v15347_v63  ;;  %v6658_v39 = vld [vmem:[%s17252_s7 + $0x15a8] sm:$0xff]  ;;  %v15427_v10 = vcombine.high %v6657_v15, %v6665_v7 }
 0x734   : > { %13221 = vmatprep.subr.bf16.mxu0 %v15349_v1  ;;  %v6666_v63 = vld [vmem:[%s17252_s7 + $0x15e8] sm:$0xff]  ;;  %v15410_v1 = vcombine.low %v6641_v17, %v6649_v9 }
 0x735   : > { %v15429_v14 = vcombine.high %v6658_v39, %v6666_v63  ;;  %v15428_v19 = vcombine.low %v6658_v39, %v6666_v63  ;;  %v6737_v63 = vld [vmem:[%s17252_s7 + $0x1820] sm:$0xff] }
 0x736   : > { %13050 = vmatpush1.bf16.msra.mxu1 %v15346_v13  ;;  %v6681_v13 = vld [vmem:[%s17252_s7 + $0x1660] sm:$0xff] }
 0x737   : > { %13222 = vmatpush1.bf16.msra.mxu0 %v15348_v62  ;;  %13051 = vmatprep.subr.bf16.mxu1 %v15363_v32  ;;  %v6674_v62 = vld [vmem:[%s17252_s7 + $0x1628] sm:$0xff]  ;;  %v15443_v30 = vcombine.high %v6673_v18, %v6681_v13 }
 0x738   : > { %13223 = vmatprep.subr.bf16.mxu0 %v15365_v6  ;;  %v6682_v32 = vld [vmem:[%s17252_s7 + $0x1668] sm:$0xff]  ;;  %v15426_v6 = vcombine.low %v6657_v15, %v6665_v7 }
 0x739   : > { %v15445_v35 = vcombine.high %v6674_v62, %v6682_v32  ;;  %v15444_v43 = vcombine.low %v6674_v62, %v6682_v32  ;;  %v6753_v32 = vld [vmem:[%s17252_s7 + $0x18a0] sm:$0xff] }
 0x73a   : > { %13052 = vmatpush1.bf16.msra.mxu1 %v15362_v38  ;;  %v6697_v38 = vld [vmem:[%s17252_s7 + $0x16e0] sm:$0xff] }
 0x73b   : > { %13224 = vmatpush1.bf16.msra.mxu0 %v15364_v40  ;;  %13053 = vmatprep.subr.bf16.mxu1 %v15379_v41  ;;  %v6690_v40 = vld [vmem:[%s17252_s7 + $0x16a8] sm:$0xff]  ;;  %v15459_v45 = vcombine.high %v6689_v36, %v6697_v38 }
 0x73c   : > { %13225 = vmatprep.subr.bf16.mxu0 %v15381_v22  ;;  %v6698_v41 = vld [vmem:[%s17252_s7 + $0x16e8] sm:$0xff]  ;;  %v15442_v22 = vcombine.low %v6673_v18, %v6681_v13 }
 0x73d   : > { %v15461_v55 = vcombine.high %v6690_v40, %v6698_v41  ;;  %v15460_v17 = vcombine.low %v6690_v40, %v6698_v41  ;;  %v6769_v40 = vld [vmem:[%s17252_s7 + $0x1920] sm:$0xff] }
 0x73e   : > { %13054 = vmatpush1.bf16.msra.mxu1 %v15378_v57  ;;  %v6713_v57 = vld [vmem:[%s17252_s7 + $0x1760] sm:$0xff] }
 0x73f   : > { %13226 = vmatpush1.bf16.msra.mxu0 %v15380_v58  ;;  %13055 = vmatprep.subr.bf16.mxu1 %v15395_v59  ;;  %v6706_v58 = vld [vmem:[%s17252_s7 + $0x1728] sm:$0xff]  ;;  %v15475_v9 = vcombine.high %v6705_v42, %v6713_v57  ;;  %v6777_v41 = vld [vmem:[%s17252_s7 + $0x1960] sm:$0xff] }
 0x740   : > { %13227 = vmatprep.subr.bf16.mxu0 %v15397_v61  ;;  %v6714_v59 = vld [vmem:[%s17252_s7 + $0x1768] sm:$0xff]  ;;  %v15458_v61 = vcombine.low %v6689_v36, %v6697_v38 }
 0x741   : > { %v15477_v29 = vcombine.high %v6706_v58, %v6714_v59  ;;  %v15476_v15 = vcombine.low %v6706_v58, %v6714_v59  ;;  %v6785_v59 = vld [vmem:[%s17252_s7 + $0x19a0] sm:$0xff] }
 0x742   : > { %13056 = vmatpush1.bf16.msra.mxu1 %v15394_v3  ;;  %v6729_v3 = vld [vmem:[%s17252_s7 + $0x17e0] sm:$0xff] }
 0x743   : > { %13228 = vmatpush1.bf16.msra.mxu0 %v15396_v11  ;;  %13057 = vmatprep.subr.bf16.mxu1 %v15411_v60  ;;  %v6722_v11 = vld [vmem:[%s17252_s7 + $0x17a8] sm:$0xff]  ;;  %v15491_v7 = vcombine.high %v6721_v2, %v6729_v3 }
 0x744   : > { %13229 = vmatprep.subr.bf16.mxu0 %v15413_v5  ;;  %v6730_v60 = vld [vmem:[%s17252_s7 + $0x17e8] sm:$0xff]  ;;  %v15474_v5 = vcombine.low %v6705_v42, %v6713_v57  ;;  %v15539_v57 = vcombine.high %v6769_v40, %v6777_v41 }
 0x745   : > { %v15493_v39 = vcombine.high %v6722_v11, %v6730_v60  ;;  %v15492_v18 = vcombine.low %v6722_v11, %v6730_v60  ;;  %v6801_v60 = vld [vmem:[%s17252_s7 + $0x1a20] sm:$0xff] }
 0x746   : > { %13058 = vmatpush1.bf16.msra.mxu1 %v15410_v1  ;;  %v6745_v1 = vld [vmem:[%s17252_s7 + $0x1860] sm:$0xff] }
 0x747   : > { %13230 = vmatpush1.bf16.msra.mxu0 %v15412_v4  ;;  %13059 = vmatprep.subr.bf16.mxu1 %v15427_v10  ;;  %v6738_v4 = vld [vmem:[%s17252_s7 + $0x1828] sm:$0xff]  ;;  %v15507_v13 = vcombine.high %v6737_v63, %v6745_v1 }
 0x748   : > { %13231 = vmatprep.subr.bf16.mxu0 %v15429_v14  ;;  %v6746_v10 = vld [vmem:[%s17252_s7 + $0x1868] sm:$0xff]  ;;  %v15490_v14 = vcombine.low %v6721_v2, %v6729_v3 }
 0x749   : > { %v15509_v62 = vcombine.high %v6738_v4, %v6746_v10  ;;  %v15508_v36 = vcombine.low %v6738_v4, %v6746_v10 }
 0x74a   : > { %13060 = vmatpush1.bf16.msra.mxu1 %v15426_v6  ;;  %v6761_v6 = vld [vmem:[%s17252_s7 + $0x18e0] sm:$0xff] }
 0x74b   : > { %13232 = vmatpush1.bf16.msra.mxu0 %v15428_v19  ;;  %13061 = vmatprep.subr.bf16.mxu1 %v15443_v30  ;;  %v15506_v19 = vcombine.low %v6737_v63, %v6745_v1  ;;  %v6754_v30 = vld [vmem:[%s17252_s7 + $0x18a8] sm:$0xff]  ;;  %v15523_v38 = vcombine.high %v6753_v32, %v6761_v6 }
 0x74c   : > { %13233 = vmatprep.subr.bf16.mxu0 %v15445_v35  ;;  %v6762_v35 = vld [vmem:[%s17252_s7 + $0x18e8] sm:$0xff] }
 0x74d   : > { %v15524_v42 = vcombine.low %v6754_v30, %v6762_v35 }
 0x74e   : > { %13062 = vmatpush1.bf16.msra.mxu1 %v15442_v22  ;;  %v15525_v22 = vcombine.high %v6754_v30, %v6762_v35  ;;  %v13671_v35 = vpop.permute.xlu0 %13670 }
 0x74f   : > { %13234 = vmatpush1.bf16.msra.mxu0 %v15444_v43  ;;  %13063 = vmatprep.subr.bf16.mxu1 %v15459_v45  ;;  %v6770_v43 = vld [vmem:[%s17252_s7 + $0x1928] sm:$0xff] }
 0x750   : > { %13235 = vmatprep.subr.bf16.mxu0 %v15461_v55  ;;  %v6778_v45 = vld [vmem:[%s17252_s7 + $0x1968] sm:$0xff]  ;;  %v15522_v55 = vcombine.low %v6753_v32, %v6761_v6 }
 0x751   : > { %v15541_v58 = vcombine.high %v6770_v43, %v6778_v45  ;;  %v15540_v2 = vcombine.low %v6770_v43, %v6778_v45  ;;  %v18952_v6 = vld [vmem:[%s17252_s7 + $0x1aa8] sm:$0xff]  ;;  %v18960_v45 = vld [vmem:[%s17252_s7 + $0x1b20] sm:$0xff] }
 0x752   : > { %13064 = vmatpush1.bf16.msra.mxu1 %v15458_v61  ;;  %v6793_v61 = vld [vmem:[%s17252_s7 + $0x19e0] sm:$0xff] }
 0x753   : > { %13236 = vmatpush1.bf16.msra.mxu0 %v15460_v17  ;;  %13065 = vmatprep.subr.bf16.mxu1 %v15475_v9  ;;  %v6786_v17 = vld [vmem:[%s17252_s7 + $0x19a8] sm:$0xff]  ;;  %v15555_v3 = vcombine.high %v6785_v59, %v6793_v61  ;;  %v15554_v1 = vcombine.low %v6785_v59, %v6793_v61  ;;  %v16697_v61 = vld [vmem:[%s19476_s29] sm:$0xff] }
 0x754   : > { %13237 = vmatprep.subr.bf16.mxu0 %v15477_v29  ;;  %v6794_v9 = vld [vmem:[%s17252_s7 + $0x19e8] sm:$0xff]  ;;  %v15538_v29 = vcombine.low %v6769_v40, %v6777_v41 }
 0x755   : > { %v15557_v11 = vcombine.high %v6786_v17, %v6794_v9  ;;  %v15556_v4 = vcombine.low %v6786_v17, %v6794_v9  ;;  %v18970_v59 = vld [vmem:[%s17252_s7 + $0x1b68] sm:$0xff] }
 0x756   : > { %13066 = vmatpush1.bf16.msra.mxu1 %v15474_v5  ;;  %v6809_v5 = vld [vmem:[%s17252_s7 + $0x1a60] sm:$0xff] }
 0x757   : > { %13238 = vmatpush1.bf16.msra.mxu0 %v15476_v15  ;;  %13067 = vmatprep.subr.bf16.mxu1 %v15491_v7  ;;  %v6802_v15 = vld [vmem:[%s17252_s7 + $0x1a28] sm:$0xff]  ;;  %v15571_v10 = vcombine.high %v6801_v60, %v6809_v5  ;;  %v15570_v30 = vcombine.low %v6801_v60, %v6809_v5 }
 0x758   : > { %13239 = vmatprep.subr.bf16.mxu0 %v15493_v39  ;;  %v6810_v7 = vld [vmem:[%s17252_s7 + $0x1a68] sm:$0xff]  ;;  %v16696_v39 = vld [vmem:[%s18587_s1] sm:$0xff] }
 0x759   : > { %v6992_v63 = vunpack.c.h.bf16 %v16696_v39  ;;  %v15572_v40 = vcombine.low %v6802_v15, %v6810_v7  ;;  %v18991_v39 = vld [vmem:[%s17252_s7 + $0x1be8] sm:$0xff] }
 0x75a   : > { %13068 = vmatpush1.bf16.msra.mxu1 %v15490_v14  ;;  %v15573_v14 = vcombine.high %v6802_v15, %v6810_v7  ;;  %v18988_v7 = vld [vmem:[%s17252_s7 + $0x1ba8] sm:$0xff] }
 0x75b   : > { %13240 = vmatpush1.bf16.msra.mxu0 %v15492_v18  ;;  %13080 = vmatprep.subr.bf16.mxu1 %v15507_v13  ;;  %v6817_v18 = vld [vmem:[%s17252_s7 + $0x1aa0] sm:$0xff]  ;;  %v7018_v32 = vrot.slane %v6992_v63, %v17345_v20  ;;  %v7030_v41 = vrot.slane %v6992_v63, %v17442_v51 }
 0x75c   : > { %13252 = vmatprep.subr.bf16.mxu0 %v15509_v62  ;;  %v6825_v13 = vld [vmem:[%s17252_s7 + $0x1ae0] sm:$0xff]  ;;  %v18948_v62 = vpop.permute.xlu1 %13674 }
 0x75d   : > { %13070 = vmatmul.mubr.bf16.vlgmr.msra.gmra.mrb[32].mxu1 %v17901_v44 }
 0x75e   : > { %13242 = vmatmul.mubr.bf16.vlgmr.msra.gmra.mrb[36].mxu0 %v17901_v44  ;;  %13081 = vmatpush1.bf16.msra.mxu1 %v15506_v19  ;;  %v6826_v19 = vld [vmem:[%s17252_s7 + $0x1ae8] sm:$0xff] }
 0x75f   : > { %13112 = vmatprep.mubr.bf16.mxu1 %v17909_v56  ;;  %13253 = vmatpush1.bf16.msra.mxu0 %v15508_v36  ;;  %v7026_v36 = vrot.slane %v6992_v63, %v17439_v50  ;;  %v15589_v43 = vcombine.high %v18952_v6, %v6826_v19  ;;  %v15588_v60 = vcombine.low %v18952_v6, %v6826_v19 }
 0x760   : > { %13284 = vmatprep.mubr.bf16.mxu0 %v17909_v56  ;;  %13082 = vmatprep.subr.bf16.mxu1 %v15523_v38  ;;  %v7022_v38 = vrot.slane %v6992_v63, %v17348_v21  ;;  %v13683_v5 = vpop.permute.xlu1 %13682 }
 0x761   : > { %13254 = vmatprep.subr.bf16.mxu0 %v15525_v22  ;;  %v15587_v22 = vcombine.high %v6817_v18, %v6825_v13  ;;  %v7106_v17 = vrot.slane %v7026_v36, %v17345_v20  ;;  %v16930_v36 = vmov 5  }
 0x762   : > { %13083 = vmatpush1.bf16.msra.mxu1 %v15522_v55  ;;  %v18963_v55 = vld [vmem:[%s17252_s7 + $0x1b60] sm:$0xff]  ;;  %v7102_v9 = vrot.slane %v7022_v38, %v17345_v20  ;;  %16143 = vset.pattern.permute.xlu0 %v16930_v36 }
 0x763   : > { %13255 = vmatpush1.bf16.msra.mxu0 %v15524_v42  ;;  %13084 = vmatprep.subr.bf16.mxu1 %v15539_v57  ;;  %v16929_v42 = vmov 4   ;;  %v7098_v57 = vrot.slane %v7018_v32, %v17345_v20  ;;  %v15603_v15 = vcombine.high %v18960_v45, %v18963_v55 }
 0x764   : > { %13256 = vmatprep.subr.bf16.mxu0 %v15541_v58  ;;  %16142 = vset.pattern.permute.xlu1 %v16929_v42  ;;  %v18967_v58 = vld [vmem:[%s17252_s7 + $0x1b28] sm:$0xff] }
 0x765   : > { %13694 = vperm.xlu1 %16142, %v16697_v61   ;;  %13706 = vperm.xlu0 %16143, %v16697_v61  }
 0x766   : > { %13085 = vmatpush1.bf16.msra.mxu1 %v15538_v29  ;;  %v15586_v29 = vcombine.low %v6817_v18, %v6825_v13 }
 0x767   : > { %13257 = vmatpush1.bf16.msra.mxu0 %v15540_v2  ;;  %13086 = vmatprep.subr.bf16.mxu1 %v15555_v3  ;;  %v18978_v2 = vld [vmem:[%s17252_s7 + $0x1ba0] sm:$0xff] }
 0x768   : > { %13258 = vmatprep.subr.bf16.mxu0 %v15557_v11  ;;  %v18981_v3 = vld [vmem:[%s17252_s7 + $0x1be0] sm:$0xff]  ;;  %v7110_v11 = vrot.slane %v7030_v41, %v17345_v20 }
 0x769   : > { %v15618_v6 = vcombine.low %v18978_v2, %v18981_v3  ;;  %v15619_v19 = vcombine.high %v18978_v2, %v18981_v3 }
 0x76a   : > { %13087 = vmatpush1.bf16.msra.mxu1 %v15554_v1  ;;  %v13687_v1 = vpop.permute.xlu0 %13686 }
 0x76b   : > { %13259 = vmatpush1.bf16.msra.mxu0 %v15556_v4  ;;  %13088 = vmatprep.subr.bf16.mxu1 %v15571_v10  ;;  %v15602_v4 = vcombine.low %v18960_v45, %v18963_v55  ;;  %v15604_v10 = vcombine.low %v18967_v58, %v18970_v59 }
 0x76c   : > { %13260 = vmatprep.subr.bf16.mxu0 %v15573_v14  ;;  %v15605_v14 = vcombine.high %v18967_v58, %v18970_v59 }
 0x76e   : > { %13089 = vmatpush1.bf16.msra.mxu1 %v15570_v30  ;;  %v16698_v30 = vld [vmem:[%s19476_s29 + $0x8] sm:$0xff] }
 0x76f   : > { %13261 = vmatpush1.bf16.msra.mxu0 %v15572_v40  ;;  %13090 = vmatprep.subr.bf16.mxu1 %v15587_v22 }
 0x770   : > { %v12770_v63 = vpop.f32.mrb[28].mxu1  ;;  %13262 = vmatprep.subr.bf16.mxu0 %v15589_v43  ;;  %13698 = vperm.xlu1 %16142, %v16698_v30   ;;  %v15621_v43 = vcombine.high %v18988_v7, %v18991_v39 }
 0x771   : > { %v15881_v18 = vadd.f32 %v12770_v63, %v7098_v57  ;;  %v12942_v13 = vpop.f32.mrb[32].mxu0  ;;  %v12772_v32 = vpop.f32.mrb[29].mxu1 }
 0x772   : > { %v15885_v38 = vadd.f32 %v12942_v13, %v7106_v17  ;;  %v15882_v40 = vadd.f32 %v12772_v32, %v7102_v9  ;;  %v12944_v41 = vpop.f32.mrb[33].mxu0  ;;  %v12774_v22 = vpop.f32.mrb[30].mxu1  ;;  %13091 = vmatpush1.bf16.msra.mxu1 %v15586_v29  ;;  %v6865_v32 = vld [vmem:[%s17252_s7 + $0x1c20] sm:$0xff] }
 0x773   : > { %v13677_v45 = vmul.f32 %v15881_v18, %v13671_v35  ;;  %v15886_v55 = vadd.f32 %v12944_v41, %v7110_v11  ;;  %v15883_v42 = vadd.f32 %v12774_v22, %v7098_v57  ;;  %v12946_v58 = vpop.f32.mrb[34].mxu0  ;;  %13263 = vmatpush1.bf16.msra.mxu0 %v15588_v60  ;;  %v12776_v59 = vpop.f32.mrb[31].mxu1  ;;  %13092 = vmatprep.subr.bf16.mxu1 %v15603_v15  ;;  %v6866_v41 = vld [vmem:[%s17252_s7 + $0x1c28] sm:$0xff]  ;;  %v6897_v22 = vld [vmem:[%s17252_s7 + $0x1d20] sm:$0xff] }
 0x774   : > { %v13678_v2 = vmul.f32 %v15882_v40, %v13671_v35  ;;  %v13689_v3 = vmul.f32 %v15885_v38, %v13683_v5  ;;  %v15887_v63 = vadd.f32 %v12946_v58, %v7106_v17  ;;  %v15884_v13 = vadd.f32 %v12776_v59, %v7102_v9  ;;  %v12948_v29 = vpop.f32.mrb[35].mxu0  ;;  %13264 = vmatprep.subr.bf16.mxu0 %v15605_v14  ;;  %v6874_v60 = vld [vmem:[%s17252_s7 + $0x1c68] sm:$0xff]  ;;  %v6889_v38 = vld [vmem:[%s17252_s7 + $0x1ce0] sm:$0xff] }
 0x775   : > { %v13690_v54 = vmul.f32 %v15886_v55, %v13683_v5  ;;  %v13679_v61 = vmul.f32 %v15883_v42, %v18948_v62  ;;  %v15888_v18 = vadd.f32 %v12948_v29, %v7110_v11  ;;  %v15620_v57 = vcombine.low %v18988_v7, %v18991_v39  ;;  %16144 = vset.pattern.permute.xlu1 %v16930_v36  ;;  %v6881_v36 = vld [vmem:[%s17252_s7 + $0x1ca0] sm:$0xff]  ;;  %v6914_v59 = vld [vmem:[%s17252_s7 + $0x1da8] sm:$0xff] }
 0x776   : > { %v13745_v35 = vadd.f32 %v13689_v3, %v13677_v45  ;;  %v13680_v17 = vmul.f32 %v15884_v13, %v18948_v62  ;;  %v13691_v9 = vmul.f32 %v15887_v63, %v13687_v1  ;;  %13093 = vmatpush1.bf16.msra.mxu1 %v15602_v4  ;;  %13710 = vperm.xlu1 %16144, %v16698_v30   ;;  %v6898_v45 = vld [vmem:[%s17252_s7 + $0x1d28] sm:$0xff]  ;;  %v6913_v42 = vld [vmem:[%s17252_s7 + $0x1da0] sm:$0xff] }
 0x777   : > { %v13746_v5 = vadd.f32 %v13690_v54, %v13678_v2  ;;  %v13692_v15 = vmul.f32 %v15888_v18, %v13687_v1  ;;  %13265 = vmatpush1.bf16.msra.mxu0 %v15604_v10  ;;  %13094 = vmatprep.subr.bf16.mxu1 %v15619_v19  ;;  %v15635_v11 = vcombine.high %v6865_v32, %v6873_v0  ;;  %v6882_v54 = vld [vmem:[%s17252_s7 + $0x1ca8] sm:$0xff]  ;;  %v6921_v58 = vld [vmem:[%s17252_s7 + $0x1de0] sm:$0xff] }
 0x778   : > { %v19017_v7 = vadd.f32 %v13745_v35, %v18680_v25  ;;  %v13747_v39 = vadd.f32 %v13691_v9, %v13679_v61  ;;  %13266 = vmatprep.subr.bf16.mxu0 %v15621_v43  ;;  %v15637_v14 = vcombine.high %v6866_v41, %v6874_v60  ;;  %v6890_v1 = vld [vmem:[%s17252_s7 + $0x1ce8] sm:$0xff]  ;;  %v15634_v25 = vcombine.low %v6865_v32, %v6873_v0  ;;  %v6905_v43 = vld [vmem:[%s17252_s7 + $0x1d60] sm:$0xff] }
 0x779   : > { %v19022_v62 = vadd.f32 %v13746_v5, %v18683_v27  ;;  %v13748_v4 = vadd.f32 %v13692_v15, %v13680_v17  ;;  %v15636_v30 = vcombine.low %v6866_v41, %v6874_v60  ;;  %v15651_v40 = vcombine.high %v6881_v36, %v6889_v38  ;;  %v6922_v2 = vld [vmem:[%s17252_s7 + $0x1de8] sm:$0xff]  ;;  %v6929_v32 = vld [vmem:[%s17252_s7 + $0x1e20] sm:$0xff] }
 0x77a   : > { %v19027_v10 = vadd.f32 %v13747_v39, %v18685_v8  ;;  %13095 = vmatpush1.bf16.msra.mxu1 %v15618_v6  ;;  %v15653_v27 = vcombine.high %v6882_v54, %v6890_v1  ;;  %v6906_v8 = vld [vmem:[%s17252_s7 + $0x1d68] sm:$0xff]  ;;  %v15650_v6 = vcombine.low %v6881_v36, %v6889_v38  ;;  %v15652_v0 = vcombine.low %v6882_v54, %v6890_v1  ;;  %v6937_v61 = vld [vmem:[%s17252_s7 + $0x1e60] sm:$0xff] }
 0x77b   : > { %v19030_v19 = vadd.f32 %v13748_v4, %v18689_v12  ;;  %13267 = vmatpush1.bf16.msra.mxu0 %v15620_v57  ;;  %13096 = vmatprep.subr.bf16.mxu1 %v15635_v11  ;;  %v15667_v12 = vcombine.high %v6897_v22, %v6905_v43  ;;  %v15669_v55 = vcombine.high %v6898_v45, %v6906_v8  ;;  %v6930_v18 = vld [vmem:[%s17252_s7 + $0x1e28] sm:$0xff]  ;;  %v6945_v9 = vld [vmem:[%s17252_s7 + $0x1ea0] sm:$0xff] }
 0x77c   : > { %13268 = vmatprep.subr.bf16.mxu0 %v15637_v14  ;;  %v15666_v3 = vcombine.low %v6897_v22, %v6905_v43  ;;  %v15668_v63 = vcombine.low %v6898_v45, %v6906_v8  ;;  %v15683_v13 = vcombine.high %v6913_v42, %v6921_v58  ;;  %v15685_v29 = vcombine.high %v6914_v59, %v6922_v2  ;;  %v6938_v57 = vld [vmem:[%s17252_s7 + $0x1e68] sm:$0xff]  ;;  %v6953_v5 = vld [vmem:[%s17252_s7 + $0x1ee0] sm:$0xff] }
 0x77d   : > { %v15682_v41 = vcombine.low %v6913_v42, %v6921_v58  ;;  %v15684_v60 = vcombine.low %v6914_v59, %v6922_v2  ;;  %v15699_v35 = vcombine.high %v6929_v32, %v6937_v61  ;;  %v15701_v17 = vcombine.high %v6930_v18, %v6938_v57  ;;  %v6946_v15 = vld [vmem:[%s17252_s7 + $0x1ea8] sm:$0xff]  ;;  %v6961_v4 = vld [vmem:[%s17252_s7 + $0x1f20] sm:$0xff]  ;;  %v5971_v58 = vld [vmem:[%s17252_s7 + $0x30] sm:$0xff] }
 0x77e   : > { %13097 = vmatpush1.bf16.msra.mxu1 %v15634_v25  ;;  %v6954_v11 = vld [vmem:[%s17252_s7 + $0x1ee8] sm:$0xff]  ;;  %v15698_v39 = vcombine.low %v6929_v32, %v6937_v61  ;;  %v15700_v14 = vcombine.low %v6930_v18, %v6938_v57  ;;  %v15715_v36 = vcombine.high %v6945_v9, %v6953_v5  ;;  %v6969_v54 = vld [vmem:[%s17252_s7 + $0x1f60] sm:$0xff]  ;;  %v5979_v59 = vld [vmem:[%s17252_s7 + $0x70] sm:$0xff] }
 0x77f   : > { %13269 = vmatpush1.bf16.msra.mxu0 %v15636_v30  ;;  %13098 = vmatprep.subr.bf16.mxu1 %v15651_v40  ;;  %v15717_v38 = vcombine.high %v6946_v15, %v6954_v11  ;;  %v6962_v1 = vld [vmem:[%s17252_s7 + $0x1f28] sm:$0xff]  ;;  %v15714_v30 = vcombine.low %v6945_v9, %v6953_v5  ;;  %v15716_v40 = vcombine.low %v6946_v15, %v6954_v11  ;;  %v6977_v43 = vld [vmem:[%s17252_s7 + $0x1fa0] sm:$0xff]  ;;  %v5972_v2 = vld [vmem:[%s17252_s7 + $0x38] sm:$0xff] }
 0x780   : > { %13270 = vmatprep.subr.bf16.mxu0 %v15653_v27  ;;  %v6970_v25 = vld [vmem:[%s17252_s7 + $0x1f68] sm:$0xff]  ;;  %v15731_v27 = vcombine.high %v6961_v4, %v6969_v54  ;;  %v6985_v45 = vld [vmem:[%s17252_s7 + $0x1fe0] sm:$0xff]  ;;  %v5987_v61 = vld [vmem:[%s17252_s7 + $0xb0] sm:$0xff]  ;;  %v14742_v57 = vcombine.low %v5971_v58, %v5979_v59 }
 0x781   : > { %v15733_v22 = vcombine.high %v6962_v1, %v6970_v25  ;;  %v6978_v8 = vld [vmem:[%s17252_s7 + $0x1fa8] sm:$0xff]  ;;  %v5995_v18 = vld [vmem:[%s17252_s7 + $0xf0] sm:$0xff]  ;;  %v6004_v11 = vld [vmem:[%s17252_s7 + $0x138] sm:$0xff] }
 0x782   : > { %13099 = vmatpush1.bf16.msra.mxu1 %v15650_v6  ;;  %v6986_v6 = vld [vmem:[%s17252_s7 + $0x1fe8] sm:$0xff]  ;;  %v6003_v9 = vld [vmem:[%s17252_s7 + $0x130] sm:$0xff] }
 0x783   : > { %13271 = vmatpush1.bf16.msra.mxu0 %v15652_v0  ;;  %13100 = vmatprep.subr.bf16.mxu1 %v15667_v12  ;;  %v15730_v0 = vcombine.low %v6961_v4, %v6969_v54  ;;  %v15732_v12 = vcombine.low %v6962_v1, %v6970_v25  ;;  %v15749_v42 = vcombine.high %v6978_v8, %v6986_v6  ;;  %v6011_v5 = vld [vmem:[%s17252_s7 + $0x170] sm:$0xff]  ;;  %v6020_v25 = vld [vmem:[%s17252_s7 + $0x1b8] sm:$0xff] }
 0x784   : > { %13272 = vmatprep.subr.bf16.mxu0 %v15669_v55  ;;  %v15747_v55 = vcombine.high %v6977_v43, %v6985_v45  ;;  %v6019_v54 = vld [vmem:[%s17252_s7 + $0x1b0] sm:$0xff] }
 0x785   : > { %v6027_v1 = vld [vmem:[%s17252_s7 + $0x1f0] sm:$0xff] }
 0x786   : > { %13101 = vmatpush1.bf16.msra.mxu1 %v15666_v3  ;;  %v5980_v3 = vld [vmem:[%s17252_s7 + $0x78] sm:$0xff] }
 0x787   : > { %13273 = vmatpush1.bf16.msra.mxu0 %v15668_v63  ;;  %13102 = vmatprep.subr.bf16.mxu1 %v15683_v13  ;;  %v15746_v63 = vcombine.low %v6977_v43, %v6985_v45  ;;  %v15748_v13 = vcombine.low %v6978_v8, %v6986_v6  ;;  %v14745_v32 = vcombine.high %v5972_v2, %v5980_v3  ;;  %v6035_v43 = vld [vmem:[%s17252_s7 + $0x230] sm:$0xff]  ;;  %v6036_v8 = vld [vmem:[%s17252_s7 + $0x238] sm:$0xff] }
 0x788   : > { %13274 = vmatprep.subr.bf16.mxu0 %v15685_v29  ;;  %v14743_v29 = vcombine.high %v5971_v58, %v5979_v59  ;;  %v6043_v45 = vld [vmem:[%s17252_s7 + $0x270] sm:$0xff]  ;;  %v6044_v6 = vld [vmem:[%s17252_s7 + $0x278] sm:$0xff] }
 0x789   : > { %v6051_v58 = vld [vmem:[%s17252_s7 + $0x2b0] sm:$0xff] }
 0x78a   : > { %13103 = vmatpush1.bf16.msra.mxu1 %v15682_v41  ;;  %v5988_v41 = vld [vmem:[%s17252_s7 + $0xb8] sm:$0xff]  ;;  %v6059_v59 = vld [vmem:[%s17252_s7 + $0x2f0] sm:$0xff] }
 0x78b   : > { %13275 = vmatpush1.bf16.msra.mxu0 %v15684_v60  ;;  %13104 = vmatprep.subr.bf16.mxu1 %v15699_v35  ;;  %v5996_v60 = vld [vmem:[%s17252_s7 + $0xf8] sm:$0xff]  ;;  %v14744_v35 = vcombine.low %v5972_v2, %v5980_v3 }
 0x78c   : > { %13276 = vmatprep.subr.bf16.mxu0 %v15701_v17  ;;  %v14759_v17 = vcombine.high %v5987_v61, %v5995_v18  ;;  %v14761_v15 = vcombine.high %v5988_v41, %v5996_v60  ;;  %v6052_v2 = vld [vmem:[%s17252_s7 + $0x2b8] sm:$0xff] }
 0x78d   : > { %v6060_v3 = vld [vmem:[%s17252_s7 + $0x2f8] sm:$0xff] }
 0x78e   : > { %13105 = vmatpush1.bf16.msra.mxu1 %v15698_v39  ;;  %v6012_v39 = vld [vmem:[%s17252_s7 + $0x178] sm:$0xff] }
 0x78f   : > { %13277 = vmatpush1.bf16.msra.mxu0 %v15700_v14  ;;  %13106 = vmatprep.subr.bf16.mxu1 %v15715_v36  ;;  %v14758_v14 = vcombine.low %v5987_v61, %v5995_v18  ;;  %v14760_v36 = vcombine.low %v5988_v41, %v5996_v60  ;;  %v14777_v4 = vcombine.high %v6004_v11, %v6012_v39  ;;  %v6067_v61 = vld [vmem:[%s17252_s7 + $0x330] sm:$0xff]  ;;  %v6076_v41 = vld [vmem:[%s17252_s7 + $0x378] sm:$0xff] }
 0x790   : > { %13278 = vmatprep.subr.bf16.mxu0 %v15717_v38  ;;  %v14775_v38 = vcombine.high %v6003_v9, %v6011_v5  ;;  %v6075_v18 = vld [vmem:[%s17252_s7 + $0x370] sm:$0xff]  ;;  %v14822_v60 = vcombine.low %v6051_v58, %v6059_v59 }
 0x792   : > { %13107 = vmatpush1.bf16.msra.mxu1 %v15714_v30  ;;  %v6028_v30 = vld [vmem:[%s17252_s7 + $0x1f8] sm:$0xff] }
 0x793   : > { %13279 = vmatpush1.bf16.msra.mxu0 %v15716_v40  ;;  %13108 = vmatprep.subr.bf16.mxu1 %v15731_v27  ;;  %v14774_v40 = vcombine.low %v6003_v9, %v6011_v5  ;;  %v14776_v27 = vcombine.low %v6004_v11, %v6012_v39  ;;  %v6083_v5 = vld [vmem:[%s17252_s7 + $0x3b0] sm:$0xff]  ;;  %v6084_v11 = vld [vmem:[%s17252_s7 + $0x3b8] sm:$0xff] }
 0x794   : > { %13280 = vmatprep.subr.bf16.mxu0 %v15733_v22  ;;  %v14791_v22 = vcombine.high %v6019_v54, %v6027_v1  ;;  %v6092_v39 = vld [vmem:[%s17252_s7 + $0x3f8] sm:$0xff] }
 0x796   : > { %13109 = vmatpush1.bf16.msra.mxu1 %v15730_v0  ;;  %v14790_v0 = vcombine.low %v6019_v54, %v6027_v1  ;;  %v6099_v54 = vld [vmem:[%s17252_s7 + $0x430] sm:$0xff] }
 0x797   : > { %13281 = vmatpush1.bf16.msra.mxu0 %v15732_v12  ;;  %13110 = vmatprep.subr.bf16.mxu1 %v15747_v55  ;;  %v14792_v12 = vcombine.low %v6020_v25, %v6028_v30  ;;  %v14807_v55 = vcombine.high %v6035_v43, %v6043_v45  ;;  %v6107_v1 = vld [vmem:[%s17252_s7 + $0x470] sm:$0xff] }
 0x798   : > { %13282 = vmatprep.subr.bf16.mxu0 %v15749_v42  ;;  %v14809_v42 = vcombine.high %v6036_v8, %v6044_v6 }
 0x79a   : > { %13111 = vmatpush1.bf16.msra.mxu1 %v15746_v63  ;;  %v14806_v63 = vcombine.low %v6035_v43, %v6043_v45  ;;  %v6115_v43 = vld [vmem:[%s17252_s7 + $0x4b0] sm:$0xff] }
 0x79b   : > { %13283 = vmatpush1.bf16.msra.mxu0 %v15748_v13  ;;  %13295 = vmatprep.subr.bf16.mxu1 %v14743_v29  ;;  %v14808_v13 = vcombine.low %v6036_v8, %v6044_v6  ;;  %v14823_v29 = vcombine.high %v6051_v58, %v6059_v59  ;;  %v6123_v45 = vld [vmem:[%s17252_s7 + $0x4f0] sm:$0xff]  ;;  %v6116_v8 = vld [vmem:[%s17252_s7 + $0x4b8] sm:$0xff] }
 0x79c   : > { %13467 = vmatprep.subr.bf16.mxu0 %v14745_v32  ;;  %v14825_v32 = vcombine.high %v6052_v2, %v6060_v3  ;;  %v6124_v6 = vld [vmem:[%s17252_s7 + $0x4f8] sm:$0xff]  ;;  %v6131_v58 = vld [vmem:[%s17252_s7 + $0x530] sm:$0xff] }
 0x79d   : > { %13113 = vmatmul.mubr.bf16.vlgmr.msra.gmra.mrb[32].mxu1 %v17903_v46  ;;  %v6139_v59 = vld [vmem:[%s17252_s7 + $0x570] sm:$0xff] }
 0x79e   : > { %13285 = vmatmul.mubr.bf16.vlgmr.msra.gmra.mrb[36].mxu0 %v17903_v46  ;;  %13296 = vmatpush1.bf16.msra.mxu1 %v14742_v57  ;;  %v6068_v57 = vld [vmem:[%s17252_s7 + $0x338] sm:$0xff] }
 0x79f   : > { %13327 = vmatprep.mubr.bf16.mxu1 %v17752_v49  ;;  %13468 = vmatpush1.bf16.msra.mxu0 %v14744_v35  ;;  %v14824_v35 = vcombine.low %v6052_v2, %v6060_v3  ;;  %v14841_v9 = vcombine.high %v6068_v57, %v6076_v41  ;;  %v6132_v2 = vld [vmem:[%s17252_s7 + $0x538] sm:$0xff] }
 0x7a0   : > { %13499 = vmatprep.mubr.bf16.mxu0 %v17752_v49  ;;  %13297 = vmatprep.subr.bf16.mxu1 %v14759_v17  ;;  %v14793_v49 = vcombine.high %v6020_v25, %v6028_v30  ;;  %v14839_v17 = vcombine.high %v6067_v61, %v6075_v18  ;;  %v6100_v25 = vld [vmem:[%s17252_s7 + $0x438] sm:$0xff] }
 0x7a1   : > { %13469 = vmatprep.subr.bf16.mxu0 %v14761_v15  ;;  %v6091_v15 = vld [vmem:[%s17252_s7 + $0x3f0] sm:$0xff]  ;;  %v6108_v30 = vld [vmem:[%s17252_s7 + $0x478] sm:$0xff] }
 0x7a2   : > { %13298 = vmatpush1.bf16.msra.mxu1 %v14758_v14  ;;  %v14838_v14 = vcombine.low %v6067_v61, %v6075_v18  ;;  %v6140_v3 = vld [vmem:[%s17252_s7 + $0x578] sm:$0xff]  ;;  %v6147_v61 = vld [vmem:[%s17252_s7 + $0x5b0] sm:$0xff] }
 0x7a3   : > { %13470 = vmatpush1.bf16.msra.mxu0 %v14760_v36  ;;  %13299 = vmatprep.subr.bf16.mxu1 %v14775_v38  ;;  %v14840_v36 = vcombine.low %v6068_v57, %v6076_v41  ;;  %v14855_v38 = vcombine.high %v6083_v5, %v6091_v15  ;;  %v6155_v18 = vld [vmem:[%s17252_s7 + $0x5f0] sm:$0xff]  ;;  %v6148_v57 = vld [vmem:[%s17252_s7 + $0x5b8] sm:$0xff] }
 0x7a4   : > { %13471 = vmatprep.subr.bf16.mxu0 %v14777_v4  ;;  %v14857_v4 = vcombine.high %v6084_v11, %v6092_v39  ;;  %v6156_v41 = vld [vmem:[%s17252_s7 + $0x5f8] sm:$0xff] }
 0x7a6   : > { %13300 = vmatpush1.bf16.msra.mxu1 %v14774_v40  ;;  %v14854_v40 = vcombine.low %v6083_v5, %v6091_v15  ;;  %v6163_v5 = vld [vmem:[%s17252_s7 + $0x630] sm:$0xff] }
 0x7a7   : > { %13472 = vmatpush1.bf16.msra.mxu0 %v14776_v27  ;;  %13301 = vmatprep.subr.bf16.mxu1 %v14791_v22  ;;  %v14856_v27 = vcombine.low %v6084_v11, %v6092_v39  ;;  %v14871_v22 = vcombine.high %v6099_v54, %v6107_v1  ;;  %v6171_v15 = vld [vmem:[%s17252_s7 + $0x670] sm:$0xff]  ;;  %v6164_v11 = vld [vmem:[%s17252_s7 + $0x638] sm:$0xff] }
 0x7a8   : > { %13473 = vmatprep.subr.bf16.mxu0 %v14793_v49  ;;  %v14873_v49 = vcombine.high %v6100_v25, %v6108_v30  ;;  %v6172_v39 = vld [vmem:[%s17252_s7 + $0x678] sm:$0xff] }
 0x7aa   : > { %13302 = vmatpush1.bf16.msra.mxu1 %v14790_v0  ;;  %v14870_v0 = vcombine.low %v6099_v54, %v6107_v1  ;;  %v6179_v54 = vld [vmem:[%s17252_s7 + $0x6b0] sm:$0xff] }
 0x7ab   : > { %13474 = vmatpush1.bf16.msra.mxu0 %v14792_v12  ;;  %13303 = vmatprep.subr.bf16.mxu1 %v14807_v55  ;;  %v14872_v12 = vcombine.low %v6100_v25, %v6108_v30  ;;  %v14887_v55 = vcombine.high %v6115_v43, %v6123_v45  ;;  %v6187_v1 = vld [vmem:[%s17252_s7 + $0x6f0] sm:$0xff]  ;;  %v6180_v25 = vld [vmem:[%s17252_s7 + $0x6b8] sm:$0xff] }
 0x7ac   : > { %13475 = vmatprep.subr.bf16.mxu0 %v14809_v42  ;;  %v14889_v42 = vcombine.high %v6116_v8, %v6124_v6  ;;  %v6188_v30 = vld [vmem:[%s17252_s7 + $0x6f8] sm:$0xff] }
 0x7ae   : > { %13304 = vmatpush1.bf16.msra.mxu1 %v14806_v63  ;;  %v14886_v63 = vcombine.low %v6115_v43, %v6123_v45  ;;  %v6195_v43 = vld [vmem:[%s17252_s7 + $0x730] sm:$0xff] }
 0x7af   : > { %13476 = vmatpush1.bf16.msra.mxu0 %v14808_v13  ;;  %13305 = vmatprep.subr.bf16.mxu1 %v14823_v29  ;;  %v14888_v13 = vcombine.low %v6116_v8, %v6124_v6  ;;  %v14903_v29 = vcombine.high %v6131_v58, %v6139_v59  ;;  %v6203_v45 = vld [vmem:[%s17252_s7 + $0x770] sm:$0xff]  ;;  %v6196_v8 = vld [vmem:[%s17252_s7 + $0x738] sm:$0xff] }
 0x7b0   : > { %13477 = vmatprep.subr.bf16.mxu0 %v14825_v32  ;;  %v14905_v32 = vcombine.high %v6132_v2, %v6140_v3  ;;  %v6204_v6 = vld [vmem:[%s17252_s7 + $0x778] sm:$0xff] }
 0x7b2   : > { %13306 = vmatpush1.bf16.msra.mxu1 %v14822_v60  ;;  %v14902_v60 = vcombine.low %v6131_v58, %v6139_v59  ;;  %v6211_v58 = vld [vmem:[%s17252_s7 + $0x7b0] sm:$0xff] }
 0x7b3   : > { %13478 = vmatpush1.bf16.msra.mxu0 %v14824_v35  ;;  %13307 = vmatprep.subr.bf16.mxu1 %v14839_v17  ;;  %v14904_v35 = vcombine.low %v6132_v2, %v6140_v3  ;;  %v14919_v17 = vcombine.high %v6147_v61, %v6155_v18  ;;  %v6219_v59 = vld [vmem:[%s17252_s7 + $0x7f0] sm:$0xff]  ;;  %v6212_v2 = vld [vmem:[%s17252_s7 + $0x7b8] sm:$0xff] }
 0x7b4   : > { %13479 = vmatprep.subr.bf16.mxu0 %v14841_v9  ;;  %v14921_v9 = vcombine.high %v6148_v57, %v6156_v41  ;;  %v6220_v3 = vld [vmem:[%s17252_s7 + $0x7f8] sm:$0xff] }
 0x7b6   : > { %13308 = vmatpush1.bf16.msra.mxu1 %v14838_v14  ;;  %v14918_v14 = vcombine.low %v6147_v61, %v6155_v18  ;;  %v6227_v61 = vld [vmem:[%s17252_s7 + $0x830] sm:$0xff] }
 0x7b7   : > { %13480 = vmatpush1.bf16.msra.mxu0 %v14840_v36  ;;  %13309 = vmatprep.subr.bf16.mxu1 %v14855_v38  ;;  %v14920_v36 = vcombine.low %v6148_v57, %v6156_v41  ;;  %v14935_v38 = vcombine.high %v6163_v5, %v6171_v15  ;;  %v6235_v18 = vld [vmem:[%s17252_s7 + $0x870] sm:$0xff]  ;;  %v6228_v57 = vld [vmem:[%s17252_s7 + $0x838] sm:$0xff] }
 0x7b8   : > { %13481 = vmatprep.subr.bf16.mxu0 %v14857_v4  ;;  %v14937_v4 = vcombine.high %v6164_v11, %v6172_v39  ;;  %v6236_v41 = vld [vmem:[%s17252_s7 + $0x878] sm:$0xff] }
 0x7ba   : > { %13310 = vmatpush1.bf16.msra.mxu1 %v14854_v40  ;;  %v14934_v40 = vcombine.low %v6163_v5, %v6171_v15  ;;  %v6243_v5 = vld [vmem:[%s17252_s7 + $0x8b0] sm:$0xff] }
 0x7bb   : > { %13482 = vmatpush1.bf16.msra.mxu0 %v14856_v27  ;;  %13311 = vmatprep.subr.bf16.mxu1 %v14871_v22  ;;  %v14936_v27 = vcombine.low %v6164_v11, %v6172_v39  ;;  %v14951_v22 = vcombine.high %v6179_v54, %v6187_v1  ;;  %v6251_v15 = vld [vmem:[%s17252_s7 + $0x8f0] sm:$0xff]  ;;  %v14998_v11 = vcombine.low %v6227_v61, %v6235_v18  ;;  %v6244_v39 = vld [vmem:[%s17252_s7 + $0x8b8] sm:$0xff] }
 0x7bc   : > { %13483 = vmatprep.subr.bf16.mxu0 %v14873_v49  ;;  %v14953_v49 = vcombine.high %v6180_v25, %v6188_v30 }
 0x7be   : > { %13312 = vmatpush1.bf16.msra.mxu1 %v14870_v0  ;;  %v14950_v0 = vcombine.low %v6179_v54, %v6187_v1  ;;  %v6267_v54 = vld [vmem:[%s17252_s7 + $0x970] sm:$0xff] }
 0x7bf   : > { %13484 = vmatpush1.bf16.msra.mxu0 %v14872_v12  ;;  %13313 = vmatprep.subr.bf16.mxu1 %v14887_v55  ;;  %v14952_v12 = vcombine.low %v6180_v25, %v6188_v30  ;;  %v14967_v55 = vcombine.high %v6195_v43, %v6203_v45  ;;  %v6260_v25 = vld [vmem:[%s17252_s7 + $0x938] sm:$0xff] }
 0x7c0   : > { %13485 = vmatprep.subr.bf16.mxu0 %v14889_v42  ;;  %v14969_v42 = vcombine.high %v6196_v8, %v6204_v6  ;;  %v6268_v30 = vld [vmem:[%s17252_s7 + $0x978] sm:$0xff] }
 0x7c2   : > { %13314 = vmatpush1.bf16.msra.mxu1 %v14886_v63  ;;  %v14966_v63 = vcombine.low %v6195_v43, %v6203_v45  ;;  %v6275_v43 = vld [vmem:[%s17252_s7 + $0x9b0] sm:$0xff] }
 0x7c3   : > { %13486 = vmatpush1.bf16.msra.mxu0 %v14888_v13  ;;  %13315 = vmatprep.subr.bf16.mxu1 %v14903_v29  ;;  %v14968_v13 = vcombine.low %v6196_v8, %v6204_v6  ;;  %v14983_v29 = vcombine.high %v6211_v58, %v6219_v59  ;;  %v6283_v45 = vld [vmem:[%s17252_s7 + $0x9f0] sm:$0xff]  ;;  %v6276_v8 = vld [vmem:[%s17252_s7 + $0x9b8] sm:$0xff] }
 0x7c4   : > { %13487 = vmatprep.subr.bf16.mxu0 %v14905_v32  ;;  %v14985_v32 = vcombine.high %v6212_v2, %v6220_v3 }
 0x7c6   : > { %13316 = vmatpush1.bf16.msra.mxu1 %v14902_v60  ;;  %v14982_v60 = vcombine.low %v6211_v58, %v6219_v59  ;;  %v6292_v58 = vld [vmem:[%s17252_s7 + $0xa38] sm:$0xff] }
 0x7c7   : > { %13488 = vmatpush1.bf16.msra.mxu0 %v14904_v35  ;;  %13317 = vmatprep.subr.bf16.mxu1 %v14919_v17  ;;  %v14984_v35 = vcombine.low %v6212_v2, %v6220_v3  ;;  %v14999_v17 = vcombine.high %v6227_v61, %v6235_v18  ;;  %v6300_v59 = vld [vmem:[%s17252_s7 + $0xa78] sm:$0xff]  ;;  %v15046_v2 = vcombine.low %v6275_v43, %v6283_v45 }
 0x7c8   : > { %13489 = vmatprep.subr.bf16.mxu0 %v14921_v9  ;;  %v15001_v9 = vcombine.high %v6228_v57, %v6236_v41  ;;  %v6308_v61 = vld [vmem:[%s17252_s7 + $0xab8] sm:$0xff] }
 0x7c9   : > { %v6316_v18 = vld [vmem:[%s17252_s7 + $0xaf8] sm:$0xff] }
 0x7ca   : > { %13318 = vmatpush1.bf16.msra.mxu1 %v14918_v14  ;;  %v6252_v14 = vld [vmem:[%s17252_s7 + $0x8f8] sm:$0xff] }
 0x7cb   : > { %13490 = vmatpush1.bf16.msra.mxu0 %v14920_v36  ;;  %13319 = vmatprep.subr.bf16.mxu1 %v14935_v38  ;;  %v15000_v36 = vcombine.low %v6228_v57, %v6236_v41  ;;  %v15015_v38 = vcombine.high %v6243_v5, %v6251_v15  ;;  %v15017_v1 = vcombine.high %v6244_v39, %v6252_v14 }
 0x7cc   : > { %13491 = vmatprep.subr.bf16.mxu0 %v14937_v4  ;;  %v6259_v4 = vld [vmem:[%s17252_s7 + $0x930] sm:$0xff]  ;;  %v15064_v41 = vcombine.low %v6292_v58, %v6300_v59 }
 0x7cd   : > { %v15030_v6 = vcombine.low %v6259_v4, %v6267_v54 }
 0x7ce   : > { %13320 = vmatpush1.bf16.msra.mxu1 %v14934_v40  ;;  %v15014_v40 = vcombine.low %v6243_v5, %v6251_v15  ;;  %v6324_v5 = vld [vmem:[%s17252_s7 + $0xb38] sm:$0xff] }
 0x7cf   : > { %13492 = vmatpush1.bf16.msra.mxu0 %v14936_v27  ;;  %13321 = vmatprep.subr.bf16.mxu1 %v14951_v22  ;;  %v15016_v27 = vcombine.low %v6244_v39, %v6252_v14  ;;  %v15031_v22 = vcombine.high %v6259_v4, %v6267_v54  ;;  %v6332_v15 = vld [vmem:[%s17252_s7 + $0xb78] sm:$0xff]  ;;  %v15080_v39 = vcombine.low %v6308_v61, %v6316_v18  ;;  %v6347_v4 = vld [vmem:[%s17252_s7 + $0xbf0] sm:$0xff] }
 0x7d0   : > { %13493 = vmatprep.subr.bf16.mxu0 %v14953_v49  ;;  %v15033_v49 = vcombine.high %v6260_v25, %v6268_v30  ;;  %v6340_v54 = vld [vmem:[%s17252_s7 + $0xbb8] sm:$0xff] }
 0x7d2   : > { %13322 = vmatpush1.bf16.msra.mxu1 %v14950_v0  ;;  %v15032_v0 = vcombine.low %v6260_v25, %v6268_v30  ;;  %v15096_v30 = vcombine.low %v6324_v5, %v6332_v15 }
 0x7d3   : > { %13494 = vmatpush1.bf16.msra.mxu0 %v14952_v12  ;;  %13323 = vmatprep.subr.bf16.mxu1 %v14967_v55  ;;  %v15047_v12 = vcombine.high %v6275_v43, %v6283_v45  ;;  %v6291_v55 = vld [vmem:[%s17252_s7 + $0xa30] sm:$0xff]  ;;  %v6356_v43 = vld [vmem:[%s17252_s7 + $0xc38] sm:$0xff] }
 0x7d4   : > { %13495 = vmatprep.subr.bf16.mxu0 %v14969_v42  ;;  %v6299_v42 = vld [vmem:[%s17252_s7 + $0xa70] sm:$0xff]  ;;  %v6364_v45 = vld [vmem:[%s17252_s7 + $0xc78] sm:$0xff] }
 0x7d5   : > { %v15062_v57 = vcombine.low %v6291_v55, %v6299_v42 }
 0x7d6   : > { %13324 = vmatpush1.bf16.msra.mxu1 %v14966_v63  ;;  %v15063_v63 = vcombine.high %v6291_v55, %v6299_v42  ;;  %v6372_v55 = vld [vmem:[%s17252_s7 + $0xcb8] sm:$0xff] }
 0x7d7   : > { %13496 = vmatpush1.bf16.msra.mxu0 %v14968_v13  ;;  %13325 = vmatprep.subr.bf16.mxu1 %v14983_v29  ;;  %v15065_v13 = vcombine.high %v6292_v58, %v6300_v59  ;;  %v6307_v29 = vld [vmem:[%s17252_s7 + $0xab0] sm:$0xff]  ;;  %v6380_v42 = vld [vmem:[%s17252_s7 + $0xcf8] sm:$0xff]  ;;  %v15128_v59 = vcombine.low %v6356_v43, %v6364_v45 }
 0x7d8   : > { %13497 = vmatprep.subr.bf16.mxu0 %v14985_v32  ;;  %v6315_v32 = vld [vmem:[%s17252_s7 + $0xaf0] sm:$0xff] }
 0x7da   : > { %13326 = vmatpush1.bf16.msra.mxu1 %v14982_v60  ;;  %v15079_v60 = vcombine.high %v6307_v29, %v6315_v32 }
 0x7db   : > { %13498 = vmatpush1.bf16.msra.mxu0 %v14984_v35  ;;  %13338 = vmatprep.subr.bf16.mxu1 %v14999_v17  ;;  %v15081_v35 = vcombine.high %v6308_v61, %v6316_v18  ;;  %v6323_v17 = vld [vmem:[%s17252_s7 + $0xb30] sm:$0xff]  ;;  %v15144_v18 = vcombine.low %v6372_v55, %v6380_v42 }
 0x7dc   : > { %13510 = vmatprep.subr.bf16.mxu0 %v15001_v9  ;;  %v6331_v9 = vld [vmem:[%s17252_s7 + $0xb70] sm:$0xff] }
 0x7dd   : > { %13328 = vmatmul.mubr.bf16.vlgmr.msra.gmra.mrb[36].mxu1 %v17748_v47  ;;  %v15095_v14 = vcombine.high %v6323_v17, %v6331_v9  ;;  %v15094_v25 = vcombine.low %v6323_v17, %v6331_v9  ;;  %v6404_v17 = vld [vmem:[%s17252_s7 + $0xdb8] sm:$0xff] }
 0x7de   : > { %13500 = vmatmul.mubr.bf16.vlgmr.msra.gmra.mrb[40].mxu0 %v17748_v47  ;;  %13339 = vmatpush1.bf16.msra.mxu1 %v14998_v11  ;;  %v6284_v47 = vld [vmem:[%s17252_s7 + $0x9f8] sm:$0xff]  ;;  %v15078_v11 = vcombine.low %v6307_v29, %v6315_v32 }
 0x7df   : > { %13370 = vmatprep.mubr.bf16.mxu1 %v17754_v52  ;;  %13511 = vmatpush1.bf16.msra.mxu0 %v15000_v36  ;;  %v15048_v3 = vcombine.low %v6276_v8, %v6284_v47  ;;  %v15097_v36 = vcombine.high %v6324_v5, %v6332_v15  ;;  %v6388_v29 = vld [vmem:[%s17252_s7 + $0xd38] sm:$0xff] }
 0x7e0   : > { %13542 = vmatprep.mubr.bf16.mxu0 %v17754_v52  ;;  %13340 = vmatprep.subr.bf16.mxu1 %v15015_v38  ;;  %v15049_v52 = vcombine.high %v6276_v8, %v6284_v47  ;;  %v6339_v38 = vld [vmem:[%s17252_s7 + $0xbb0] sm:$0xff]  ;;  %v6396_v32 = vld [vmem:[%s17252_s7 + $0xd78] sm:$0xff] }
 0x7e1   : > { %13512 = vmatprep.subr.bf16.mxu0 %v15017_v1  ;;  %v6348_v1 = vld [vmem:[%s17252_s7 + $0xbf8] sm:$0xff]  ;;  %v15110_v8 = vcombine.low %v6339_v38, %v6347_v4  ;;  %v15160_v15 = vcombine.low %v6388_v29, %v6396_v32 }
 0x7e2   : > { %13341 = vmatpush1.bf16.msra.mxu1 %v15014_v40  ;;  %v15111_v40 = vcombine.high %v6339_v38, %v6347_v4  ;;  %v15112_v47 = vcombine.low %v6340_v54, %v6348_v1  ;;  %v6412_v9 = vld [vmem:[%s17252_s7 + $0xdf8] sm:$0xff] }
 0x7e3   : > { %13513 = vmatpush1.bf16.msra.mxu0 %v15016_v27  ;;  %13342 = vmatprep.subr.bf16.mxu1 %v15031_v22  ;;  %v15113_v27 = vcombine.high %v6340_v54, %v6348_v1  ;;  %v6355_v22 = vld [vmem:[%s17252_s7 + $0xc30] sm:$0xff]  ;;  %v6420_v38 = vld [vmem:[%s17252_s7 + $0xe38] sm:$0xff]  ;;  %v15176_v1 = vcombine.low %v6404_v17, %v6412_v9 }
 0x7e4   : > { %13514 = vmatprep.subr.bf16.mxu0 %v15033_v49  ;;  %v6363_v49 = vld [vmem:[%s17252_s7 + $0xc70] sm:$0xff]  ;;  %v6428_v4 = vld [vmem:[%s17252_s7 + $0xe78] sm:$0xff] }
 0x7e5   : > { %v15126_v58 = vcombine.low %v6355_v22, %v6363_v49 }
 0x7e6   : > { %13343 = vmatpush1.bf16.msra.mxu1 %v15030_v6  ;;  %v15127_v6 = vcombine.high %v6355_v22, %v6363_v49  ;;  %v6436_v22 = vld [vmem:[%s17252_s7 + $0xeb8] sm:$0xff] }
 0x7e7   : > { %13515 = vmatpush1.bf16.msra.mxu0 %v15032_v0  ;;  %13344 = vmatprep.subr.bf16.mxu1 %v15047_v12  ;;  %v15129_v0 = vcombine.high %v6356_v43, %v6364_v45  ;;  %v6371_v12 = vld [vmem:[%s17252_s7 + $0xcb0] sm:$0xff]  ;;  %v6444_v49 = vld [vmem:[%s17252_s7 + $0xef8] sm:$0xff]  ;;  %v15192_v45 = vcombine.low %v6420_v38, %v6428_v4 }
 0x7e8   : > { %13516 = vmatprep.subr.bf16.mxu0 %v15049_v52  ;;  %v6379_v52 = vld [vmem:[%s17252_s7 + $0xcf0] sm:$0xff] }
 0x7e9   : > { %v15142_v61 = vcombine.low %v6371_v12, %v6379_v52 }
 0x7ea   : > { %13345 = vmatpush1.bf16.msra.mxu1 %v15046_v2  ;;  %v15143_v2 = vcombine.high %v6371_v12, %v6379_v52  ;;  %v6452_v12 = vld [vmem:[%s17252_s7 + $0xf38] sm:$0xff] }
 0x7eb   : > { %13517 = vmatpush1.bf16.msra.mxu0 %v15048_v3  ;;  %13346 = vmatprep.subr.bf16.mxu1 %v15063_v63  ;;  %v15145_v3 = vcombine.high %v6372_v55, %v6380_v42  ;;  %v6387_v63 = vld [vmem:[%s17252_s7 + $0xd30] sm:$0xff]  ;;  %v6460_v52 = vld [vmem:[%s17252_s7 + $0xf78] sm:$0xff]  ;;  %v15208_v42 = vcombine.low %v6436_v22, %v6444_v49 }
 0x7ec   : > { %13518 = vmatprep.subr.bf16.mxu0 %v15065_v13  ;;  %v6395_v13 = vld [vmem:[%s17252_s7 + $0xd70] sm:$0xff] }
 0x7ed   : > { %v15158_v5 = vcombine.low %v6387_v63, %v6395_v13 }
 0x7ee   : > { %13347 = vmatpush1.bf16.msra.mxu1 %v15062_v57  ;;  %v15159_v57 = vcombine.high %v6387_v63, %v6395_v13  ;;  %v6468_v63 = vld [vmem:[%s17252_s7 + $0xfb8] sm:$0xff] }
 0x7ef   : > { %13519 = vmatpush1.bf16.msra.mxu0 %v15064_v41  ;;  %13348 = vmatprep.subr.bf16.mxu1 %v15079_v60  ;;  %v15161_v41 = vcombine.high %v6388_v29, %v6396_v32  ;;  %v6403_v60 = vld [vmem:[%s17252_s7 + $0xdb0] sm:$0xff]  ;;  %v6476_v13 = vld [vmem:[%s17252_s7 + $0xff8] sm:$0xff]  ;;  %v15224_v32 = vcombine.low %v6452_v12, %v6460_v52 }
 0x7f0   : > { %13520 = vmatprep.subr.bf16.mxu0 %v15081_v35  ;;  %v6411_v35 = vld [vmem:[%s17252_s7 + $0xdf0] sm:$0xff] }
 0x7f1   : > { %v15174_v54 = vcombine.low %v6403_v60, %v6411_v35 }
 0x7f2   : > { %13349 = vmatpush1.bf16.msra.mxu1 %v15078_v11  ;;  %v15175_v11 = vcombine.high %v6403_v60, %v6411_v35  ;;  %v6484_v60 = vld [vmem:[%s17252_s7 + $0x1038] sm:$0xff] }
 0x7f3   : > { %13521 = vmatpush1.bf16.msra.mxu0 %v15080_v39  ;;  %13350 = vmatprep.subr.bf16.mxu1 %v15095_v14  ;;  %v15177_v39 = vcombine.high %v6404_v17, %v6412_v9  ;;  %v6419_v14 = vld [vmem:[%s17252_s7 + $0xe30] sm:$0xff]  ;;  %v6492_v35 = vld [vmem:[%s17252_s7 + $0x1078] sm:$0xff]  ;;  %v15240_v9 = vcombine.low %v6468_v63, %v6476_v13 }
 0x7f4   : > { %13522 = vmatprep.subr.bf16.mxu0 %v15097_v36  ;;  %v6427_v36 = vld [vmem:[%s17252_s7 + $0xe70] sm:$0xff] }
 0x7f5   : > { %v15190_v43 = vcombine.low %v6419_v14, %v6427_v36 }
 0x7f6   : > { %13351 = vmatpush1.bf16.msra.mxu1 %v15094_v25  ;;  %v15191_v25 = vcombine.high %v6419_v14, %v6427_v36  ;;  %v6500_v36 = vld [vmem:[%s17252_s7 + $0x10b8] sm:$0xff] }
 0x7f7   : > { %13523 = vmatpush1.bf16.msra.mxu0 %v15096_v30  ;;  %13352 = vmatprep.subr.bf16.mxu1 %v15111_v40  ;;  %v15193_v30 = vcombine.high %v6420_v38, %v6428_v4  ;;  %v6435_v40 = vld [vmem:[%s17252_s7 + $0xeb0] sm:$0xff]  ;;  %v6508_v38 = vld [vmem:[%s17252_s7 + $0x10f8] sm:$0xff]  ;;  %v15256_v4 = vcombine.low %v6484_v60, %v6492_v35 }
 0x7f8   : > { %13524 = vmatprep.subr.bf16.mxu0 %v15113_v27  ;;  %v6443_v27 = vld [vmem:[%s17252_s7 + $0xef0] sm:$0xff] }
 0x7f9   : > { %v15206_v55 = vcombine.low %v6435_v40, %v6443_v27 }
 0x7fa   : > { %13353 = vmatpush1.bf16.msra.mxu1 %v15110_v8  ;;  %v15207_v8 = vcombine.high %v6435_v40, %v6443_v27  ;;  %v6516_v40 = vld [vmem:[%s17252_s7 + $0x1138] sm:$0xff] }
 0x7fb   : > { %13525 = vmatpush1.bf16.msra.mxu0 %v15112_v47  ;;  %13354 = vmatprep.subr.bf16.mxu1 %v15127_v6  ;;  %v15209_v47 = vcombine.high %v6436_v22, %v6444_v49  ;;  %v6451_v6 = vld [vmem:[%s17252_s7 + $0xf30] sm:$0xff]  ;;  %v6524_v27 = vld [vmem:[%s17252_s7 + $0x1178] sm:$0xff]  ;;  %v15272_v49 = vcombine.low %v6500_v36, %v6508_v38 }
 0x7fc   : > { %13526 = vmatprep.subr.bf16.mxu0 %v15129_v0  ;;  %v6459_v0 = vld [vmem:[%s17252_s7 + $0xf70] sm:$0xff] }
 0x7fd   : > { %v15222_v29 = vcombine.low %v6451_v6, %v6459_v0 }
 0x7fe   : > { %13355 = vmatpush1.bf16.msra.mxu1 %v15126_v58  ;;  %v15223_v58 = vcombine.high %v6451_v6, %v6459_v0  ;;  %v6532_v6 = vld [vmem:[%s17252_s7 + $0x11b8] sm:$0xff] }
 0x7ff   : > { %13527 = vmatpush1.bf16.msra.mxu0 %v15128_v59  ;;  %13356 = vmatprep.subr.bf16.mxu1 %v15143_v2  ;;  %v15225_v59 = vcombine.high %v6452_v12, %v6460_v52  ;;  %v6467_v2 = vld [vmem:[%s17252_s7 + $0xfb0] sm:$0xff]  ;;  %v6540_v0 = vld [vmem:[%s17252_s7 + $0x11f8] sm:$0xff] }
 0x800   : > { %13528 = vmatprep.subr.bf16.mxu0 %v15145_v3  ;;  %v6475_v3 = vld [vmem:[%s17252_s7 + $0xff0] sm:$0xff]  ;;  %v16699_v52 = vld [vmem:[%s19476_s29] sm:$0xff] }
 0x801   : > { %v15238_v17 = vcombine.low %v6467_v2, %v6475_v3 }
 0x802   : > { %13357 = vmatpush1.bf16.msra.mxu1 %v15142_v61  ;;  %v15239_v61 = vcombine.high %v6467_v2, %v6475_v3  ;;  %v6548_v2 = vld [vmem:[%s17252_s7 + $0x1238] sm:$0xff] }
 0x803   : > { %13529 = vmatpush1.bf16.msra.mxu0 %v15144_v18  ;;  %13358 = vmatprep.subr.bf16.mxu1 %v15159_v57  ;;  %v15241_v18 = vcombine.high %v6468_v63, %v6476_v13  ;;  %v6483_v57 = vld [vmem:[%s17252_s7 + $0x1030] sm:$0xff]  ;;  %v6556_v3 = vld [vmem:[%s17252_s7 + $0x1278] sm:$0xff]  ;;  %v16700_v63 = vld [vmem:[%s19476_s29 + $0x8] sm:$0xff] }
 0x804   : > { %13530 = vmatprep.subr.bf16.mxu0 %v15161_v41  ;;  %v6491_v41 = vld [vmem:[%s17252_s7 + $0x1070] sm:$0xff] }
 0x805   : > { %v15254_v14 = vcombine.low %v6483_v57, %v6491_v41 }
 0x806   : > { %13359 = vmatpush1.bf16.msra.mxu1 %v15158_v5  ;;  %v15255_v5 = vcombine.high %v6483_v57, %v6491_v41  ;;  %v6563_v57 = vld [vmem:[%s17252_s7 + $0x12b0] sm:$0xff] }
 0x807   : > { %13531 = vmatpush1.bf16.msra.mxu0 %v15160_v15  ;;  %13360 = vmatprep.subr.bf16.mxu1 %v15175_v11  ;;  %v15257_v15 = vcombine.high %v6484_v60, %v6492_v35  ;;  %v6499_v11 = vld [vmem:[%s17252_s7 + $0x10b0] sm:$0xff]  ;;  %v6564_v60 = vld [vmem:[%s17252_s7 + $0x12b8] sm:$0xff] }
 0x808   : > { %13532 = vmatprep.subr.bf16.mxu0 %v15177_v39  ;;  %v6507_v39 = vld [vmem:[%s17252_s7 + $0x10f0] sm:$0xff]  ;;  %v6572_v35 = vld [vmem:[%s17252_s7 + $0x12f8] sm:$0xff] }
 0x809   : > { %v15270_v22 = vcombine.low %v6499_v11, %v6507_v39  ;;  %v6571_v41 = vld [vmem:[%s17252_s7 + $0x12f0] sm:$0xff] }
 0x80a   : > { %13361 = vmatpush1.bf16.msra.mxu1 %v15174_v54  ;;  %v15271_v54 = vcombine.high %v6499_v11, %v6507_v39  ;;  %v15337_v11 = vcombine.high %v6564_v60, %v6572_v35  ;;  %v6579_v39 = vld [vmem:[%s17252_s7 + $0x1330] sm:$0xff] }
 0x80b   : > { %13533 = vmatpush1.bf16.msra.mxu0 %v15176_v1  ;;  %13362 = vmatprep.subr.bf16.mxu1 %v15191_v25  ;;  %v6515_v1 = vld [vmem:[%s17252_s7 + $0x1130] sm:$0xff] }
 0x80c   : > { %13534 = vmatprep.subr.bf16.mxu0 %v15193_v30  ;;  %v6523_v25 = vld [vmem:[%s17252_s7 + $0x1170] sm:$0xff]  ;;  %v15273_v30 = vcombine.high %v6500_v36, %v6508_v38  ;;  %v6580_v36 = vld [vmem:[%s17252_s7 + $0x1338] sm:$0xff] }
 0x80d   : > { %v15286_v12 = vcombine.low %v6515_v1, %v6523_v25  ;;  %v6588_v38 = vld [vmem:[%s17252_s7 + $0x1378] sm:$0xff] }
 0x80e   : > { %13363 = vmatpush1.bf16.msra.mxu1 %v15190_v43  ;;  %v15287_v43 = vcombine.high %v6515_v1, %v6523_v25  ;;  %v15353_v25 = vcombine.high %v6580_v36, %v6588_v38 }
 0x80f   : > { %13535 = vmatpush1.bf16.msra.mxu0 %v15192_v45  ;;  %13364 = vmatprep.subr.bf16.mxu1 %v15207_v8  ;;  %v15289_v45 = vcombine.high %v6516_v40, %v6524_v27  ;;  %v6531_v8 = vld [vmem:[%s17252_s7 + $0x11b0] sm:$0xff] }
 0x810   : > { %13536 = vmatprep.subr.bf16.mxu0 %v15209_v47  ;;  %v6539_v47 = vld [vmem:[%s17252_s7 + $0x11f0] sm:$0xff] }
 0x811   : > { %v15302_v13 = vcombine.low %v6531_v8, %v6539_v47 }
 0x812   : > { %13365 = vmatpush1.bf16.msra.mxu1 %v15206_v55  ;;  %v15303_v55 = vcombine.high %v6531_v8, %v6539_v47  ;;  %v6611_v47 = vld [vmem:[%s17252_s7 + $0x1430] sm:$0xff] }
 0x813   : > { %13537 = vmatpush1.bf16.msra.mxu0 %v15208_v42  ;;  %13366 = vmatprep.subr.bf16.mxu1 %v15223_v58  ;;  %v15305_v42 = vcombine.high %v6532_v6, %v6540_v0  ;;  %v6547_v58 = vld [vmem:[%s17252_s7 + $0x1230] sm:$0xff] }
 0x814   : > { %13538 = vmatprep.subr.bf16.mxu0 %v15225_v59  ;;  %v6555_v59 = vld [vmem:[%s17252_s7 + $0x1270] sm:$0xff] }
 0x816   : > { %13367 = vmatpush1.bf16.msra.mxu1 %v15222_v29  ;;  %v16932_v29 = vmov 7  }
 0x817   : > { %13539 = vmatpush1.bf16.msra.mxu0 %v15224_v32  ;;  %13368 = vmatprep.subr.bf16.mxu1 %v15239_v61  ;;  %v15304_v32 = vcombine.low %v6532_v6, %v6540_v0  ;;  %v15319_v61 = vcombine.high %v6547_v58, %v6555_v59  ;;  %v6619_v6 = vld [vmem:[%s17252_s7 + $0x1470] sm:$0xff]  ;;  %v6612_v0 = vld [vmem:[%s17252_s7 + $0x1438] sm:$0xff] }
 0x818   : > { %13540 = vmatprep.subr.bf16.mxu0 %v15241_v18  ;;  %v15321_v18 = vcombine.high %v6548_v2, %v6556_v3 }
 0x81a   : > { %13369 = vmatpush1.bf16.msra.mxu1 %v15238_v17  ;;  %v19479_v17 = vmov 0  }
 0x81b   : > { %13541 = vmatpush1.bf16.msra.mxu0 %v15240_v9  ;;  %13381 = vmatprep.subr.bf16.mxu1 %v15255_v5  ;;  %v15318_v9 = vcombine.low %v6547_v58, %v6555_v59  ;;  %v15320_v5 = vcombine.low %v6548_v2, %v6556_v3  ;;  %v6635_v58 = vld [vmem:[%s17252_s7 + $0x14f0] sm:$0xff]  ;;  %v6628_v59 = vld [vmem:[%s17252_s7 + $0x14b8] sm:$0xff]  ;;  %v15382_v3 = vcombine.low %v6611_v47, %v6619_v6 }
 0x81c   : > { %13553 = vmatprep.subr.bf16.mxu0 %v15257_v15  ;;  %v15335_v15 = vcombine.high %v6563_v57, %v6571_v41  ;;  %v6636_v2 = vld [vmem:[%s17252_s7 + $0x14f8] sm:$0xff] }
 0x81d   : > { %13371 = vmatmul.mubr.bf16.vlgmr.msra.gmra.mrb[36].mxu1 %v17750_v48 }
 0x81e   : > { %13543 = vmatmul.mubr.bf16.vlgmr.msra.gmra.mrb[40].mxu0 %v17750_v48  ;;  %13382 = vmatpush1.bf16.msra.mxu1 %v15254_v14  ;;  %v16931_v48 = vmov 6   ;;  %v6587_v14 = vld [vmem:[%s17252_s7 + $0x1370] sm:$0xff] }
 0x81f   : > { %13413 = vmatprep.mubr.bf16.mxu1 %v17905_v53  ;;  %13554 = vmatpush1.bf16.msra.mxu0 %v15256_v4  ;;  %v15334_v4 = vcombine.low %v6563_v57, %v6571_v41  ;;  %v15351_v1 = vcombine.high %v6579_v39, %v6587_v14  ;;  %v6652_v57 = vld [vmem:[%s17252_s7 + $0x1578] sm:$0xff] }
 0x820   : > { %13585 = vmatprep.mubr.bf16.mxu0 %v17905_v53  ;;  %13383 = vmatprep.subr.bf16.mxu1 %v15271_v54  ;;  %v15288_v53 = vcombine.low %v6516_v40, %v6524_v27  ;;  %v15336_v54 = vcombine.low %v6564_v60, %v6572_v35  ;;  %v6603_v40 = vld [vmem:[%s17252_s7 + $0x13f0] sm:$0xff]  ;;  %v6596_v27 = vld [vmem:[%s17252_s7 + $0x13b8] sm:$0xff]  ;;  %v15400_v60 = vcombine.low %v6628_v59, %v6636_v2 }
 0x821   : > { %13555 = vmatprep.subr.bf16.mxu0 %v15273_v30  ;;  %16145 = vset.pattern.permute.xlu1 %v16931_v48  ;;  %v6595_v30 = vld [vmem:[%s17252_s7 + $0x13b0] sm:$0xff] }
 0x822   : > { %13384 = vmatpush1.bf16.msra.mxu1 %v15270_v22  ;;  %13718 = vperm.xlu1 %16145, %v16699_v52   ;;  %v6604_v22 = vld [vmem:[%s17252_s7 + $0x13f8] sm:$0xff] }
 0x823   : > { %13556 = vmatpush1.bf16.msra.mxu0 %v15272_v49  ;;  %13385 = vmatprep.subr.bf16.mxu1 %v15287_v43  ;;  %v15350_v49 = vcombine.low %v6579_v39, %v6587_v14  ;;  %v15352_v43 = vcombine.low %v6580_v36, %v6588_v38  ;;  %v15369_v8 = vcombine.high %v6596_v27, %v6604_v22 }
 0x824   : > { %13557 = vmatprep.subr.bf16.mxu0 %v15289_v45  ;;  %16146 = vset.pattern.permute.xlu0 %v16931_v48  ;;  %v15367_v45 = vcombine.high %v6595_v30, %v6603_v40  ;;  %v6620_v48 = vld [vmem:[%s17252_s7 + $0x1478] sm:$0xff] }
 0x825   : > { %13722 = vperm.xlu0 %16146, %v16700_v63  }
 0x826   : > { %13386 = vmatpush1.bf16.msra.mxu1 %v15286_v12  ;;  %16147 = vset.pattern.permute.xlu1 %v16932_v29  ;;  %v15366_v12 = vcombine.low %v6595_v30, %v6603_v40  ;;  %v15401_v29 = vcombine.high %v6628_v59, %v6636_v2 }
 0x827   : > { %13558 = vmatpush1.bf16.msra.mxu0 %v15288_v53  ;;  %13387 = vmatprep.subr.bf16.mxu1 %v15303_v55  ;;  %v15383_v53 = vcombine.high %v6611_v47, %v6619_v6  ;;  %v15385_v55 = vcombine.high %v6612_v0, %v6620_v48 }
 0x828   : > { %13559 = vmatprep.subr.bf16.mxu0 %v15305_v42  ;;  %13730 = vperm.xlu1 %16147, %v16699_v52   ;;  %v15368_v52 = vcombine.low %v6596_v27, %v6604_v22  ;;  %v6627_v42 = vld [vmem:[%s17252_s7 + $0x14b0] sm:$0xff] }
 0x829   : > { %16148 = vset.pattern.permute.xlu0 %v19479_v17  ;;  %v15398_v41 = vcombine.low %v6627_v42, %v6635_v58 }
 0x82a   : > { %13388 = vmatpush1.bf16.msra.mxu1 %v15302_v13  ;;  %v15399_v13 = vcombine.high %v6627_v42, %v6635_v58 }
 0x82b   : > { %13560 = vmatpush1.bf16.msra.mxu0 %v15304_v32  ;;  %13389 = vmatprep.subr.bf16.mxu1 %v15319_v61  ;;  %v6643_v32 = vld [vmem:[%s17252_s7 + $0x1530] sm:$0xff] }
 0x82c   : > { %13561 = vmatprep.subr.bf16.mxu0 %v15321_v18  ;;  %13734 = vperm.xlu1 %16147, %v16700_v63   ;;  %v15384_v63 = vcombine.low %v6612_v0, %v6620_v48  ;;  %v6651_v61 = vld [vmem:[%s17252_s7 + $0x1570] sm:$0xff]  ;;  %v6644_v18 = vld [vmem:[%s17252_s7 + $0x1538] sm:$0xff] }
 0x82d   : > { %v15415_v35 = vcombine.high %v6643_v32, %v6651_v61  ;;  %v15414_v39 = vcombine.low %v6643_v32, %v6651_v61  ;;  %v15416_v14 = vcombine.low %v6644_v18, %v6652_v57 }
 0x82e   : > { %13390 = vmatpush1.bf16.msra.mxu1 %v15318_v9  ;;  %v6659_v9 = vld [vmem:[%s17252_s7 + $0x15b0] sm:$0xff] }
 0x82f   : > { %13562 = vmatpush1.bf16.msra.mxu0 %v15320_v5  ;;  %13391 = vmatprep.subr.bf16.mxu1 %v15335_v15  ;;  %v6667_v5 = vld [vmem:[%s17252_s7 + $0x15f0] sm:$0xff]  ;;  %v6660_v15 = vld [vmem:[%s17252_s7 + $0x15b8] sm:$0xff] }
 0x830   : > { %13563 = vmatprep.subr.bf16.mxu0 %v15337_v11  ;;  %16149 = vset.pattern.permute.xlu1 %v19479_v17  ;;  %v15417_v17 = vcombine.high %v6644_v18, %v6652_v57  ;;  %v6668_v11 = vld [vmem:[%s17252_s7 + $0x15f8] sm:$0xff]  ;;  %v15431_v36 = vcombine.high %v6659_v9, %v6667_v5  ;;  %v15430_v30 = vcombine.low %v6659_v9, %v6667_v5 }
 0x831   : > { %v15433_v38 = vcombine.high %v6660_v15, %v6668_v11  ;;  %v15432_v40 = vcombine.low %v6660_v15, %v6668_v11 }
 0x832   : > { %13392 = vmatpush1.bf16.msra.mxu1 %v15334_v4  ;;  %v6675_v4 = vld [vmem:[%s17252_s7 + $0x1630] sm:$0xff] }
 0x833   : > { %13564 = vmatpush1.bf16.msra.mxu0 %v15336_v54  ;;  %13393 = vmatprep.subr.bf16.mxu1 %v15351_v1  ;;  %v6683_v54 = vld [vmem:[%s17252_s7 + $0x1670] sm:$0xff]  ;;  %v6676_v1 = vld [vmem:[%s17252_s7 + $0x1638] sm:$0xff] }
 0x834   : > { %13565 = vmatprep.subr.bf16.mxu0 %v15353_v25  ;;  %v6684_v25 = vld [vmem:[%s17252_s7 + $0x1678] sm:$0xff]  ;;  %v15447_v27 = vcombine.high %v6675_v4, %v6683_v54  ;;  %v15446_v47 = vcombine.low %v6675_v4, %v6683_v54 }
 0x835   : > { %v15449_v22 = vcombine.high %v6676_v1, %v6684_v25  ;;  %v15448_v6 = vcombine.low %v6676_v1, %v6684_v25  ;;  %v6764_v4 = vld [vmem:[%s17252_s7 + $0x18f8] sm:$0xff]  ;;  %v6771_v25 = vld [vmem:[%s17252_s7 + $0x1930] sm:$0xff] }
 0x836   : > { %13394 = vmatpush1.bf16.msra.mxu1 %v15350_v49  ;;  %v6691_v49 = vld [vmem:[%s17252_s7 + $0x16b0] sm:$0xff] }
 0x837   : > { %13566 = vmatpush1.bf16.msra.mxu0 %v15352_v43  ;;  %13395 = vmatprep.subr.bf16.mxu1 %v15367_v45  ;;  %v6699_v43 = vld [vmem:[%s17252_s7 + $0x16f0] sm:$0xff]  ;;  %v6692_v45 = vld [vmem:[%s17252_s7 + $0x16b8] sm:$0xff] }
 0x838   : > { %13567 = vmatprep.subr.bf16.mxu0 %v15369_v8  ;;  %v6700_v8 = vld [vmem:[%s17252_s7 + $0x16f8] sm:$0xff]  ;;  %v15463_v0 = vcombine.high %v6691_v49, %v6699_v43  ;;  %v15462_v42 = vcombine.low %v6691_v49, %v6699_v43 }
 0x839   : > { %v15465_v48 = vcombine.high %v6692_v45, %v6700_v8  ;;  %v15464_v58 = vcombine.low %v6692_v45, %v6700_v8 }
 0x83a   : > { %13396 = vmatpush1.bf16.msra.mxu1 %v15366_v12  ;;  %v6707_v12 = vld [vmem:[%s17252_s7 + $0x1730] sm:$0xff] }
 0x83b   : > { %13568 = vmatpush1.bf16.msra.mxu0 %v15368_v52  ;;  %13397 = vmatprep.subr.bf16.mxu1 %v15383_v53  ;;  %v6715_v52 = vld [vmem:[%s17252_s7 + $0x1770] sm:$0xff]  ;;  %v6708_v53 = vld [vmem:[%s17252_s7 + $0x1738] sm:$0xff] }
 0x83c   : > { %13569 = vmatprep.subr.bf16.mxu0 %v15385_v55  ;;  %v6716_v55 = vld [vmem:[%s17252_s7 + $0x1778] sm:$0xff]  ;;  %v15479_v59 = vcombine.high %v6707_v12, %v6715_v52  ;;  %v15478_v32 = vcombine.low %v6707_v12, %v6715_v52  ;;  %v19289_v12 = vld [vmem:[%s18587_s1 + $0x8] sm:$0xff] }
 0x83d   : > { %v15481_v2 = vcombine.high %v6708_v53, %v6716_v55  ;;  %v15480_v61 = vcombine.low %v6708_v53, %v6716_v55  ;;  %v19291_v55 = vpop.permute.xlu1 %13694 }
 0x83e   : > { %13398 = vmatpush1.bf16.msra.mxu1 %v15382_v3  ;;  %v6723_v3 = vld [vmem:[%s17252_s7 + $0x17b0] sm:$0xff] }
 0x83f   : > { %13570 = vmatpush1.bf16.msra.mxu0 %v15384_v63  ;;  %13399 = vmatprep.subr.bf16.mxu1 %v15399_v13  ;;  %v6731_v63 = vld [vmem:[%s17252_s7 + $0x17f0] sm:$0xff]  ;;  %v6724_v13 = vld [vmem:[%s17252_s7 + $0x17b8] sm:$0xff] }
 0x840   : > { %13571 = vmatprep.subr.bf16.mxu0 %v15401_v29  ;;  %v6732_v29 = vld [vmem:[%s17252_s7 + $0x17f8] sm:$0xff]  ;;  %v15495_v18 = vcombine.high %v6723_v3, %v6731_v63  ;;  %v15494_v9 = vcombine.low %v6723_v3, %v6731_v63  ;;  %v6993_v3 = vunpack.c.l.bf16 %v19289_v12 }
 0x841   : > { %v15497_v57 = vcombine.high %v6724_v13, %v6732_v29  ;;  %v15496_v5 = vcombine.low %v6724_v13, %v6732_v29 }
 0x842   : > { %13400 = vmatpush1.bf16.msra.mxu1 %v15398_v41  ;;  %v6739_v41 = vld [vmem:[%s17252_s7 + $0x1830] sm:$0xff] }
 0x843   : > { %13572 = vmatpush1.bf16.msra.mxu0 %v15400_v60  ;;  %13401 = vmatprep.subr.bf16.mxu1 %v15415_v35  ;;  %v6747_v60 = vld [vmem:[%s17252_s7 + $0x1870] sm:$0xff]  ;;  %v6740_v35 = vld [vmem:[%s17252_s7 + $0x1838] sm:$0xff] }
 0x844   : > { %13573 = vmatprep.subr.bf16.mxu0 %v15417_v17  ;;  %v6748_v17 = vld [vmem:[%s17252_s7 + $0x1878] sm:$0xff]  ;;  %v15511_v15 = vcombine.high %v6739_v41, %v6747_v60 }
 0x845   : > { %v15513_v11 = vcombine.high %v6740_v35, %v6748_v17  ;;  %v15512_v54 = vcombine.low %v6740_v35, %v6748_v17  ;;  %v19303_v17 = vpop.permute.xlu1 %13698 }
 0x846   : > { %13402 = vmatpush1.bf16.msra.mxu1 %v15414_v39  ;;  %v6755_v39 = vld [vmem:[%s17252_s7 + $0x18b0] sm:$0xff] }
 0x847   : > { %13574 = vmatpush1.bf16.msra.mxu0 %v15416_v14  ;;  %13403 = vmatprep.subr.bf16.mxu1 %v15431_v36  ;;  %v6763_v14 = vld [vmem:[%s17252_s7 + $0x18f0] sm:$0xff]  ;;  %v15510_v36 = vcombine.low %v6739_v41, %v6747_v60  ;;  %v6820_v41 = vld [vmem:[%s17252_s7 + $0x1ab8] sm:$0xff] }
 0x848   : > { %13575 = vmatprep.subr.bf16.mxu0 %v15433_v38  ;;  %v6756_v38 = vld [vmem:[%s17252_s7 + $0x18b8] sm:$0xff]  ;;  %v15527_v1 = vcombine.high %v6755_v39, %v6763_v14  ;;  %v15526_v49 = vcombine.low %v6755_v39, %v6763_v14 }
 0x849   : > { %v15528_v43 = vcombine.low %v6756_v38, %v6764_v4  ;;  %v6828_v60 = vld [vmem:[%s17252_s7 + $0x1af8] sm:$0xff] }
 0x84a   : > { %13404 = vmatpush1.bf16.msra.mxu1 %v15430_v30  ;;  %v6779_v30 = vld [vmem:[%s17252_s7 + $0x1970] sm:$0xff]  ;;  %v15593_v14 = vcombine.high %v6820_v41, %v6828_v60 }
 0x84b   : > { %13576 = vmatpush1.bf16.msra.mxu0 %v15432_v40  ;;  %13405 = vmatprep.subr.bf16.mxu1 %v15447_v27  ;;  %v15529_v40 = vcombine.high %v6756_v38, %v6764_v4  ;;  %v6772_v27 = vld [vmem:[%s17252_s7 + $0x1938] sm:$0xff]  ;;  %v15543_v45 = vcombine.high %v6771_v25, %v6779_v30  ;;  %v6843_v38 = vld [vmem:[%s17252_s7 + $0x1b70] sm:$0xff] }
 0x84c   : > { %13577 = vmatprep.subr.bf16.mxu0 %v15449_v22  ;;  %v6780_v22 = vld [vmem:[%s17252_s7 + $0x1978] sm:$0xff] }
 0x84d   : > { %v15545_v8 = vcombine.high %v6772_v27, %v6780_v22  ;;  %v15544_v52 = vcombine.low %v6772_v27, %v6780_v22  ;;  %v19316_v27 = vld [vmem:[%s17252_s7 + $0x1bb0] sm:$0xff] }
 0x84e   : > { %13406 = vmatpush1.bf16.msra.mxu1 %v15446_v47  ;;  %v6787_v47 = vld [vmem:[%s17252_s7 + $0x19b0] sm:$0xff] }
 0x84f   : > { %13578 = vmatpush1.bf16.msra.mxu0 %v15448_v6  ;;  %13407 = vmatprep.subr.bf16.mxu1 %v15463_v0  ;;  %v6795_v6 = vld [vmem:[%s17252_s7 + $0x19f0] sm:$0xff]  ;;  %v6796_v0 = vld [vmem:[%s17252_s7 + $0x19f8] sm:$0xff] }
 0x850   : > { %13579 = vmatprep.subr.bf16.mxu0 %v15465_v48  ;;  %v15542_v48 = vcombine.low %v6771_v25, %v6779_v30  ;;  %v15559_v53 = vcombine.high %v6787_v47, %v6795_v6  ;;  %v15558_v63 = vcombine.low %v6787_v47, %v6795_v6  ;;  %v6852_v47 = vld [vmem:[%s17252_s7 + $0x1bb8] sm:$0xff] }
 0x851   : > { %v6860_v6 = vld [vmem:[%s17252_s7 + $0x1bf8] sm:$0xff] }
 0x852   : > { %13408 = vmatpush1.bf16.msra.mxu1 %v15462_v42  ;;  %v6803_v42 = vld [vmem:[%s17252_s7 + $0x1a30] sm:$0xff] }
 0x853   : > { %13580 = vmatpush1.bf16.msra.mxu0 %v15464_v58  ;;  %13409 = vmatprep.subr.bf16.mxu1 %v15479_v59  ;;  %v6811_v58 = vld [vmem:[%s17252_s7 + $0x1a70] sm:$0xff]  ;;  %v6804_v59 = vld [vmem:[%s17252_s7 + $0x1a38] sm:$0xff] }
 0x854   : > { %13581 = vmatprep.subr.bf16.mxu0 %v15481_v2  ;;  %v6812_v2 = vld [vmem:[%s17252_s7 + $0x1a78] sm:$0xff]  ;;  %v15575_v29 = vcombine.high %v6803_v42, %v6811_v58  ;;  %v15574_v35 = vcombine.low %v6803_v42, %v6811_v58 }
 0x856   : > { %13410 = vmatpush1.bf16.msra.mxu1 %v15478_v32  ;;  %v15577_v32 = vcombine.high %v6804_v59, %v6812_v2 }
 0x857   : > { %13582 = vmatpush1.bf16.msra.mxu0 %v15480_v61  ;;  %13411 = vmatprep.subr.bf16.mxu1 %v15495_v18  ;;  %v6819_v61 = vld [vmem:[%s17252_s7 + $0x1ab0] sm:$0xff] }
 0x858   : > { %13583 = vmatprep.subr.bf16.mxu0 %v15497_v57  ;;  %v6827_v18 = vld [vmem:[%s17252_s7 + $0x1af0] sm:$0xff]  ;;  %v7034_v57 = vrot.slane %v6993_v3, %v17345_v20 }
 0x859   : > { %v15591_v39 = vcombine.high %v6819_v61, %v6827_v18 }
 0x85a   : > { %13412 = vmatpush1.bf16.msra.mxu1 %v15494_v9  ;;  %v7042_v9 = vrot.slane %v6993_v3, %v17439_v50  ;;  %v7114_v4 = vrot.slane %v7034_v57, %v17345_v20 }
 0x85b   : > { %13584 = vmatpush1.bf16.msra.mxu0 %v15496_v5  ;;  %13424 = vmatprep.subr.bf16.mxu1 %v15511_v15  ;;  %v7038_v5 = vrot.slane %v6993_v3, %v17348_v21  ;;  %v15576_v15 = vcombine.low %v6804_v59, %v6812_v2 }
 0x85c   : > { %13596 = vmatprep.subr.bf16.mxu0 %v15513_v11  ;;  %v7046_v11 = vrot.slane %v6993_v3, %v17442_v51  ;;  %v7122_v25 = vrot.slane %v7042_v9, %v17345_v20 }
 0x85d   : > { %13414 = vmatmul.mubr.bf16.vlgmr.msra.gmra.mrb[36].mxu1 %v17901_v44  ;;  %v7118_v30 = vrot.slane %v7038_v5, %v17345_v20 }
 0x85e   : > { %13586 = vmatmul.mubr.bf16.vlgmr.msra.gmra.mrb[40].mxu0 %v17901_v44  ;;  %13425 = vmatpush1.bf16.msra.mxu1 %v15510_v36  ;;  %v6788_v44 = vld [vmem:[%s17252_s7 + $0x19b8] sm:$0xff]  ;;  %v6835_v36 = vld [vmem:[%s17252_s7 + $0x1b30] sm:$0xff]  ;;  %v7126_v22 = vrot.slane %v7046_v11, %v17345_v20 }
 0x85f   : > { %13456 = vmatprep.mubr.bf16.mxu1 %v17909_v56  ;;  %13597 = vmatpush1.bf16.msra.mxu0 %v15512_v54  ;;  %v15560_v13 = vcombine.low %v6788_v44, %v6796_v0  ;;  %v6836_v54 = vld [vmem:[%s17252_s7 + $0x1b38] sm:$0xff]  ;;  %v15606_v42 = vcombine.low %v6835_v36, %v6843_v38  ;;  %v6867_v11 = vld [vmem:[%s17252_s7 + $0x1c30] sm:$0xff] }
 0x860   : > { %13628 = vmatprep.mubr.bf16.mxu0 %v17909_v56  ;;  %13426 = vmatprep.subr.bf16.mxu1 %v15527_v1  ;;  %v15561_v56 = vcombine.high %v6788_v44, %v6796_v0  ;;  %v6844_v1 = vld [vmem:[%s17252_s7 + $0x1b78] sm:$0xff]  ;;  %v13711_v0 = vpop.permute.xlu1 %13710 }
 0x861   : > { %13598 = vmatprep.subr.bf16.mxu0 %v15529_v40  ;;  %v15590_v40 = vcombine.low %v6819_v61, %v6827_v18  ;;  %v15608_v58 = vcombine.low %v6836_v54, %v6844_v1 }
 0x862   : > { %13427 = vmatpush1.bf16.msra.mxu1 %v15526_v49  ;;  %v15592_v49 = vcombine.low %v6820_v41, %v6828_v60 }
 0x863   : > { %13599 = vmatpush1.bf16.msra.mxu0 %v15528_v43  ;;  %13428 = vmatprep.subr.bf16.mxu1 %v15543_v45  ;;  %v13707_v43 = vpop.permute.xlu0 %13706  ;;  %v15607_v45 = vcombine.high %v6835_v36, %v6843_v38 }
 0x864   : > { %13600 = vmatprep.subr.bf16.mxu0 %v15545_v8  ;;  %v6859_v8 = vld [vmem:[%s17252_s7 + $0x1bf0] sm:$0xff] }
 0x866   : > { %13429 = vmatpush1.bf16.msra.mxu1 %v15542_v48  ;;  %v15609_v48 = vcombine.high %v6836_v54, %v6844_v1  ;;  %v6868_v54 = vld [vmem:[%s17252_s7 + $0x1c38] sm:$0xff] }
 0x867   : > { %13601 = vmatpush1.bf16.msra.mxu0 %v15544_v52  ;;  %13430 = vmatprep.subr.bf16.mxu1 %v15559_v53  ;;  %v6876_v1 = vld [vmem:[%s17252_s7 + $0x1c78] sm:$0xff] }
 0x868   : > { %13602 = vmatprep.subr.bf16.mxu0 %v15561_v56 }
 0x86a   : > { %13431 = vmatpush1.bf16.msra.mxu1 %v15558_v63 }
 0x86b   : > { %13603 = vmatpush1.bf16.msra.mxu0 %v15560_v13  ;;  %13432 = vmatprep.subr.bf16.mxu1 %v15575_v29  ;;  %v15623_v13 = vcombine.high %v19316_v27, %v6859_v8  ;;  %v15625_v29 = vcombine.high %v6852_v47, %v6860_v6 }
 0x86c   : > { %13604 = vmatprep.subr.bf16.mxu0 %v15577_v32 }
 0x86e   : > { %13433 = vmatpush1.bf16.msra.mxu1 %v15574_v35 }
 0x86f   : > { %13605 = vmatpush1.bf16.msra.mxu0 %v15576_v15  ;;  %13434 = vmatprep.subr.bf16.mxu1 %v15591_v39  ;;  %v6875_v39 = vld [vmem:[%s17252_s7 + $0x1c70] sm:$0xff] }
 0x870   : > { %v13114_v44 = vpop.f32.mrb[32].mxu1  ;;  %13606 = vmatprep.subr.bf16.mxu0 %v15593_v14 }
 0x871   : > { %v15889_v52 = vadd.f32 %v13114_v44, %v7114_v4  ;;  %v13286_v53 = vpop.f32.mrb[36].mxu0  ;;  %v13116_v56 = vpop.f32.mrb[33].mxu1 }
 0x872   : > { %v15893_v59 = vadd.f32 %v13286_v53, %v7122_v25  ;;  %v15890_v2 = vadd.f32 %v13116_v56, %v7118_v30  ;;  %v13288_v3 = vpop.f32.mrb[37].mxu0  ;;  %v13118_v63 = vpop.f32.mrb[34].mxu1  ;;  %13435 = vmatpush1.bf16.msra.mxu1 %v15590_v40  ;;  %v6899_v56 = vld [vmem:[%s17252_s7 + $0x1d30] sm:$0xff] }
 0x873   : > { %v13701_v32 = vmul.f32 %v15889_v52, %v19291_v55  ;;  %v15894_v61 = vadd.f32 %v13288_v3, %v7126_v22  ;;  %v15891_v18 = vadd.f32 %v13118_v63, %v7114_v4  ;;  %v13290_v57 = vpop.f32.mrb[38].mxu0  ;;  %13607 = vmatpush1.bf16.msra.mxu0 %v15592_v49  ;;  %v13120_v41 = vpop.f32.mrb[35].mxu1  ;;  %13436 = vmatprep.subr.bf16.mxu1 %v15607_v45 }
 0x874   : > { %v13702_v60 = vmul.f32 %v15890_v2, %v19291_v55  ;;  %v13713_v35 = vmul.f32 %v15893_v59, %v13707_v43  ;;  %v15895_v9 = vadd.f32 %v13290_v57, %v7122_v25  ;;  %v15892_v5 = vadd.f32 %v13120_v41, %v7118_v30  ;;  %v13292_v15 = vpop.f32.mrb[39].mxu0  ;;  %13608 = vmatprep.subr.bf16.mxu0 %v15609_v48  ;;  %v6884_v48 = vld [vmem:[%s17252_s7 + $0x1cb8] sm:$0xff] }
 0x875   : > { %v13714_v14 = vmul.f32 %v15894_v61, %v13707_v43  ;;  %v13703_v36 = vmul.f32 %v15891_v18, %v19303_v17  ;;  %v15896_v38 = vadd.f32 %v13292_v15, %v7126_v22  ;;  %v15622_v4 = vcombine.low %v19316_v27, %v6859_v8  ;;  %v6883_v8 = vld [vmem:[%s17252_s7 + $0x1cb0] sm:$0xff]  ;;  %v6908_v59 = vld [vmem:[%s17252_s7 + $0x1d78] sm:$0xff] }
 0x876   : > { %v19331_v40 = vadd.f32 %v13713_v35, %v13701_v32  ;;  %v13704_v55 = vmul.f32 %v15892_v5, %v19303_v17  ;;  %v13715_v25 = vmul.f32 %v15895_v9, %v13711_v0  ;;  %13437 = vmatpush1.bf16.msra.mxu1 %v15606_v42  ;;  %v15624_v30 = vcombine.low %v6852_v47, %v6860_v6  ;;  %v6891_v17 = vld [vmem:[%s17252_s7 + $0x1cf0] sm:$0xff]  ;;  %v6892_v47 = vld [vmem:[%s17252_s7 + $0x1cf8] sm:$0xff] }
 0x877   : > { %v19334_v49 = vadd.f32 %v13714_v14, %v13702_v60  ;;  %v13716_v43 = vmul.f32 %v15896_v38, %v13711_v0  ;;  %13609 = vmatpush1.bf16.msra.mxu0 %v15608_v58  ;;  %13438 = vmatprep.subr.bf16.mxu1 %v15623_v13  ;;  %v15639_v22 = vcombine.high %v6867_v11, %v6875_v39  ;;  %v6907_v42 = vld [vmem:[%s17252_s7 + $0x1d70] sm:$0xff]  ;;  %v6900_v58 = vld [vmem:[%s17252_s7 + $0x1d38] sm:$0xff] }
 0x878   : > { %v19336_v27 = vadd.f32 %v13715_v25, %v13703_v36  ;;  %13610 = vmatprep.subr.bf16.mxu0 %v15625_v29  ;;  %v15641_v45 = vcombine.high %v6868_v54, %v6876_v1  ;;  %v15638_v6 = vcombine.low %v6867_v11, %v6875_v39  ;;  %v15640_v0 = vcombine.low %v6868_v54, %v6876_v1  ;;  %v6915_v29 = vld [vmem:[%s17252_s7 + $0x1db0] sm:$0xff]  ;;  %v6916_v61 = vld [vmem:[%s17252_s7 + $0x1db8] sm:$0xff] }
 0x879   : > { %v19340_v44 = vadd.f32 %v13716_v43, %v13704_v55  ;;  %v15655_v52 = vcombine.high %v6883_v8, %v6891_v17  ;;  %v15657_v53 = vcombine.high %v6884_v48, %v6892_v47  ;;  %v15654_v2 = vcombine.low %v6883_v8, %v6891_v17  ;;  %v6923_v32 = vld [vmem:[%s17252_s7 + $0x1df0] sm:$0xff]  ;;  %v6924_v18 = vld [vmem:[%s17252_s7 + $0x1df8] sm:$0xff] }
 0x87a   : > { %13439 = vmatpush1.bf16.msra.mxu1 %v15622_v4  ;;  %v15656_v3 = vcombine.low %v6884_v48, %v6892_v47  ;;  %v15671_v63 = vcombine.high %v6899_v56, %v6907_v42  ;;  %v15673_v13 = vcombine.high %v6900_v58, %v6908_v59  ;;  %v15670_v57 = vcombine.low %v6899_v56, %v6907_v42  ;;  %v6931_v9 = vld [vmem:[%s17252_s7 + $0x1e30] sm:$0xff]  ;;  %v6932_v15 = vld [vmem:[%s17252_s7 + $0x1e38] sm:$0xff] }
 0x87b   : > { %13611 = vmatpush1.bf16.msra.mxu0 %v15624_v30  ;;  %13440 = vmatprep.subr.bf16.mxu1 %v15639_v22  ;;  %v15672_v41 = vcombine.low %v6900_v58, %v6908_v59  ;;  %v15687_v60 = vcombine.high %v6915_v29, %v6923_v32  ;;  %v15689_v35 = vcombine.high %v6916_v61, %v6924_v18  ;;  %v6939_v5 = vld [vmem:[%s17252_s7 + $0x1e70] sm:$0xff]  ;;  %v6940_v11 = vld [vmem:[%s17252_s7 + $0x1e78] sm:$0xff] }
 0x87c   : > { %13612 = vmatprep.subr.bf16.mxu0 %v15641_v45  ;;  %v15686_v39 = vcombine.low %v6915_v29, %v6923_v32  ;;  %v15688_v14 = vcombine.low %v6916_v61, %v6924_v18  ;;  %v15703_v36 = vcombine.high %v6931_v9, %v6939_v5  ;;  %v15705_v38 = vcombine.high %v6932_v15, %v6940_v11  ;;  %v6947_v4 = vld [vmem:[%s17252_s7 + $0x1eb0] sm:$0xff]  ;;  %v6948_v1 = vld [vmem:[%s17252_s7 + $0x1eb8] sm:$0xff] }
 0x87d   : > { %v6955_v54 = vld [vmem:[%s17252_s7 + $0x1ef0] sm:$0xff]  ;;  %v6956_v55 = vld [vmem:[%s17252_s7 + $0x1ef8] sm:$0xff]  ;;  %v15702_v25 = vcombine.low %v6931_v9, %v6939_v5  ;;  %v15704_v30 = vcombine.low %v6932_v15, %v6940_v11  ;;  %v6994_v32 = vunpack.c.h.bf16 %v19289_v12 }
 0x87e   : > { %13441 = vmatpush1.bf16.msra.mxu1 %v15638_v6  ;;  %v15719_v43 = vcombine.high %v6947_v4, %v6955_v54  ;;  %v15721_v22 = vcombine.high %v6948_v1, %v6956_v55  ;;  %v6963_v45 = vld [vmem:[%s17252_s7 + $0x1f30] sm:$0xff]  ;;  %v6964_v17 = vld [vmem:[%s17252_s7 + $0x1f38] sm:$0xff]  ;;  %v15718_v47 = vcombine.low %v6947_v4, %v6955_v54  ;;  %v15720_v6 = vcombine.low %v6948_v1, %v6956_v55 }
 0x87f   : > { %13613 = vmatpush1.bf16.msra.mxu0 %v15640_v0  ;;  %13442 = vmatprep.subr.bf16.mxu1 %v15655_v52  ;;  %v6971_v8 = vld [vmem:[%s17252_s7 + $0x1f70] sm:$0xff]  ;;  %v6972_v48 = vld [vmem:[%s17252_s7 + $0x1f78] sm:$0xff]  ;;  %v7050_v18 = vrot.slane %v6994_v32, %v17345_v20 }
 0x880   : > { %13614 = vmatprep.subr.bf16.mxu0 %v15657_v53  ;;  %v15735_v0 = vcombine.high %v6963_v45, %v6971_v8  ;;  %v15737_v52 = vcombine.high %v6964_v17, %v6972_v48  ;;  %v6979_v53 = vld [vmem:[%s17252_s7 + $0x1fb0] sm:$0xff]  ;;  %v6980_v42 = vld [vmem:[%s17252_s7 + $0x1fb8] sm:$0xff]  ;;  %v15734_v59 = vcombine.low %v6963_v45, %v6971_v8 }
 0x881   : > { %v6987_v56 = vld [vmem:[%s17252_s7 + $0x1ff0] sm:$0xff]  ;;  %v6988_v58 = vld [vmem:[%s17252_s7 + $0x1ff8] sm:$0xff] }
 0x882   : > { %13443 = vmatpush1.bf16.msra.mxu1 %v15654_v2  ;;  %v15736_v2 = vcombine.low %v6964_v17, %v6972_v48  ;;  %v15752_v29 = vcombine.low %v6980_v42, %v6988_v58  ;;  %v16701_v9 = vld [vmem:[%s18257_s18] sm:$0x1f] }
 0x883   : > { %13615 = vmatpush1.bf16.msra.mxu0 %v15656_v3  ;;  %13444 = vmatprep.subr.bf16.mxu1 %v15671_v63  ;;  %v15751_v3 = vcombine.high %v6979_v53, %v6987_v56  ;;  %v15753_v63 = vcombine.high %v6980_v42, %v6988_v58  ;;  %v3706_v5 = vunpack.c.l.bf16 %v16701_v9 }
 0x884   : > { %13616 = vmatprep.subr.bf16.mxu0 %v15673_v13  ;;  %v15750_v13 = vcombine.low %v6979_v53, %v6987_v56 }
 0x885   : > { %v3713_v54 = vrot.slane %v3706_v5, %v17345_v20  ;;  %v3721_v56 = vrot.slane %v3706_v5, %v17439_v50 }
 0x886   : > { %13445 = vmatpush1.bf16.msra.mxu1 %v15670_v57  ;;  %v7058_v57 = vrot.slane %v6994_v32, %v17439_v50 }
 0x887   : > { %13617 = vmatpush1.bf16.msra.mxu0 %v15672_v41  ;;  %13446 = vmatprep.subr.bf16.mxu1 %v15687_v60  ;;  %v7054_v41 = vrot.slane %v6994_v32, %v17348_v21  ;;  %v7062_v60 = vrot.slane %v6994_v32, %v17442_v51  ;;  %v3725_v32 = vrot.slane %v3706_v5, %v17442_v51 }
 0x888   : > { %13618 = vmatprep.subr.bf16.mxu0 %v15689_v35  ;;  %v7130_v35 = vrot.slane %v7050_v18, %v17345_v20  ;;  %v7138_v15 = vrot.slane %v7058_v57, %v17345_v20  ;;  %v3746_v9 = vrot.slane %v3721_v56, %v17345_v20 }
 0x889   : > { %v7134_v11 = vrot.slane %v7054_v41, %v17345_v20  ;;  %v7142_v12 = vrot.slane %v7062_v60, %v17345_v20  ;;  %v3750_v51 = vrot.slane %v3725_v32, %v17345_v20 }
 0x88a   : > { %13447 = vmatpush1.bf16.msra.mxu1 %v15686_v39 }
 0x88b   : > { %13619 = vmatpush1.bf16.msra.mxu0 %v15688_v14  ;;  %13448 = vmatprep.subr.bf16.mxu1 %v15703_v36 }
 0x88c   : > { %13620 = vmatprep.subr.bf16.mxu0 %v15705_v38 }
 0x88e   : > { %13449 = vmatpush1.bf16.msra.mxu1 %v15702_v25 }
 0x88f   : > { %13621 = vmatpush1.bf16.msra.mxu0 %v15704_v30  ;;  %13450 = vmatprep.subr.bf16.mxu1 %v15719_v43  ;;  %v3717_v43 = vrot.slane %v3706_v5, %v17348_v21 }
 0x890   : > { %13622 = vmatprep.subr.bf16.mxu0 %v15721_v22 }
 0x892   : > { %13451 = vmatpush1.bf16.msra.mxu1 %v15718_v47 }
 0x893   : > { %13623 = vmatpush1.bf16.msra.mxu0 %v15720_v6  ;;  %13452 = vmatprep.subr.bf16.mxu1 %v15735_v0 }
 0x894   : > { %13624 = vmatprep.subr.bf16.mxu0 %v15737_v52 }
 0x896   : > { %13453 = vmatpush1.bf16.msra.mxu1 %v15734_v59 }
 0x897   : > { %13625 = vmatpush1.bf16.msra.mxu0 %v15736_v2  ;;  %13454 = vmatprep.subr.bf16.mxu1 %v15751_v3  ;;  %v3738_v3 = vrot.slane %v3713_v54, %v17345_v20 }
 0x898   : > { %13626 = vmatprep.subr.bf16.mxu0 %v15753_v63 }
 0x89a   : > { %13455 = vmatpush1.bf16.msra.mxu1 %v15750_v13 }
 0x89b   : > { %13627 = vmatpush1.bf16.msra.mxu0 %v15752_v29  ;;  %v3742_v29 = vrot.slane %v3717_v43, %v17345_v20  ;;  %v15870_v20 = vadd.f32 %v18225_v26, %v3750_v51  ;;  %v19480_v43 = vld [vmem:[#allocation19_spill] sm:$0xff] }
 0x89d   : > { %13457 = vmatmul.mubr.bf16.vlgmr.msra.gmra.mrb[36].mxu1 %v17903_v46 }
 0x89e   : > { %13629 = vmatmul.mubr.bf16.vlgmr.msra.gmra.mrb[40].mxu0 %v17903_v46 }
 0x8a1   : > { %v13719_v61 = vpop.permute.xlu1 %13718 }
 0x8a4   : > { %v13723_v14 = vpop.permute.xlu0 %13722 }
 0x8a7   : > { %v13731_v46 = vpop.permute.xlu1 %13730 }
 0x8ab   : > { %v13735_v42 = vpop.permute.xlu1 %13734 }
 0x970   : > { %v13458_v39 = vpop.f32.mrb[36].mxu1 }
 0x971   : > { %v15897_v36 = vadd.f32 %v13458_v39, %v7130_v35  ;;  %v13630_v38 = vpop.f32.mrb[40].mxu0  ;;  %v13460_v4 = vpop.f32.mrb[37].mxu1 }
 0x972   : > { %v15901_v1 = vadd.f32 %v13630_v38, %v7138_v15  ;;  %v15898_v55 = vadd.f32 %v13460_v4, %v7134_v11  ;;  %v13632_v25 = vpop.f32.mrb[41].mxu0  ;;  %v13462_v30 = vpop.f32.mrb[38].mxu1 }
 0x973   : > { %v13725_v22 = vmul.f32 %v15897_v36, %v13719_v61  ;;  %v15902_v45 = vadd.f32 %v13632_v25, %v7142_v12  ;;  %v15899_v8 = vadd.f32 %v13462_v30, %v7130_v35  ;;  %v13634_v17 = vpop.f32.mrb[42].mxu0  ;;  %v13464_v48 = vpop.f32.mrb[39].mxu1  ;;  %v15865_v35 = vadd.f32 %v18217_v24, %v3738_v3 }
 0x974   : > { %v13737_v47 = vmul.f32 %v15901_v1, %v13731_v46  ;;  %v13726_v6 = vmul.f32 %v15898_v55, %v13719_v61  ;;  %v15903_v0 = vadd.f32 %v13634_v17, %v7138_v15  ;;  %v15900_v52 = vadd.f32 %v13464_v48, %v7134_v11  ;;  %v13636_v53 = vpop.f32.mrb[43].mxu0 }
 0x975   : > { %v13738_v58 = vmul.f32 %v15902_v45, %v13731_v46  ;;  %v15904_v59 = vadd.f32 %v13636_v53, %v7142_v12  ;;  %v13727_v2 = vmul.f32 %v15899_v8, %v13723_v14  ;;  %v15866_v46 = vadd.f32 %v18223_v23, %v3742_v29 }
 0x976   : > { %v13753_v63 = vadd.f32 %v13737_v47, %v13725_v22  ;;  %v13739_v21 = vmul.f32 %v15903_v0, %v13735_v42  ;;  %v13728_v13 = vmul.f32 %v15900_v52, %v13723_v14  ;;  %v15867_v12 = vadd.f32 %v18229_v28, %v3738_v3 }
 0x977   : > { %v13754_v18 = vadd.f32 %v13738_v58, %v13726_v6  ;;  %v13740_v61 = vmul.f32 %v15904_v59, %v13735_v42  ;;  %v15868_v24 = vadd.f32 %v18233_v33, %v3742_v29 }
 0x978   : > { %v13761_v57 = vadd.f32 %v13753_v63, %v19331_v40  ;;  %v13755_v41 = vadd.f32 %v13739_v21, %v13727_v2 }
 0x979   : > { %v13762_v50 = vadd.f32 %v13754_v18, %v19334_v49  ;;  %v13756_v60 = vadd.f32 %v13740_v61, %v13728_v13 }
 0x97a   : > { %v13763_v15 = vadd.f32 %v13755_v41, %v19336_v27  ;;  %v13765_v11 = vadd.f32 %v13761_v57, %v19017_v7  ;;  %v15869_v7 = vadd.f32 %v18219_v16, %v3746_v9 }
 0x97b   : > { %v13764_v5 = vadd.f32 %v13756_v60, %v19340_v44  ;;  %v13766_v40 = vadd.f32 %v13762_v50, %v19022_v62  ;;  %v15871_v62 = vadd.f32 %v18231_v31, %v3746_v9 }
 0x97c   : > { %v13767_v49 = vadd.f32 %v13763_v15, %v19027_v10  ;;  %v13798_v39 = vadd.f32 %v15865_v35, %v13765_v11  ;;  %v15872_v10 = vadd.f32 %v18235_v34, %v3750_v51 }
 0x97d   : > { %v13768_v14 = vadd.f32 %v13764_v5, %v19030_v19  ;;  %v13799_v27 = vadd.f32 %v15866_v46, %v13766_v40 }
 0x97e   : > { %v13802_v36 = vmax.f32 %v13798_v39, 0.0  ;;  %v13800_v23 = vadd.f32 %v15867_v12, %v13767_v49 }
 0x97f   : > { %v13803_v38 = vmax.f32 %v13799_v27, 0.0  ;;  %v13801_v44 = vadd.f32 %v15868_v24, %v13768_v14 }
 0x980   : > { %v13806_v4 = vmul.f32 %v15869_v7, %v13802_v36  ;;  %v13804_v28 = vmax.f32 %v13800_v23, 0.0 }
 0x981   : > { %v13807_v54 = vmul.f32 %v15870_v20, %v13803_v38  ;;  %v13805_v33 = vmax.f32 %v13801_v44, 0.0 }
 0x982   : > { %v13808_v1 = vmul.f32 %v15871_v62, %v13804_v28 }
 0x983   : > { %v13810_v19 = vadd.f32 %v13807_v54, %v13806_v4  ;;  %v13809_v55 = vmul.f32 %v15872_v10, %v13805_v33 }
 0x985   : > { %13811 = vadd.xlane.f32.xlu0 %v13810_v19  ;;  %v13813_v16 = vadd.f32 %v13809_v55, %v13808_v1 }
 0x987   : > { %13814 = vadd.xlane.f32.xlu1 %v13813_v16 }
 0xa12   : > { %v13812_v25 = vpop.xlane.xlu0 %13811 }
 0xa13   : > { %v13816_v26 = vadd.f32 %v13812_v25, %v18330_v37 }
 0xa14   : > { %v13815_v30 = vpop.xlane.xlu1 %13814 }
 0xa15   : > { %v13817_v22 = vadd.f32 %v13815_v30, %v19480_v43  ;;  %13820 = vperm.xlu0 %16148, %v13816_v26  }
 0xa17   : > { %13825 = vperm.xlu1 %16149, %v13817_v22  }
 0xa94   : > { %v13821_v31 = vpop.permute.xlu0 %13820 }
 0xa95   : > { %13828 = vst [vmem:[%s703_s16] sm:$0xff] %v13821_v31 }
 0xa96   : > { %v13826_v34 = vpop.permute.xlu1 %13825 }
 0xa97   : > { %13829 = vst [vmem:[%s703_s16 + $0x8] sm:$0xff] %v13826_v34 }
 0xa98 PF: > { %s31_s26 = sadd.s32 1, %s16910_s26   ;;  %s19482_s19 = sld [smem:[#allocation16_spill]] }
 0xa99   : > { %p28_p10 = scmp.ge.s32.totalorder %s31_s26, 4   ;;  %s19483_s23 = sld [smem:[#allocation18_spill]] }
 0xa9a   : > { %s19484_s30 = sld [smem:[#allocation17_spill]]  ;;  %s19485_s21 = smov %s16894_s22 }
 0xa9b   : > { %s19487_s24 = smov %s16906_s25  ;;  %30 = sbr.rel (!%p28_p10) target bundleno = 16 (0x10), region = 180 }
 0xa9e   : > { %s19486_s22 = smov %s19482_s19 }
 0xaa0   : > { %s19488_s25 = smov %s19484_s30 }
 0xaa2   :  { %13851 = vsyncpa [#allocation6], 1 }
 0xaa3   :  { %13853 = vsyncpa [#allocation6 + $0x1], 1 }
 0xaa4   :  { %13854 = vsyncpa [#allocation8], 1 }
 0xaa5   :  { %13856 = vsyncpa [#allocation8 + $0x1], 1 }
 0xaa6   :  { %13857 = vsyncpa [#allocation11], 1 }
 0xaa7   :  { %13859 = vsyncpa [#allocation11 + $0x1], 1 }

</bundles_post_ra>
